<compile_context>
chip_gen: v7x
topology: tpu7x:2x2x1
jax: 0.10.0
libtpu: 0.0.40
codegen_flags: <defaults>
</compile_context>

<pallas_src>
import functools

import jax
import jax.numpy as jnp
from jax import lax
from jax.experimental import pallas as pl
from jax.experimental.pallas import tpu as pltpu


def _halo(w):
    # number of halo rows for the flat conv layout: >= w + 1, multiple of 8
    return ((w + 1 + 7) // 8) * 8


# --------------------------------------------------------------------------
# Fused network kernel (per batch element)
# --------------------------------------------------------------------------
def _point_net_kernel(
    x_ref, m1_ref, m2_ref, m3_ref, s2_ref, s4_ref, base_ref,
    w1_ref, b1_ref, w2_ref, b2_ref, w3_ref, b3_ref, w4_ref, b4_ref,
    wh_ref, bh_ref,
    out_ref,
    sc1, sc2, sc3, sc4, sch,
    *, H, W, n_valid,
):
    HW = H * W
    H2, W2 = H // 2, W // 2
    HW2 = H2 * W2
    hc, wc = H // 4, W // 4
    HWc = hc * wc
    P1, P2, P3 = _halo(W), _halo(W2), _halo(wc)

    def conv3x3(x, w_ref, b_ref, msk_ref, sc, Wl, HWl, P, pad_val):
        """'same' 3x3 stride-1 conv on a flat (HWl, Cin) activation.

        The activation is staged (with `pad_val` halo rows) into VMEM scratch;
        the 9 kernel taps are read as shifted (HWl, Cin) windows and reduced
        with 9 small MXU dots.  Left/right border columns (where the flat
        layout would wrap into the adjacent image row) are fixed via masks.
        """
        cin = x.shape[1]
        cout = b_ref.shape[1]
        fill = jnp.full((P, cin), pad_val, dtype=jnp.float32)
        sc[0:P, :] = fill
        sc[P:P + HWl, :] = x
        sc[P + HWl:P + HWl + P, :] = fill

        left_ok = msk_ref[:, 0:1] > 0.5    # output column j > 0
        right_ok = msk_ref[:, 1:2] > 0.5   # output column j < Wl - 1

        acc = jnp.zeros((HWl, cout), dtype=jnp.float32)
        for di in range(3):
            for dj in range(3):
                t = di * 3 + dj
                off = P + (di - 1) * Wl + (dj - 1)
                v = sc[off:off + HWl, :]
                if dj == 0:
                    v = jnp.where(left_ok, v, pad_val)
                elif dj == 2:
                    v = jnp.where(right_ok, v, pad_val)
                acc = acc + jnp.dot(
                    v, w_ref[t * cin:(t + 1) * cin, :],
                    preferred_element_type=jnp.float32)
        return acc + b_ref[...]

    # --- backbone (Normalize folded into w1/b1; halo value 0.5 == image mean) ---
    x0 = x_ref[...]                                                       # (HW, 3)
    a1 = jnp.maximum(conv3x3(x0, w1_ref, b1_ref, m1_ref, sc1, W, HW, P1, 0.5), 0.0)
    a2 = jnp.maximum(conv3x3(a1, w2_ref, b2_ref, m1_ref, sc2, W, HW, P1, 0.0), 0.0)
    a2 = jnp.dot(s2_ref[...], a2, preferred_element_type=jnp.float32)     # stride 2
    a3 = jnp.maximum(conv3x3(a2, w3_ref, b3_ref, m2_ref, sc3, W2, HW2, P2, 0.0), 0.0)
    a4 = jnp.maximum(conv3x3(a3, w4_ref, b4_ref, m2_ref, sc4, W2, HW2, P2, 0.0), 0.0)
    feat = jnp.dot(s4_ref[...], a4, preferred_element_type=jnp.float32)   # stride 2

    # --- merged heads: one lane-dense (HWc, 128) slab ---
    h = conv3x3(feat, wh_ref, bh_ref, m3_ref, sch, wc, HWc, P3, 0.0)

    # epilogue: col 0 -> sigmoid score; cols 1..2 -> clamp(base + tanh*step);
    #           cols 3..n_valid-1 -> descriptor (identity); rest -> 0
    col = lax.broadcasted_iota(jnp.int32, h.shape, 1)
    cell = H // hc
    step = (cell - 1) / 2.0
    base = jnp.where(col == 1, base_ref[:, 0:1], base_ref[:, 1:2])
    cmax = jnp.where(col == 1, float(W - 1), float(H - 1))
    coord = jnp.clip(base + jnp.tanh(h) * step, 0.0, cmax)
    score = jax.nn.sigmoid(h)
    out = jnp.where(col == 0, score, jnp.where(col <= 2, coord, h))
    out_ref[...] = jnp.where(col < n_valid, out, 0.0)


# --------------------------------------------------------------------------
# Parameters (deterministic synthetic stand-in weights)
# --------------------------------------------------------------------------
def _conv_param(key, cin, cout, k=3, scale=0.05):
    kw, kb = jax.random.split(key)
    w = scale * jax.random.normal(kw, (k * k * cin, cout), jnp.float32)
    b = scale * jax.random.normal(kb, (1, cout), jnp.float32)
    return w, b


def init_params(key, c_in=3, c1=16, c2=32, c3=32, c4=64, c_desc=64):
    keys = jax.random.split(key, 7)
    p = {}
    p["w1"], p["b1"] = _conv_param(keys[0], c_in, c1)
    p["w2"], p["b2"] = _conv_param(keys[1], c1, c2)
    p["w3"], p["b3"] = _conv_param(keys[2], c2, c3)
    p["w4"], p["b4"] = _conv_param(keys[3], c3, c4)
    p["ws"], p["bs"] = _conv_param(keys[4], c4, 1)       # score head
    p["wc"], p["bc"] = _conv_param(keys[5], c4, 2)       # coord (center-shift) head
    p["wd"], p["bd"] = _conv_param(keys[6], c4, c_desc)  # descriptor head
    return p


# --------------------------------------------------------------------------
# PointModel forward (is_test=True)
# --------------------------------------------------------------------------
def point_model_forward(img, params):
    """img: (B, 3, H, W) float32 NCHW.
    Returns (score (B,1,hc,wc), coord (B,2,hc,wc), desc (B,Cd,hc,wc))."""
    B, C, H, W = img.shape
    assert H % 4 == 0 and W % 4 == 0, "two stride-2 stages require H, W % 4 == 0"
    hc, wc = H // 4, W // 4
    HW, HW2, HWc = H * W, (H // 2) * (W // 2), hc * wc
    c1 = params["w1"].shape[1]
    c2 = params["w2"].shape[1]
    c3 = params["w3"].shape[1]
    c4 = params["w4"].shape[1]
    c_desc = params["wd"].shape[1]
    n_valid = 3 + c_desc            # score(1) + coord(2) + desc
    NH = 128                        # lane-dense merged-head width

    # NCHW -> flat NHWC rows (channels on the 128-lane axis)
    x = jnp.transpose(img, (0, 2, 3, 1)).reshape(B * HW, C)

    # fold Normalize(mean=0.5, std=0.225) into conv1 (exact, incl. zero padding)
    inv_std = 1.0 / 0.225
    w1 = params["w1"] * inv_std
    b1 = params["b1"] - (0.5 * inv_std) * jnp.sum(params["w1"], axis=0, keepdims=True)

    # merge + lane-pad the three heads: [score | coord | desc | 0] -> (9*c4, 128)
    wh = jnp.concatenate([params["ws"], params["wc"], params["wd"]], axis=1)
    bh = jnp.concatenate([params["bs"], params["bc"], params["bd"]], axis=1)
    wh = jnp.pad(wh, ((0, 0), (0, NH - n_valid)))
    bh = jnp.pad(bh, ((0, 0), (0, NH - n_valid)))

    # (left-ok, right-ok) border masks per resolution (compile-time constants)
    def border_mask(h, w):
        j = jnp.tile(jnp.arange(w), h)
        return jnp.stack([j > 0, j < w - 1], axis=1).astype(jnp.float32)

    m1 = border_mask(H, W)
    m2 = border_mask(H // 2, W // 2)
    m3 = border_mask(hc, wc)

    # exact stride-2 row-selection matrices (downsample expressed as a matmul)
    def sel_matrix(h, w):
        k = jnp.arange((h // 2) * (w // 2))
        rows = 2 * (k // (w // 2)) * w + 2 * (k % (w // 2))
        return (rows[:, None] == jnp.arange(h * w)[None, :]).astype(jnp.float32)

    s2 = sel_matrix(H, W)            # (HW2, HW)
    s4 = sel_matrix(H // 2, W // 2)  # (HWc, HW2)

    # cell-center base grid (x, y) over the (hc, wc) cells
    cell = H // hc
    step = (cell - 1) / 2.0
    k = jnp.arange(HWc)
    base = jnp.stack([(k % wc).astype(jnp.float32) * cell + step,
                      (k // wc).astype(jnp.float32) * cell + step], axis=1)

    P1, P2, P3 = _halo(W), _halo(W // 2), _halo(wc)
    full = lambda a: pl.BlockSpec(a.shape, lambda b: (0, 0))

    out = pl.pallas_call(
        functools.partial(_point_net_kernel, H=H, W=W, n_valid=n_valid),
        out_shape=jax.ShapeDtypeStruct((B * HWc, NH), jnp.float32),
        grid_spec=pltpu.PrefetchScalarGridSpec(
            num_scalar_prefetch=0,
            grid=(B,),
            in_specs=[
                pl.BlockSpec((HW, C), lambda b: (b, 0)),   # per-image flat rows
                full(m1), full(m2), full(m3),
                full(s2), full(s4), full(base),
                full(w1), full(b1),
                full(params["w2"]), full(params["b2"]),
                full(params["w3"]), full(params["b3"]),
                full(params["w4"]), full(params["b4"]),
                full(wh), full(bh),
            ],
            out_specs=pl.BlockSpec((HWc, NH), lambda b: (b, 0)),
            scratch_shapes=[
                pltpu.VMEM((HW + 2 * P1, C), jnp.float32),    # conv1 input + halo
                pltpu.VMEM((HW + 2 * P1, c1), jnp.float32),   # conv2 input + halo
                pltpu.VMEM((HW2 + 2 * P2, c2), jnp.float32),  # conv3 input + halo
                pltpu.VMEM((HW2 + 2 * P2, c3), jnp.float32),  # conv4 input + halo
                pltpu.VMEM((HWc + 2 * P3, c4), jnp.float32),  # head input + halo
            ],
        ),
        compiler_params=pltpu.CompilerParams(
            dimension_semantics=("parallel",),
            vmem_limit_bytes=32 * 1024 * 1024,
        ),
    )(x, m1, m2, m3, s2, s4, base,
      w1, b1, params["w2"], params["b2"], params["w3"], params["b3"],
      params["w4"], params["b4"], wh, bh)

    out = out.reshape(B, hc, wc, NH)
    score = jnp.transpose(out[..., 0:1], (0, 3, 1, 2))
    coord = jnp.transpose(out[..., 1:3], (0, 3, 1, 2))
    desc = jnp.transpose(out[..., 3:3 + c_desc], (0, 3, 1, 2))
    return score, coord, desc


# --------------------------------------------------------------------------
# Pure-JAX reference of the same stand-in network (for verification only)
# --------------------------------------------------------------------------
def _reference_forward(img, params):
    B, C, H, W = img.shape
    x = jnp.transpose(img, (0, 2, 3, 1))
    x = (x - 0.5) / 0.225

    def conv(x, w, b, stride, act):
        cin, cout = x.shape[-1], w.shape[1]
        y = lax.conv_general_dilated(
            x, w.reshape(3, 3, cin, cout),
            window_strides=(stride, stride), padding=((1, 1), (1, 1)),
            dimension_numbers=("NHWC", "HWIO", "NHWC"),
            precision=lax.Precision.HIGHEST)
        y = y + b.reshape(1, 1, 1, cout)
        if act == "relu":
            return jnp.maximum(y, 0.0)
        if act == "sigmoid":
            return jax.nn.sigmoid(y)
        if act == "tanh":
            return jnp.tanh(y)
        return y

    x = conv(x, params["w1"], params["b1"], 1, "relu")
    x = conv(x, params["w2"], params["b2"], 2, "relu")
    x = conv(x, params["w3"], params["b3"], 1, "relu")
    feat = conv(x, params["w4"], params["b4"], 2, "relu")
    hc, wc = feat.shape[1], feat.shape[2]
    score = conv(feat, params["ws"], params["bs"], 1, "sigmoid")
    shift = conv(feat, params["wc"], params["bc"], 1, "tanh")
    desc = conv(feat, params["wd"], params["bd"], 1, "none")
    cell = H // hc
    step = (cell - 1) / 2.0
    xs = jnp.arange(wc, dtype=jnp.float32) * cell + step
    ys = jnp.arange(hc, dtype=jnp.float32) * cell + step
    gx, gy = jnp.meshgrid(xs, ys, indexing="xy")
    base = jnp.stack([gx, gy], axis=-1)[None]
    coord = jnp.clip(base + shift * step, 0.0,
                     jnp.array([W - 1.0, H - 1.0], jnp.float32))
    to_nchw = lambda t: jnp.transpose(t, (0, 3, 1, 2))
    return to_nchw(score), to_nchw(coord), to_nchw(desc)


if __name__ == "__main__":
    img = jax.random.uniform(jax.random.PRNGKey(0), (2, 3, 16, 16), dtype=jnp.float32)
    params = init_params(jax.random.PRNGKey(1))

    fwd = jax.jit(point_model_forward)
    score, coord, desc = fwd(img, params)
    jax.block_until_ready((score, coord, desc))

    assert score.shape == (2, 1, 4, 4)
    assert coord.shape == (2, 2, 4, 4)
    assert desc.shape == (2, 64, 4, 4)

    # numerical check against a pure-JAX reference of the same network
    r_score, r_coord, r_desc = jax.jit(_reference_forward)(img, params)
    for got, ref, name in ((score, r_score, "score"),
                           (coord, r_coord, "coord"),
                           (desc, r_desc, "desc")):
        assert jnp.allclose(got, ref, atol=5e-3, rtol=5e-3), f"mismatch in {name}"

    print("KERNEL_OK")
</pallas_src>

<mosaic_0001>
module attributes {stable_mosaic.version = 11 : i64} {
  func.func @_point_net_kernel(%arg0: i32, %arg1: memref<256x3xf32, #tpu.memory_space<vmem>>, %arg2: memref<256x2xf32, #tpu.memory_space<vmem>>, %arg3: memref<64x2xf32, #tpu.memory_space<vmem>>, %arg4: memref<16x2xf32, #tpu.memory_space<vmem>>, %arg5: memref<64x256xf32, #tpu.memory_space<vmem>>, %arg6: memref<16x64xf32, #tpu.memory_space<vmem>>, %arg7: memref<16x2xf32, #tpu.memory_space<vmem>>, %arg8: memref<27x16xf32, #tpu.memory_space<vmem>>, %arg9: memref<1x16xf32, #tpu.memory_space<vmem>>, %arg10: memref<144x32xf32, #tpu.memory_space<vmem>>, %arg11: memref<1x32xf32, #tpu.memory_space<vmem>>, %arg12: memref<288x32xf32, #tpu.memory_space<vmem>>, %arg13: memref<1x32xf32, #tpu.memory_space<vmem>>, %arg14: memref<288x64xf32, #tpu.memory_space<vmem>>, %arg15: memref<1x64xf32, #tpu.memory_space<vmem>>, %arg16: memref<576x128xf32, #tpu.memory_space<vmem>>, %arg17: memref<1x128xf32, #tpu.memory_space<vmem>>, %arg18: memref<16x128xf32, #tpu.memory_space<vmem>>, %arg19: memref<304x3xf32, #tpu.memory_space<vmem>>, %arg20: memref<304x16xf32, #tpu.memory_space<vmem>>, %arg21: memref<96x32xf32, #tpu.memory_space<vmem>>, %arg22: memref<96x32xf32, #tpu.memory_space<vmem>>, %arg23: memref<32x64xf32, #tpu.memory_space<vmem>>) attributes {dimension_semantics = [#tpu.dimension_semantics<parallel>], iteration_bounds = array<i64: 2>, scalar_prefetch = 0 : i64, scratch_operands = 5 : i64, tpu.core_type = #tpu.core_type<tc>, window_params = [{transform_indices = @transform_0, window_bounds = array<i64: 256, 3>}, {pipeline_mode = #tpu.pipeline_mode<synchronous>, transform_indices = @transform_1, window_bounds = array<i64: 256, 2>}, {pipeline_mode = #tpu.pipeline_mode<synchronous>, transform_indices = @transform_2, window_bounds = array<i64: 64, 2>}, {pipeline_mode = #tpu.pipeline_mode<synchronous>, transform_indices = @transform_3, window_bounds = array<i64: 16, 2>}, {pipeline_mode = #tpu.pipeline_mode<synchronous>, transform_indices = @transform_4, window_bounds = array<i64: 64, 256>}, {pipeline_mode = #tpu.pipeline_mode<synchronous>, transform_indices = @transform_5, window_bounds = array<i64: 16, 64>}, {pipeline_mode = #tpu.pipeline_mode<synchronous>, transform_indices = @transform_6, window_bounds = array<i64: 16, 2>}, {pipeline_mode = #tpu.pipeline_mode<synchronous>, transform_indices = @transform_7, window_bounds = array<i64: 27, 16>}, {pipeline_mode = #tpu.pipeline_mode<synchronous>, transform_indices = @transform_8, window_bounds = array<i64: 1, 16>}, {pipeline_mode = #tpu.pipeline_mode<synchronous>, transform_indices = @transform_9, window_bounds = array<i64: 144, 32>}, {pipeline_mode = #tpu.pipeline_mode<synchronous>, transform_indices = @transform_10, window_bounds = array<i64: 1, 32>}, {pipeline_mode = #tpu.pipeline_mode<synchronous>, transform_indices = @transform_11, window_bounds = array<i64: 288, 32>}, {pipeline_mode = #tpu.pipeline_mode<synchronous>, transform_indices = @transform_12, window_bounds = array<i64: 1, 32>}, {pipeline_mode = #tpu.pipeline_mode<synchronous>, transform_indices = @transform_13, window_bounds = array<i64: 288, 64>}, {pipeline_mode = #tpu.pipeline_mode<synchronous>, transform_indices = @transform_14, window_bounds = array<i64: 1, 64>}, {pipeline_mode = #tpu.pipeline_mode<synchronous>, transform_indices = @transform_15, window_bounds = array<i64: 576, 128>}, {pipeline_mode = #tpu.pipeline_mode<synchronous>, transform_indices = @transform_16, window_bounds = array<i64: 1, 128>}, {transform_indices = @transform_17, window_bounds = array<i64: 16, 128>}]} {
    %c0 = arith.constant 0 : index
    %c0_0 = arith.constant 0 : index
    %0 = vector.load %arg1[%c0, %c0_0] : memref<256x3xf32, #tpu.memory_space<vmem>>, vector<256x3xf32>
    %cst = arith.constant 5.000000e-01 : f32
    %1 = vector.broadcast %cst : f32 to vector<24x3xf32>
    %c0_1 = arith.constant 0 : index
    %c0_2 = arith.constant 0 : index
    %2 = vector.load %arg19[%c0_1, %c0_2] : memref<304x3xf32, #tpu.memory_space<vmem>>, vector<24x3xf32>
    tpu.vector_store %arg19[%c0_1, %c0_2], %1 {strides = array<i32>} : memref<304x3xf32, #tpu.memory_space<vmem>>, vector<24x3xf32>,
    %c24 = arith.constant 24 : index
    %c0_3 = arith.constant 0 : index
    %3 = vector.load %arg19[%c24, %c0_3] : memref<304x3xf32, #tpu.memory_space<vmem>>, vector<256x3xf32>
    tpu.vector_store %arg19[%c24, %c0_3], %0 {strides = array<i32>} : memref<304x3xf32, #tpu.memory_space<vmem>>, vector<256x3xf32>,
    %c280 = arith.constant 280 : index
    %c0_4 = arith.constant 0 : index
    %4 = vector.load %arg19[%c280, %c0_4] : memref<304x3xf32, #tpu.memory_space<vmem>>, vector<24x3xf32>
    tpu.vector_store %arg19[%c280, %c0_4], %1 {strides = array<i32>} : memref<304x3xf32, #tpu.memory_space<vmem>>, vector<24x3xf32>,
    %c0_5 = arith.constant 0 : index
    %c0_6 = arith.constant 0 : index
    %5 = vector.load %arg2[%c0_5, %c0_6] : memref<256x2xf32, #tpu.memory_space<vmem>>, vector<256x1xf32>
    %cst_7 = arith.constant 5.000000e-01 : f32
    %6 = vector.broadcast %cst_7 : f32 to vector<256x1xf32>
    %7 = arith.cmpf ogt, %5, %6 : vector<256x1xf32>
    %c0_8 = arith.constant 0 : index
    %c1 = arith.constant 1 : index
    %8 = vector.load %arg2[%c0_8, %c1] : memref<256x2xf32, #tpu.memory_space<vmem>>, vector<256x1xf32>
    %cst_9 = arith.constant 5.000000e-01 : f32
    %9 = vector.broadcast %cst_9 : f32 to vector<256x1xf32>
    %10 = arith.cmpf ogt, %8, %9 : vector<256x1xf32>
    %cst_10 = arith.constant 0.000000e+00 : f32
    %11 = vector.broadcast %cst_10 : f32 to vector<256x16xf32>
    %c7 = arith.constant 7 : index
    %c0_11 = arith.constant 0 : index
    %12 = vector.load %arg19[%c7, %c0_11] : memref<304x3xf32, #tpu.memory_space<vmem>>, vector<256x3xf32>
    %cst_12 = arith.constant 5.000000e-01 : f32
    %13 = vector.shape_cast %7 : vector<256x1xi1> to vector<256x1xi1>
    %14 = vector.broadcast %13 : vector<256x1xi1> to vector<256x3xi1>
    %15 = vector.broadcast %cst_12 : f32 to vector<256x3xf32>
    %16 = arith.select %14, %12, %15 : vector<256x3xi1>, vector<256x3xf32>
    %c0_13 = arith.constant 0 : index
    %c0_14 = arith.constant 0 : index
    %17 = vector.load %arg8[%c0_13, %c0_14] : memref<27x16xf32, #tpu.memory_space<vmem>>, vector<3x16xf32>
    %cst_15 = arith.constant dense<0.000000e+00> : vector<256x16xf32>
    %18 = tpu.matmul %16, %17, %cst_15 {dimension_numbers = #tpu.dot_dimension_numbers<[1], [0], [0], [1], [0, 0, 1, 1], [], []>} : vector<256x3xf32>, vector<3x16xf32>, vector<256x16xf32> -> vector<256x16xf32>
    %19 = arith.addf %11, %18 : vector<256x16xf32>
    %c8 = arith.constant 8 : index
    %c0_16 = arith.constant 0 : index
    %20 = vector.load %arg19[%c8, %c0_16] : memref<304x3xf32, #tpu.memory_space<vmem>>, vector<256x3xf32>
    %c3 = arith.constant 3 : index
    %c0_17 = arith.constant 0 : index
    %21 = vector.load %arg8[%c3, %c0_17] : memref<27x16xf32, #tpu.memory_space<vmem>>, vector<3x16xf32>
    %cst_18 = arith.constant dense<0.000000e+00> : vector<256x16xf32>
    %22 = tpu.matmul %20, %21, %cst_18 {dimension_numbers = #tpu.dot_dimension_numbers<[1], [0], [0], [1], [0, 0, 1, 1], [], []>} : vector<256x3xf32>, vector<3x16xf32>, vector<256x16xf32> -> vector<256x16xf32>
    %23 = arith.addf %19, %22 : vector<256x16xf32>
    %c9 = arith.constant 9 : index
    %c0_19 = arith.constant 0 : index
    %24 = vector.load %arg19[%c9, %c0_19] : memref<304x3xf32, #tpu.memory_space<vmem>>, vector<256x3xf32>
    %cst_20 = arith.constant 5.000000e-01 : f32
    %25 = vector.shape_cast %10 : vector<256x1xi1> to vector<256x1xi1>
    %26 = vector.broadcast %25 : vector<256x1xi1> to vector<256x3xi1>
    %27 = vector.broadcast %cst_20 : f32 to vector<256x3xf32>
    %28 = arith.select %26, %24, %27 : vector<256x3xi1>, vector<256x3xf32>
    %c6 = arith.constant 6 : index
    %c0_21 = arith.constant 0 : index
    %29 = vector.load %arg8[%c6, %c0_21] : memref<27x16xf32, #tpu.memory_space<vmem>>, vector<3x16xf32>
    %cst_22 = arith.constant dense<0.000000e+00> : vector<256x16xf32>
    %30 = tpu.matmul %28, %29, %cst_22 {dimension_numbers = #tpu.dot_dimension_numbers<[1], [0], [0], [1], [0, 0, 1, 1], [], []>} : vector<256x3xf32>, vector<3x16xf32>, vector<256x16xf32> -> vector<256x16xf32>
    %31 = arith.addf %23, %30 : vector<256x16xf32>
    %c23 = arith.constant 23 : index
    %c0_23 = arith.constant 0 : index
    %32 = vector.load %arg19[%c23, %c0_23] : memref<304x3xf32, #tpu.memory_space<vmem>>, vector<256x3xf32>
    %cst_24 = arith.constant 5.000000e-01 : f32
    %33 = vector.shape_cast %7 : vector<256x1xi1> to vector<256x1xi1>
    %34 = vector.broadcast %33 : vector<256x1xi1> to vector<256x3xi1>
    %35 = vector.broadcast %cst_24 : f32 to vector<256x3xf32>
    %36 = arith.select %34, %32, %35 : vector<256x3xi1>, vector<256x3xf32>
    %c9_25 = arith.constant 9 : index
    %c0_26 = arith.constant 0 : index
    %37 = vector.load %arg8[%c9_25, %c0_26] : memref<27x16xf32, #tpu.memory_space<vmem>>, vector<3x16xf32>
    %cst_27 = arith.constant dense<0.000000e+00> : vector<256x16xf32>
    %38 = tpu.matmul %36, %37, %cst_27 {dimension_numbers = #tpu.dot_dimension_numbers<[1], [0], [0], [1], [0, 0, 1, 1], [], []>} : vector<256x3xf32>, vector<3x16xf32>, vector<256x16xf32> -> vector<256x16xf32>
    %39 = arith.addf %31, %38 : vector<256x16xf32>
    %c24_28 = arith.constant 24 : index
    %c0_29 = arith.constant 0 : index
    %40 = vector.load %arg19[%c24_28, %c0_29] : memref<304x3xf32, #tpu.memory_space<vmem>>, vector<256x3xf32>
    %c12 = arith.constant 12 : index
    %c0_30 = arith.constant 0 : index
    %41 = vector.load %arg8[%c12, %c0_30] : memref<27x16xf32, #tpu.memory_space<vmem>>, vector<3x16xf32>
    %cst_31 = arith.constant dense<0.000000e+00> : vector<256x16xf32>
    %42 = tpu.matmul %40, %41, %cst_31 {dimension_numbers = #tpu.dot_dimension_numbers<[1], [0], [0], [1], [0, 0, 1, 1], [], []>} : vector<256x3xf32>, vector<3x16xf32>, vector<256x16xf32> -> vector<256x16xf32>
    %43 = arith.addf %39, %42 : vector<256x16xf32>
    %c25 = arith.constant 25 : index
    %c0_32 = arith.constant 0 : index
    %44 = vector.load %arg19[%c25, %c0_32] : memref<304x3xf32, #tpu.memory_space<vmem>>, vector<256x3xf32>
    %cst_33 = arith.constant 5.000000e-01 : f32
    %45 = vector.shape_cast %10 : vector<256x1xi1> to vector<256x1xi1>
    %46 = vector.broadcast %45 : vector<256x1xi1> to vector<256x3xi1>
    %47 = vector.broadcast %cst_33 : f32 to vector<256x3xf32>
    %48 = arith.select %46, %44, %47 : vector<256x3xi1>, vector<256x3xf32>
    %c15 = arith.constant 15 : index
    %c0_34 = arith.constant 0 : index
    %49 = vector.load %arg8[%c15, %c0_34] : memref<27x16xf32, #tpu.memory_space<vmem>>, vector<3x16xf32>
    %cst_35 = arith.constant dense<0.000000e+00> : vector<256x16xf32>
    %50 = tpu.matmul %48, %49, %cst_35 {dimension_numbers = #tpu.dot_dimension_numbers<[1], [0], [0], [1], [0, 0, 1, 1], [], []>} : vector<256x3xf32>, vector<3x16xf32>, vector<256x16xf32> -> vector<256x16xf32>
    %51 = arith.addf %43, %50 : vector<256x16xf32>
    %c39 = arith.constant 39 : index
    %c0_36 = arith.constant 0 : index
    %52 = vector.load %arg19[%c39, %c0_36] : memref<304x3xf32, #tpu.memory_space<vmem>>, vector<256x3xf32>
    %cst_37 = arith.constant 5.000000e-01 : f32
    %53 = vector.shape_cast %7 : vector<256x1xi1> to vector<256x1xi1>
    %54 = vector.broadcast %53 : vector<256x1xi1> to vector<256x3xi1>
    %55 = vector.broadcast %cst_37 : f32 to vector<256x3xf32>
    %56 = arith.select %54, %52, %55 : vector<256x3xi1>, vector<256x3xf32>
    %c18 = arith.constant 18 : index
    %c0_38 = arith.constant 0 : index
    %57 = vector.load %arg8[%c18, %c0_38] : memref<27x16xf32, #tpu.memory_space<vmem>>, vector<3x16xf32>
    %cst_39 = arith.constant dense<0.000000e+00> : vector<256x16xf32>
    %58 = tpu.matmul %56, %57, %cst_39 {dimension_numbers = #tpu.dot_dimension_numbers<[1], [0], [0], [1], [0, 0, 1, 1], [], []>} : vector<256x3xf32>, vector<3x16xf32>, vector<256x16xf32> -> vector<256x16xf32>
    %59 = arith.addf %51, %58 : vector<256x16xf32>
    %c40 = arith.constant 40 : index
    %c0_40 = arith.constant 0 : index
    %60 = vector.load %arg19[%c40, %c0_40] : memref<304x3xf32, #tpu.memory_space<vmem>>, vector<256x3xf32>
    %c21 = arith.constant 21 : index
    %c0_41 = arith.constant 0 : index
    %61 = vector.load %arg8[%c21, %c0_41] : memref<27x16xf32, #tpu.memory_space<vmem>>, vector<3x16xf32>
    %cst_42 = arith.constant dense<0.000000e+00> : vector<256x16xf32>
    %62 = tpu.matmul %60, %61, %cst_42 {dimension_numbers = #tpu.dot_dimension_numbers<[1], [0], [0], [1], [0, 0, 1, 1], [], []>} : vector<256x3xf32>, vector<3x16xf32>, vector<256x16xf32> -> vector<256x16xf32>
    %63 = arith.addf %59, %62 : vector<256x16xf32>
    %c41 = arith.constant 41 : index
    %c0_43 = arith.constant 0 : index
    %64 = vector.load %arg19[%c41, %c0_43] : memref<304x3xf32, #tpu.memory_space<vmem>>, vector<256x3xf32>
    %cst_44 = arith.constant 5.000000e-01 : f32
    %65 = vector.shape_cast %10 : vector<256x1xi1> to vector<256x1xi1>
    %66 = vector.broadcast %65 : vector<256x1xi1> to vector<256x3xi1>
    %67 = vector.broadcast %cst_44 : f32 to vector<256x3xf32>
    %68 = arith.select %66, %64, %67 : vector<256x3xi1>, vector<256x3xf32>
    %c24_45 = arith.constant 24 : index
    %c0_46 = arith.constant 0 : index
    %69 = vector.load %arg8[%c24_45, %c0_46] : memref<27x16xf32, #tpu.memory_space<vmem>>, vector<3x16xf32>
    %cst_47 = arith.constant dense<0.000000e+00> : vector<256x16xf32>
    %70 = tpu.matmul %68, %69, %cst_47 {dimension_numbers = #tpu.dot_dimension_numbers<[1], [0], [0], [1], [0, 0, 1, 1], [], []>} : vector<256x3xf32>, vector<3x16xf32>, vector<256x16xf32> -> vector<256x16xf32>
    %71 = arith.addf %63, %70 : vector<256x16xf32>
    %c0_48 = arith.constant 0 : index
    %c0_49 = arith.constant 0 : index
    %72 = vector.load %arg9[%c0_48, %c0_49] : memref<1x16xf32, #tpu.memory_space<vmem>>, vector<1x16xf32>
    %73 = vector.broadcast %72 : vector<1x16xf32> to vector<256x16xf32>
    %74 = arith.addf %71, %73 : vector<256x16xf32>
    %cst_50 = arith.constant 0.000000e+00 : f32
    %75 = vector.broadcast %cst_50 : f32 to vector<256x16xf32>
    %76 = arith.maximumf %74, %75 : vector<256x16xf32>
    %cst_51 = arith.constant 0.000000e+00 : f32
    %77 = vector.broadcast %cst_51 : f32 to vector<24x16xf32>
    %c0_52 = arith.constant 0 : index
    %c0_53 = arith.constant 0 : index
    %78 = vector.load %arg20[%c0_52, %c0_53] : memref<304x16xf32, #tpu.memory_space<vmem>>, vector<24x16xf32>
    tpu.vector_store %arg20[%c0_52, %c0_53], %77 {strides = array<i32>} : memref<304x16xf32, #tpu.memory_space<vmem>>, vector<24x16xf32>,
    %c24_54 = arith.constant 24 : index
    %c0_55 = arith.constant 0 : index
    %79 = vector.load %arg20[%c24_54, %c0_55] : memref<304x16xf32, #tpu.memory_space<vmem>>, vector<256x16xf32>
    tpu.vector_store %arg20[%c24_54, %c0_55], %76 {strides = array<i32>} : memref<304x16xf32, #tpu.memory_space<vmem>>, vector<256x16xf32>,
    %c280_56 = arith.constant 280 : index
    %c0_57 = arith.constant 0 : index
    %80 = vector.load %arg20[%c280_56, %c0_57] : memref<304x16xf32, #tpu.memory_space<vmem>>, vector<24x16xf32>
    tpu.vector_store %arg20[%c280_56, %c0_57], %77 {strides = array<i32>} : memref<304x16xf32, #tpu.memory_space<vmem>>, vector<24x16xf32>,
    %c0_58 = arith.constant 0 : index
    %c0_59 = arith.constant 0 : index
    %81 = vector.load %arg2[%c0_58, %c0_59] : memref<256x2xf32, #tpu.memory_space<vmem>>, vector<256x1xf32>
    %cst_60 = arith.constant 5.000000e-01 : f32
    %82 = vector.broadcast %cst_60 : f32 to vector<256x1xf32>
    %83 = arith.cmpf ogt, %81, %82 : vector<256x1xf32>
    %c0_61 = arith.constant 0 : index
    %c1_62 = arith.constant 1 : index
    %84 = vector.load %arg2[%c0_61, %c1_62] : memref<256x2xf32, #tpu.memory_space<vmem>>, vector<256x1xf32>
    %cst_63 = arith.constant 5.000000e-01 : f32
    %85 = vector.broadcast %cst_63 : f32 to vector<256x1xf32>
    %86 = arith.cmpf ogt, %84, %85 : vector<256x1xf32>
    %cst_64 = arith.constant 0.000000e+00 : f32
    %87 = vector.broadcast %cst_64 : f32 to vector<256x32xf32>
    %c7_65 = arith.constant 7 : index
    %c0_66 = arith.constant 0 : index
    %88 = vector.load %arg20[%c7_65, %c0_66] : memref<304x16xf32, #tpu.memory_space<vmem>>, vector<256x16xf32>
    %cst_67 = arith.constant 0.000000e+00 : f32
    %89 = vector.shape_cast %83 : vector<256x1xi1> to vector<256x1xi1>
    %90 = vector.broadcast %89 : vector<256x1xi1> to vector<256x16xi1>
    %91 = vector.broadcast %cst_67 : f32 to vector<256x16xf32>
    %92 = arith.select %90, %88, %91 : vector<256x16xi1>, vector<256x16xf32>
    %c0_68 = arith.constant 0 : index
    %c0_69 = arith.constant 0 : index
    %93 = vector.load %arg10[%c0_68, %c0_69] : memref<144x32xf32, #tpu.memory_space<vmem>>, vector<16x32xf32>
    %cst_70 = arith.constant dense<0.000000e+00> : vector<256x32xf32>
    %94 = tpu.matmul %92, %93, %cst_70 {dimension_numbers = #tpu.dot_dimension_numbers<[1], [0], [0], [1], [0, 0, 1, 1], [], []>} : vector<256x16xf32>, vector<16x32xf32>, vector<256x32xf32> -> vector<256x32xf32>
    %95 = arith.addf %87, %94 : vector<256x32xf32>
    %c8_71 = arith.constant 8 : index
    %c0_72 = arith.constant 0 : index
    %96 = vector.load %arg20[%c8_71, %c0_72] : memref<304x16xf32, #tpu.memory_space<vmem>>, vector<256x16xf32>
    %c16 = arith.constant 16 : index
    %c0_73 = arith.constant 0 : index
    %97 = vector.load %arg10[%c16, %c0_73] : memref<144x32xf32, #tpu.memory_space<vmem>>, vector<16x32xf32>
    %cst_74 = arith.constant dense<0.000000e+00> : vector<256x32xf32>
    %98 = tpu.matmul %96, %97, %cst_74 {dimension_numbers = #tpu.dot_dimension_numbers<[1], [0], [0], [1], [0, 0, 1, 1], [], []>} : vector<256x16xf32>, vector<16x32xf32>, vector<256x32xf32> -> vector<256x32xf32>
    %99 = arith.addf %95, %98 : vector<256x32xf32>
    %c9_75 = arith.constant 9 : index
    %c0_76 = arith.constant 0 : index
    %100 = vector.load %arg20[%c9_75, %c0_76] : memref<304x16xf32, #tpu.memory_space<vmem>>, vector<256x16xf32>
    %cst_77 = arith.constant 0.000000e+00 : f32
    %101 = vector.shape_cast %86 : vector<256x1xi1> to vector<256x1xi1>
    %102 = vector.broadcast %101 : vector<256x1xi1> to vector<256x16xi1>
    %103 = vector.broadcast %cst_77 : f32 to vector<256x16xf32>
    %104 = arith.select %102, %100, %103 : vector<256x16xi1>, vector<256x16xf32>
    %c32 = arith.constant 32 : index
    %c0_78 = arith.constant 0 : index
    %105 = vector.load %arg10[%c32, %c0_78] : memref<144x32xf32, #tpu.memory_space<vmem>>, vector<16x32xf32>
    %cst_79 = arith.constant dense<0.000000e+00> : vector<256x32xf32>
    %106 = tpu.matmul %104, %105, %cst_79 {dimension_numbers = #tpu.dot_dimension_numbers<[1], [0], [0], [1], [0, 0, 1, 1], [], []>} : vector<256x16xf32>, vector<16x32xf32>, vector<256x32xf32> -> vector<256x32xf32>
    %107 = arith.addf %99, %106 : vector<256x32xf32>
    %c23_80 = arith.constant 23 : index
    %c0_81 = arith.constant 0 : index
    %108 = vector.load %arg20[%c23_80, %c0_81] : memref<304x16xf32, #tpu.memory_space<vmem>>, vector<256x16xf32>
    %cst_82 = arith.constant 0.000000e+00 : f32
    %109 = vector.shape_cast %83 : vector<256x1xi1> to vector<256x1xi1>
    %110 = vector.broadcast %109 : vector<256x1xi1> to vector<256x16xi1>
    %111 = vector.broadcast %cst_82 : f32 to vector<256x16xf32>
    %112 = arith.select %110, %108, %111 : vector<256x16xi1>, vector<256x16xf32>
    %c48 = arith.constant 48 : index
    %c0_83 = arith.constant 0 : index
    %113 = vector.load %arg10[%c48, %c0_83] : memref<144x32xf32, #tpu.memory_space<vmem>>, vector<16x32xf32>
    %cst_84 = arith.constant dense<0.000000e+00> : vector<256x32xf32>
    %114 = tpu.matmul %112, %113, %cst_84 {dimension_numbers = #tpu.dot_dimension_numbers<[1], [0], [0], [1], [0, 0, 1, 1], [], []>} : vector<256x16xf32>, vector<16x32xf32>, vector<256x32xf32> -> vector<256x32xf32>
    %115 = arith.addf %107, %114 : vector<256x32xf32>
    %c24_85 = arith.constant 24 : index
    %c0_86 = arith.constant 0 : index
    %116 = vector.load %arg20[%c24_85, %c0_86] : memref<304x16xf32, #tpu.memory_space<vmem>>, vector<256x16xf32>
    %c64 = arith.constant 64 : index
    %c0_87 = arith.constant 0 : index
    %117 = vector.load %arg10[%c64, %c0_87] : memref<144x32xf32, #tpu.memory_space<vmem>>, vector<16x32xf32>
    %cst_88 = arith.constant dense<0.000000e+00> : vector<256x32xf32>
    %118 = tpu.matmul %116, %117, %cst_88 {dimension_numbers = #tpu.dot_dimension_numbers<[1], [0], [0], [1], [0, 0, 1, 1], [], []>} : vector<256x16xf32>, vector<16x32xf32>, vector<256x32xf32> -> vector<256x32xf32>
    %119 = arith.addf %115, %118 : vector<256x32xf32>
    %c25_89 = arith.constant 25 : index
    %c0_90 = arith.constant 0 : index
    %120 = vector.load %arg20[%c25_89, %c0_90] : memref<304x16xf32, #tpu.memory_space<vmem>>, vector<256x16xf32>
    %cst_91 = arith.constant 0.000000e+00 : f32
    %121 = vector.shape_cast %86 : vector<256x1xi1> to vector<256x1xi1>
    %122 = vector.broadcast %121 : vector<256x1xi1> to vector<256x16xi1>
    %123 = vector.broadcast %cst_91 : f32 to vector<256x16xf32>
    %124 = arith.select %122, %120, %123 : vector<256x16xi1>, vector<256x16xf32>
    %c80 = arith.constant 80 : index
    %c0_92 = arith.constant 0 : index
    %125 = vector.load %arg10[%c80, %c0_92] : memref<144x32xf32, #tpu.memory_space<vmem>>, vector<16x32xf32>
    %cst_93 = arith.constant dense<0.000000e+00> : vector<256x32xf32>
    %126 = tpu.matmul %124, %125, %cst_93 {dimension_numbers = #tpu.dot_dimension_numbers<[1], [0], [0], [1], [0, 0, 1, 1], [], []>} : vector<256x16xf32>, vector<16x32xf32>, vector<256x32xf32> -> vector<256x32xf32>
    %127 = arith.addf %119, %126 : vector<256x32xf32>
    %c39_94 = arith.constant 39 : index
    %c0_95 = arith.constant 0 : index
    %128 = vector.load %arg20[%c39_94, %c0_95] : memref<304x16xf32, #tpu.memory_space<vmem>>, vector<256x16xf32>
    %cst_96 = arith.constant 0.000000e+00 : f32
    %129 = vector.shape_cast %83 : vector<256x1xi1> to vector<256x1xi1>
    %130 = vector.broadcast %129 : vector<256x1xi1> to vector<256x16xi1>
    %131 = vector.broadcast %cst_96 : f32 to vector<256x16xf32>
    %132 = arith.select %130, %128, %131 : vector<256x16xi1>, vector<256x16xf32>
    %c96 = arith.constant 96 : index
    %c0_97 = arith.constant 0 : index
    %133 = vector.load %arg10[%c96, %c0_97] : memref<144x32xf32, #tpu.memory_space<vmem>>, vector<16x32xf32>
    %cst_98 = arith.constant dense<0.000000e+00> : vector<256x32xf32>
    %134 = tpu.matmul %132, %133, %cst_98 {dimension_numbers = #tpu.dot_dimension_numbers<[1], [0], [0], [1], [0, 0, 1, 1], [], []>} : vector<256x16xf32>, vector<16x32xf32>, vector<256x32xf32> -> vector<256x32xf32>
    %135 = arith.addf %127, %134 : vector<256x32xf32>
    %c40_99 = arith.constant 40 : index
    %c0_100 = arith.constant 0 : index
    %136 = vector.load %arg20[%c40_99, %c0_100] : memref<304x16xf32, #tpu.memory_space<vmem>>, vector<256x16xf32>
    %c112 = arith.constant 112 : index
    %c0_101 = arith.constant 0 : index
    %137 = vector.load %arg10[%c112, %c0_101] : memref<144x32xf32, #tpu.memory_space<vmem>>, vector<16x32xf32>
    %cst_102 = arith.constant dense<0.000000e+00> : vector<256x32xf32>
    %138 = tpu.matmul %136, %137, %cst_102 {dimension_numbers = #tpu.dot_dimension_numbers<[1], [0], [0], [1], [0, 0, 1, 1], [], []>} : vector<256x16xf32>, vector<16x32xf32>, vector<256x32xf32> -> vector<256x32xf32>
    %139 = arith.addf %135, %138 : vector<256x32xf32>
    %c41_103 = arith.constant 41 : index
    %c0_104 = arith.constant 0 : index
    %140 = vector.load %arg20[%c41_103, %c0_104] : memref<304x16xf32, #tpu.memory_space<vmem>>, vector<256x16xf32>
    %cst_105 = arith.constant 0.000000e+00 : f32
    %141 = vector.shape_cast %86 : vector<256x1xi1> to vector<256x1xi1>
    %142 = vector.broadcast %141 : vector<256x1xi1> to vector<256x16xi1>
    %143 = vector.broadcast %cst_105 : f32 to vector<256x16xf32>
    %144 = arith.select %142, %140, %143 : vector<256x16xi1>, vector<256x16xf32>
    %c128 = arith.constant 128 : index
    %c0_106 = arith.constant 0 : index
    %145 = vector.load %arg10[%c128, %c0_106] : memref<144x32xf32, #tpu.memory_space<vmem>>, vector<16x32xf32>
    %cst_107 = arith.constant dense<0.000000e+00> : vector<256x32xf32>
    %146 = tpu.matmul %144, %145, %cst_107 {dimension_numbers = #tpu.dot_dimension_numbers<[1], [0], [0], [1], [0, 0, 1, 1], [], []>} : vector<256x16xf32>, vector<16x32xf32>, vector<256x32xf32> -> vector<256x32xf32>
    %147 = arith.addf %139, %146 : vector<256x32xf32>
    %c0_108 = arith.constant 0 : index
    %c0_109 = arith.constant 0 : index
    %148 = vector.load %arg11[%c0_108, %c0_109] : memref<1x32xf32, #tpu.memory_space<vmem>>, vector<1x32xf32>
    %149 = vector.broadcast %148 : vector<1x32xf32> to vector<256x32xf32>
    %150 = arith.addf %147, %149 : vector<256x32xf32>
    %cst_110 = arith.constant 0.000000e+00 : f32
    %151 = vector.broadcast %cst_110 : f32 to vector<256x32xf32>
    %152 = arith.maximumf %150, %151 : vector<256x32xf32>
    %c0_111 = arith.constant 0 : index
    %c0_112 = arith.constant 0 : index
    %153 = vector.load %arg5[%c0_111, %c0_112] : memref<64x256xf32, #tpu.memory_space<vmem>>, vector<64x256xf32>
    %cst_113 = arith.constant dense<0.000000e+00> : vector<64x32xf32>
    %154 = tpu.matmul %153, %152, %cst_113 {dimension_numbers = #tpu.dot_dimension_numbers<[1], [0], [0], [1], [0, 0, 1, 1], [], []>} : vector<64x256xf32>, vector<256x32xf32>, vector<64x32xf32> -> vector<64x32xf32>
    %cst_114 = arith.constant 0.000000e+00 : f32
    %155 = vector.broadcast %cst_114 : f32 to vector<16x32xf32>
    %c0_115 = arith.constant 0 : index
    %c0_116 = arith.constant 0 : index
    %156 = vector.load %arg21[%c0_115, %c0_116] : memref<96x32xf32, #tpu.memory_space<vmem>>, vector<16x32xf32>
    tpu.vector_store %arg21[%c0_115, %c0_116], %155 {strides = array<i32>} : memref<96x32xf32, #tpu.memory_space<vmem>>, vector<16x32xf32>,
    %c16_117 = arith.constant 16 : index
    %c0_118 = arith.constant 0 : index
    %157 = vector.load %arg21[%c16_117, %c0_118] : memref<96x32xf32, #tpu.memory_space<vmem>>, vector<64x32xf32>
    tpu.vector_store %arg21[%c16_117, %c0_118], %154 {strides = array<i32>} : memref<96x32xf32, #tpu.memory_space<vmem>>, vector<64x32xf32>,
    %c80_119 = arith.constant 80 : index
    %c0_120 = arith.constant 0 : index
    %158 = vector.load %arg21[%c80_119, %c0_120] : memref<96x32xf32, #tpu.memory_space<vmem>>, vector<16x32xf32>
    tpu.vector_store %arg21[%c80_119, %c0_120], %155 {strides = array<i32>} : memref<96x32xf32, #tpu.memory_space<vmem>>, vector<16x32xf32>,
    %c0_121 = arith.constant 0 : index
    %c0_122 = arith.constant 0 : index
    %159 = vector.load %arg3[%c0_121, %c0_122] : memref<64x2xf32, #tpu.memory_space<vmem>>, vector<64x1xf32>
    %cst_123 = arith.constant 5.000000e-01 : f32
    %160 = vector.broadcast %cst_123 : f32 to vector<64x1xf32>
    %161 = arith.cmpf ogt, %159, %160 : vector<64x1xf32>
    %c0_124 = arith.constant 0 : index
    %c1_125 = arith.constant 1 : index
    %162 = vector.load %arg3[%c0_124, %c1_125] : memref<64x2xf32, #tpu.memory_space<vmem>>, vector<64x1xf32>
    %cst_126 = arith.constant 5.000000e-01 : f32
    %163 = vector.broadcast %cst_126 : f32 to vector<64x1xf32>
    %164 = arith.cmpf ogt, %162, %163 : vector<64x1xf32>
    %cst_127 = arith.constant 0.000000e+00 : f32
    %165 = vector.broadcast %cst_127 : f32 to vector<64x32xf32>
    %c7_128 = arith.constant 7 : index
    %c0_129 = arith.constant 0 : index
    %166 = vector.load %arg21[%c7_128, %c0_129] : memref<96x32xf32, #tpu.memory_space<vmem>>, vector<64x32xf32>
    %cst_130 = arith.constant 0.000000e+00 : f32
    %167 = vector.shape_cast %161 : vector<64x1xi1> to vector<64x1xi1>
    %168 = vector.broadcast %167 : vector<64x1xi1> to vector<64x32xi1>
    %169 = vector.broadcast %cst_130 : f32 to vector<64x32xf32>
    %170 = arith.select %168, %166, %169 : vector<64x32xi1>, vector<64x32xf32>
    %c0_131 = arith.constant 0 : index
    %c0_132 = arith.constant 0 : index
    %171 = vector.load %arg12[%c0_131, %c0_132] : memref<288x32xf32, #tpu.memory_space<vmem>>, vector<32x32xf32>
    %cst_133 = arith.constant dense<0.000000e+00> : vector<64x32xf32>
    %172 = tpu.matmul %170, %171, %cst_133 {dimension_numbers = #tpu.dot_dimension_numbers<[1], [0], [0], [1], [0, 0, 1, 1], [], []>} : vector<64x32xf32>, vector<32x32xf32>, vector<64x32xf32> -> vector<64x32xf32>
    %173 = arith.addf %165, %172 : vector<64x32xf32>
    %c8_134 = arith.constant 8 : index
    %c0_135 = arith.constant 0 : index
    %174 = vector.load %arg21[%c8_134, %c0_135] : memref<96x32xf32, #tpu.memory_space<vmem>>, vector<64x32xf32>
    %c32_136 = arith.constant 32 : index
    %c0_137 = arith.constant 0 : index
    %175 = vector.load %arg12[%c32_136, %c0_137] : memref<288x32xf32, #tpu.memory_space<vmem>>, vector<32x32xf32>
    %cst_138 = arith.constant dense<0.000000e+00> : vector<64x32xf32>
    %176 = tpu.matmul %174, %175, %cst_138 {dimension_numbers = #tpu.dot_dimension_numbers<[1], [0], [0], [1], [0, 0, 1, 1], [], []>} : vector<64x32xf32>, vector<32x32xf32>, vector<64x32xf32> -> vector<64x32xf32>
    %177 = arith.addf %173, %176 : vector<64x32xf32>
    %c9_139 = arith.constant 9 : index
    %c0_140 = arith.constant 0 : index
    %178 = vector.load %arg21[%c9_139, %c0_140] : memref<96x32xf32, #tpu.memory_space<vmem>>, vector<64x32xf32>
    %cst_141 = arith.constant 0.000000e+00 : f32
    %179 = vector.shape_cast %164 : vector<64x1xi1> to vector<64x1xi1>
    %180 = vector.broadcast %179 : vector<64x1xi1> to vector<64x32xi1>
    %181 = vector.broadcast %cst_141 : f32 to vector<64x32xf32>
    %182 = arith.select %180, %178, %181 : vector<64x32xi1>, vector<64x32xf32>
    %c64_142 = arith.constant 64 : index
    %c0_143 = arith.constant 0 : index
    %183 = vector.load %arg12[%c64_142, %c0_143] : memref<288x32xf32, #tpu.memory_space<vmem>>, vector<32x32xf32>
    %cst_144 = arith.constant dense<0.000000e+00> : vector<64x32xf32>
    %184 = tpu.matmul %182, %183, %cst_144 {dimension_numbers = #tpu.dot_dimension_numbers<[1], [0], [0], [1], [0, 0, 1, 1], [], []>} : vector<64x32xf32>, vector<32x32xf32>, vector<64x32xf32> -> vector<64x32xf32>
    %185 = arith.addf %177, %184 : vector<64x32xf32>
    %c15_145 = arith.constant 15 : index
    %c0_146 = arith.constant 0 : index
    %186 = vector.load %arg21[%c15_145, %c0_146] : memref<96x32xf32, #tpu.memory_space<vmem>>, vector<64x32xf32>
    %cst_147 = arith.constant 0.000000e+00 : f32
    %187 = vector.shape_cast %161 : vector<64x1xi1> to vector<64x1xi1>
    %188 = vector.broadcast %187 : vector<64x1xi1> to vector<64x32xi1>
    %189 = vector.broadcast %cst_147 : f32 to vector<64x32xf32>
    %190 = arith.select %188, %186, %189 : vector<64x32xi1>, vector<64x32xf32>
    %c96_148 = arith.constant 96 : index
    %c0_149 = arith.constant 0 : index
    %191 = vector.load %arg12[%c96_148, %c0_149] : memref<288x32xf32, #tpu.memory_space<vmem>>, vector<32x32xf32>
    %cst_150 = arith.constant dense<0.000000e+00> : vector<64x32xf32>
    %192 = tpu.matmul %190, %191, %cst_150 {dimension_numbers = #tpu.dot_dimension_numbers<[1], [0], [0], [1], [0, 0, 1, 1], [], []>} : vector<64x32xf32>, vector<32x32xf32>, vector<64x32xf32> -> vector<64x32xf32>
    %193 = arith.addf %185, %192 : vector<64x32xf32>
    %c16_151 = arith.constant 16 : index
    %c0_152 = arith.constant 0 : index
    %194 = vector.load %arg21[%c16_151, %c0_152] : memref<96x32xf32, #tpu.memory_space<vmem>>, vector<64x32xf32>
    %c128_153 = arith.constant 128 : index
    %c0_154 = arith.constant 0 : index
    %195 = vector.load %arg12[%c128_153, %c0_154] : memref<288x32xf32, #tpu.memory_space<vmem>>, vector<32x32xf32>
    %cst_155 = arith.constant dense<0.000000e+00> : vector<64x32xf32>
    %196 = tpu.matmul %194, %195, %cst_155 {dimension_numbers = #tpu.dot_dimension_numbers<[1], [0], [0], [1], [0, 0, 1, 1], [], []>} : vector<64x32xf32>, vector<32x32xf32>, vector<64x32xf32> -> vector<64x32xf32>
    %197 = arith.addf %193, %196 : vector<64x32xf32>
    %c17 = arith.constant 17 : index
    %c0_156 = arith.constant 0 : index
    %198 = vector.load %arg21[%c17, %c0_156] : memref<96x32xf32, #tpu.memory_space<vmem>>, vector<64x32xf32>
    %cst_157 = arith.constant 0.000000e+00 : f32
    %199 = vector.shape_cast %164 : vector<64x1xi1> to vector<64x1xi1>
    %200 = vector.broadcast %199 : vector<64x1xi1> to vector<64x32xi1>
    %201 = vector.broadcast %cst_157 : f32 to vector<64x32xf32>
    %202 = arith.select %200, %198, %201 : vector<64x32xi1>, vector<64x32xf32>
    %c160 = arith.constant 160 : index
    %c0_158 = arith.constant 0 : index
    %203 = vector.load %arg12[%c160, %c0_158] : memref<288x32xf32, #tpu.memory_space<vmem>>, vector<32x32xf32>
    %cst_159 = arith.constant dense<0.000000e+00> : vector<64x32xf32>
    %204 = tpu.matmul %202, %203, %cst_159 {dimension_numbers = #tpu.dot_dimension_numbers<[1], [0], [0], [1], [0, 0, 1, 1], [], []>} : vector<64x32xf32>, vector<32x32xf32>, vector<64x32xf32> -> vector<64x32xf32>
    %205 = arith.addf %197, %204 : vector<64x32xf32>
    %c23_160 = arith.constant 23 : index
    %c0_161 = arith.constant 0 : index
    %206 = vector.load %arg21[%c23_160, %c0_161] : memref<96x32xf32, #tpu.memory_space<vmem>>, vector<64x32xf32>
    %cst_162 = arith.constant 0.000000e+00 : f32
    %207 = vector.shape_cast %161 : vector<64x1xi1> to vector<64x1xi1>
    %208 = vector.broadcast %207 : vector<64x1xi1> to vector<64x32xi1>
    %209 = vector.broadcast %cst_162 : f32 to vector<64x32xf32>
    %210 = arith.select %208, %206, %209 : vector<64x32xi1>, vector<64x32xf32>
    %c192 = arith.constant 192 : index
    %c0_163 = arith.constant 0 : index
    %211 = vector.load %arg12[%c192, %c0_163] : memref<288x32xf32, #tpu.memory_space<vmem>>, vector<32x32xf32>
    %cst_164 = arith.constant dense<0.000000e+00> : vector<64x32xf32>
    %212 = tpu.matmul %210, %211, %cst_164 {dimension_numbers = #tpu.dot_dimension_numbers<[1], [0], [0], [1], [0, 0, 1, 1], [], []>} : vector<64x32xf32>, vector<32x32xf32>, vector<64x32xf32> -> vector<64x32xf32>
    %213 = arith.addf %205, %212 : vector<64x32xf32>
    %c24_165 = arith.constant 24 : index
    %c0_166 = arith.constant 0 : index
    %214 = vector.load %arg21[%c24_165, %c0_166] : memref<96x32xf32, #tpu.memory_space<vmem>>, vector<64x32xf32>
    %c224 = arith.constant 224 : index
    %c0_167 = arith.constant 0 : index
    %215 = vector.load %arg12[%c224, %c0_167] : memref<288x32xf32, #tpu.memory_space<vmem>>, vector<32x32xf32>
    %cst_168 = arith.constant dense<0.000000e+00> : vector<64x32xf32>
    %216 = tpu.matmul %214, %215, %cst_168 {dimension_numbers = #tpu.dot_dimension_numbers<[1], [0], [0], [1], [0, 0, 1, 1], [], []>} : vector<64x32xf32>, vector<32x32xf32>, vector<64x32xf32> -> vector<64x32xf32>
    %217 = arith.addf %213, %216 : vector<64x32xf32>
    %c25_169 = arith.constant 25 : index
    %c0_170 = arith.constant 0 : index
    %218 = vector.load %arg21[%c25_169, %c0_170] : memref<96x32xf32, #tpu.memory_space<vmem>>, vector<64x32xf32>
    %cst_171 = arith.constant 0.000000e+00 : f32
    %219 = vector.shape_cast %164 : vector<64x1xi1> to vector<64x1xi1>
    %220 = vector.broadcast %219 : vector<64x1xi1> to vector<64x32xi1>
    %221 = vector.broadcast %cst_171 : f32 to vector<64x32xf32>
    %222 = arith.select %220, %218, %221 : vector<64x32xi1>, vector<64x32xf32>
    %c256 = arith.constant 256 : index
    %c0_172 = arith.constant 0 : index
    %223 = vector.load %arg12[%c256, %c0_172] : memref<288x32xf32, #tpu.memory_space<vmem>>, vector<32x32xf32>
    %cst_173 = arith.constant dense<0.000000e+00> : vector<64x32xf32>
    %224 = tpu.matmul %222, %223, %cst_173 {dimension_numbers = #tpu.dot_dimension_numbers<[1], [0], [0], [1], [0, 0, 1, 1], [], []>} : vector<64x32xf32>, vector<32x32xf32>, vector<64x32xf32> -> vector<64x32xf32>
    %225 = arith.addf %217, %224 : vector<64x32xf32>
    %c0_174 = arith.constant 0 : index
    %c0_175 = arith.constant 0 : index
    %226 = vector.load %arg13[%c0_174, %c0_175] : memref<1x32xf32, #tpu.memory_space<vmem>>, vector<1x32xf32>
    %227 = vector.broadcast %226 : vector<1x32xf32> to vector<64x32xf32>
    %228 = arith.addf %225, %227 : vector<64x32xf32>
    %cst_176 = arith.constant 0.000000e+00 : f32
    %229 = vector.broadcast %cst_176 : f32 to vector<64x32xf32>
    %230 = arith.maximumf %228, %229 : vector<64x32xf32>
    %cst_177 = arith.constant 0.000000e+00 : f32
    %231 = vector.broadcast %cst_177 : f32 to vector<16x32xf32>
    %c0_178 = arith.constant 0 : index
    %c0_179 = arith.constant 0 : index
    %232 = vector.load %arg22[%c0_178, %c0_179] : memref<96x32xf32, #tpu.memory_space<vmem>>, vector<16x32xf32>
    tpu.vector_store %arg22[%c0_178, %c0_179], %231 {strides = array<i32>} : memref<96x32xf32, #tpu.memory_space<vmem>>, vector<16x32xf32>,
    %c16_180 = arith.constant 16 : index
    %c0_181 = arith.constant 0 : index
    %233 = vector.load %arg22[%c16_180, %c0_181] : memref<96x32xf32, #tpu.memory_space<vmem>>, vector<64x32xf32>
    tpu.vector_store %arg22[%c16_180, %c0_181], %230 {strides = array<i32>} : memref<96x32xf32, #tpu.memory_space<vmem>>, vector<64x32xf32>,
    %c80_182 = arith.constant 80 : index
    %c0_183 = arith.constant 0 : index
    %234 = vector.load %arg22[%c80_182, %c0_183] : memref<96x32xf32, #tpu.memory_space<vmem>>, vector<16x32xf32>
    tpu.vector_store %arg22[%c80_182, %c0_183], %231 {strides = array<i32>} : memref<96x32xf32, #tpu.memory_space<vmem>>, vector<16x32xf32>,
    %c0_184 = arith.constant 0 : index
    %c0_185 = arith.constant 0 : index
    %235 = vector.load %arg3[%c0_184, %c0_185] : memref<64x2xf32, #tpu.memory_space<vmem>>, vector<64x1xf32>
    %cst_186 = arith.constant 5.000000e-01 : f32
    %236 = vector.broadcast %cst_186 : f32 to vector<64x1xf32>
    %237 = arith.cmpf ogt, %235, %236 : vector<64x1xf32>
    %c0_187 = arith.constant 0 : index
    %c1_188 = arith.constant 1 : index
    %238 = vector.load %arg3[%c0_187, %c1_188] : memref<64x2xf32, #tpu.memory_space<vmem>>, vector<64x1xf32>
    %cst_189 = arith.constant 5.000000e-01 : f32
    %239 = vector.broadcast %cst_189 : f32 to vector<64x1xf32>
    %240 = arith.cmpf ogt, %238, %239 : vector<64x1xf32>
    %cst_190 = arith.constant 0.000000e+00 : f32
    %241 = vector.broadcast %cst_190 : f32 to vector<64x64xf32>
    %c7_191 = arith.constant 7 : index
    %c0_192 = arith.constant 0 : index
    %242 = vector.load %arg22[%c7_191, %c0_192] : memref<96x32xf32, #tpu.memory_space<vmem>>, vector<64x32xf32>
    %cst_193 = arith.constant 0.000000e+00 : f32
    %243 = vector.shape_cast %237 : vector<64x1xi1> to vector<64x1xi1>
    %244 = vector.broadcast %243 : vector<64x1xi1> to vector<64x32xi1>
    %245 = vector.broadcast %cst_193 : f32 to vector<64x32xf32>
    %246 = arith.select %244, %242, %245 : vector<64x32xi1>, vector<64x32xf32>
    %c0_194 = arith.constant 0 : index
    %c0_195 = arith.constant 0 : index
    %247 = vector.load %arg14[%c0_194, %c0_195] : memref<288x64xf32, #tpu.memory_space<vmem>>, vector<32x64xf32>
    %cst_196 = arith.constant dense<0.000000e+00> : vector<64x64xf32>
    %248 = tpu.matmul %246, %247, %cst_196 {dimension_numbers = #tpu.dot_dimension_numbers<[1], [0], [0], [1], [0, 0, 1, 1], [], []>} : vector<64x32xf32>, vector<32x64xf32>, vector<64x64xf32> -> vector<64x64xf32>
    %249 = arith.addf %241, %248 : vector<64x64xf32>
    %c8_197 = arith.constant 8 : index
    %c0_198 = arith.constant 0 : index
    %250 = vector.load %arg22[%c8_197, %c0_198] : memref<96x32xf32, #tpu.memory_space<vmem>>, vector<64x32xf32>
    %c32_199 = arith.constant 32 : index
    %c0_200 = arith.constant 0 : index
    %251 = vector.load %arg14[%c32_199, %c0_200] : memref<288x64xf32, #tpu.memory_space<vmem>>, vector<32x64xf32>
    %cst_201 = arith.constant dense<0.000000e+00> : vector<64x64xf32>
    %252 = tpu.matmul %250, %251, %cst_201 {dimension_numbers = #tpu.dot_dimension_numbers<[1], [0], [0], [1], [0, 0, 1, 1], [], []>} : vector<64x32xf32>, vector<32x64xf32>, vector<64x64xf32> -> vector<64x64xf32>
    %253 = arith.addf %249, %252 : vector<64x64xf32>
    %c9_202 = arith.constant 9 : index
    %c0_203 = arith.constant 0 : index
    %254 = vector.load %arg22[%c9_202, %c0_203] : memref<96x32xf32, #tpu.memory_space<vmem>>, vector<64x32xf32>
    %cst_204 = arith.constant 0.000000e+00 : f32
    %255 = vector.shape_cast %240 : vector<64x1xi1> to vector<64x1xi1>
    %256 = vector.broadcast %255 : vector<64x1xi1> to vector<64x32xi1>
    %257 = vector.broadcast %cst_204 : f32 to vector<64x32xf32>
    %258 = arith.select %256, %254, %257 : vector<64x32xi1>, vector<64x32xf32>
    %c64_205 = arith.constant 64 : index
    %c0_206 = arith.constant 0 : index
    %259 = vector.load %arg14[%c64_205, %c0_206] : memref<288x64xf32, #tpu.memory_space<vmem>>, vector<32x64xf32>
    %cst_207 = arith.constant dense<0.000000e+00> : vector<64x64xf32>
    %260 = tpu.matmul %258, %259, %cst_207 {dimension_numbers = #tpu.dot_dimension_numbers<[1], [0], [0], [1], [0, 0, 1, 1], [], []>} : vector<64x32xf32>, vector<32x64xf32>, vector<64x64xf32> -> vector<64x64xf32>
    %261 = arith.addf %253, %260 : vector<64x64xf32>
    %c15_208 = arith.constant 15 : index
    %c0_209 = arith.constant 0 : index
    %262 = vector.load %arg22[%c15_208, %c0_209] : memref<96x32xf32, #tpu.memory_space<vmem>>, vector<64x32xf32>
    %cst_210 = arith.constant 0.000000e+00 : f32
    %263 = vector.shape_cast %237 : vector<64x1xi1> to vector<64x1xi1>
    %264 = vector.broadcast %263 : vector<64x1xi1> to vector<64x32xi1>
    %265 = vector.broadcast %cst_210 : f32 to vector<64x32xf32>
    %266 = arith.select %264, %262, %265 : vector<64x32xi1>, vector<64x32xf32>
    %c96_211 = arith.constant 96 : index
    %c0_212 = arith.constant 0 : index
    %267 = vector.load %arg14[%c96_211, %c0_212] : memref<288x64xf32, #tpu.memory_space<vmem>>, vector<32x64xf32>
    %cst_213 = arith.constant dense<0.000000e+00> : vector<64x64xf32>
    %268 = tpu.matmul %266, %267, %cst_213 {dimension_numbers = #tpu.dot_dimension_numbers<[1], [0], [0], [1], [0, 0, 1, 1], [], []>} : vector<64x32xf32>, vector<32x64xf32>, vector<64x64xf32> -> vector<64x64xf32>
    %269 = arith.addf %261, %268 : vector<64x64xf32>
    %c16_214 = arith.constant 16 : index
    %c0_215 = arith.constant 0 : index
    %270 = vector.load %arg22[%c16_214, %c0_215] : memref<96x32xf32, #tpu.memory_space<vmem>>, vector<64x32xf32>
    %c128_216 = arith.constant 128 : index
    %c0_217 = arith.constant 0 : index
    %271 = vector.load %arg14[%c128_216, %c0_217] : memref<288x64xf32, #tpu.memory_space<vmem>>, vector<32x64xf32>
    %cst_218 = arith.constant dense<0.000000e+00> : vector<64x64xf32>
    %272 = tpu.matmul %270, %271, %cst_218 {dimension_numbers = #tpu.dot_dimension_numbers<[1], [0], [0], [1], [0, 0, 1, 1], [], []>} : vector<64x32xf32>, vector<32x64xf32>, vector<64x64xf32> -> vector<64x64xf32>
    %273 = arith.addf %269, %272 : vector<64x64xf32>
    %c17_219 = arith.constant 17 : index
    %c0_220 = arith.constant 0 : index
    %274 = vector.load %arg22[%c17_219, %c0_220] : memref<96x32xf32, #tpu.memory_space<vmem>>, vector<64x32xf32>
    %cst_221 = arith.constant 0.000000e+00 : f32
    %275 = vector.shape_cast %240 : vector<64x1xi1> to vector<64x1xi1>
    %276 = vector.broadcast %275 : vector<64x1xi1> to vector<64x32xi1>
    %277 = vector.broadcast %cst_221 : f32 to vector<64x32xf32>
    %278 = arith.select %276, %274, %277 : vector<64x32xi1>, vector<64x32xf32>
    %c160_222 = arith.constant 160 : index
    %c0_223 = arith.constant 0 : index
    %279 = vector.load %arg14[%c160_222, %c0_223] : memref<288x64xf32, #tpu.memory_space<vmem>>, vector<32x64xf32>
    %cst_224 = arith.constant dense<0.000000e+00> : vector<64x64xf32>
    %280 = tpu.matmul %278, %279, %cst_224 {dimension_numbers = #tpu.dot_dimension_numbers<[1], [0], [0], [1], [0, 0, 1, 1], [], []>} : vector<64x32xf32>, vector<32x64xf32>, vector<64x64xf32> -> vector<64x64xf32>
    %281 = arith.addf %273, %280 : vector<64x64xf32>
    %c23_225 = arith.constant 23 : index
    %c0_226 = arith.constant 0 : index
    %282 = vector.load %arg22[%c23_225, %c0_226] : memref<96x32xf32, #tpu.memory_space<vmem>>, vector<64x32xf32>
    %cst_227 = arith.constant 0.000000e+00 : f32
    %283 = vector.shape_cast %237 : vector<64x1xi1> to vector<64x1xi1>
    %284 = vector.broadcast %283 : vector<64x1xi1> to vector<64x32xi1>
    %285 = vector.broadcast %cst_227 : f32 to vector<64x32xf32>
    %286 = arith.select %284, %282, %285 : vector<64x32xi1>, vector<64x32xf32>
    %c192_228 = arith.constant 192 : index
    %c0_229 = arith.constant 0 : index
    %287 = vector.load %arg14[%c192_228, %c0_229] : memref<288x64xf32, #tpu.memory_space<vmem>>, vector<32x64xf32>
    %cst_230 = arith.constant dense<0.000000e+00> : vector<64x64xf32>
    %288 = tpu.matmul %286, %287, %cst_230 {dimension_numbers = #tpu.dot_dimension_numbers<[1], [0], [0], [1], [0, 0, 1, 1], [], []>} : vector<64x32xf32>, vector<32x64xf32>, vector<64x64xf32> -> vector<64x64xf32>
    %289 = arith.addf %281, %288 : vector<64x64xf32>
    %c24_231 = arith.constant 24 : index
    %c0_232 = arith.constant 0 : index
    %290 = vector.load %arg22[%c24_231, %c0_232] : memref<96x32xf32, #tpu.memory_space<vmem>>, vector<64x32xf32>
    %c224_233 = arith.constant 224 : index
    %c0_234 = arith.constant 0 : index
    %291 = vector.load %arg14[%c224_233, %c0_234] : memref<288x64xf32, #tpu.memory_space<vmem>>, vector<32x64xf32>
    %cst_235 = arith.constant dense<0.000000e+00> : vector<64x64xf32>
    %292 = tpu.matmul %290, %291, %cst_235 {dimension_numbers = #tpu.dot_dimension_numbers<[1], [0], [0], [1], [0, 0, 1, 1], [], []>} : vector<64x32xf32>, vector<32x64xf32>, vector<64x64xf32> -> vector<64x64xf32>
    %293 = arith.addf %289, %292 : vector<64x64xf32>
    %c25_236 = arith.constant 25 : index
    %c0_237 = arith.constant 0 : index
    %294 = vector.load %arg22[%c25_236, %c0_237] : memref<96x32xf32, #tpu.memory_space<vmem>>, vector<64x32xf32>
    %cst_238 = arith.constant 0.000000e+00 : f32
    %295 = vector.shape_cast %240 : vector<64x1xi1> to vector<64x1xi1>
    %296 = vector.broadcast %295 : vector<64x1xi1> to vector<64x32xi1>
    %297 = vector.broadcast %cst_238 : f32 to vector<64x32xf32>
    %298 = arith.select %296, %294, %297 : vector<64x32xi1>, vector<64x32xf32>
    %c256_239 = arith.constant 256 : index
    %c0_240 = arith.constant 0 : index
    %299 = vector.load %arg14[%c256_239, %c0_240] : memref<288x64xf32, #tpu.memory_space<vmem>>, vector<32x64xf32>
    %cst_241 = arith.constant dense<0.000000e+00> : vector<64x64xf32>
    %300 = tpu.matmul %298, %299, %cst_241 {dimension_numbers = #tpu.dot_dimension_numbers<[1], [0], [0], [1], [0, 0, 1, 1], [], []>} : vector<64x32xf32>, vector<32x64xf32>, vector<64x64xf32> -> vector<64x64xf32>
    %301 = arith.addf %293, %300 : vector<64x64xf32>
    %c0_242 = arith.constant 0 : index
    %c0_243 = arith.constant 0 : index
    %302 = vector.load %arg15[%c0_242, %c0_243] : memref<1x64xf32, #tpu.memory_space<vmem>>, vector<1x64xf32>
    %303 = vector.broadcast %302 : vector<1x64xf32> to vector<64x64xf32>
    %304 = arith.addf %301, %303 : vector<64x64xf32>
    %cst_244 = arith.constant 0.000000e+00 : f32
    %305 = vector.broadcast %cst_244 : f32 to vector<64x64xf32>
    %306 = arith.maximumf %304, %305 : vector<64x64xf32>
    %c0_245 = arith.constant 0 : index
    %c0_246 = arith.constant 0 : index
    %307 = vector.load %arg6[%c0_245, %c0_246] : memref<16x64xf32, #tpu.memory_space<vmem>>, vector<16x64xf32>
    %cst_247 = arith.constant dense<0.000000e+00> : vector<16x64xf32>
    %308 = tpu.matmul %307, %306, %cst_247 {dimension_numbers = #tpu.dot_dimension_numbers<[1], [0], [0], [1], [0, 0, 1, 1], [], []>} : vector<16x64xf32>, vector<64x64xf32>, vector<16x64xf32> -> vector<16x64xf32>
    %cst_248 = arith.constant 0.000000e+00 : f32
    %309 = vector.broadcast %cst_248 : f32 to vector<8x64xf32>
    %c0_249 = arith.constant 0 : index
    %c0_250 = arith.constant 0 : index
    %310 = vector.load %arg23[%c0_249, %c0_250] : memref<32x64xf32, #tpu.memory_space<vmem>>, vector<8x64xf32>
    tpu.vector_store %arg23[%c0_249, %c0_250], %309 {strides = array<i32>} : memref<32x64xf32, #tpu.memory_space<vmem>>, vector<8x64xf32>,
    %c8_251 = arith.constant 8 : index
    %c0_252 = arith.constant 0 : index
    %311 = vector.load %arg23[%c8_251, %c0_252] : memref<32x64xf32, #tpu.memory_space<vmem>>, vector<16x64xf32>
    tpu.vector_store %arg23[%c8_251, %c0_252], %308 {strides = array<i32>} : memref<32x64xf32, #tpu.memory_space<vmem>>, vector<16x64xf32>,
    %c24_253 = arith.constant 24 : index
    %c0_254 = arith.constant 0 : index
    %312 = vector.load %arg23[%c24_253, %c0_254] : memref<32x64xf32, #tpu.memory_space<vmem>>, vector<8x64xf32>
    tpu.vector_store %arg23[%c24_253, %c0_254], %309 {strides = array<i32>} : memref<32x64xf32, #tpu.memory_space<vmem>>, vector<8x64xf32>,
    %c0_255 = arith.constant 0 : index
    %c0_256 = arith.constant 0 : index
    %313 = vector.load %arg4[%c0_255, %c0_256] : memref<16x2xf32, #tpu.memory_space<vmem>>, vector<16x1xf32>
    %cst_257 = arith.constant 5.000000e-01 : f32
    %314 = vector.broadcast %cst_257 : f32 to vector<16x1xf32>
    %315 = arith.cmpf ogt, %313, %314 : vector<16x1xf32>
    %c0_258 = arith.constant 0 : index
    %c1_259 = arith.constant 1 : index
    %316 = vector.load %arg4[%c0_258, %c1_259] : memref<16x2xf32, #tpu.memory_space<vmem>>, vector<16x1xf32>
    %cst_260 = arith.constant 5.000000e-01 : f32
    %317 = vector.broadcast %cst_260 : f32 to vector<16x1xf32>
    %318 = arith.cmpf ogt, %316, %317 : vector<16x1xf32>
    %cst_261 = arith.constant 0.000000e+00 : f32
    %319 = vector.broadcast %cst_261 : f32 to vector<16x128xf32>
    %c3_262 = arith.constant 3 : index
    %c0_263 = arith.constant 0 : index
    %320 = vector.load %arg23[%c3_262, %c0_263] : memref<32x64xf32, #tpu.memory_space<vmem>>, vector<16x64xf32>
    %cst_264 = arith.constant 0.000000e+00 : f32
    %321 = vector.shape_cast %315 : vector<16x1xi1> to vector<16x1xi1>
    %322 = vector.broadcast %321 : vector<16x1xi1> to vector<16x64xi1>
    %323 = vector.broadcast %cst_264 : f32 to vector<16x64xf32>
    %324 = arith.select %322, %320, %323 : vector<16x64xi1>, vector<16x64xf32>
    %c0_265 = arith.constant 0 : index
    %c0_266 = arith.constant 0 : index
    %325 = vector.load %arg16[%c0_265, %c0_266] : memref<576x128xf32, #tpu.memory_space<vmem>>, vector<64x128xf32>
    %cst_267 = arith.constant dense<0.000000e+00> : vector<16x128xf32>
    %326 = tpu.matmul %324, %325, %cst_267 {dimension_numbers = #tpu.dot_dimension_numbers<[1], [0], [0], [1], [0, 0, 1, 1], [], []>} : vector<16x64xf32>, vector<64x128xf32>, vector<16x128xf32> -> vector<16x128xf32>
    %327 = arith.addf %319, %326 : vector<16x128xf32>
    %c4 = arith.constant 4 : index
    %c0_268 = arith.constant 0 : index
    %328 = vector.load %arg23[%c4, %c0_268] : memref<32x64xf32, #tpu.memory_space<vmem>>, vector<16x64xf32>
    %c64_269 = arith.constant 64 : index
    %c0_270 = arith.constant 0 : index
    %329 = vector.load %arg16[%c64_269, %c0_270] : memref<576x128xf32, #tpu.memory_space<vmem>>, vector<64x128xf32>
    %cst_271 = arith.constant dense<0.000000e+00> : vector<16x128xf32>
    %330 = tpu.matmul %328, %329, %cst_271 {dimension_numbers = #tpu.dot_dimension_numbers<[1], [0], [0], [1], [0, 0, 1, 1], [], []>} : vector<16x64xf32>, vector<64x128xf32>, vector<16x128xf32> -> vector<16x128xf32>
    %331 = arith.addf %327, %330 : vector<16x128xf32>
    %c5 = arith.constant 5 : index
    %c0_272 = arith.constant 0 : index
    %332 = vector.load %arg23[%c5, %c0_272] : memref<32x64xf32, #tpu.memory_space<vmem>>, vector<16x64xf32>
    %cst_273 = arith.constant 0.000000e+00 : f32
    %333 = vector.shape_cast %318 : vector<16x1xi1> to vector<16x1xi1>
    %334 = vector.broadcast %333 : vector<16x1xi1> to vector<16x64xi1>
    %335 = vector.broadcast %cst_273 : f32 to vector<16x64xf32>
    %336 = arith.select %334, %332, %335 : vector<16x64xi1>, vector<16x64xf32>
    %c128_274 = arith.constant 128 : index
    %c0_275 = arith.constant 0 : index
    %337 = vector.load %arg16[%c128_274, %c0_275] : memref<576x128xf32, #tpu.memory_space<vmem>>, vector<64x128xf32>
    %cst_276 = arith.constant dense<0.000000e+00> : vector<16x128xf32>
    %338 = tpu.matmul %336, %337, %cst_276 {dimension_numbers = #tpu.dot_dimension_numbers<[1], [0], [0], [1], [0, 0, 1, 1], [], []>} : vector<16x64xf32>, vector<64x128xf32>, vector<16x128xf32> -> vector<16x128xf32>
    %339 = arith.addf %331, %338 : vector<16x128xf32>
    %c7_277 = arith.constant 7 : index
    %c0_278 = arith.constant 0 : index
    %340 = vector.load %arg23[%c7_277, %c0_278] : memref<32x64xf32, #tpu.memory_space<vmem>>, vector<16x64xf32>
    %cst_279 = arith.constant 0.000000e+00 : f32
    %341 = vector.shape_cast %315 : vector<16x1xi1> to vector<16x1xi1>
    %342 = vector.broadcast %341 : vector<16x1xi1> to vector<16x64xi1>
    %343 = vector.broadcast %cst_279 : f32 to vector<16x64xf32>
    %344 = arith.select %342, %340, %343 : vector<16x64xi1>, vector<16x64xf32>
    %c192_280 = arith.constant 192 : index
    %c0_281 = arith.constant 0 : index
    %345 = vector.load %arg16[%c192_280, %c0_281] : memref<576x128xf32, #tpu.memory_space<vmem>>, vector<64x128xf32>
    %cst_282 = arith.constant dense<0.000000e+00> : vector<16x128xf32>
    %346 = tpu.matmul %344, %345, %cst_282 {dimension_numbers = #tpu.dot_dimension_numbers<[1], [0], [0], [1], [0, 0, 1, 1], [], []>} : vector<16x64xf32>, vector<64x128xf32>, vector<16x128xf32> -> vector<16x128xf32>
    %347 = arith.addf %339, %346 : vector<16x128xf32>
    %c8_283 = arith.constant 8 : index
    %c0_284 = arith.constant 0 : index
    %348 = vector.load %arg23[%c8_283, %c0_284] : memref<32x64xf32, #tpu.memory_space<vmem>>, vector<16x64xf32>
    %c256_285 = arith.constant 256 : index
    %c0_286 = arith.constant 0 : index
    %349 = vector.load %arg16[%c256_285, %c0_286] : memref<576x128xf32, #tpu.memory_space<vmem>>, vector<64x128xf32>
    %cst_287 = arith.constant dense<0.000000e+00> : vector<16x128xf32>
    %350 = tpu.matmul %348, %349, %cst_287 {dimension_numbers = #tpu.dot_dimension_numbers<[1], [0], [0], [1], [0, 0, 1, 1], [], []>} : vector<16x64xf32>, vector<64x128xf32>, vector<16x128xf32> -> vector<16x128xf32>
    %351 = arith.addf %347, %350 : vector<16x128xf32>
    %c9_288 = arith.constant 9 : index
    %c0_289 = arith.constant 0 : index
    %352 = vector.load %arg23[%c9_288, %c0_289] : memref<32x64xf32, #tpu.memory_space<vmem>>, vector<16x64xf32>
    %cst_290 = arith.constant 0.000000e+00 : f32
    %353 = vector.shape_cast %318 : vector<16x1xi1> to vector<16x1xi1>
    %354 = vector.broadcast %353 : vector<16x1xi1> to vector<16x64xi1>
    %355 = vector.broadcast %cst_290 : f32 to vector<16x64xf32>
    %356 = arith.select %354, %352, %355 : vector<16x64xi1>, vector<16x64xf32>
    %c320 = arith.constant 320 : index
    %c0_291 = arith.constant 0 : index
    %357 = vector.load %arg16[%c320, %c0_291] : memref<576x128xf32, #tpu.memory_space<vmem>>, vector<64x128xf32>
    %cst_292 = arith.constant dense<0.000000e+00> : vector<16x128xf32>
    %358 = tpu.matmul %356, %357, %cst_292 {dimension_numbers = #tpu.dot_dimension_numbers<[1], [0], [0], [1], [0, 0, 1, 1], [], []>} : vector<16x64xf32>, vector<64x128xf32>, vector<16x128xf32> -> vector<16x128xf32>
    %359 = arith.addf %351, %358 : vector<16x128xf32>
    %c11 = arith.constant 11 : index
    %c0_293 = arith.constant 0 : index
    %360 = vector.load %arg23[%c11, %c0_293] : memref<32x64xf32, #tpu.memory_space<vmem>>, vector<16x64xf32>
    %cst_294 = arith.constant 0.000000e+00 : f32
    %361 = vector.shape_cast %315 : vector<16x1xi1> to vector<16x1xi1>
    %362 = vector.broadcast %361 : vector<16x1xi1> to vector<16x64xi1>
    %363 = vector.broadcast %cst_294 : f32 to vector<16x64xf32>
    %364 = arith.select %362, %360, %363 : vector<16x64xi1>, vector<16x64xf32>
    %c384 = arith.constant 384 : index
    %c0_295 = arith.constant 0 : index
    %365 = vector.load %arg16[%c384, %c0_295] : memref<576x128xf32, #tpu.memory_space<vmem>>, vector<64x128xf32>
    %cst_296 = arith.constant dense<0.000000e+00> : vector<16x128xf32>
    %366 = tpu.matmul %364, %365, %cst_296 {dimension_numbers = #tpu.dot_dimension_numbers<[1], [0], [0], [1], [0, 0, 1, 1], [], []>} : vector<16x64xf32>, vector<64x128xf32>, vector<16x128xf32> -> vector<16x128xf32>
    %367 = arith.addf %359, %366 : vector<16x128xf32>
    %c12_297 = arith.constant 12 : index
    %c0_298 = arith.constant 0 : index
    %368 = vector.load %arg23[%c12_297, %c0_298] : memref<32x64xf32, #tpu.memory_space<vmem>>, vector<16x64xf32>
    %c448 = arith.constant 448 : index
    %c0_299 = arith.constant 0 : index
    %369 = vector.load %arg16[%c448, %c0_299] : memref<576x128xf32, #tpu.memory_space<vmem>>, vector<64x128xf32>
    %cst_300 = arith.constant dense<0.000000e+00> : vector<16x128xf32>
    %370 = tpu.matmul %368, %369, %cst_300 {dimension_numbers = #tpu.dot_dimension_numbers<[1], [0], [0], [1], [0, 0, 1, 1], [], []>} : vector<16x64xf32>, vector<64x128xf32>, vector<16x128xf32> -> vector<16x128xf32>
    %371 = arith.addf %367, %370 : vector<16x128xf32>
    %c13 = arith.constant 13 : index
    %c0_301 = arith.constant 0 : index
    %372 = vector.load %arg23[%c13, %c0_301] : memref<32x64xf32, #tpu.memory_space<vmem>>, vector<16x64xf32>
    %cst_302 = arith.constant 0.000000e+00 : f32
    %373 = vector.shape_cast %318 : vector<16x1xi1> to vector<16x1xi1>
    %374 = vector.broadcast %373 : vector<16x1xi1> to vector<16x64xi1>
    %375 = vector.broadcast %cst_302 : f32 to vector<16x64xf32>
    %376 = arith.select %374, %372, %375 : vector<16x64xi1>, vector<16x64xf32>
    %c512 = arith.constant 512 : index
    %c0_303 = arith.constant 0 : index
    %377 = vector.load %arg16[%c512, %c0_303] : memref<576x128xf32, #tpu.memory_space<vmem>>, vector<64x128xf32>
    %cst_304 = arith.constant dense<0.000000e+00> : vector<16x128xf32>
    %378 = tpu.matmul %376, %377, %cst_304 {dimension_numbers = #tpu.dot_dimension_numbers<[1], [0], [0], [1], [0, 0, 1, 1], [], []>} : vector<16x64xf32>, vector<64x128xf32>, vector<16x128xf32> -> vector<16x128xf32>
    %379 = arith.addf %371, %378 : vector<16x128xf32>
    %c0_305 = arith.constant 0 : index
    %c0_306 = arith.constant 0 : index
    %380 = vector.load %arg17[%c0_305, %c0_306] : memref<1x128xf32, #tpu.memory_space<vmem>>, vector<1x128xf32>
    %381 = vector.broadcast %380 : vector<1x128xf32> to vector<16x128xf32>
    %382 = arith.addf %379, %381 : vector<16x128xf32>
    %383 = tpu.iota {dimensions = array<i32: 1>} : vector<16x128xi32>
    %c1_i32 = arith.constant 1 : i32
    %384 = vector.broadcast %c1_i32 : i32 to vector<16x128xi32>
    %385 = arith.cmpi eq, %383, %384 : vector<16x128xi32>
    %c0_307 = arith.constant 0 : index
    %c0_308 = arith.constant 0 : index
    %386 = vector.load %arg7[%c0_307, %c0_308] : memref<16x2xf32, #tpu.memory_space<vmem>>, vector<16x1xf32>
    %c0_309 = arith.constant 0 : index
    %c1_310 = arith.constant 1 : index
    %387 = vector.load %arg7[%c0_309, %c1_310] : memref<16x2xf32, #tpu.memory_space<vmem>>, vector<16x1xf32>
    %388 = vector.shape_cast %386 : vector<16x1xf32> to vector<16x1xf32>
    %389 = vector.broadcast %388 : vector<16x1xf32> to vector<16x128xf32>
    %390 = vector.shape_cast %387 : vector<16x1xf32> to vector<16x1xf32>
    %391 = vector.broadcast %390 : vector<16x1xf32> to vector<16x128xf32>
    %392 = arith.select %385, %389, %391 : vector<16x128xi1>, vector<16x128xf32>
    %c1_i32_311 = arith.constant 1 : i32
    %393 = vector.broadcast %c1_i32_311 : i32 to vector<16x128xi32>
    %394 = arith.cmpi eq, %383, %393 : vector<16x128xi32>
    %cst_312 = arith.constant 1.500000e+01 : f32
    %cst_313 = arith.constant 1.500000e+01 : f32
    %395 = vector.broadcast %cst_312 : f32 to vector<16x128xf32>
    %396 = vector.broadcast %cst_313 : f32 to vector<16x128xf32>
    %397 = arith.select %394, %395, %396 : vector<16x128xi1>, vector<16x128xf32>
    %398 = math.tanh %382 : vector<16x128xf32>
    %cst_314 = arith.constant 1.500000e+00 : f32
    %399 = vector.broadcast %cst_314 : f32 to vector<16x128xf32>
    %400 = arith.mulf %398, %399 : vector<16x128xf32>
    %401 = arith.addf %392, %400 : vector<16x128xf32>
    %cst_315 = arith.constant 0.000000e+00 : f32
    %402 = vector.broadcast %cst_315 : f32 to vector<16x128xf32>
    %403 = arith.maximumf %402, %401 : vector<16x128xf32>
    %404 = arith.minimumf %397, %403 : vector<16x128xf32>
    %405 = arith.negf %382 : vector<16x128xf32>
    %406 = math.exp %405 : vector<16x128xf32>
    %cst_316 = arith.constant 1.000000e+00 : f32
    %407 = vector.broadcast %cst_316 : f32 to vector<16x128xf32>
    %408 = arith.addf %407, %406 : vector<16x128xf32>
    %409 = arith.divf %407, %408 : vector<16x128xf32>
    %c0_i32 = arith.constant 0 : i32
    %410 = vector.broadcast %c0_i32 : i32 to vector<16x128xi32>
    %411 = arith.cmpi eq, %383, %410 : vector<16x128xi32>
    %c2_i32 = arith.constant 2 : i32
    %412 = vector.broadcast %c2_i32 : i32 to vector<16x128xi32>
    %413 = arith.cmpi sle, %383, %412 : vector<16x128xi32>
    %414 = arith.select %413, %404, %382 : vector<16x128xi1>, vector<16x128xf32>
    %415 = arith.select %411, %409, %414 : vector<16x128xi1>, vector<16x128xf32>
    %c67_i32 = arith.constant 67 : i32
    %416 = vector.broadcast %c67_i32 : i32 to vector<16x128xi32>
    %417 = arith.cmpi slt, %383, %416 : vector<16x128xi32>
    %cst_317 = arith.constant 0.000000e+00 : f32
    %418 = vector.broadcast %cst_317 : f32 to vector<16x128xf32>
    %419 = arith.select %417, %415, %418 : vector<16x128xi1>, vector<16x128xf32>
    %c0_318 = arith.constant 0 : index
    %c0_319 = arith.constant 0 : index
    %420 = vector.load %arg18[%c0_318, %c0_319] : memref<16x128xf32, #tpu.memory_space<vmem>>, vector<16x128xf32>
    tpu.vector_store %arg18[%c0_318, %c0_319], %419 {strides = array<i32>} : memref<16x128xf32, #tpu.memory_space<vmem>>, vector<16x128xf32>,
    return
  }
  func.func @transform_0(%arg0: i32) -> (i32, i32) {
    %c0_i32 = arith.constant 0 : i32
    %c0_i32_0 = arith.constant 0 : i32
    return %arg0, %c0_i32 : i32, i32
  }
  func.func @transform_1(%arg0: i32) -> (i32, i32) {
    %c0_i32 = arith.constant 0 : i32
    %c0_i32_0 = arith.constant 0 : i32
    %c0_i32_1 = arith.constant 0 : i32
    return %c0_i32, %c0_i32_0 : i32, i32
  }
  func.func @transform_2(%arg0: i32) -> (i32, i32) {
    %c0_i32 = arith.constant 0 : i32
    %c0_i32_0 = arith.constant 0 : i32
    %c0_i32_1 = arith.constant 0 : i32
    return %c0_i32, %c0_i32_0 : i32, i32
  }
  func.func @transform_3(%arg0: i32) -> (i32, i32) {
    %c0_i32 = arith.constant 0 : i32
    %c0_i32_0 = arith.constant 0 : i32
    %c0_i32_1 = arith.constant 0 : i32
    return %c0_i32, %c0_i32_0 : i32, i32
  }
  func.func @transform_4(%arg0: i32) -> (i32, i32) {
    %c0_i32 = arith.constant 0 : i32
    %c0_i32_0 = arith.constant 0 : i32
    %c0_i32_1 = arith.constant 0 : i32
    return %c0_i32, %c0_i32_0 : i32, i32
  }
  func.func @transform_5(%arg0: i32) -> (i32, i32) {
    %c0_i32 = arith.constant 0 : i32
    %c0_i32_0 = arith.constant 0 : i32
    %c0_i32_1 = arith.constant 0 : i32
    return %c0_i32, %c0_i32_0 : i32, i32
  }
  func.func @transform_6(%arg0: i32) -> (i32, i32) {
    %c0_i32 = arith.constant 0 : i32
    %c0_i32_0 = arith.constant 0 : i32
    %c0_i32_1 = arith.constant 0 : i32
    return %c0_i32, %c0_i32_0 : i32, i32
  }
  func.func @transform_7(%arg0: i32) -> (i32, i32) {
    %c0_i32 = arith.constant 0 : i32
    %c0_i32_0 = arith.constant 0 : i32
    %c0_i32_1 = arith.constant 0 : i32
    return %c0_i32, %c0_i32_0 : i32, i32
  }
  func.func @transform_8(%arg0: i32) -> (i32, i32) {
    %c0_i32 = arith.constant 0 : i32
    %c0_i32_0 = arith.constant 0 : i32
    %c0_i32_1 = arith.constant 0 : i32
    return %c0_i32, %c0_i32_0 : i32, i32
  }
  func.func @transform_9(%arg0: i32) -> (i32, i32) {
    %c0_i32 = arith.constant 0 : i32
    %c0_i32_0 = arith.constant 0 : i32
    %c0_i32_1 = arith.constant 0 : i32
    return %c0_i32, %c0_i32_0 : i32, i32
  }
  func.func @transform_10(%arg0: i32) -> (i32, i32) {
    %c0_i32 = arith.constant 0 : i32
    %c0_i32_0 = arith.constant 0 : i32
    %c0_i32_1 = arith.constant 0 : i32
    return %c0_i32, %c0_i32_0 : i32, i32
  }
  func.func @transform_11(%arg0: i32) -> (i32, i32) {
    %c0_i32 = arith.constant 0 : i32
    %c0_i32_0 = arith.constant 0 : i32
    %c0_i32_1 = arith.constant 0 : i32
    return %c0_i32, %c0_i32_0 : i32, i32
  }
  func.func @transform_12(%arg0: i32) -> (i32, i32) {
    %c0_i32 = arith.constant 0 : i32
    %c0_i32_0 = arith.constant 0 : i32
    %c0_i32_1 = arith.constant 0 : i32
    return %c0_i32, %c0_i32_0 : i32, i32
  }
  func.func @transform_13(%arg0: i32) -> (i32, i32) {
    %c0_i32 = arith.constant 0 : i32
    %c0_i32_0 = arith.constant 0 : i32
    %c0_i32_1 = arith.constant 0 : i32
    return %c0_i32, %c0_i32_0 : i32, i32
  }
  func.func @transform_14(%arg0: i32) -> (i32, i32) {
    %c0_i32 = arith.constant 0 : i32
    %c0_i32_0 = arith.constant 0 : i32
    %c0_i32_1 = arith.constant 0 : i32
    return %c0_i32, %c0_i32_0 : i32, i32
  }
  func.func @transform_15(%arg0: i32) -> (i32, i32) {
    %c0_i32 = arith.constant 0 : i32
    %c0_i32_0 = arith.constant 0 : i32
    %c0_i32_1 = arith.constant 0 : i32
    return %c0_i32, %c0_i32_0 : i32, i32
  }
  func.func @transform_16(%arg0: i32) -> (i32, i32) {
    %c0_i32 = arith.constant 0 : i32
    %c0_i32_0 = arith.constant 0 : i32
    %c0_i32_1 = arith.constant 0 : i32
    return %c0_i32, %c0_i32_0 : i32, i32
  }
  func.func @transform_17(%arg0: i32) -> (i32, i32) {
    %c0_i32 = arith.constant 0 : i32
    %c0_i32_0 = arith.constant 0 : i32
    return %arg0, %c0_i32 : i32, i32
  }
}

</mosaic_0001>

<bundles_post_ra>
// kernel: point_model_forward.1
= control target key start
LH: loop header
LB: loop body
LE: loop exit
PB: predicated region body
PF: predicated region fallthrough
CT: control target
= control target key end

     0   :  { %s17335_s24 = smov 0   ;;  %s22524_s0 = inlined_call_operand.vmem [shape: f32[512,3], index: 0, kind: input, shape index: {}]   ;;  %s22525_s1 = inlined_call_operand.vmem [shape: f32[256,2], index: 1, kind: input, shape index: {}]   ;;  %s22526_s2 = inlined_call_operand.vmem [shape: f32[64,2], index: 2, kind: input, shape index: {}]   ;;  %s22527_s3 = inlined_call_operand.vmem [shape: f32[16,2], index: 3, kind: input, shape index: {}]   ;;  %s22528_s4 = inlined_call_operand.vmem [shape: f32[64,256], index: 4, kind: input, shape index: {}]   ;;  %s22529_s5 = inlined_call_operand.vmem [shape: f32[16,64], index: 5, kind: input, shape index: {}]   ;;  %s22530_s6 = inlined_call_operand.vmem [shape: f32[16,2], index: 6, kind: input, shape index: {}]   ;;  %s22531_s7 = inlined_call_operand.vmem [shape: f32[27,16], index: 7, kind: input, shape index: {}]   ;;  %s22532_s8 = inlined_call_operand.vmem [shape: f32[1,16], index: 8, kind: input, shape index: {}]   ;;  %s22533_s9 = inlined_call_operand.vmem [shape: f32[144,32], index: 9, kind: input, shape index: {}]   ;;  %s22534_s10 = inlined_call_operand.vmem [shape: f32[1,32], index: 10, kind: input, shape index: {}]   ;;  %s22535_s11 = inlined_call_operand.vmem [shape: f32[288,32], index: 11, kind: input, shape index: {}]   ;;  %s22536_s12 = inlined_call_operand.vmem [shape: f32[1,32], index: 12, kind: input, shape index: {}]   ;;  %s22537_s13 = inlined_call_operand.vmem [shape: f32[288,64], index: 13, kind: input, shape index: {}]   ;;  %s22538_s14 = inlined_call_operand.vmem [shape: f32[1,64], index: 14, kind: input, shape index: {}]   ;;  %s22539_s15 = inlined_call_operand.vmem [shape: f32[576,128], index: 15, kind: input, shape index: {}]   ;;  %s22540_s16 = inlined_call_operand.vmem [shape: f32[1,128], index: 16, kind: input, shape index: {}]   ;;  %s22541_s17 = inlined_call_operand.vmem [shape: f32[32,128], index: 17, kind: output, shape index: {}]  }
   0x1   :  { %22786 = sst [smem:[#allocation202_spill]] %s22524_s0 }
   0x2   :  { %22787 = sst [smem:[#allocation203_spill]] %s22525_s1 }
   0x3 LB: > { %s12941_s25 = sadd.s32 4294967295, %s17239_s24   ;;  %p12945_p0 = scmp.ge.s32.totalorder %s17239_s24, 1  ;;  %s17239_s24 = sphi %s17335_s24, %s27_s24  }
   0x4   : > { %p488_p1 = scmp.lt.s32.totalorder %s17239_s24, 3 }
   0x6   : > { %p489_p2 = pnand %p12945_p0, %p488_p1 }
   0x8   : > { %492 = sbr.rel (%p489_p2) target bundleno = 3212 (0xc8c), region = 88 }
   0xf   : > { %s22788_s28 = sld [smem:[#allocation203_spill]]  ;;  %v22556_v3 = vmov 0   ;;  %vm1041_vm10 = vcmask 1042432   ;;  %v944_v21 = vld [vmem:[%s22531_s7 + $0x3] sm:$0x7]  ;;  %s12946_s29 = sshll.u32 %s12941_s25, 5 }
  0x10   : > { %17194 = vset.pattern.permute.xlu1 %v22556_v3  ;;  %17193 = vset.pattern.permute.xlu0 %v22556_v3  ;;  %vm584_vm13 = vcmask 23552   ;;  %p541_p3 = scmp.lt.s32.totalorder %s12946_s29, 63  ;;  %v17429_v24 = vld [vmem:[%s22531_s7] sm:$0x7]  ;;  %v17242_v27 = vmov 0.5   ;;  %s22789_s18 = sld [smem:[#allocation202_spill]] }
  0x11   : > { %14683 = vmatprep.subr.msk.mxu0 %vm1041_vm10, %v944_v21  ;;  %586 = vst.msk [vmem:[#allocation2 + $0x8] sm:$0xff] %vm584_vm13, %v17242_v27  ;;  %585 = vst.msk [vmem:[#allocation2] sm:$0xff] %vm584_vm13, %v17242_v27  ;;  %s12948_s20 = sshll.u32 %s12941_s25, 1 }
  0x12   : > { %14684 = vmatpush3.msk.msra.mxu0 %vm1041_vm10, %v944_v21  ;;  %587 = vst.msk [vmem:[#allocation2 + $0x10] sm:$0xff] %vm584_vm13, %v17242_v27  ;;  %620 = vst.msk [vmem:[#allocation2 + $0x118] sm:$0xff] %vm584_vm13, %v17242_v27  ;;  %s23431_s29 = smov (!%p541_p3, %s12946_s29), 63  ;;  %p547_p4 = scmp.lt.s32.totalorder %s12948_s20, 3 }
  0x13   : > { %621 = vst.msk [vmem:[#allocation2 + $0x120] sm:$0xff] %vm584_vm13, %v17242_v27  ;;  %622 = vst.msk [vmem:[#allocation2 + $0x128] sm:$0xff] %vm584_vm13, %v17242_v27  ;;  %14733 = vmatprep.subr.msk.mxu0 %vm1041_vm10, %v17429_v24  ;;  %s12947_s21 = sshll.u32 %s23431_s29, 3 }
  0x14   : > { %s23433_s20 = smov (!%p547_p4, %s12948_s20), 3 }
  0x15   : > { %v625_v0 = vld [vmem:[%s22788_s28 + $0x10] sm:$0xff]  ;;  %v623_v1 = vld [vmem:[%s22788_s28] sm:$0xff]  ;;  %v626_v2 = vld [vmem:[%s22788_s28 + $0x18] sm:$0xff] }
  0x16   : > { %vm657_vm0 = vcmp.gt.f32.partialorder %v625_v0, 0.5  ;;  %vm655_vm1 = vcmp.gt.f32.partialorder %v623_v1, 0.5  ;;  %vm658_vm2 = vcmp.gt.f32.partialorder %v626_v2, 0.5  ;;  %v624_v4 = vld [vmem:[%s22788_s28 + $0x8] sm:$0xff]  ;;  %v627_v8 = vld [vmem:[%s22788_s28 + $0x20] sm:$0xff]  ;;  %v630_v11 = vld [vmem:[%s22788_s28 + $0x38] sm:$0xff]  ;;  %s17465_s19 = scalar_lea.vmem %s22789_s18, %s12947_s21 }
  0x17   : > { %v17358_v5 = vsel %vm657_vm0, 1, %v22556_v3  ;;  %v17361_v6 = vsel %vm655_vm1, 1, %v22556_v3  ;;  %vm656_vm3 = vcmp.gt.f32.partialorder %v624_v4, 0.5  ;;  %v628_v7 = vld [vmem:[%s22788_s28 + $0x28] sm:$0xff]  ;;  %v17372_v9 = vsel %vm658_vm2, 1, %v22556_v3  ;;  %v629_v12 = vld [vmem:[%s22788_s28 + $0x30] sm:$0xff] }
  0x18   : > { %758 = vperm.xlu1 %17194, %v17358_v5   ;;  %752 = vperm.xlu0 %17193, %v17361_v6   ;;  %v17375_v10 = vsel %vm656_vm3, 1, %v22556_v3  ;;  %vm660_vm4 = vcmp.gt.f32.partialorder %v628_v7, 0.5  ;;  %vm659_vm5 = vcmp.gt.f32.partialorder %v627_v8, 0.5  ;;  %vm662_vm6 = vcmp.gt.f32.partialorder %v630_v11, 0.5  ;;  %v632_v15 = vld [vmem:[%s22788_s28 + $0x48] sm:$0xff]  ;;  %v631_v16 = vld [vmem:[%s22788_s28 + $0x40] sm:$0xff] }
  0x19   : > { %v17386_v13 = vsel %vm660_vm4, 1, %v22556_v3  ;;  %v17389_v14 = vsel %vm659_vm5, 1, %v22556_v3  ;;  %vm661_vm7 = vcmp.gt.f32.partialorder %v629_v12, 0.5  ;;  %v17400_v17 = vsel %vm662_vm6, 1, %v22556_v3  ;;  %v634_v19 = vld [vmem:[%s22788_s28 + $0x58] sm:$0xff]  ;;  %v633_v20 = vld [vmem:[%s22788_s28 + $0x50] sm:$0xff] }
  0x1a   : > { %v17403_v18 = vsel %vm661_vm7, 1, %v22556_v3  ;;  %vm664_vm8 = vcmp.gt.f32.partialorder %v632_v15, 0.5  ;;  %vm663_vm9 = vcmp.gt.f32.partialorder %v631_v16, 0.5  ;;  %vm666_vm11 = vcmp.gt.f32.partialorder %v634_v19, 0.5  ;;  %v636_v25 = vld [vmem:[%s22788_s28 + $0x68] sm:$0xff]  ;;  %v635_v26 = vld [vmem:[%s22788_s28 + $0x60] sm:$0xff] }
  0x1b   : > { %v17417_v22 = vsel %vm664_vm8, 1, %v22556_v3  ;;  %v17420_v23 = vsel %vm663_vm9, 1, %v22556_v3  ;;  %vm665_vm12 = vcmp.gt.f32.partialorder %v633_v20, 0.5  ;;  %v17450_v28 = vsel %vm666_vm11, 1, %v22556_v3  ;;  %v638_v30 = vld [vmem:[%s22788_s28 + $0x78] sm:$0xff]  ;;  %v637_v31 = vld [vmem:[%s22788_s28 + $0x70] sm:$0xff] }
  0x1c   : > { %761 = vperm.xlu1 %17194, %v17372_v9   ;;  %755 = vperm.xlu0 %17193, %v17375_v10   ;;  %v17454_v29 = vsel %vm665_vm12, 1, %v22556_v3  ;;  %vm668_vm14 = vcmp.gt.f32.partialorder %v636_v25, 0.5  ;;  %vm667_vm15 = vcmp.gt.f32.partialorder %v635_v26, 0.5  ;;  %v552_v32 = vld [vmem:[%s17465_s19] sm:$0xff]  ;;  %v553_v33 = vld [vmem:[%s17465_s19 + $0x8] sm:$0xff]  ;;  %v554_v34 = vld [vmem:[%s17465_s19 + $0x10] sm:$0xff] }
  0x1d   : > { %v17473_v35 = vsel %vm668_vm14, 1, %v22556_v3  ;;  %v17476_v36 = vsel %vm667_vm15, 1, %v22556_v3  ;;  %v17481_v37 = vld [vmem:[%s22788_s28 + $0x88] sm:$0xff]  ;;  %v17486_v38 = vld [vmem:[%s22788_s28 + $0x80] sm:$0xff]  ;;  %588 = vst.msk [vmem:[#allocation2 + $0x18] sm:$0xff] %vm584_vm13, %v552_v32  ;;  %589 = vst.msk [vmem:[#allocation2 + $0x20] sm:$0xff] %vm584_vm13, %v553_v33 }
  0x1e   : > { %590 = vst.msk [vmem:[#allocation2 + $0x28] sm:$0xff] %vm584_vm13, %v554_v34  ;;  %v555_v39 = vld [vmem:[%s17465_s19 + $0x18] sm:$0xff]  ;;  %v556_v40 = vld [vmem:[%s17465_s19 + $0x20] sm:$0xff]  ;;  %v557_v41 = vld [vmem:[%s17465_s19 + $0x28] sm:$0xff]  ;;  %vm670_vm0 = vcmp.gt.f32.partialorder %v638_v30, 0.5  ;;  %vm669_vm1 = vcmp.gt.f32.partialorder %v637_v31, 0.5 }
  0x1f   : > { %v912_v42 = vld [vmem:[#allocation2 + $0x8] sm:$0xff]  ;;  %v913_v43 = vld [vmem:[#allocation2 + $0x10] sm:$0xff]  ;;  %591 = vst.msk [vmem:[#allocation2 + $0x30] sm:$0xff] %vm584_vm13, %v555_v39  ;;  %592 = vst.msk [vmem:[#allocation2 + $0x38] sm:$0xff] %vm584_vm13, %v556_v40  ;;  %v17513_v51 = vsel %vm670_vm0, 1, %v22556_v3  ;;  %v17517_v52 = vsel %vm669_vm1, 1, %v22556_v3 }
  0x20   : > { %767 = vperm.xlu1 %17194, %v17386_v13   ;;  %764 = vperm.xlu0 %17193, %v17389_v14   ;;  %593 = vst.msk [vmem:[#allocation2 + $0x40] sm:$0xff] %vm584_vm13, %v557_v41  ;;  %v558_v44 = vld [vmem:[%s17465_s19 + $0x30] sm:$0xff]  ;;  %v559_v45 = vld [vmem:[%s17465_s19 + $0x38] sm:$0xff]  ;;  %v560_v46 = vld [vmem:[%s17465_s19 + $0x40] sm:$0xff]  ;;  %vm672_vm2 = vcmp.gt.f32.partialorder %v17481_v37, 0.5  ;;  %vm671_vm3 = vcmp.gt.f32.partialorder %v17486_v38, 0.5 }
  0x21   : > { %14685 = vmatprep.mubr.msk.f32.mxu0 %vm584_vm13, %v912_v42  ;;  %594 = vst.msk [vmem:[#allocation2 + $0x48] sm:$0xff] %vm584_vm13, %v558_v44  ;;  %v561_v47 = vld [vmem:[%s17465_s19 + $0x48] sm:$0xff]  ;;  %595 = vst.msk [vmem:[#allocation2 + $0x50] sm:$0xff] %vm584_vm13, %v559_v45  ;;  %v562_v48 = vld [vmem:[%s17465_s19 + $0x50] sm:$0xff]  ;;  %v17556_v4 = vsel %vm672_vm2, 1, %v22556_v3  ;;  %v17561_v7 = vsel %vm671_vm3, 1, %v22556_v3 }
  0x22   : > { %596 = vst.msk [vmem:[#allocation2 + $0x58] sm:$0xff] %vm584_vm13, %v560_v46  ;;  %597 = vst.msk [vmem:[#allocation2 + $0x60] sm:$0xff] %vm584_vm13, %v561_v47  ;;  %v563_v49 = vld [vmem:[%s17465_s19 + $0x58] sm:$0xff]  ;;  %v564_v50 = vld [vmem:[%s17465_s19 + $0x60] sm:$0xff]  ;;  %14686 = vmatmul.mubr.msk.f32.vlgmr.msra.gmra.mrb[0].mxu0 %vm584_vm13, %v913_v43  ;;  %s12949_s21 = sshll.u32 %s23433_s20, 3 }
  0x23   : > { %v642_v53 = vld [vmem:[%s22788_s28 + $0x98] sm:$0xff]  ;;  %v641_v54 = vld [vmem:[%s22788_s28 + $0x90] sm:$0xff]  ;;  %598 = vst.msk [vmem:[#allocation2 + $0x68] sm:$0xff] %vm584_vm13, %v562_v48  ;;  %599 = vst.msk [vmem:[#allocation2 + $0x70] sm:$0xff] %vm584_vm13, %v563_v49  ;;  %14734 = vmatpush3.msk.msra.mxu0 %vm1041_vm10, %v17429_v24  ;;  %s550_s23 = scalar_lea.vmem %s22541_s17, %s12949_s21 }
  0x24   : > { %773 = vperm.xlu1 %17194, %v17400_v17   ;;  %770 = vperm.xlu0 %17193, %v17403_v18   ;;  %600 = vst.msk [vmem:[#allocation2 + $0x78] sm:$0xff] %vm584_vm13, %v564_v50  ;;  %v565_v55 = vld [vmem:[%s17465_s19 + $0x68] sm:$0xff]  ;;  %v566_v56 = vld [vmem:[%s17465_s19 + $0x70] sm:$0xff]  ;;  %v567_v57 = vld [vmem:[%s17465_s19 + $0x78] sm:$0xff]  ;;  %vm674_vm4 = vcmp.gt.f32.partialorder %v642_v53, 0.5  ;;  %vm673_vm5 = vcmp.gt.f32.partialorder %v641_v54, 0.5 }
  0x25   : > { %601 = vst.msk [vmem:[#allocation2 + $0x80] sm:$0xff] %vm584_vm13, %v565_v55  ;;  %602 = vst.msk [vmem:[#allocation2 + $0x88] sm:$0xff] %vm584_vm13, %v566_v56  ;;  %v568_v58 = vld [vmem:[%s17465_s19 + $0x80] sm:$0xff]  ;;  %v569_v59 = vld [vmem:[%s17465_s19 + $0x88] sm:$0xff]  ;;  %v17579_v20 = vsel %vm674_vm4, 1, %v22556_v3  ;;  %v17582_v21 = vsel %vm673_vm5, 1, %v22556_v3 }
  0x26   : > { %603 = vst.msk [vmem:[#allocation2 + $0x90] sm:$0xff] %vm584_vm13, %v567_v57  ;;  %v570_v60 = vld [vmem:[%s17465_s19 + $0x90] sm:$0xff]  ;;  %604 = vst.msk [vmem:[#allocation2 + $0x98] sm:$0xff] %vm584_vm13, %v568_v58  ;;  %v571_v61 = vld [vmem:[%s17465_s19 + $0x98] sm:$0xff] }
  0x27   : > { %605 = vst.msk [vmem:[#allocation2 + $0xa0] sm:$0xff] %vm584_vm13, %v569_v59  ;;  %606 = vst.msk [vmem:[#allocation2 + $0xa8] sm:$0xff] %vm584_vm13, %v570_v60  ;;  %v572_v62 = vld [vmem:[%s17465_s19 + $0xa0] sm:$0xff]  ;;  %v573_v63 = vld [vmem:[%s17465_s19 + $0xa8] sm:$0xff] }
  0x28   : > { %779 = vperm.xlu1 %17194, %v17417_v22   ;;  %776 = vperm.xlu0 %17193, %v17420_v23   ;;  %v914_v0 = vld [vmem:[#allocation2 + $0x18] sm:$0xff]  ;;  %v915_v1 = vld [vmem:[#allocation2 + $0x20] sm:$0xff]  ;;  %v916_v2 = vld [vmem:[#allocation2 + $0x28] sm:$0xff]  ;;  %607 = vst.msk [vmem:[#allocation2 + $0xb0] sm:$0xff] %vm584_vm13, %v571_v61 }
  0x29   : > { %608 = vst.msk [vmem:[#allocation2 + $0xb8] sm:$0xff] %vm584_vm13, %v572_v62  ;;  %609 = vst.msk [vmem:[#allocation2 + $0xc0] sm:$0xff] %vm584_vm13, %v573_v63  ;;  %14688 = vmatprep.mubr.msk.f32.mxu0 %vm584_vm13, %v914_v0  ;;  %v574_v8 = vld [vmem:[%s17465_s19 + $0xb0] sm:$0xff]  ;;  %v575_v11 = vld [vmem:[%s17465_s19 + $0xb8] sm:$0xff] }
  0x2a   : > { %14689 = vmatmul.mubr.msk.f32.gmra.mrb[2].mxu0 %vm584_vm13, %v915_v1  ;;  %v644_v12 = vld [vmem:[%s22788_s28 + $0xa8] sm:$0xff]  ;;  %v643_v15 = vld [vmem:[%s22788_s28 + $0xa0] sm:$0xff]  ;;  %v917_v16 = vld [vmem:[#allocation2 + $0x30] sm:$0xff]  ;;  %610 = vst.msk [vmem:[#allocation2 + $0xc8] sm:$0xff] %vm584_vm13, %v574_v8 }
  0x2b   : > { %14691 = vmatprep.mubr.msk.f32.mxu0 %vm584_vm13, %v916_v2  ;;  %611 = vst.msk [vmem:[#allocation2 + $0xd0] sm:$0xff] %vm584_vm13, %v575_v11  ;;  %v918_v19 = vld [vmem:[#allocation2 + $0x38] sm:$0xff]  ;;  %vm676_vm6 = vcmp.gt.f32.partialorder %v644_v12, 0.5  ;;  %vm675_vm7 = vcmp.gt.f32.partialorder %v643_v15, 0.5  ;;  %v645_v25 = vld [vmem:[%s22788_s28 + $0xb0] sm:$0xff]  ;;  %v919_v26 = vld [vmem:[#allocation2 + $0x40] sm:$0xff] }
  0x2c   : > { %785 = vperm.xlu1 %17194, %v17450_v28   ;;  %782 = vperm.xlu0 %17193, %v17454_v29   ;;  %v646_v24 = vld [vmem:[%s22788_s28 + $0xb8] sm:$0xff]  ;;  %v920_v27 = vld [vmem:[#allocation2 + $0x48] sm:$0xff]  ;;  %v576_v30 = vld [vmem:[%s17465_s19 + $0xc0] sm:$0xff]  ;;  %v17598_v33 = vsel %vm676_vm6, 1, %v22556_v3  ;;  %v17601_v34 = vsel %vm675_vm7, 1, %v22556_v3  ;;  %vm677_vm9 = vcmp.gt.f32.partialorder %v645_v25, 0.5 }
  0x2d   : > { %v577_v31 = vld [vmem:[%s17465_s19 + $0xc8] sm:$0xff]  ;;  %v578_v32 = vld [vmem:[%s17465_s19 + $0xd0] sm:$0xff]  ;;  %612 = vst.msk [vmem:[#allocation2 + $0xd8] sm:$0xff] %vm584_vm13, %v576_v30  ;;  %v579_v37 = vld [vmem:[%s17465_s19 + $0xd8] sm:$0xff]  ;;  %vm678_vm8 = vcmp.gt.f32.partialorder %v646_v24, 0.5  ;;  %v17626_v45 = vsel %vm677_vm9, 1, %v22556_v3 }
  0x2e   : > { %14692 = vmatmul.mubr.msk.f32.gmra.mrb[4].mxu0 %vm584_vm13, %v917_v16  ;;  %613 = vst.msk [vmem:[#allocation2 + $0xe0] sm:$0xff] %vm584_vm13, %v577_v31  ;;  %614 = vst.msk [vmem:[#allocation2 + $0xe8] sm:$0xff] %vm584_vm13, %v578_v32  ;;  %v580_v38 = vld [vmem:[%s17465_s19 + $0xe0] sm:$0xff]  ;;  %v581_v39 = vld [vmem:[%s17465_s19 + $0xe8] sm:$0xff]  ;;  %v17623_v44 = vsel %vm678_vm8, 1, %v22556_v3 }
  0x2f   : > { %14694 = vmatprep.mubr.msk.f32.mxu0 %vm584_vm13, %v918_v19  ;;  %615 = vst.msk [vmem:[#allocation2 + $0xf0] sm:$0xff] %vm584_vm13, %v579_v37  ;;  %616 = vst.msk [vmem:[#allocation2 + $0xf8] sm:$0xff] %vm584_vm13, %v580_v38  ;;  %v648_v40 = vld [vmem:[%s22788_s28 + $0xc8] sm:$0xff]  ;;  %v647_v41 = vld [vmem:[%s22788_s28 + $0xc0] sm:$0xff] }
  0x30   : > { %791 = vperm.xlu1 %17194, %v17473_v35   ;;  %788 = vperm.xlu0 %17193, %v17476_v36   ;;  %617 = vst.msk [vmem:[#allocation2 + $0x100] sm:$0xff] %vm584_vm13, %v581_v39  ;;  %v921_v42 = vld [vmem:[#allocation2 + $0x50] sm:$0xff]  ;;  %v922_v43 = vld [vmem:[#allocation2 + $0x58] sm:$0xff]  ;;  %vm680_vm11 = vcmp.gt.f32.partialorder %v648_v40, 0.5  ;;  %vm679_vm12 = vcmp.gt.f32.partialorder %v647_v41, 0.5  ;;  %v923_v48 = vld [vmem:[#allocation2 + $0x60] sm:$0xff] }
  0x31   : > { %v650_v46 = vld [vmem:[%s22788_s28 + $0xd8] sm:$0xff]  ;;  %v649_v47 = vld [vmem:[%s22788_s28 + $0xd0] sm:$0xff]  ;;  %v924_v49 = vld [vmem:[#allocation2 + $0x68] sm:$0xff]  ;;  %v17639_v50 = vsel %vm680_vm11, 1, %v22556_v3  ;;  %v17642_v53 = vsel %vm679_vm12, 1, %v22556_v3 }
  0x32   : > { %14695 = vmatmul.mubr.msk.f32.gmra.mrb[6].mxu0 %vm584_vm13, %v919_v26  ;;  %vm682_vm14 = vcmp.gt.f32.partialorder %v650_v46, 0.5  ;;  %vm681_vm15 = vcmp.gt.f32.partialorder %v649_v47, 0.5  ;;  %v17648_v54 = vld [vmem:[%s22531_s7 + $0x6] sm:$0x7]  ;;  %v925_v57 = vld [vmem:[#allocation2 + $0x70] sm:$0xff]  ;;  %v926_v58 = vld [vmem:[#allocation2 + $0x78] sm:$0xff] }
  0x33   : > { %14697 = vmatprep.mubr.msk.f32.mxu0 %vm584_vm13, %v920_v27  ;;  %v652_v55 = vld [vmem:[%s22788_s28 + $0xe8] sm:$0xff]  ;;  %v651_v56 = vld [vmem:[%s22788_s28 + $0xe0] sm:$0xff]  ;;  %14783 = vmatprep.subr.msk.mxu0 %vm1041_vm10, %v17648_v54  ;;  %v17662_v59 = vsel %vm682_vm14, 1, %v22556_v3  ;;  %v17665_v60 = vsel %vm681_vm15, 1, %v22556_v3  ;;  %v582_v61 = vld [vmem:[%s17465_s19 + $0xf0] sm:$0xff]  ;;  %v22554_v27 = vmov 1  }
  0x34   : > { %797 = vperm.xlu1 %17194, %v17513_v51   ;;  %794 = vperm.xlu0 %17193, %v17517_v52   ;;  %vm684_vm0 = vcmp.gt.f32.partialorder %v652_v55, 0.5  ;;  %vm683_vm1 = vcmp.gt.f32.partialorder %v651_v56, 0.5  ;;  %v583_v62 = vld [vmem:[%s17465_s19 + $0xf8] sm:$0xff]  ;;  %v653_v0 = vld [vmem:[%s22788_s28 + $0xf0] sm:$0xff]  ;;  %v927_v1 = vld [vmem:[#allocation2 + $0x80] sm:$0xff]  ;;  %618 = vst.msk [vmem:[#allocation2 + $0x108] sm:$0xff] %vm584_vm13, %v582_v61 }
  0x35   : > { %v654_v63 = vld [vmem:[%s22788_s28 + $0xf8] sm:$0xff]  ;;  %619 = vst.msk [vmem:[#allocation2 + $0x110] sm:$0xff] %vm584_vm13, %v583_v62  ;;  %v928_v2 = vld [vmem:[#allocation2 + $0x88] sm:$0xff]  ;;  %v17682_v8 = vsel %vm684_vm0, 1, %v22556_v3  ;;  %v17685_v11 = vsel %vm683_vm1, 1, %v22556_v3  ;;  %vm685_vm3 = vcmp.gt.f32.partialorder %v653_v0, 0.5 }
  0x36   : > { %14698 = vmatmul.mubr.msk.f32.gmra.mrb[8].mxu0 %vm584_vm13, %v921_v42  ;;  %vm686_vm2 = vcmp.gt.f32.partialorder %v654_v63, 0.5  ;;  %v929_v12 = vld [vmem:[#allocation2 + $0x90] sm:$0xff]  ;;  %v930_v15 = vld [vmem:[#allocation2 + $0x98] sm:$0xff]  ;;  %v17695_v19 = vsel %vm685_vm3, 1, %v22556_v3  ;;  %v931_v24 = vld [vmem:[#allocation2 + $0xa0] sm:$0xff] }
  0x37   : > { %14700 = vmatprep.mubr.msk.f32.mxu0 %vm584_vm13, %v922_v43  ;;  %v17692_v16 = vsel %vm686_vm2, 1, %v22556_v3  ;;  %v932_v25 = vld [vmem:[#allocation2 + $0xa8] sm:$0xff]  ;;  %v933_v26 = vld [vmem:[#allocation2 + $0xb0] sm:$0xff]  ;;  %v934_v30 = vld [vmem:[#allocation2 + $0xb8] sm:$0xff] }
  0x38   : > { %803 = vperm.xlu1 %17194, %v17556_v4   ;;  %800 = vperm.xlu0 %17193, %v17561_v7   ;;  %v935_v31 = vld [vmem:[#allocation2 + $0xc0] sm:$0xff]  ;;  %v936_v32 = vld [vmem:[#allocation2 + $0xc8] sm:$0xff]  ;;  %v937_v37 = vld [vmem:[#allocation2 + $0xd0] sm:$0xff] }
  0x39   : > { %v938_v38 = vld [vmem:[#allocation2 + $0xd8] sm:$0xff] }
  0x3a   : > { %14701 = vmatmul.mubr.msk.f32.gmra.mrb[10].mxu0 %vm584_vm13, %v923_v48  ;;  %v693_v40 = vld [vmem:[#allocation2 + $0x37] sm:$0xff]  ;;  %v694_v41 = vld [vmem:[#allocation2 + $0x3f] sm:$0xff] }
  0x3b   : > { %14703 = vmatprep.mubr.msk.f32.mxu0 %vm584_vm13, %v924_v49  ;;  %v695_v49 = vld [vmem:[#allocation2 + $0x47] sm:$0xff] }
  0x3c   : > { %809 = vperm.xlu1 %17194, %v17579_v20   ;;  %806 = vperm.xlu0 %17193, %v17582_v21  }
  0x3e   : > { %14704 = vmatmul.mubr.msk.f32.gmra.mrb[12].mxu0 %vm584_vm13, %v925_v57 }
  0x3f   : > { %14706 = vmatprep.mubr.msk.f32.mxu0 %vm584_vm13, %v926_v58 }
  0x40   : > { %815 = vperm.xlu1 %17194, %v17598_v33   ;;  %812 = vperm.xlu0 %17193, %v17601_v34  }
  0x42   : > { %14707 = vmatmul.mubr.msk.f32.gmra.mrb[14].mxu0 %vm584_vm13, %v927_v1 }
  0x43   : > { %14709 = vmatprep.mubr.msk.f32.mxu0 %vm584_vm13, %v928_v2 }
  0x44   : > { %821 = vperm.xlu1 %17194, %v17623_v44   ;;  %818 = vperm.xlu0 %17193, %v17626_v45  }
  0x46   : > { %14710 = vmatmul.mubr.msk.f32.gmra.mrb[16].mxu0 %vm584_vm13, %v929_v12 }
  0x47   : > { %14712 = vmatprep.mubr.msk.f32.mxu0 %vm584_vm13, %v930_v15 }
  0x48   : > { %827 = vperm.xlu1 %17194, %v17639_v50   ;;  %824 = vperm.xlu0 %17193, %v17642_v53  }
  0x4a   : > { %14713 = vmatmul.mubr.msk.f32.gmra.mrb[18].mxu0 %vm584_vm13, %v931_v24 }
  0x4b   : > { %14715 = vmatprep.mubr.msk.f32.mxu0 %vm584_vm13, %v932_v25 }
  0x4c   : > { %833 = vperm.xlu1 %17194, %v17662_v59   ;;  %830 = vperm.xlu0 %17193, %v17665_v60  }
  0x4e   : > { %14716 = vmatmul.mubr.msk.f32.gmra.mrb[20].mxu0 %vm584_vm13, %v933_v26  ;;  %v701_v26 = vld [vmem:[#allocation2 + $0x77] sm:$0xff] }
  0x4f   : > { %14718 = vmatprep.mubr.msk.f32.mxu0 %vm584_vm13, %v934_v30  ;;  %v702_v30 = vld [vmem:[#allocation2 + $0x7f] sm:$0xff] }
  0x50   : > { %839 = vperm.xlu1 %17194, %v17682_v8   ;;  %836 = vperm.xlu0 %17193, %v17685_v11  }
  0x52   : > { %14719 = vmatmul.mubr.msk.f32.gmra.mrb[22].mxu0 %vm584_vm13, %v935_v31 }
  0x53   : > { %14721 = vmatprep.mubr.msk.f32.mxu0 %vm584_vm13, %v936_v32 }
  0x54   : > { %845 = vperm.xlu1 %17194, %v17692_v16   ;;  %842 = vperm.xlu0 %17193, %v17695_v19  }
  0x56   : > { %14722 = vmatmul.mubr.msk.f32.gmra.mrb[24].mxu0 %vm584_vm13, %v937_v37 }
  0x57   : > { %14724 = vmatprep.mubr.msk.f32.mxu0 %vm584_vm13, %v938_v38 }
  0x58   : > { %17196 = vset.pattern.permute.xlu1 %v22554_v27  ;;  %17195 = vset.pattern.permute.xlu0 %v22554_v27 }
  0x59   : > { %1630 = vperm.xlu1 %17196, %v17375_v10   ;;  %1627 = vperm.xlu0 %17195, %v17361_v6   ;;  %v939_v6 = vld [vmem:[#allocation2 + $0xe0] sm:$0xff]  ;;  %v940_v10 = vld [vmem:[#allocation2 + $0xe8] sm:$0xff] }
  0x5a   : > { %14725 = vmatmul.mubr.msk.f32.gmra.mrb[26].mxu0 %vm584_vm13, %v939_v6 }
  0x5b   : > { %14727 = vmatprep.mubr.msk.f32.mxu0 %vm584_vm13, %v940_v10 }
  0x5d   : > { %1633 = vperm.xlu1 %17196, %v17358_v5   ;;  %1636 = vperm.xlu0 %17195, %v17372_v9   ;;  %v941_v5 = vld [vmem:[#allocation2 + $0xf0] sm:$0xff]  ;;  %v942_v9 = vld [vmem:[#allocation2 + $0xf8] sm:$0xff] }
  0x5e   : > { %14728 = vmatmul.mubr.msk.f32.gmra.mrb[28].mxu0 %vm584_vm13, %v941_v5  ;;  %v703_v5 = vld [vmem:[#allocation2 + $0x87] sm:$0xff] }
  0x5f   : > { %14730 = vmatprep.mubr.msk.f32.mxu0 %vm584_vm13, %v942_v9  ;;  %v704_v9 = vld [vmem:[#allocation2 + $0x8f] sm:$0xff] }
  0x61   : > { %1639 = vperm.xlu1 %17196, %v17389_v14   ;;  %1642 = vperm.xlu0 %17195, %v17386_v13   ;;  %v943_v13 = vld [vmem:[#allocation2 + $0x100] sm:$0xff] }
  0x62   : > { %14731 = vmatmul.mubr.msk.f32.gmra.mrb[30].mxu0 %vm584_vm13, %v943_v13  ;;  %v687_v14 = vld [vmem:[#allocation2 + $0x7] sm:$0xff] }
  0x65   : > { %1645 = vperm.xlu1 %17196, %v17403_v18   ;;  %1648 = vperm.xlu0 %17195, %v17400_v17   ;;  %v689_v17 = vld [vmem:[#allocation2 + $0x17] sm:$0xff]  ;;  %v691_v18 = vld [vmem:[#allocation2 + $0x27] sm:$0xff] }
  0x69   : > { %1651 = vperm.xlu1 %17196, %v17420_v23   ;;  %1654 = vperm.xlu0 %17195, %v17417_v22  }
  0x6d   : > { %1657 = vperm.xlu1 %17196, %v17454_v29   ;;  %1660 = vperm.xlu0 %17195, %v17450_v28  }
  0x71   : > { %1663 = vperm.xlu1 %17196, %v17476_v36   ;;  %1666 = vperm.xlu0 %17195, %v17473_v35   ;;  %v688_v36 = vld [vmem:[#allocation2 + $0xf] sm:$0xff] }
  0x75   : > { %1669 = vperm.xlu1 %17196, %v17517_v52   ;;  %1672 = vperm.xlu0 %17195, %v17513_v51   ;;  %v2144_v51 = vld [vmem:[#allocation2 + $0x1f] sm:$0xff]  ;;  %v3375_v52 = vld [vmem:[#allocation2 + $0x2f] sm:$0xff] }
  0x79   : > { %1675 = vperm.xlu1 %17196, %v17561_v7   ;;  %1678 = vperm.xlu0 %17195, %v17556_v4  }
  0x7d   : > { %1681 = vperm.xlu1 %17196, %v17582_v21   ;;  %1684 = vperm.xlu0 %17195, %v17579_v20  }
  0x81   : > { %1687 = vperm.xlu1 %17196, %v17601_v34   ;;  %1690 = vperm.xlu0 %17195, %v17598_v33   ;;  %v17777_v34 = vld [vmem:[%s22531_s7 + $0x9] sm:$0x7] }
  0x85   : > { %1693 = vperm.xlu1 %17196, %v17626_v45   ;;  %1696 = vperm.xlu0 %17195, %v17623_v44  }
  0x89   : > { %1699 = vperm.xlu1 %17196, %v17642_v53   ;;  %1702 = vperm.xlu0 %17195, %v17639_v50   ;;  %v696_v50 = vld [vmem:[#allocation2 + $0x4f] sm:$0xff] }
  0x8d   : > { %1705 = vperm.xlu1 %17196, %v17665_v60   ;;  %1708 = vperm.xlu0 %17195, %v17662_v59   ;;  %v697_v59 = vld [vmem:[#allocation2 + $0x57] sm:$0xff]  ;;  %v698_v60 = vld [vmem:[#allocation2 + $0x5f] sm:$0xff] }
  0x91   : > { %1711 = vperm.xlu1 %17196, %v17685_v11   ;;  %1714 = vperm.xlu0 %17195, %v17682_v8   ;;  %v699_v8 = vld [vmem:[#allocation2 + $0x67] sm:$0xff]  ;;  %v700_v11 = vld [vmem:[#allocation2 + $0x6f] sm:$0xff] }
  0x95   : > { %1717 = vperm.xlu1 %17196, %v17695_v19   ;;  %1720 = vperm.xlu0 %17195, %v17692_v16  }
  0x97   : > { %v17748_v22 = vpop.permute.xlu1 %758  ;;  %v17750_v23 = vpop.permute.xlu0 %752 }
  0x98   : > { %22790 = vst [vmem:[#allocation7_spill] sm:$0xff] %v17748_v22  ;;  %22791 = vst [vmem:[#allocation8_spill] sm:$0xff] %v17750_v23  ;;  %vm849_vm4 = vcmp.eq.s32.totalorder %v17748_v22, 1  ;;  %vm847_vm5 = vcmp.eq.s32.totalorder %v17750_v23, 1  ;;  %v1615_v23 = vld [vmem:[#allocation2 + $0xb1] sm:$0xff] }
  0x99   : > { %v879_v28 = vsel %vm847_vm5, %v687_v14, 0.5  ;;  %v17758_v29 = vsel %vm847_vm5, %v689_v17, 0.5  ;;  %v17762_v35 = vsel %vm849_vm4, %v691_v18, 0.5  ;;  %17197 = vset.pattern.permute.xlu1 %v22556_v3  ;;  %17198 = vset.pattern.permute.xlu0 %v22556_v3  ;;  %v881_v39 = vsel %vm849_vm4, %v689_v17, 0.5 }
  0x9a   : > { %14735 = vmatprep.mubr.msk.f32.mxu0 %vm584_vm13, %v879_v28 }
  0x9b   : > { %v17767_v4 = vpop.permute.xlu1 %761  ;;  %v756_v7 = vpop.permute.xlu0 %755 }
  0x9c   : > { %22792 = vst [vmem:[#allocation9_spill] sm:$0xff] %v17767_v4  ;;  %vm850_vm6 = vcmp.eq.s32.totalorder %v17767_v4, 1  ;;  %vm848_vm7 = vcmp.eq.s32.totalorder %v756_v7, 1  ;;  %v1611_v4 = vld [vmem:[#allocation2 + $0x91] sm:$0xff] }
  0x9d   : > { %v880_v20 = vsel %vm848_vm7, %v688_v36, 0.5  ;;  %v17770_v21 = vsel %vm848_vm7, %v2144_v51, 0.5  ;;  %v17772_v33 = vsel %vm848_vm7, %v3375_v52, 0.5  ;;  %v17784_v42 = vsel %vm850_vm6, %v3375_v52, 0.5 }
  0x9e   : > { %22793 = vst [vmem:[#allocation10_spill] sm:$0xff] %v17772_v33  ;;  %14736 = vmatmul.mubr.msk.f32.vlgmr.msra.gmra.mrb[0].mxu0 %vm584_vm13, %v880_v20  ;;  %v882_v45 = vsel %vm850_vm6, %v2144_v51, 0.5  ;;  %v705_v51 = vld [vmem:[#allocation2 + $0x97] sm:$0xff] }
  0x9f   : > { %v17786_v43 = vpop.permute.xlu1 %767  ;;  %v17788_v44 = vpop.permute.xlu0 %764  ;;  %14738 = vmatprep.mubr.msk.f32.mxu0 %vm584_vm13, %v881_v39  ;;  %14784 = vmatpush3.msk.msra.mxu0 %vm1041_vm10, %v17648_v54 }
  0xa0   : > { %22794 = vst [vmem:[#allocation11_spill] sm:$0xff] %v17786_v43  ;;  %22795 = vst [vmem:[#allocation12_spill] sm:$0xff] %v17788_v44  ;;  %vm852_vm8 = vcmp.eq.s32.totalorder %v17786_v43, 1  ;;  %vm851_vm9 = vcmp.eq.s32.totalorder %v17788_v44, 1  ;;  %14833 = vmatprep.subr.msk.mxu0 %vm1041_vm10, %v17777_v34  ;;  %v1609_v43 = vld [vmem:[#allocation2 + $0x81] sm:$0xff] }
  0xa1   : > { %v883_v46 = vsel %vm851_vm9, %v691_v18, 0.5  ;;  %v17803_v47 = vsel %vm851_vm9, %v693_v40, 0.5  ;;  %v17807_v48 = vsel %vm852_vm8, %v694_v41, 0.5  ;;  %v884_v55 = vsel %vm852_vm8, %v3375_v52, 0.5  ;;  %v706_v52 = vld [vmem:[#allocation2 + $0x9f] sm:$0xff] }
  0xa2   : > { %14739 = vmatmul.mubr.msk.f32.gmra.mrb[2].mxu0 %vm584_vm13, %v882_v45 }
  0xa3   : > { %v17810_v53 = vpop.permute.xlu1 %773  ;;  %v17812_v54 = vpop.permute.xlu0 %770  ;;  %14741 = vmatprep.mubr.msk.f32.mxu0 %vm584_vm13, %v883_v46  ;;  %v707_v46 = vld [vmem:[#allocation2 + $0xa7] sm:$0xff] }
  0xa4   : > { %22796 = vst [vmem:[#allocation13_spill] sm:$0xff] %v17810_v53  ;;  %22797 = vst [vmem:[#allocation14_spill] sm:$0xff] %v17812_v54  ;;  %vm854_vm11 = vcmp.eq.s32.totalorder %v17810_v53, 1  ;;  %vm853_vm12 = vcmp.eq.s32.totalorder %v17812_v54, 1  ;;  %v1607_v53 = vld [vmem:[#allocation2 + $0x71] sm:$0xff] }
  0xa5   : > { %v885_v56 = vsel %vm853_vm12, %v693_v40, 0.5  ;;  %v17823_v57 = vsel %vm853_vm12, %v695_v49, 0.5  ;;  %v17827_v58 = vsel %vm854_vm11, %v696_v50, 0.5  ;;  %v886_v63 = vsel %vm854_vm11, %v694_v41, 0.5 }
  0xa6   : > { %14742 = vmatmul.mubr.msk.f32.gmra.mrb[4].mxu0 %vm584_vm13, %v884_v55 }
  0xa7   : > { %v17830_v61 = vpop.permute.xlu1 %779  ;;  %v17832_v62 = vpop.permute.xlu0 %776  ;;  %14744 = vmatprep.mubr.msk.f32.mxu0 %vm584_vm13, %v885_v56 }
  0xa8   : > { %22798 = vst [vmem:[#allocation15_spill] sm:$0xff] %v17830_v61  ;;  %22799 = vst [vmem:[#allocation16_spill] sm:$0xff] %v17832_v62  ;;  %vm22577_vm14 = vcmp.eq.s32.totalorder %v17830_v61, 1  ;;  %vm855_vm15 = vcmp.eq.s32.totalorder %v17832_v62, 1  ;;  %v1605_v61 = vld [vmem:[#allocation2 + $0x61] sm:$0xff] }
  0xa9   : > { %v887_v0 = vsel %vm855_vm15, %v695_v49, 0.5  ;;  %v17843_v1 = vsel %vm855_vm15, %v697_v59, 0.5  ;;  %v17847_v2 = vsel %vm22577_vm14, %v698_v60, 0.5  ;;  %v888_v16 = vsel %vm22577_vm14, %v696_v50, 0.5  ;;  %v708_v49 = vld [vmem:[#allocation2 + $0xaf] sm:$0xff] }
  0xaa   : > { %14745 = vmatmul.mubr.msk.f32.gmra.mrb[6].mxu0 %vm584_vm13, %v886_v63 }
  0xab   : > { %v17850_v12 = vpop.permute.xlu1 %785  ;;  %v17852_v15 = vpop.permute.xlu0 %782  ;;  %14747 = vmatprep.mubr.msk.f32.mxu0 %vm584_vm13, %v887_v0  ;;  %v709_v0 = vld [vmem:[#allocation2 + $0xb7] sm:$0xff] }
  0xac   : > { %22800 = vst [vmem:[#allocation17_spill] sm:$0xff] %v17850_v12  ;;  %22801 = vst [vmem:[#allocation18_spill] sm:$0xff] %v17852_v15  ;;  %vm22543_vm0 = vcmp.eq.s32.totalorder %v17850_v12, 1  ;;  %vm22576_vm1 = vcmp.eq.s32.totalorder %v17852_v15, 1  ;;  %v1603_v12 = vld [vmem:[#allocation2 + $0x51] sm:$0xff] }
  0xad   : > { %v889_v19 = vsel %vm22576_vm1, %v697_v59, 0.5  ;;  %v17863_v24 = vsel %vm22576_vm1, %v699_v8, 0.5  ;;  %v17867_v25 = vsel %vm22543_vm0, %v700_v11, 0.5  ;;  %v890_v37 = vsel %vm22543_vm0, %v698_v60, 0.5 }
  0xae   : > { %14748 = vmatmul.mubr.msk.f32.gmra.mrb[8].mxu0 %vm584_vm13, %v888_v16 }
  0xaf   : > { %v17870_v31 = vpop.permute.xlu1 %791  ;;  %v17872_v32 = vpop.permute.xlu0 %788  ;;  %14750 = vmatprep.mubr.msk.f32.mxu0 %vm584_vm13, %v889_v19 }
  0xb0   : > { %22802 = vst [vmem:[#allocation19_spill] sm:$0xff] %v17870_v31  ;;  %22803 = vst [vmem:[#allocation20_spill] sm:$0xff] %v17872_v32  ;;  %vm22544_vm2 = vcmp.eq.s32.totalorder %v17870_v31, 1  ;;  %vm22545_vm3 = vcmp.eq.s32.totalorder %v17872_v32, 1  ;;  %v1602_v32 = vld [vmem:[#allocation2 + $0x49] sm:$0xff] }
  0xb1   : > { %v891_v38 = vsel %vm22545_vm3, %v699_v8, 0.5  ;;  %v17883_v6 = vsel %vm22545_vm3, %v701_v26, 0.5  ;;  %v17887_v10 = vsel %vm22544_vm2, %v702_v30, 0.5  ;;  %v892_v17 = vsel %vm22544_vm2, %v700_v11, 0.5  ;;  %v710_v8 = vld [vmem:[#allocation2 + $0xbf] sm:$0xff] }
  0xb2   : > { %14751 = vmatmul.mubr.msk.f32.gmra.mrb[10].mxu0 %vm584_vm13, %v890_v37 }
  0xb3   : > { %v17890_v13 = vpop.permute.xlu1 %797  ;;  %v17892_v14 = vpop.permute.xlu0 %794  ;;  %14753 = vmatprep.mubr.msk.f32.mxu0 %vm584_vm13, %v891_v38  ;;  %v711_v38 = vld [vmem:[#allocation2 + $0xc7] sm:$0xff] }
  0xb4   : > { %22804 = vst [vmem:[#allocation21_spill] sm:$0xff] %v17890_v13  ;;  %22805 = vst [vmem:[#allocation22_spill] sm:$0xff] %v17892_v14  ;;  %vm22546_vm7 = vcmp.eq.s32.totalorder %v17890_v13, 1  ;;  %vm22547_vm0 = vcmp.eq.s32.totalorder %v17892_v14, 1  ;;  %v1598_v13 = vld [vmem:[#allocation2 + $0x29] sm:$0xff] }
  0xb5   : > { %v893_v18 = vsel %vm22547_vm0, %v701_v26, 0.5  ;;  %v17903_v28 = vsel %vm22547_vm0, %v703_v5, 0.5  ;;  %v17907_v36 = vsel %vm22546_vm7, %v704_v9, 0.5  ;;  %v894_v39 = vsel %vm22546_vm7, %v702_v30, 0.5 }
  0xb6   : > { %14754 = vmatmul.mubr.msk.f32.gmra.mrb[12].mxu0 %vm584_vm13, %v892_v17 }
  0xb7   : > { %v17910_v7 = vpop.permute.xlu1 %803  ;;  %v17912_v20 = vpop.permute.xlu0 %800  ;;  %14756 = vmatprep.mubr.msk.f32.mxu0 %vm584_vm13, %v893_v18 }
  0xb8   : > { %22806 = vst [vmem:[#allocation23_spill] sm:$0xff] %v17910_v7  ;;  %22807 = vst [vmem:[#allocation24_spill] sm:$0xff] %v17912_v20  ;;  %vm22548_vm2 = vcmp.eq.s32.totalorder %v17910_v7, 1  ;;  %vm22549_vm3 = vcmp.eq.s32.totalorder %v17912_v20, 1 }
  0xb9   : > { %v895_v40 = vsel %vm22549_vm3, %v703_v5, 0.5  ;;  %v17923_v41 = vsel %vm22549_vm3, %v705_v51, 0.5  ;;  %v17927_v45 = vsel %vm22548_vm2, %v706_v52, 0.5  ;;  %v896_v56 = vsel %vm22548_vm2, %v704_v9, 0.5  ;;  %v712_v5 = vld [vmem:[#allocation2 + $0xcf] sm:$0xff] }
  0xba   : > { %14757 = vmatmul.mubr.msk.f32.gmra.mrb[14].mxu0 %vm584_vm13, %v894_v39 }
  0xbb   : > { %v17930_v50 = vpop.permute.xlu1 %809  ;;  %v17932_v55 = vpop.permute.xlu0 %806  ;;  %14759 = vmatprep.mubr.msk.f32.mxu0 %vm584_vm13, %v895_v40  ;;  %v713_v40 = vld [vmem:[#allocation2 + $0xd7] sm:$0xff] }
  0xbc   : > { %22808 = vst [vmem:[#allocation25_spill] sm:$0xff] %v17930_v50  ;;  %22809 = vst [vmem:[#allocation26_spill] sm:$0xff] %v17932_v55  ;;  %vm22550_vm7 = vcmp.eq.s32.totalorder %v17930_v50, 1  ;;  %vm22551_vm0 = vcmp.eq.s32.totalorder %v17932_v55, 1 }
  0xbd   : > { %v897_v59 = vsel %vm22551_vm0, %v705_v51, 0.5  ;;  %v17943_v60 = vsel %vm22551_vm0, %v707_v46, 0.5  ;;  %v17947_v63 = vsel %vm22550_vm7, %v708_v49, 0.5  ;;  %v898_v19 = vsel %vm22550_vm7, %v706_v52, 0.5 }
  0xbe   : > { %14760 = vmatmul.mubr.msk.f32.gmra.mrb[16].mxu0 %vm584_vm13, %v896_v56 }
  0xbf   : > { %v17950_v11 = vpop.permute.xlu1 %815  ;;  %v17952_v16 = vpop.permute.xlu0 %812  ;;  %14762 = vmatprep.mubr.msk.f32.mxu0 %vm584_vm13, %v897_v59 }
  0xc0   : > { %22810 = vst [vmem:[#allocation27_spill] sm:$0xff] %v17950_v11  ;;  %22811 = vst [vmem:[#allocation28_spill] sm:$0xff] %v17952_v16  ;;  %vm22552_vm2 = vcmp.eq.s32.totalorder %v17950_v11, 1  ;;  %vm22553_vm3 = vcmp.eq.s32.totalorder %v17952_v16, 1 }
  0xc1   : > { %v899_v26 = vsel %vm22553_vm3, %v707_v46, 0.5  ;;  %v17963_v30 = vsel %vm22553_vm3, %v709_v0, 0.5  ;;  %v17967_v37 = vsel %vm22552_vm2, %v710_v8, 0.5  ;;  %v900_v18 = vsel %vm22552_vm2, %v708_v49, 0.5  ;;  %v714_v46 = vld [vmem:[#allocation2 + $0xdf] sm:$0xff] }
  0xc2   : > { %14763 = vmatmul.mubr.msk.f32.gmra.mrb[18].mxu0 %vm584_vm13, %v898_v19 }
  0xc3   : > { %v17970_v9 = vpop.permute.xlu1 %821  ;;  %v17972_v17 = vpop.permute.xlu0 %818  ;;  %14765 = vmatprep.mubr.msk.f32.mxu0 %vm584_vm13, %v899_v26 }
  0xc4   : > { %22812 = vst [vmem:[#allocation29_spill] sm:$0xff] %v17970_v9  ;;  %22813 = vst [vmem:[#allocation30_spill] sm:$0xff] %v17972_v17  ;;  %vm22558_vm7 = vcmp.eq.s32.totalorder %v17970_v9, 1  ;;  %vm22559_vm0 = vcmp.eq.s32.totalorder %v17972_v17, 1 }
  0xc5   : > { %v901_v51 = vsel %vm22559_vm0, %v709_v0, 0.5  ;;  %v17983_v52 = vsel %vm22559_vm0, %v711_v38, 0.5  ;;  %v17987_v39 = vsel %vm22558_vm7, %v712_v5, 0.5  ;;  %v902_v49 = vsel %vm22558_vm7, %v710_v8, 0.5  ;;  %v718_v8 = vld [vmem:[#allocation2 + $0xff] sm:$0xff] }
  0xc6   : > { %14766 = vmatmul.mubr.msk.f32.gmra.mrb[20].mxu0 %vm584_vm13, %v900_v18  ;;  %v715_v18 = vld [vmem:[#allocation2 + $0xe7] sm:$0xff] }
  0xc7   : > { %v17990_v56 = vpop.permute.xlu1 %827  ;;  %v17992_v59 = vpop.permute.xlu0 %824  ;;  %14768 = vmatprep.mubr.msk.f32.mxu0 %vm584_vm13, %v901_v51  ;;  %v716_v51 = vld [vmem:[#allocation2 + $0xef] sm:$0xff] }
  0xc8   : > { %22814 = vst [vmem:[#allocation31_spill] sm:$0xff] %v17990_v56  ;;  %22815 = vst [vmem:[#allocation32_spill] sm:$0xff] %v17992_v59  ;;  %vm22565_vm2 = vcmp.eq.s32.totalorder %v17990_v56, 1  ;;  %vm22572_vm3 = vcmp.eq.s32.totalorder %v17992_v59, 1 }
  0xc9   : > { %v903_v0 = vsel %vm22572_vm3, %v711_v38, 0.5  ;;  %v18003_v19 = vsel %vm22572_vm3, %v713_v40, 0.5  ;;  %v18007_v26 = vsel %vm22565_vm2, %v714_v46, 0.5  ;;  %v904_v38 = vsel %vm22565_vm2, %v712_v5, 0.5  ;;  %v18030_v5 = vld [vmem:[#allocation2 + $0x107] sm:$0xff] }
  0xca   : > { %14769 = vmatmul.mubr.msk.f32.gmra.mrb[22].mxu0 %vm584_vm13, %v902_v49 }
  0xcb   : > { %v834_v27 = vpop.permute.xlu1 %833  ;;  %v18010_v3 = vpop.permute.xlu0 %830  ;;  %14771 = vmatprep.mubr.msk.f32.mxu0 %vm584_vm13, %v903_v0  ;;  %v717_v0 = vld [vmem:[#allocation2 + $0xf7] sm:$0xff] }
  0xcc   : > { %22816 = vst [vmem:[#allocation33_spill] sm:$0xff] %v18010_v3  ;;  %vm874_vm7 = vcmp.eq.s32.totalorder %v834_v27, 1  ;;  %vm22566_vm0 = vcmp.eq.s32.totalorder %v18010_v3, 1 }
  0xcd   : > { %v905_v59 = vsel %vm22566_vm0, %v713_v40, 0.5  ;;  %v18020_v49 = vsel %vm22566_vm0, %v715_v18, 0.5  ;;  %v18023_v9 = vsel %vm874_vm7, %v716_v51, 0.5  ;;  %v18027_v17 = vsel %vm874_vm7, %v718_v8, 0.5  ;;  %v18032_v40 = vld [vmem:[#allocation2 + $0x10f] sm:$0xff] }
  0xce   : > { %14772 = vmatmul.mubr.msk.f32.gmra.mrb[24].mxu0 %vm584_vm13, %v904_v38  ;;  %22817 = vst [vmem:[#allocation34_spill] sm:$0xff] %v18027_v17  ;;  %v906_v3 = vsel %vm874_vm7, %v714_v46, 0.5  ;;  %v1594_v46 = vld [vmem:[#allocation2 + $0x9] sm:$0xff] }
  0xcf   : > { %v840_v11 = vpop.permute.xlu1 %839  ;;  %v837_v16 = vpop.permute.xlu0 %836  ;;  %14774 = vmatprep.mubr.msk.f32.mxu0 %vm584_vm13, %v905_v59 }
  0xd0   : > { %vm876_vm2 = vcmp.eq.s32.totalorder %v840_v11, 1  ;;  %vm875_vm0 = vcmp.eq.s32.totalorder %v837_v16, 1  ;;  %v4185_v16 = vld [vmem:[#allocation2 + $0x31] sm:$0xff] }
  0xd1   : > { %v907_v56 = vsel %vm875_vm0, %v715_v18, 0.5  ;;  %v18035_v50 = vsel %vm875_vm0, %v717_v0, 0.5  ;;  %v18037_v38 = vsel %vm876_vm2, %v718_v8, 0.5  ;;  %v18041_v17 = vsel %vm875_vm0, %v18030_v5, 0.5 }
  0xd2   : > { %14775 = vmatmul.mubr.msk.f32.gmra.mrb[26].mxu0 %vm584_vm13, %v906_v3  ;;  %22818 = vst [vmem:[#allocation35_spill] sm:$0xff] %v18041_v17  ;;  %v18044_v59 = vsel %vm876_vm2, %v18032_v40, 0.5  ;;  %v908_v27 = vsel %vm876_vm2, %v716_v51, 0.5  ;;  %v2954_v3 = vld [vmem:[#allocation2 + $0x21] sm:$0xff] }
  0xd3   : > { %22819 = vst [vmem:[#allocation36_spill] sm:$0xff] %v18044_v59  ;;  %v18046_v55 = vpop.permute.xlu1 %845  ;;  %v18048_v7 = vpop.permute.xlu0 %842  ;;  %14777 = vmatprep.mubr.msk.f32.mxu0 %vm584_vm13, %v907_v56  ;;  %v1595_v59 = vld [vmem:[#allocation2 + $0x11] sm:$0xff]  ;;  %v1596_v56 = vld [vmem:[#allocation2 + $0x19] sm:$0xff] }
  0xd4   : > { %vm877_vm7 = vcmp.eq.s32.totalorder %v18048_v7, 1  ;;  %vm878_vm3 = vcmp.eq.s32.totalorder %v18046_v55, 1  ;;  %v4733_v55 = vld [vmem:[%s22788_s28 + $0x90] sm:$0xff] }
  0xd5   : > { %v909_v11 = vsel %vm877_vm7, %v717_v0, 0.5  ;;  %v910_v51 = vsel %vm878_vm3, %v718_v8, 0.5 }
  0xd6   : > { %14778 = vmatmul.mubr.msk.f32.gmra.mrb[28].mxu0 %vm584_vm13, %v908_v27 }
  0xd7   : > { %14780 = vmatprep.mubr.msk.f32.mxu0 %vm584_vm13, %v909_v11 }
  0xd8   : > { %v1631_v18 = vpop.permute.xlu1 %1630  ;;  %v18057_v17 = vpop.permute.xlu0 %1627 }
  0xd9   : > { %22820 = vst [vmem:[#allocation37_spill] sm:$0xff] %v18057_v17  ;;  %vm1723_vm0 = vcmp.eq.s32.totalorder %v1631_v18, 1  ;;  %vm22586_vm2 = vcmp.eq.s32.totalorder %v18057_v17, 1  ;;  %v1601_v17 = vld [vmem:[#allocation2 + $0x41] sm:$0xff] }
  0xda   : > { %v18062_v0 = vsel %vm1723_vm0, %v2954_v3, 0.5  ;;  %v18064_v20 = vsel %vm1723_vm0, %v4185_v16, 0.5  ;;  %14781 = vmatmul.mubr.msk.f32.gmra.mrb[30].mxu0 %vm584_vm13, %v910_v51  ;;  %v1754_v27 = vsel %vm22586_vm2, %v1594_v46, 0.5  ;;  %v1755_v11 = vsel %vm1723_vm0, %v1595_v59, 0.5  ;;  %v18083_v46 = vld [vmem:[%s22531_s7 + $0xc] sm:$0x7] }
  0xdb   : > { %22821 = vst [vmem:[#allocation38_spill] sm:$0xff] %v18064_v20  ;;  %14785 = vmatprep.mubr.msk.f32.mxu0 %vm584_vm13, %v1754_v27  ;;  %v18072_v18 = vsel %vm22586_vm2, %v1596_v56, 0.5  ;;  %v1600_v20 = vld [vmem:[#allocation2 + $0x39] sm:$0xff] }
  0xdc   : > { %v18074_v14 = vpop.permute.xlu1 %1633  ;;  %v18076_v8 = vpop.permute.xlu0 %1636 }
  0xdd   : > { %22822 = vst [vmem:[#allocation39_spill] sm:$0xff] %v18074_v14  ;;  %22823 = vst [vmem:[#allocation40_spill] sm:$0xff] %v18076_v8  ;;  %vm22580_vm1 = vcmp.eq.s32.totalorder %v18074_v14, 1  ;;  %vm22585_vm14 = vcmp.eq.s32.totalorder %v18076_v8, 1  ;;  %v1604_v8 = vld [vmem:[#allocation2 + $0x59] sm:$0xff] }
  0xde   : > { %14786 = vmatmul.mubr.msk.f32.vlgmr.msra.gmra.mrb[0].mxu0 %vm584_vm13, %v1755_v11  ;;  %v1756_v59 = vsel %vm22580_vm1, %v1596_v56, 0.5  ;;  %v18090_v51 = vsel %vm22580_vm1, %v1598_v13, 0.5  ;;  %v18094_v27 = vsel %vm22585_vm14, %v4185_v16, 0.5  ;;  %v1757_v56 = vsel %vm22585_vm14, %v2954_v3, 0.5 }
  0xdf   : > { %14788 = vmatprep.mubr.msk.f32.mxu0 %vm584_vm13, %v1756_v59  ;;  %14834 = vmatpush3.msk.msra.mxu0 %vm1041_vm10, %v17777_v34 }
  0xe0   : > { %v18099_v31 = vpop.permute.xlu1 %1639  ;;  %v18101_v11 = vpop.permute.xlu0 %1642  ;;  %14883 = vmatprep.subr.msk.mxu0 %vm1041_vm10, %v18083_v46 }
  0xe1   : > { %22824 = vst [vmem:[#allocation41_spill] sm:$0xff] %v18099_v31  ;;  %22825 = vst [vmem:[#allocation42_spill] sm:$0xff] %v18101_v11  ;;  %vm22592_vm0 = vcmp.eq.s32.totalorder %v18099_v31, 1  ;;  %vm22591_vm1 = vcmp.eq.s32.totalorder %v18101_v11, 1  ;;  %v1606_v11 = vld [vmem:[#allocation2 + $0x69] sm:$0xff] }
  0xe2   : > { %14789 = vmatmul.mubr.msk.f32.gmra.mrb[2].mxu0 %vm584_vm13, %v1757_v56  ;;  %v1758_v59 = vsel %vm22592_vm0, %v1598_v13, 0.5  ;;  %v18114_v34 = vsel %vm22592_vm0, %v1600_v20, 0.5  ;;  %v18118_v14 = vsel %vm22591_vm1, %v1601_v17, 0.5  ;;  %v1759_v13 = vsel %vm22591_vm1, %v4185_v16, 0.5 }
  0xe3   : > { %14791 = vmatprep.mubr.msk.f32.mxu0 %vm584_vm13, %v1758_v59 }
  0xe4   : > { %v18121_v15 = vpop.permute.xlu1 %1645  ;;  %v18123_v3 = vpop.permute.xlu0 %1648 }
  0xe5   : > { %22826 = vst [vmem:[#allocation43_spill] sm:$0xff] %v18121_v15  ;;  %22827 = vst [vmem:[#allocation44_spill] sm:$0xff] %v18123_v3  ;;  %vm22598_vm14 = vcmp.eq.s32.totalorder %v18121_v15, 1  ;;  %vm22597_vm2 = vcmp.eq.s32.totalorder %v18123_v3, 1  ;;  %v1608_v3 = vld [vmem:[#allocation2 + $0x79] sm:$0xff] }
  0xe6   : > { %14792 = vmatmul.mubr.msk.f32.gmra.mrb[4].mxu0 %vm584_vm13, %v1759_v13  ;;  %v1760_v56 = vsel %vm22598_vm14, %v1600_v20, 0.5  ;;  %v18134_v59 = vsel %vm22598_vm14, %v1602_v32, 0.5  ;;  %v18138_v31 = vsel %vm22597_vm2, %v1603_v12, 0.5  ;;  %v1761_v20 = vsel %vm22597_vm2, %v1601_v17, 0.5 }
  0xe7   : > { %14794 = vmatprep.mubr.msk.f32.mxu0 %vm584_vm13, %v1760_v56 }
  0xe8   : > { %v18141_v62 = vpop.permute.xlu1 %1651  ;;  %v18143_v16 = vpop.permute.xlu0 %1654 }
  0xe9   : > { %22828 = vst [vmem:[#allocation45_spill] sm:$0xff] %v18141_v62  ;;  %22829 = vst [vmem:[#allocation46_spill] sm:$0xff] %v18143_v16  ;;  %vm22604_vm1 = vcmp.eq.s32.totalorder %v18141_v62, 1  ;;  %vm22603_vm0 = vcmp.eq.s32.totalorder %v18143_v16, 1  ;;  %v1610_v16 = vld [vmem:[#allocation2 + $0x89] sm:$0xff] }
  0xea   : > { %14795 = vmatmul.mubr.msk.f32.gmra.mrb[6].mxu0 %vm584_vm13, %v1761_v20  ;;  %v1762_v13 = vsel %vm22604_vm1, %v1602_v32, 0.5  ;;  %v18154_v56 = vsel %vm22604_vm1, %v1604_v8, 0.5  ;;  %v18158_v15 = vsel %vm22603_vm0, %v1605_v61, 0.5  ;;  %v1763_v32 = vsel %vm22603_vm0, %v1603_v12, 0.5 }
  0xeb   : > { %14797 = vmatprep.mubr.msk.f32.mxu0 %vm584_vm13, %v1762_v13 }
  0xec   : > { %v18161_v54 = vpop.permute.xlu1 %1657  ;;  %v18163_v17 = vpop.permute.xlu0 %1660 }
  0xed   : > { %22830 = vst [vmem:[#allocation47_spill] sm:$0xff] %v18161_v54  ;;  %22831 = vst [vmem:[#allocation48_spill] sm:$0xff] %v18163_v17  ;;  %vm22610_vm2 = vcmp.eq.s32.totalorder %v18161_v54, 1  ;;  %vm22609_vm14 = vcmp.eq.s32.totalorder %v18163_v17, 1  ;;  %v1612_v17 = vld [vmem:[#allocation2 + $0x99] sm:$0xff] }
  0xee   : > { %14798 = vmatmul.mubr.msk.f32.gmra.mrb[8].mxu0 %vm584_vm13, %v1763_v32  ;;  %v1764_v20 = vsel %vm22610_vm2, %v1604_v8, 0.5  ;;  %v18174_v13 = vsel %vm22610_vm2, %v1606_v11, 0.5  ;;  %v18178_v62 = vsel %vm22609_vm14, %v1607_v53, 0.5  ;;  %v1765_v8 = vsel %vm22609_vm14, %v1605_v61, 0.5 }
  0xef   : > { %14800 = vmatprep.mubr.msk.f32.mxu0 %vm584_vm13, %v1764_v20 }
  0xf0   : > { %v18181_v44 = vpop.permute.xlu1 %1663  ;;  %v18183_v12 = vpop.permute.xlu0 %1666 }
  0xf1   : > { %22832 = vst [vmem:[#allocation49_spill] sm:$0xff] %v18181_v44  ;;  %22833 = vst [vmem:[#allocation50_spill] sm:$0xff] %v18183_v12  ;;  %vm22615_vm0 = vcmp.eq.s32.totalorder %v18181_v44, 1  ;;  %vm22614_vm1 = vcmp.eq.s32.totalorder %v18183_v12, 1 }
  0xf2   : > { %14801 = vmatmul.mubr.msk.f32.gmra.mrb[10].mxu0 %vm584_vm13, %v1765_v8  ;;  %v1766_v32 = vsel %vm22615_vm0, %v1606_v11, 0.5  ;;  %v18194_v20 = vsel %vm22615_vm0, %v1608_v3, 0.5  ;;  %v18198_v54 = vsel %vm22614_vm1, %v1609_v43, 0.5  ;;  %v1767_v11 = vsel %vm22614_vm1, %v1607_v53, 0.5  ;;  %v1613_v53 = vld [vmem:[#allocation2 + $0xa1] sm:$0xff] }
  0xf3   : > { %14803 = vmatprep.mubr.msk.f32.mxu0 %vm584_vm13, %v1766_v32 }
  0xf4   : > { %v18201_v22 = vpop.permute.xlu1 %1669  ;;  %v18203_v61 = vpop.permute.xlu0 %1672 }
  0xf5   : > { %22834 = vst [vmem:[#allocation51_spill] sm:$0xff] %v18201_v22  ;;  %22835 = vst [vmem:[#allocation52_spill] sm:$0xff] %v18203_v61  ;;  %vm22619_vm14 = vcmp.eq.s32.totalorder %v18201_v22, 1  ;;  %vm22618_vm2 = vcmp.eq.s32.totalorder %v18203_v61, 1  ;;  %v1614_v22 = vld [vmem:[#allocation2 + $0xa9] sm:$0xff]  ;;  %v1616_v61 = vld [vmem:[#allocation2 + $0xb9] sm:$0xff] }
  0xf6   : > { %14804 = vmatmul.mubr.msk.f32.gmra.mrb[12].mxu0 %vm584_vm13, %v1767_v11  ;;  %v1768_v8 = vsel %vm22619_vm14, %v1608_v3, 0.5  ;;  %v18214_v32 = vsel %vm22619_vm14, %v1610_v16, 0.5  ;;  %v18218_v44 = vsel %vm22618_vm2, %v1611_v4, 0.5  ;;  %v1769_v3 = vsel %vm22618_vm2, %v1609_v43, 0.5 }
  0xf7   : > { %22836 = vst [vmem:[#allocation53_spill] sm:$0xff] %v18214_v32  ;;  %22837 = vst [vmem:[#allocation54_spill] sm:$0xff] %v18218_v44  ;;  %14806 = vmatprep.mubr.msk.f32.mxu0 %vm584_vm13, %v1768_v8 }
  0xf8   : > { %v18221_v33 = vpop.permute.xlu1 %1675  ;;  %v18223_v12 = vpop.permute.xlu0 %1678 }
  0xf9   : > { %22838 = vst [vmem:[#allocation55_spill] sm:$0xff] %v18221_v33  ;;  %22839 = vst [vmem:[#allocation56_spill] sm:$0xff] %v18223_v12  ;;  %vm22623_vm1 = vcmp.eq.s32.totalorder %v18221_v33, 1  ;;  %vm22622_vm0 = vcmp.eq.s32.totalorder %v18223_v12, 1  ;;  %v1618_v12 = vld [vmem:[#allocation2 + $0xc9] sm:$0xff] }
  0xfa   : > { %14807 = vmatmul.mubr.msk.f32.gmra.mrb[14].mxu0 %vm584_vm13, %v1769_v3  ;;  %v1770_v11 = vsel %vm22623_vm1, %v1610_v16, 0.5  ;;  %v18234_v8 = vsel %vm22623_vm1, %v1612_v17, 0.5  ;;  %v18239_v44 = vsel %vm22622_vm0, %v1613_v53, 0.5  ;;  %v1771_v16 = vsel %vm22622_vm0, %v1611_v4, 0.5 }
  0xfb   : > { %22840 = vst [vmem:[#allocation57_spill] sm:$0xff] %v18234_v8  ;;  %14809 = vmatprep.mubr.msk.f32.mxu0 %vm584_vm13, %v1770_v11  ;;  %22841 = vst [vmem:[#allocation58_spill] sm:$0xff] %v18239_v44  ;;  %v1617_v44 = vld [vmem:[#allocation2 + $0xc1] sm:$0xff] }
  0xfc   : > { %v18241_v32 = vpop.permute.xlu1 %1681  ;;  %v18243_v43 = vpop.permute.xlu0 %1684 }
  0xfd   : > { %22842 = vst [vmem:[#allocation59_spill] sm:$0xff] %v18241_v32  ;;  %22843 = vst [vmem:[#allocation60_spill] sm:$0xff] %v18243_v43  ;;  %vm22627_vm2 = vcmp.eq.s32.totalorder %v18241_v32, 1  ;;  %vm22626_vm14 = vcmp.eq.s32.totalorder %v18243_v43, 1  ;;  %v1620_v43 = vld [vmem:[#allocation2 + $0xd9] sm:$0xff] }
  0xfe   : > { %14810 = vmatmul.mubr.msk.f32.gmra.mrb[16].mxu0 %vm584_vm13, %v1771_v16  ;;  %v1772_v3 = vsel %vm22627_vm2, %v1612_v17, 0.5  ;;  %v18254_v11 = vsel %vm22627_vm2, %v1614_v22, 0.5  ;;  %v18258_v33 = vsel %vm22626_vm14, %v1615_v23, 0.5  ;;  %v1773_v17 = vsel %vm22626_vm14, %v1613_v53, 0.5 }
  0xff   : > { %22844 = vst [vmem:[#allocation61_spill] sm:$0xff] %v18254_v11  ;;  %22845 = vst [vmem:[#allocation62_spill] sm:$0xff] %v18258_v33  ;;  %14812 = vmatprep.mubr.msk.f32.mxu0 %vm584_vm13, %v1772_v3  ;;  %v1619_v33 = vld [vmem:[#allocation2 + $0xd1] sm:$0xff] }
 0x100   : > { %v18261_v8 = vpop.permute.xlu1 %1687  ;;  %v18263_v4 = vpop.permute.xlu0 %1690 }
 0x101   : > { %22846 = vst [vmem:[#allocation63_spill] sm:$0xff] %v18261_v8  ;;  %22847 = vst [vmem:[#allocation64_spill] sm:$0xff] %v18263_v4  ;;  %vm22631_vm0 = vcmp.eq.s32.totalorder %v18261_v8, 1  ;;  %vm22630_vm1 = vcmp.eq.s32.totalorder %v18263_v4, 1  ;;  %v1622_v4 = vld [vmem:[#allocation2 + $0xe9] sm:$0xff] }
 0x102   : > { %14813 = vmatmul.mubr.msk.f32.gmra.mrb[18].mxu0 %vm584_vm13, %v1773_v17  ;;  %v1774_v16 = vsel %vm22631_vm0, %v1614_v22, 0.5  ;;  %v18274_v3 = vsel %vm22631_vm0, %v1616_v61, 0.5  ;;  %v18278_v32 = vsel %vm22630_vm1, %v1617_v44, 0.5  ;;  %v1775_v22 = vsel %vm22630_vm1, %v1615_v23, 0.5 }
 0x103   : > { %22848 = vst [vmem:[#allocation65_spill] sm:$0xff] %v18274_v3  ;;  %22849 = vst [vmem:[#allocation66_spill] sm:$0xff] %v18278_v32  ;;  %14815 = vmatprep.mubr.msk.f32.mxu0 %vm584_vm13, %v1774_v16  ;;  %v1621_v32 = vld [vmem:[#allocation2 + $0xe1] sm:$0xff] }
 0x104   : > { %v18281_v11 = vpop.permute.xlu1 %1693  ;;  %v18283_v53 = vpop.permute.xlu0 %1696 }
 0x105   : > { %22850 = vst [vmem:[#allocation67_spill] sm:$0xff] %v18281_v11  ;;  %22851 = vst [vmem:[#allocation68_spill] sm:$0xff] %v18283_v53  ;;  %vm22635_vm14 = vcmp.eq.s32.totalorder %v18281_v11, 1  ;;  %vm22634_vm2 = vcmp.eq.s32.totalorder %v18283_v53, 1  ;;  %v1625_v53 = vld [vmem:[#allocation2 + $0x101] sm:$0xff] }
 0x106   : > { %14816 = vmatmul.mubr.msk.f32.gmra.mrb[20].mxu0 %vm584_vm13, %v1775_v22  ;;  %v1776_v17 = vsel %vm22635_vm14, %v1616_v61, 0.5  ;;  %v18294_v16 = vsel %vm22635_vm14, %v1618_v12, 0.5  ;;  %v18298_v8 = vsel %vm22634_vm2, %v1619_v33, 0.5  ;;  %v1777_v61 = vsel %vm22634_vm2, %v1617_v44, 0.5 }
 0x107   : > { %22852 = vst [vmem:[#allocation69_spill] sm:$0xff] %v18294_v16  ;;  %22853 = vst [vmem:[#allocation70_spill] sm:$0xff] %v18298_v8  ;;  %14818 = vmatprep.mubr.msk.f32.mxu0 %vm584_vm13, %v1776_v17  ;;  %v1623_v8 = vld [vmem:[#allocation2 + $0xf1] sm:$0xff] }
 0x108   : > { %v18301_v3 = vpop.permute.xlu1 %1699  ;;  %v18303_v23 = vpop.permute.xlu0 %1702 }
 0x109   : > { %22854 = vst [vmem:[#allocation71_spill] sm:$0xff] %v18301_v3  ;;  %22855 = vst [vmem:[#allocation72_spill] sm:$0xff] %v18303_v23  ;;  %vm22640_vm1 = vcmp.eq.s32.totalorder %v18301_v3, 1  ;;  %vm22639_vm0 = vcmp.eq.s32.totalorder %v18303_v23, 1 }
 0x10a   : > { %14819 = vmatmul.mubr.msk.f32.gmra.mrb[22].mxu0 %vm584_vm13, %v1777_v61  ;;  %v1778_v22 = vsel %vm22640_vm1, %v1618_v12, 0.5  ;;  %v18314_v17 = vsel %vm22640_vm1, %v1620_v43, 0.5  ;;  %v18318_v11 = vsel %vm22639_vm0, %v1621_v32, 0.5  ;;  %v1779_v12 = vsel %vm22639_vm0, %v1619_v33, 0.5  ;;  %v18343_v33 = vld [vmem:[#allocation2 + $0x109] sm:$0xff] }
 0x10b   : > { %22856 = vst [vmem:[#allocation73_spill] sm:$0xff] %v18314_v17  ;;  %22857 = vst [vmem:[#allocation74_spill] sm:$0xff] %v18318_v11  ;;  %14821 = vmatprep.mubr.msk.f32.mxu0 %vm584_vm13, %v1778_v22  ;;  %v1624_v11 = vld [vmem:[#allocation2 + $0xf9] sm:$0xff] }
 0x10c   : > { %v18321_v16 = vpop.permute.xlu1 %1705  ;;  %v18323_v44 = vpop.permute.xlu0 %1708 }
 0x10d   : > { %22858 = vst [vmem:[#allocation75_spill] sm:$0xff] %v18321_v16  ;;  %vm22643_vm2 = vcmp.eq.s32.totalorder %v18321_v16, 1  ;;  %vm22642_vm14 = vcmp.eq.s32.totalorder %v18323_v44, 1 }
 0x10e   : > { %14822 = vmatmul.mubr.msk.f32.gmra.mrb[24].mxu0 %vm584_vm13, %v1779_v12  ;;  %v1780_v61 = vsel %vm22643_vm2, %v1620_v43, 0.5  ;;  %v18334_v22 = vsel %vm22643_vm2, %v1622_v4, 0.5  ;;  %v18338_v3 = vsel %vm22642_vm14, %v1623_v8, 0.5  ;;  %v1781_v43 = vsel %vm22642_vm14, %v1621_v32, 0.5 }
 0x10f   : > { %22859 = vst [vmem:[#allocation76_spill] sm:$0xff] %v18334_v22  ;;  %22860 = vst [vmem:[#allocation77_spill] sm:$0xff] %v18338_v3  ;;  %14824 = vmatprep.mubr.msk.f32.mxu0 %vm584_vm13, %v1780_v61 }
 0x110   : > { %v1712_v17 = vpop.permute.xlu1 %1711  ;;  %v18341_v23 = vpop.permute.xlu0 %1714 }
 0x111   : > { %vm1750_vm0 = vcmp.eq.s32.totalorder %v1712_v17, 1  ;;  %vm1751_vm1 = vcmp.eq.s32.totalorder %v18341_v23, 1  ;;  %v5038_v23 = vld [vmem:[%s22533_s9 + $0x18] sm:$0xff] }
 0x112   : > { %14825 = vmatmul.mubr.msk.f32.gmra.mrb[26].mxu0 %vm584_vm13, %v1781_v43  ;;  %v1782_v12 = vsel %vm1750_vm0, %v1622_v4, 0.5  ;;  %v18349_v16 = vsel %vm1750_vm0, %v1624_v11, 0.5  ;;  %v18353_v61 = vsel %vm1751_vm1, %v1625_v53, 0.5  ;;  %v18357_v3 = vsel %vm1750_vm0, %v18343_v33, 0.5 }
 0x113   : > { %14827 = vmatprep.mubr.msk.f32.mxu0 %vm584_vm13, %v1782_v12  ;;  %v1783_v32 = vsel %vm1751_vm1, %v1623_v8, 0.5  ;;  %v3017_v8 = vld [vmem:[%s22531_s7 + $0xf] sm:$0x7]  ;;  %v3827_v12 = vld [vmem:[%s22531_s7 + $0x15] sm:$0x7] }
 0x114   : > { %v18359_v17 = vpop.permute.xlu1 %1717  ;;  %v18361_v22 = vpop.permute.xlu0 %1720 }
 0x115   : > { %vm1752_vm14 = vcmp.eq.s32.totalorder %v18359_v17, 1  ;;  %vm1753_vm2 = vcmp.eq.s32.totalorder %v18361_v22, 1 }
 0x116   : > { %14828 = vmatmul.mubr.msk.f32.gmra.mrb[28].mxu0 %vm584_vm13, %v1783_v32  ;;  %v1784_v4 = vsel %vm1752_vm14, %v1624_v11, 0.5  ;;  %v1785_v43 = vsel %vm1753_vm2, %v1625_v53, 0.5  ;;  %v17229_v11 = vld [vmem:[#allocation2 + $0x100] sm:$0xff]  ;;  %v18559_v53 = vld [vmem:[#allocation2 + $0x110] sm:$0xff] }
 0x117   : > { %14830 = vmatprep.mubr.msk.f32.mxu0 %vm584_vm13, %v1784_v4  ;;  %v2984_v32 = vld [vmem:[#allocation2 + $0x111] sm:$0xff]  ;;  %v3015_v4 = vsel %vm1752_vm14, %v18343_v33, 0.5 }
 0x118   : > { %v22876_v33 = vld [vmem:[#allocation10_spill] sm:$0xff] }
 0x11a   : > { %14831 = vmatmul.mubr.msk.f32.gmra.mrb[30].mxu0 %vm584_vm13, %v1785_v43  ;;  %v3374_v43 = vld [vmem:[#allocation2 + $0x27] sm:$0xff] }
 0x11b   : > { %14835 = vmatprep.mubr.msk.f32.mxu0 %vm584_vm13, %v17758_v29  ;;  %v2205_v29 = vsel %vm877_vm7, %v18030_v5, 0.5  ;;  %v17226_v5 = vld [vmem:[#allocation2 + $0xe8] sm:$0xff] }
 0x11e   : > { %14836 = vmatmul.mubr.msk.f32.vlgmr.msra.gmra.mrb[0].mxu0 %vm584_vm13, %v17770_v21  ;;  %v2206_v21 = vsel %vm878_vm3, %v18032_v40, 0.5  ;;  %v17227_v40 = vld [vmem:[#allocation2 + $0xf0] sm:$0xff] }
 0x11f   : > { %14838 = vmatprep.mubr.msk.f32.mxu0 %vm584_vm13, %v17762_v35  ;;  %14884 = vmatpush3.msk.msra.mxu0 %vm1041_vm10, %v18083_v46  ;;  %v2564_v35 = vld [vmem:[#allocation2 + $0x18] sm:$0xff]  ;;  %v18554_v46 = vld [vmem:[#allocation2 + $0x108] sm:$0xff] }
 0x120   : > { %14933 = vmatprep.subr.msk.mxu0 %vm1041_vm10, %v3017_v8 }
 0x122   : > { %14839 = vmatmul.mubr.msk.f32.gmra.mrb[2].mxu0 %vm584_vm13, %v17784_v42  ;;  %v2565_v42 = vld [vmem:[#allocation2 + $0x20] sm:$0xff] }
 0x123   : > { %14841 = vmatprep.mubr.msk.f32.mxu0 %vm584_vm13, %v17803_v47  ;;  %v18449_v47 = vld [vmem:[#allocation2 + $0x28] sm:$0xff] }
 0x126   : > { %14842 = vmatmul.mubr.msk.f32.gmra.mrb[4].mxu0 %vm584_vm13, %v17807_v48  ;;  %v18454_v48 = vld [vmem:[%s22531_s7 + $0x12] sm:$0x7] }
 0x127   : > { %14844 = vmatprep.mubr.msk.f32.mxu0 %vm584_vm13, %v17823_v57  ;;  %v18459_v57 = vld [vmem:[#allocation2 + $0x30] sm:$0xff] }
 0x12a   : > { %14845 = vmatmul.mubr.msk.f32.gmra.mrb[6].mxu0 %vm584_vm13, %v17827_v58  ;;  %v18462_v58 = vld [vmem:[#allocation2 + $0x38] sm:$0xff] }
 0x12b   : > { %14847 = vmatprep.mubr.msk.f32.mxu0 %vm584_vm13, %v17843_v1  ;;  %v18470_v1 = vld [vmem:[#allocation2 + $0x40] sm:$0xff] }
 0x12e   : > { %14848 = vmatmul.mubr.msk.f32.gmra.mrb[8].mxu0 %vm584_vm13, %v17847_v2  ;;  %v18472_v2 = vld [vmem:[#allocation2 + $0x48] sm:$0xff] }
 0x12f   : > { %14850 = vmatprep.mubr.msk.f32.mxu0 %vm584_vm13, %v17863_v24  ;;  %v18478_v24 = vld [vmem:[#allocation2 + $0x50] sm:$0xff] }
 0x132   : > { %14851 = vmatmul.mubr.msk.f32.gmra.mrb[10].mxu0 %vm584_vm13, %v17867_v25  ;;  %v18480_v25 = vld [vmem:[#allocation2 + $0x58] sm:$0xff] }
 0x133   : > { %14853 = vmatprep.mubr.msk.f32.mxu0 %vm584_vm13, %v17883_v6  ;;  %v18486_v6 = vld [vmem:[#allocation2 + $0x60] sm:$0xff] }
 0x136   : > { %14854 = vmatmul.mubr.msk.f32.gmra.mrb[12].mxu0 %vm584_vm13, %v17887_v10  ;;  %v18488_v10 = vld [vmem:[#allocation2 + $0x68] sm:$0xff] }
 0x137   : > { %14856 = vmatprep.mubr.msk.f32.mxu0 %vm584_vm13, %v17903_v28  ;;  %v18494_v28 = vld [vmem:[#allocation2 + $0x70] sm:$0xff] }
 0x13a   : > { %14857 = vmatmul.mubr.msk.f32.gmra.mrb[14].mxu0 %vm584_vm13, %v17907_v36  ;;  %v18496_v36 = vld [vmem:[#allocation2 + $0x78] sm:$0xff] }
 0x13b   : > { %14859 = vmatprep.mubr.msk.f32.mxu0 %vm584_vm13, %v17923_v41  ;;  %v18502_v41 = vld [vmem:[#allocation2 + $0x80] sm:$0xff] }
 0x13e   : > { %14860 = vmatmul.mubr.msk.f32.gmra.mrb[16].mxu0 %vm584_vm13, %v17927_v45  ;;  %v18504_v45 = vld [vmem:[#allocation2 + $0x88] sm:$0xff] }
 0x13f   : > { %14862 = vmatprep.mubr.msk.f32.mxu0 %vm584_vm13, %v17943_v60  ;;  %v18512_v60 = vld [vmem:[#allocation2 + $0x98] sm:$0xff] }
 0x142   : > { %14863 = vmatmul.mubr.msk.f32.gmra.mrb[18].mxu0 %vm584_vm13, %v17947_v63  ;;  %v18518_v63 = vld [vmem:[#allocation2 + $0xa0] sm:$0xff] }
 0x143   : > { %14865 = vmatprep.mubr.msk.f32.mxu0 %vm584_vm13, %v17963_v30  ;;  %v18520_v30 = vld [vmem:[#allocation2 + $0xa8] sm:$0xff] }
 0x146   : > { %14866 = vmatmul.mubr.msk.f32.gmra.mrb[20].mxu0 %vm584_vm13, %v17967_v37  ;;  %v18526_v37 = vld [vmem:[#allocation2 + $0xb0] sm:$0xff] }
 0x147   : > { %14868 = vmatprep.mubr.msk.f32.mxu0 %vm584_vm13, %v17983_v52  ;;  %v18534_v52 = vld [vmem:[#allocation2 + $0xc0] sm:$0xff] }
 0x14a   : > { %14869 = vmatmul.mubr.msk.f32.gmra.mrb[22].mxu0 %vm584_vm13, %v17987_v39  ;;  %v18536_v39 = vld [vmem:[#allocation2 + $0xc8] sm:$0xff] }
 0x14b   : > { %14871 = vmatprep.mubr.msk.f32.mxu0 %vm584_vm13, %v18003_v19  ;;  %v18542_v19 = vld [vmem:[#allocation2 + $0xd0] sm:$0xff] }
 0x14e   : > { %14872 = vmatmul.mubr.msk.f32.gmra.mrb[24].mxu0 %vm584_vm13, %v18007_v26  ;;  %v18544_v26 = vld [vmem:[#allocation2 + $0xd8] sm:$0xff] }
 0x14f   : > { %14874 = vmatprep.mubr.msk.f32.mxu0 %vm584_vm13, %v18020_v49  ;;  %v17225_v49 = vld [vmem:[#allocation2 + $0xe0] sm:$0xff] }
 0x152   : > { %14875 = vmatmul.mubr.msk.f32.gmra.mrb[26].mxu0 %vm584_vm13, %v18023_v9  ;;  %v18528_v9 = vld [vmem:[#allocation2 + $0xb8] sm:$0xff] }
 0x153   : > { %14877 = vmatprep.mubr.msk.f32.mxu0 %vm584_vm13, %v18035_v50  ;;  %v18510_v50 = vld [vmem:[#allocation2 + $0x90] sm:$0xff] }
 0x156   : > { %14878 = vmatmul.mubr.msk.f32.gmra.mrb[28].mxu0 %vm584_vm13, %v18037_v38  ;;  %v17228_v38 = vld [vmem:[#allocation2 + $0xf8] sm:$0xff] }
 0x157   : > { %14880 = vmatprep.mubr.msk.f32.mxu0 %vm584_vm13, %v2205_v29  ;;  %v3386_v29 = vld [vmem:[#allocation2 + $0x87] sm:$0xff] }
 0x15a   : > { %14881 = vmatmul.mubr.msk.f32.gmra.mrb[30].mxu0 %vm584_vm13, %v2206_v21 }
 0x15b   : > { %14885 = vmatprep.mubr.msk.f32.mxu0 %vm584_vm13, %v2564_v35  ;;  %v3406_v35 = vsel %vm847_vm5, %v3374_v43, 0.5 }
 0x15e   : > { %14886 = vmatmul.mubr.msk.f32.vlgmr.msra.gmra.mrb[0].mxu0 %vm584_vm13, %v2565_v42 }
 0x15f   : > { %14888 = vmatprep.mubr.msk.f32.mxu0 %vm584_vm13, %v18449_v47  ;;  %14934 = vmatpush3.msk.msra.mxu0 %vm1041_vm10, %v3017_v8  ;;  %v3016_v8 = vsel %vm1753_vm2, %v2984_v32, 0.5 }
 0x160   : > { %14983 = vmatprep.subr.msk.mxu0 %vm1041_vm10, %v18454_v48 }
 0x162   : > { %14889 = vmatmul.mubr.msk.f32.gmra.mrb[2].mxu0 %vm584_vm13, %v18459_v57 }
 0x163   : > { %14891 = vmatprep.mubr.msk.f32.mxu0 %vm584_vm13, %v18462_v58 }
 0x166   : > { %14892 = vmatmul.mubr.msk.f32.gmra.mrb[4].mxu0 %vm584_vm13, %v18470_v1 }
 0x167   : > { %14894 = vmatprep.mubr.msk.f32.mxu0 %vm584_vm13, %v18472_v2 }
 0x16a   : > { %14895 = vmatmul.mubr.msk.f32.gmra.mrb[6].mxu0 %vm584_vm13, %v18478_v24 }
 0x16b   : > { %14897 = vmatprep.mubr.msk.f32.mxu0 %vm584_vm13, %v18480_v25 }
 0x16e   : > { %14898 = vmatmul.mubr.msk.f32.gmra.mrb[8].mxu0 %vm584_vm13, %v18486_v6 }
 0x16f   : > { %14900 = vmatprep.mubr.msk.f32.mxu0 %vm584_vm13, %v18488_v10 }
 0x172   : > { %14901 = vmatmul.mubr.msk.f32.gmra.mrb[10].mxu0 %vm584_vm13, %v18494_v28 }
 0x173   : > { %14903 = vmatprep.mubr.msk.f32.mxu0 %vm584_vm13, %v18496_v36 }
 0x176   : > { %14904 = vmatmul.mubr.msk.f32.gmra.mrb[12].mxu0 %vm584_vm13, %v18502_v41 }
 0x177   : > { %14906 = vmatprep.mubr.msk.f32.mxu0 %vm584_vm13, %v18504_v45 }
 0x17a   : > { %14907 = vmatmul.mubr.msk.f32.gmra.mrb[14].mxu0 %vm584_vm13, %v18510_v50 }
 0x17b   : > { %14909 = vmatprep.mubr.msk.f32.mxu0 %vm584_vm13, %v18512_v60 }
 0x17e   : > { %14910 = vmatmul.mubr.msk.f32.gmra.mrb[16].mxu0 %vm584_vm13, %v18518_v63 }
 0x17f   : > { %14912 = vmatprep.mubr.msk.f32.mxu0 %vm584_vm13, %v18520_v30 }
 0x182   : > { %14913 = vmatmul.mubr.msk.f32.gmra.mrb[18].mxu0 %vm584_vm13, %v18526_v37 }
 0x183   : > { %14915 = vmatprep.mubr.msk.f32.mxu0 %vm584_vm13, %v18528_v9 }
 0x186   : > { %14916 = vmatmul.mubr.msk.f32.gmra.mrb[20].mxu0 %vm584_vm13, %v18534_v52 }
 0x187   : > { %14918 = vmatprep.mubr.msk.f32.mxu0 %vm584_vm13, %v18536_v39 }
 0x18a   : > { %14919 = vmatmul.mubr.msk.f32.gmra.mrb[22].mxu0 %vm584_vm13, %v18542_v19 }
 0x18b   : > { %14921 = vmatprep.mubr.msk.f32.mxu0 %vm584_vm13, %v18544_v26 }
 0x18e   : > { %14922 = vmatmul.mubr.msk.f32.gmra.mrb[24].mxu0 %vm584_vm13, %v17225_v49  ;;  %v3378_v49 = vld [vmem:[#allocation2 + $0x47] sm:$0xff] }
 0x18f   : > { %14924 = vmatprep.mubr.msk.f32.mxu0 %vm584_vm13, %v17226_v5  ;;  %v22892_v5 = vld [vmem:[#allocation19_spill] sm:$0xff] }
 0x192   : > { %14925 = vmatmul.mubr.msk.f32.gmra.mrb[26].mxu0 %vm584_vm13, %v17227_v40 }
 0x193   : > { %14927 = vmatprep.mubr.msk.f32.mxu0 %vm584_vm13, %v17228_v38  ;;  %v22894_v38 = vmov 0  }
 0x196   : > { %14928 = vmatmul.mubr.msk.f32.gmra.mrb[28].mxu0 %vm584_vm13, %v17229_v11  ;;  %v3410_v11 = vsel %vm851_vm9, %v3378_v49, 0.5  ;;  %v4715_v49 = vld [vmem:[%s22788_s28] sm:$0xff] }
 0x197   : > { %14930 = vmatprep.mubr.msk.f32.mxu0 %vm584_vm13, %v18554_v46  ;;  %vm4747_vm9 = vcmp.gt.f32.partialorder %v4715_v49, 0.5  ;;  %v22907_v49 = vld [vmem:[#allocation28_spill] sm:$0xff] }
 0x19a   : > { %14931 = vmatmul.mubr.msk.f32.gmra.mrb[30].mxu0 %vm584_vm13, %v18559_v53 }
 0x19b   : > { %14935 = vmatprep.mubr.msk.f32.mxu0 %vm584_vm13, %v18072_v18  ;;  %v22865_v18 = vld [vmem:[#allocation61_spill] sm:$0xff] }
 0x19e   : > { %14936 = vmatmul.mubr.msk.f32.vlgmr.msra.gmra.mrb[0].mxu0 %vm584_vm13, %v18062_v0  ;;  %v22863_v0 = vld [vmem:[#allocation57_spill] sm:$0xff] }
 0x19f   : > { %14938 = vmatprep.mubr.msk.f32.mxu0 %vm584_vm13, %v18090_v51  ;;  %14984 = vmatpush3.msk.msra.mxu0 %vm1041_vm10, %v18454_v48  ;;  %v22867_v51 = vld [vmem:[#allocation65_spill] sm:$0xff]  ;;  %v3377_v48 = vld [vmem:[#allocation2 + $0x3f] sm:$0xff] }
 0x1a0   : > { %15033 = vmatprep.subr.msk.mxu0 %vm1041_vm10, %v3827_v12  ;;  %v3409_v40 = vsel %vm850_vm6, %v3377_v48, 0.5  ;;  %v3388_v48 = vld [vmem:[#allocation2 + $0x97] sm:$0xff] }
 0x1a2   : > { %14939 = vmatmul.mubr.msk.f32.gmra.mrb[2].mxu0 %vm584_vm13, %v18094_v27  ;;  %v22869_v27 = vld [vmem:[#allocation69_spill] sm:$0xff] }
 0x1a3   : > { %14941 = vmatprep.mubr.msk.f32.mxu0 %vm584_vm13, %v18114_v34  ;;  %v22870_v34 = vld [vmem:[#allocation70_spill] sm:$0xff] }
 0x1a6   : > { %14942 = vmatmul.mubr.msk.f32.gmra.mrb[4].mxu0 %vm584_vm13, %v18118_v14  ;;  %v22861_v14 = vld [vmem:[#allocation53_spill] sm:$0xff] }
 0x1a7   : > { %14944 = vmatprep.mubr.msk.f32.mxu0 %vm584_vm13, %v18134_v59  ;;  %v22871_v59 = vld [vmem:[#allocation73_spill] sm:$0xff] }
 0x1aa   : > { %14945 = vmatmul.mubr.msk.f32.gmra.mrb[6].mxu0 %vm584_vm13, %v18138_v31  ;;  %v22862_v31 = vld [vmem:[#allocation54_spill] sm:$0xff] }
 0x1ab   : > { %14947 = vmatprep.mubr.msk.f32.mxu0 %vm584_vm13, %v18154_v56  ;;  %v22872_v56 = vld [vmem:[#allocation74_spill] sm:$0xff] }
 0x1ae   : > { %14948 = vmatmul.mubr.msk.f32.gmra.mrb[8].mxu0 %vm584_vm13, %v18158_v15  ;;  %v22864_v15 = vld [vmem:[#allocation58_spill] sm:$0xff] }
 0x1af   : > { %14950 = vmatprep.mubr.msk.f32.mxu0 %vm584_vm13, %v18174_v13  ;;  %v22873_v13 = vld [vmem:[#allocation76_spill] sm:$0xff] }
 0x1b2   : > { %14951 = vmatmul.mubr.msk.f32.gmra.mrb[10].mxu0 %vm584_vm13, %v18178_v62  ;;  %v22866_v62 = vld [vmem:[#allocation62_spill] sm:$0xff] }
 0x1b3   : > { %14953 = vmatprep.mubr.msk.f32.mxu0 %vm584_vm13, %v18194_v20  ;;  %v22874_v20 = vld [vmem:[#allocation77_spill] sm:$0xff] }
 0x1b6   : > { %14954 = vmatmul.mubr.msk.f32.gmra.mrb[12].mxu0 %vm584_vm13, %v18198_v54  ;;  %v22868_v54 = vld [vmem:[#allocation66_spill] sm:$0xff] }
 0x1b7   : > { %14956 = vmatprep.mubr.msk.f32.mxu0 %vm584_vm13, %v22861_v14  ;;  %v3379_v14 = vld [vmem:[#allocation2 + $0x4f] sm:$0xff] }
 0x1ba   : > { %14957 = vmatmul.mubr.msk.f32.gmra.mrb[14].mxu0 %vm584_vm13, %v22862_v31  ;;  %v3380_v31 = vld [vmem:[#allocation2 + $0x57] sm:$0xff] }
 0x1bb   : > { %14959 = vmatprep.mubr.msk.f32.mxu0 %vm584_vm13, %v22863_v0  ;;  %v3389_v0 = vld [vmem:[#allocation2 + $0x9f] sm:$0xff] }
 0x1be   : > { %14960 = vmatmul.mubr.msk.f32.gmra.mrb[16].mxu0 %vm584_vm13, %v22864_v15  ;;  %v3411_v15 = vsel %vm852_vm8, %v3379_v14, 0.5  ;;  %v22895_v14 = vld [vmem:[#allocation22_spill] sm:$0xff] }
 0x1bf   : > { %14962 = vmatprep.mubr.msk.f32.mxu0 %vm584_vm13, %v22865_v18  ;;  %v3412_v18 = vsel %vm853_vm12, %v3380_v31, 0.5  ;;  %vm22896_vm12 = vcmp.eq.s32.totalorder %v22895_v14, 1  ;;  %v4719_v14 = vld [vmem:[%s22788_s28 + $0x20] sm:$0xff] }
 0x1c0   : > { %v3420_v31 = vsel %vm22896_vm12, %v3388_v48, 0.5 }
 0x1c2   : > { %14963 = vmatmul.mubr.msk.f32.gmra.mrb[18].mxu0 %vm584_vm13, %v22866_v62  ;;  %v3381_v62 = vld [vmem:[#allocation2 + $0x5f] sm:$0xff] }
 0x1c3   : > { %14965 = vmatprep.mubr.msk.f32.mxu0 %vm584_vm13, %v22867_v51  ;;  %v3382_v51 = vld [vmem:[#allocation2 + $0x67] sm:$0xff] }
 0x1c6   : > { %14966 = vmatmul.mubr.msk.f32.gmra.mrb[20].mxu0 %vm584_vm13, %v22868_v54  ;;  %v22899_v54 = vld [vmem:[#allocation24_spill] sm:$0xff] }
 0x1c7   : > { %14968 = vmatprep.mubr.msk.f32.mxu0 %vm584_vm13, %v22869_v27  ;;  %v3413_v27 = vsel %vm854_vm11, %v3381_v62, 0.5  ;;  %vm22893_vm11 = vcmp.eq.s32.totalorder %v22892_v5, 1 }
 0x1ca   : > { %14969 = vmatmul.mubr.msk.f32.gmra.mrb[22].mxu0 %vm584_vm13, %v22870_v34  ;;  %v3391_v34 = vld [vmem:[#allocation2 + $0xaf] sm:$0xff] }
 0x1cb   : > { %14971 = vmatprep.mubr.msk.f32.mxu0 %vm584_vm13, %v22871_v59  ;;  %v3414_v59 = vsel %vm855_vm15, %v3382_v51, 0.5 }
 0x1ce   : > { %14972 = vmatmul.mubr.msk.f32.gmra.mrb[24].mxu0 %vm584_vm13, %v22872_v56  ;;  %v3383_v56 = vld [vmem:[#allocation2 + $0x6f] sm:$0xff] }
 0x1cf   : > { %14974 = vmatprep.mubr.msk.f32.mxu0 %vm584_vm13, %v22873_v13  ;;  %v3384_v13 = vld [vmem:[#allocation2 + $0x77] sm:$0xff] }
 0x1d2   : > { %14975 = vmatmul.mubr.msk.f32.gmra.mrb[26].mxu0 %vm584_vm13, %v22874_v20  ;;  %v22884_v20 = vld [vmem:[#allocation15_spill] sm:$0xff] }
 0x1d3   : > { %14977 = vmatprep.mubr.msk.f32.mxu0 %vm584_vm13, %v18349_v16  ;;  %v3376_v16 = vld [vmem:[#allocation2 + $0x37] sm:$0xff] }
 0x1d4   : > { %v3408_v42 = vsel %vm849_vm4, %v3376_v16, 0.5  ;;  %vm22885_vm4 = vcmp.eq.s32.totalorder %v22884_v20, 1 }
 0x1d5   : > { %v3415_v32 = vsel %vm22885_vm4, %v3383_v56, 0.5  ;;  %vm22900_vm4 = vcmp.eq.s32.totalorder %v22899_v54, 1  ;;  %v4718_v56 = vld [vmem:[%s22788_s28 + $0x18] sm:$0xff] }
 0x1d6   : > { %14978 = vmatmul.mubr.msk.f32.gmra.mrb[28].mxu0 %vm584_vm13, %v18353_v61  ;;  %v18642_v61 = vld [vmem:[%s22531_s7 + $0x18] sm:$0x7] }
 0x1d7   : > { %14980 = vmatprep.mubr.msk.f32.mxu0 %vm584_vm13, %v3015_v4  ;;  %v22886_v4 = vld [vmem:[#allocation18_spill] sm:$0xff] }
 0x1d8   : > { %vm22887_vm5 = vcmp.eq.s32.totalorder %v22886_v4, 1  ;;  %v22903_v4 = vld [vmem:[#allocation26_spill] sm:$0xff] }
 0x1d9   : > { %v3416_v43 = vsel %vm22887_vm5, %v3384_v13, 0.5  ;;  %vm4750_vm5 = vcmp.gt.f32.partialorder %v4718_v56, 0.5  ;;  %v22901_v13 = vld [vmem:[#allocation23_spill] sm:$0xff]  ;;  %v22911_v54 = vld [vmem:[#allocation30_spill] sm:$0xff] }
 0x1da   : > { %14981 = vmatmul.mubr.msk.f32.gmra.mrb[30].mxu0 %vm584_vm13, %v3016_v8  ;;  %v3385_v8 = vld [vmem:[#allocation2 + $0x7f] sm:$0xff]  ;;  %v3398_v56 = vld [vmem:[#allocation2 + $0xe7] sm:$0xff] }
 0x1db   : > { %14985 = vmatprep.mubr.msk.f32.mxu0 %vm584_vm13, %v3406_v35  ;;  %v22888_v35 = vld [vmem:[#allocation17_spill] sm:$0xff] }
 0x1dc   : > { %vm22889_vm6 = vcmp.eq.s32.totalorder %v22888_v35, 1  ;;  %v3394_v35 = vld [vmem:[#allocation2 + $0xc7] sm:$0xff] }
 0x1dd   : > { %v3417_v16 = vsel %vm22889_vm6, %v3385_v8, 0.5  ;;  %vm22902_vm6 = vcmp.eq.s32.totalorder %v22901_v13, 1  ;;  %v3393_v8 = vld [vmem:[#allocation2 + $0xbf] sm:$0xff]  ;;  %v4724_v13 = vld [vmem:[%s22788_s28 + $0x48] sm:$0xff] }
 0x1de   : > { %14986 = vmatmul.mubr.msk.f32.vlgmr.msra.gmra.mrb[0].mxu0 %vm584_vm13, %v22876_v33  ;;  %v22890_v33 = vld [vmem:[#allocation20_spill] sm:$0xff]  ;;  %v3423_v20 = vsel %vm22902_vm6, %v3391_v34, 0.5  ;;  %vm22912_vm6 = vcmp.eq.s32.totalorder %v22911_v54, 1  ;;  %v3397_v34 = vld [vmem:[#allocation2 + $0xdf] sm:$0xff] }
 0x1df   : > { %14988 = vmatprep.mubr.msk.f32.mxu0 %vm584_vm13, %v3408_v42  ;;  %15034 = vmatpush3.msk.msra.mxu0 %vm1041_vm10, %v3827_v12  ;;  %vm22891_vm8 = vcmp.eq.s32.totalorder %v22890_v33, 1  ;;  %v3387_v42 = vld [vmem:[#allocation2 + $0x8f] sm:$0xff] }
 0x1e0   : > { %15083 = vmatprep.subr.msk.mxu0 %vm1041_vm10, %v18642_v61  ;;  %v3418_v21 = vsel %vm22891_vm8, %v3386_v29, 0.5  ;;  %v4717_v12 = vld [vmem:[%s22788_s28 + $0x10] sm:$0xff]  ;;  %vm22904_vm8 = vcmp.eq.s32.totalorder %v22903_v4, 1  ;;  %v4716_v29 = vld [vmem:[%s22788_s28 + $0x8] sm:$0xff] }
 0x1e1   : > { %vm4749_vm15 = vcmp.gt.f32.partialorder %v4717_v12, 0.5  ;;  %v22909_v12 = vld [vmem:[#allocation27_spill] sm:$0xff]  ;;  %v22913_v4 = vld [vmem:[#allocation29_spill] sm:$0xff]  ;;  %v4728_v54 = vld [vmem:[%s22788_s28 + $0x68] sm:$0xff] }
 0x1e2   : > { %14989 = vmatmul.mubr.msk.f32.gmra.mrb[2].mxu0 %vm584_vm13, %v3409_v40  ;;  %v3419_v40 = vsel %vm22893_vm11, %v3387_v42, 0.5  ;;  %v18701_v51 = vsel %vm4749_vm15, 1, %v22894_v38  ;;  %vm22908_vm15 = vcmp.eq.s32.totalorder %v22907_v49, 1  ;;  %v4726_v49 = vld [vmem:[%s22788_s28 + $0x58] sm:$0xff] }
 0x1e3   : > { %14991 = vmatprep.mubr.msk.f32.mxu0 %vm584_vm13, %v3410_v11  ;;  %v18688_v11 = vsel %vm4747_vm9, 1, %v22894_v38  ;;  %vm4748_vm9 = vcmp.gt.f32.partialorder %v4716_v29, 0.5  ;;  %v3426_v5 = vsel %vm22908_vm15, %v3394_v35, 0.5  ;;  %v22915_v29 = vld [vmem:[#allocation32_spill] sm:$0xff] }
 0x1e4   : > { %4844 = vperm.xlu1 %17197, %v18688_v11   ;;  %v18728_v33 = vsel %vm4748_vm9, 1, %v22894_v38  ;;  %vm4756_vm9 = vcmp.gt.f32.partialorder %v4724_v13, 0.5  ;;  %v22922_v13 = vld [vmem:[#allocation35_spill] sm:$0xff] }
 0x1e5   : > { %4847 = vperm.xlu0 %17198, %v18728_v33  }
 0x1e6   : > { %14992 = vmatmul.mubr.msk.f32.gmra.mrb[4].mxu0 %vm584_vm13, %v3411_v15  ;;  %v3390_v15 = vld [vmem:[#allocation2 + $0xa7] sm:$0xff] }
 0x1e7   : > { %14994 = vmatprep.mubr.msk.f32.mxu0 %vm584_vm13, %v3412_v18  ;;  %v22897_v18 = vld [vmem:[#allocation21_spill] sm:$0xff] }
 0x1e8   : > { %vm22898_vm0 = vcmp.eq.s32.totalorder %v22897_v18, 1  ;;  %4850 = vperm.xlu1 %17197, %v18701_v51  }
 0x1e9   : > { %v3421_v62 = vsel %vm22898_vm0, %v3389_v0, 0.5  ;;  %vm4751_vm0 = vcmp.gt.f32.partialorder %v4719_v14, 0.5  ;;  %v4722_v0 = vld [vmem:[%s22788_s28 + $0x38] sm:$0xff] }
 0x1ea   : > { %14995 = vmatmul.mubr.msk.f32.gmra.mrb[6].mxu0 %vm584_vm13, %v3413_v27  ;;  %v3422_v27 = vsel %vm22900_vm4, %v3390_v15, 0.5  ;;  %v18748_v15 = vsel %vm4751_vm0, 1, %v22894_v38  ;;  %vm4754_vm4 = vcmp.gt.f32.partialorder %v4722_v0, 0.5  ;;  %vm4758_vm0 = vcmp.gt.f32.partialorder %v4726_v49, 0.5  ;;  %v22919_v0 = vld [vmem:[#allocation33_spill] sm:$0xff] }
 0x1eb   : > { %14997 = vmatprep.mubr.msk.f32.mxu0 %vm584_vm13, %v3414_v59  ;;  %v3392_v59 = vld [vmem:[#allocation2 + $0xb7] sm:$0xff]  ;;  %4856 = vperm.xlu0 %17198, %v18748_v15  }
 0x1ec   : > { %v4729_v49 = vld [vmem:[%s22788_s28 + $0x70] sm:$0xff] }
 0x1ee   : > { %14998 = vmatmul.mubr.msk.f32.gmra.mrb[8].mxu0 %vm584_vm13, %v3415_v32  ;;  %v18714_v32 = vsel %vm4750_vm5, 1, %v22894_v38  ;;  %vm22910_vm5 = vcmp.eq.s32.totalorder %v22909_v12, 1 }
 0x1ef   : > { %15000 = vmatprep.mubr.msk.f32.mxu0 %vm584_vm13, %v3416_v43  ;;  %v3424_v43 = vsel %vm22904_vm8, %v3392_v59, 0.5  ;;  %4853 = vperm.xlu1 %17197, %v18714_v32   ;;  %v4721_v59 = vld [vmem:[%s22788_s28 + $0x30] sm:$0xff] }
 0x1f0   : > { %vm4753_vm8 = vcmp.gt.f32.partialorder %v4721_v59, 0.5  ;;  %v22921_v59 = vld [vmem:[#allocation34_spill] sm:$0xff] }
 0x1f2   : > { %15001 = vmatmul.mubr.msk.f32.gmra.mrb[10].mxu0 %vm584_vm13, %v3417_v16  ;;  %v4720_v16 = vld [vmem:[%s22788_s28 + $0x28] sm:$0xff] }
 0x1f3   : > { %15003 = vmatprep.mubr.msk.f32.mxu0 %vm584_vm13, %v3418_v21  ;;  %vm4752_vm11 = vcmp.gt.f32.partialorder %v4720_v16, 0.5  ;;  %v22905_v21 = vld [vmem:[#allocation25_spill] sm:$0xff] }
 0x1f4   : > { %vm22906_vm12 = vcmp.eq.s32.totalorder %v22905_v21, 1  ;;  %v18734_v48 = vsel %vm4752_vm11, 1, %v22894_v38  ;;  %vm22914_vm11 = vcmp.eq.s32.totalorder %v22913_v4, 1  ;;  %v3399_v16 = vld [vmem:[#allocation2 + $0xef] sm:$0xff]  ;;  %v4723_v21 = vld [vmem:[%s22788_s28 + $0x40] sm:$0xff]  ;;  %v3404_v4 = vld [vmem:[#allocation2 + $0x117] sm:$0xff] }
 0x1f5   : > { %v3425_v42 = vsel %vm22906_vm12, %v3393_v8, 0.5  ;;  %4859 = vperm.xlu1 %17197, %v18734_v48   ;;  %v18774_v8 = vsel %vm4756_vm9, 1, %v22894_v38  ;;  %vm22916_vm12 = vcmp.eq.s32.totalorder %v22915_v29, 1  ;;  %vm4755_vm15 = vcmp.gt.f32.partialorder %v4723_v21, 0.5 }
 0x1f6   : > { %15004 = vmatmul.mubr.msk.f32.gmra.mrb[12].mxu0 %vm584_vm13, %v3419_v40  ;;  %v3395_v40 = vld [vmem:[#allocation2 + $0xcf] sm:$0xff]  ;;  %v3430_v35 = vsel %vm22916_vm12, %v3398_v56, 0.5  ;;  %v4727_v56 = vld [vmem:[%s22788_s28 + $0x60] sm:$0xff]  ;;  %v3436_v21 = vsel %vm877_vm7, %v3404_v4, 0.5  ;;  %vm4761_vm12 = vcmp.gt.f32.partialorder %v4729_v49, 0.5  ;;  %v4738_v4 = vld [vmem:[%s22788_s28 + $0xb8] sm:$0xff] }
 0x1f7   : > { %15006 = vmatprep.mubr.msk.f32.mxu0 %vm584_vm13, %v3420_v31  ;;  %v3396_v31 = vld [vmem:[#allocation2 + $0xd7] sm:$0xff]  ;;  %v3427_v18 = vsel %vm22910_vm5, %v3395_v40, 0.5  ;;  %v22917_v40 = vld [vmem:[#allocation31_spill] sm:$0xff]  ;;  %vm22920_vm5 = vcmp.eq.s32.totalorder %v22919_v0, 1  ;;  %vm4759_vm9 = vcmp.gt.f32.partialorder %v4727_v56, 0.5 }
 0x1f8   : > { %v18826_v29 = vsel %vm4759_vm9, 1, %v22894_v38 }
 0x1fa   : > { %15007 = vmatmul.mubr.msk.f32.gmra.mrb[14].mxu0 %vm584_vm13, %v3421_v62  ;;  %v18754_v62 = vsel %vm4754_vm4, 1, %v22894_v38  ;;  %vm22918_vm4 = vcmp.eq.s32.totalorder %v22917_v40, 1  ;;  %v4732_v40 = vld [vmem:[%s22788_s28 + $0x88] sm:$0xff] }
 0x1fb   : > { %15009 = vmatprep.mubr.msk.f32.mxu0 %vm584_vm13, %v3422_v27  ;;  %v3428_v27 = vsel %vm22912_vm6, %v3396_v31, 0.5  ;;  %4865 = vperm.xlu1 %17197, %v18754_v62   ;;  %v3431_v14 = vsel %vm22918_vm4, %v3399_v16, 0.5  ;;  %v18794_v31 = vsel %vm4758_vm0, 1, %v22894_v38  ;;  %v22923_v16 = vld [vmem:[#allocation36_spill] sm:$0xff]  ;;  %vm4765_vm4 = vcmp.gt.f32.partialorder %v4733_v55, 0.5  ;;  %v4745_v55 = vld [vmem:[%s22788_s28 + $0xf0] sm:$0xff] }
 0x1fe   : > { %15010 = vmatmul.mubr.msk.f32.gmra.mrb[16].mxu0 %vm584_vm13, %v3423_v20  ;;  %v18768_v20 = vsel %vm4753_vm8, 1, %v22894_v38  ;;  %vm4760_vm8 = vcmp.gt.f32.partialorder %v4728_v54, 0.5  ;;  %v4736_v54 = vld [vmem:[%s22788_s28 + $0xa8] sm:$0xff] }
 0x1ff   : > { %15012 = vmatprep.mubr.msk.f32.mxu0 %vm584_vm13, %v3424_v43  ;;  %v3429_v43 = vsel %vm22914_vm11, %v3397_v34, 0.5  ;;  %4862 = vperm.xlu0 %17198, %v18768_v20   ;;  %v18812_v34 = vsel %vm4760_vm8, 1, %v22894_v38  ;;  %vm4770_vm8 = vcmp.gt.f32.partialorder %v4738_v4, 0.5  ;;  %v4194_v4 = vld [vmem:[#allocation2 + $0x79] sm:$0xff] }
 0x200   : > { %4871 = vperm.xlu1 %17197, %v18774_v8  }
 0x202   : > { %15013 = vmatmul.mubr.msk.f32.gmra.mrb[18].mxu0 %vm584_vm13, %v3425_v42  ;;  %v3400_v42 = vld [vmem:[#allocation2 + $0xf7] sm:$0xff] }
 0x203   : > { %15015 = vmatprep.mubr.msk.f32.mxu0 %vm584_vm13, %v3426_v5  ;;  %v18788_v5 = vsel %vm4755_vm15, 1, %v22894_v38  ;;  %v3432_v12 = vsel %vm22920_vm5, %v3400_v42, 0.5  ;;  %v3405_v42 = vld [vmem:[#allocation2 + $0x11f] sm:$0xff]  ;;  %vm4764_vm15 = vcmp.gt.f32.partialorder %v4732_v40, 0.5  ;;  %vm4768_vm5 = vcmp.gt.f32.partialorder %v4736_v54, 0.5  ;;  %v4741_v40 = vld [vmem:[%s22788_s28 + $0xd0] sm:$0xff] }
 0x204   : > { %4868 = vperm.xlu0 %17198, %v18788_v5   ;;  %4877 = vperm.xlu1 %17197, %v18794_v31   ;;  %v3437_v7 = vsel %vm878_vm3, %v3405_v42, 0.5  ;;  %v18851_v0 = vsel %vm4764_vm15, 1, %v22894_v38  ;;  %vm4676_vm3 = vcmask 130048   ;;  %v4739_v42 = vld [vmem:[%s22788_s28 + $0xc0] sm:$0xff]  ;;  %vm4773_vm15 = vcmp.gt.f32.partialorder %v4741_v40, 0.5 }
 0x206   : > { %15016 = vmatmul.mubr.msk.f32.gmra.mrb[20].mxu0 %vm584_vm13, %v3427_v18  ;;  %v4725_v18 = vld [vmem:[%s22788_s28 + $0x50] sm:$0xff] }
 0x207   : > { %15018 = vmatprep.mubr.msk.f32.mxu0 %vm584_vm13, %v3428_v27  ;;  %vm4757_vm6 = vcmp.gt.f32.partialorder %v4725_v18, 0.5  ;;  %v4734_v18 = vld [vmem:[%s22788_s28 + $0x98] sm:$0xff] }
 0x208   : > { %v18808_v27 = vsel %vm4757_vm6, 1, %v22894_v38  ;;  %4883 = vperm.xlu1 %17197, %v18812_v34   ;;  %vm4766_vm0 = vcmp.gt.f32.partialorder %v4734_v18, 0.5 }
 0x209   : > { %4874 = vperm.xlu0 %17198, %v18808_v27   ;;  %v18885_v56 = vsel %vm4766_vm0, 1, %v22894_v38 }
 0x20a   : > { %15019 = vmatmul.mubr.msk.f32.gmra.mrb[22].mxu0 %vm584_vm13, %v3429_v43  ;;  %v4730_v43 = vld [vmem:[%s22788_s28 + $0x78] sm:$0xff] }
 0x20b   : > { %15021 = vmatprep.mubr.msk.f32.mxu0 %vm584_vm13, %v3430_v35  ;;  %vm4762_vm11 = vcmp.gt.f32.partialorder %v4730_v43, 0.5  ;;  %v18899_v43 = vsel %vm4765_vm4, 1, %v22894_v38 }
 0x20c   : > { %v18830_v35 = vsel %vm4762_vm11, 1, %v22894_v38  ;;  %vm4771_vm11 = vcmp.gt.f32.partialorder %v4739_v42, 0.5  ;;  %v4196_v42 = vld [vmem:[#allocation2 + $0x89] sm:$0xff] }
 0x20d   : > { %4880 = vperm.xlu0 %17198, %v18826_v29   ;;  %4889 = vperm.xlu1 %17197, %v18830_v35  }
 0x20e   : > { %15022 = vmatmul.mubr.msk.f32.gmra.mrb[24].mxu0 %vm584_vm13, %v3431_v14  ;;  %v18845_v14 = vsel %vm4761_vm12, 1, %v22894_v38 }
 0x20f   : > { %15024 = vmatprep.mubr.msk.f32.mxu0 %vm584_vm13, %v3432_v12  ;;  %v4731_v12 = vld [vmem:[%s22788_s28 + $0x80] sm:$0xff] }
 0x210   : > { %vm4763_vm7 = vcmp.gt.f32.partialorder %v4731_v12, 0.5  ;;  %v4743_v12 = vld [vmem:[%s22788_s28 + $0xe0] sm:$0xff] }
 0x211   : > { %4886 = vperm.xlu0 %17198, %v18845_v14   ;;  %4895 = vperm.xlu1 %17197, %v18851_v0   ;;  %vm4775_vm0 = vcmp.gt.f32.partialorder %v4743_v12, 0.5 }
 0x212   : > { %15025 = vmatmul.mubr.msk.f32.gmra.mrb[26].mxu0 %vm584_vm13, %v22921_v59  ;;  %v22644_v59 = vmov 0.0  }
 0x213   : > { %15027 = vmatprep.mubr.msk.f32.mxu0 %vm584_vm13, %v22922_v13  ;;  %4678 = vst.msk [vmem:[#allocation3 + $0x8] sm:$0xff] %vm4676_vm3, %v22644_v59  ;;  %4679 = vst.msk [vmem:[#allocation3 + $0x10] sm:$0xff] %vm4676_vm3, %v22644_v59  ;;  %v4735_v13 = vld [vmem:[%s22788_s28 + $0xa0] sm:$0xff] }
 0x214   : > { %4677 = vst.msk [vmem:[#allocation3] sm:$0xff] %vm4676_vm3, %v22644_v59  ;;  %4712 = vst.msk [vmem:[#allocation3 + $0x118] sm:$0xff] %vm4676_vm3, %v22644_v59  ;;  %vm4767_vm6 = vcmp.gt.f32.partialorder %v4735_v13, 0.5  ;;  %v4193_v13 = vld [vmem:[#allocation2 + $0x71] sm:$0xff] }
 0x215   : > { %4713 = vst.msk [vmem:[#allocation3 + $0x120] sm:$0xff] %vm4676_vm3, %v22644_v59  ;;  %4714 = vst.msk [vmem:[#allocation3 + $0x128] sm:$0xff] %vm4676_vm3, %v22644_v59  ;;  %4901 = vperm.xlu1 %17197, %v18885_v56  }
 0x216   : > { %15028 = vmatmul.mubr.msk.f32.gmra.mrb[28].mxu0 %vm584_vm13, %v22923_v16  ;;  %v18906_v16 = vsel %vm4768_vm5, 1, %v22894_v38  ;;  %vm4777_vm5 = vcmp.gt.f32.partialorder %v4745_v55, 0.5  ;;  %v4199_v55 = vld [vmem:[#allocation2 + $0xa1] sm:$0xff] }
 0x217   : > { %15030 = vmatprep.mubr.msk.f32.mxu0 %vm584_vm13, %v3436_v21  ;;  %v4740_v21 = vld [vmem:[%s22788_s28 + $0xc8] sm:$0xff] }
 0x218   : > { %vm4772_vm9 = vcmp.gt.f32.partialorder %v4740_v21, 0.5 }
 0x219   : > { %4907 = vperm.xlu1 %17197, %v18906_v16   ;;  %v18942_v49 = vsel %vm4772_vm9, 1, %v22894_v38 }
 0x21a   : > { %15031 = vmatmul.mubr.msk.f32.gmra.mrb[30].mxu0 %vm584_vm13, %v3437_v7  ;;  %v5005_v17 = vld [vmem:[#allocation3 + $0x8] sm:$0xff]  ;;  %v5006_v22 = vld [vmem:[#allocation3 + $0x10] sm:$0xff] }
 0x21b   : > { %15035 = vmatprep.mubr.msk.f32.mxu0 %vm584_vm13, %v18449_v47  ;;  %v18882_v47 = vsel %vm4763_vm7, 1, %v22894_v38 }
 0x21c   : > { %4892 = vperm.xlu0 %17198, %v18882_v47  }
 0x21e   : > { %15036 = vmatmul.mubr.msk.f32.vlgmr.msra.gmra.mrb[0].mxu0 %vm584_vm13, %v18459_v57  ;;  %v4737_v57 = vld [vmem:[%s22788_s28 + $0xb0] sm:$0xff] }
 0x21f   : > { %15038 = vmatprep.mubr.msk.f32.mxu0 %vm584_vm13, %v18462_v58  ;;  %15084 = vmatpush3.msk.msra.mxu0 %vm1041_vm10, %v18642_v61  ;;  %v18919_v58 = vsel %vm4767_vm6, 1, %v22894_v38  ;;  %v18924_v61 = vsel %vm4770_vm8, 1, %v22894_v38  ;;  %vm4769_vm10 = vcmp.gt.f32.partialorder %v4737_v57, 0.5  ;;  %v22944_v57 = vld [vmem:[#allocation47_spill] sm:$0xff] }
 0x220   : > { %4898 = vperm.xlu0 %17198, %v18899_v43   ;;  %4913 = vperm.xlu1 %17197, %v18924_v61  }
 0x222   : > { %15039 = vmatmul.mubr.msk.f32.gmra.mrb[2].mxu0 %vm584_vm13, %v18470_v1  ;;  %v4742_v1 = vld [vmem:[%s22788_s28 + $0xd8] sm:$0xff] }
 0x223   : > { %15041 = vmatprep.mubr.msk.f32.mxu0 %vm584_vm13, %v18472_v2  ;;  %v18937_v2 = vsel %vm4769_vm10, 1, %v22894_v38  ;;  %vm4774_vm12 = vcmp.gt.f32.partialorder %v4742_v1, 0.5 }
 0x224   : > { %4904 = vperm.xlu0 %17198, %v18919_v58   ;;  %4919 = vperm.xlu1 %17197, %v18942_v49   ;;  %v18960_v7 = vsel %vm4774_vm12, 1, %v22894_v38 }
 0x226   : > { %15042 = vmatmul.mubr.msk.f32.gmra.mrb[4].mxu0 %vm584_vm13, %v18478_v24  ;;  %v4744_v24 = vld [vmem:[%s22788_s28 + $0xe8] sm:$0xff] }
 0x227   : > { %15044 = vmatprep.mubr.msk.f32.mxu0 %vm584_vm13, %v18480_v25  ;;  %v18955_v25 = vsel %vm4771_vm11, 1, %v22894_v38  ;;  %vm4776_vm7 = vcmp.gt.f32.partialorder %v4744_v24, 0.5  ;;  %v4197_v24 = vld [vmem:[#allocation2 + $0x91] sm:$0xff] }
 0x228   : > { %4910 = vperm.xlu0 %17198, %v18937_v2   ;;  %4925 = vperm.xlu1 %17197, %v18960_v7   ;;  %v18978_v18 = vsel %vm4776_vm7, 1, %v22894_v38 }
 0x22a   : > { %15045 = vmatmul.mubr.msk.f32.gmra.mrb[6].mxu0 %vm584_vm13, %v18486_v6  ;;  %v4746_v6 = vld [vmem:[%s22788_s28 + $0xf8] sm:$0xff] }
 0x22b   : > { %15047 = vmatprep.mubr.msk.f32.mxu0 %vm584_vm13, %v18488_v10  ;;  %v18973_v10 = vsel %vm4773_vm15, 1, %v22894_v38  ;;  %vm4778_vm4 = vcmp.gt.f32.partialorder %v4746_v6, 0.5  ;;  %v22952_v6 = vld [vmem:[#allocation51_spill] sm:$0xff] }
 0x22c   : > { %4916 = vperm.xlu0 %17198, %v18955_v25   ;;  %4931 = vperm.xlu1 %17197, %v18978_v18  }
 0x22e   : > { %15048 = vmatmul.mubr.msk.f32.gmra.mrb[8].mxu0 %vm584_vm13, %v18494_v28  ;;  %v18988_v28 = vsel %vm4775_vm0, 1, %v22894_v38 }
 0x22f   : > { %15050 = vmatprep.mubr.msk.f32.mxu0 %vm584_vm13, %v18496_v36  ;;  %v18993_v36 = vsel %vm4778_vm4, 1, %v22894_v38  ;;  %vm22945_vm4 = vcmp.eq.s32.totalorder %v22944_v57, 1 }
 0x230   : > { %4922 = vperm.xlu0 %17198, %v18973_v10   ;;  %4937 = vperm.xlu1 %17197, %v18993_v36   ;;  %v4226_v21 = vsel %vm22945_vm4, %v4194_v4, 0.5  ;;  %v4214_v4 = vld [vmem:[#allocation2 + $0x119] sm:$0xff] }
 0x231   : > { %v4246_v57 = vsel %vm1752_vm14, %v4214_v4, 0.5 }
 0x232   : > { %15051 = vmatmul.mubr.msk.f32.gmra.mrb[10].mxu0 %vm584_vm13, %v18502_v41  ;;  %v19000_v41 = vsel %vm4777_vm5, 1, %v22894_v38 }
 0x233   : > { %15053 = vmatprep.mubr.msk.f32.mxu0 %vm584_vm13, %v18504_v45  ;;  %v22924_v45 = vmov 1  }
 0x234   : > { %4928 = vperm.xlu0 %17198, %v18988_v28   ;;  %17200 = vset.pattern.permute.xlu1 %v22924_v45 }
 0x235   : > { %5717 = vperm.xlu1 %17200, %v18728_v33   ;;  %v4188_v33 = vld [vmem:[#allocation2 + $0x49] sm:$0xff] }
 0x236   : > { %15054 = vmatmul.mubr.msk.f32.gmra.mrb[12].mxu0 %vm584_vm13, %v18510_v50  ;;  %v3818_v50 = vld [vmem:[#allocation2 + $0xe0] sm:$0xff] }
 0x237   : > { %15056 = vmatprep.mubr.msk.f32.mxu0 %vm584_vm13, %v18512_v60  ;;  %v3819_v60 = vld [vmem:[#allocation2 + $0xe8] sm:$0xff] }
 0x238   : > { %4934 = vperm.xlu0 %17198, %v19000_v41  }
 0x239   : > { %5720 = vperm.xlu1 %17200, %v18701_v51  }
 0x23a   : > { %15057 = vmatmul.mubr.msk.f32.gmra.mrb[14].mxu0 %vm584_vm13, %v18518_v63  ;;  %v3820_v63 = vld [vmem:[#allocation2 + $0xf0] sm:$0xff] }
 0x23b   : > { %15059 = vmatprep.mubr.msk.f32.mxu0 %vm584_vm13, %v18520_v30  ;;  %v3821_v30 = vld [vmem:[#allocation2 + $0xf8] sm:$0xff] }
 0x23c   : > { %17199 = vset.pattern.permute.xlu0 %v22924_v45 }
 0x23d   : > { %5714 = vperm.xlu0 %17199, %v18688_v11   ;;  %5726 = vperm.xlu1 %17200, %v18748_v15   ;;  %v22928_v11 = vld [vmem:[#allocation39_spill] sm:$0xff] }
 0x23e   : > { %15060 = vmatmul.mubr.msk.f32.gmra.mrb[16].mxu0 %vm584_vm13, %v18526_v37  ;;  %v3822_v37 = vld [vmem:[#allocation2 + $0x100] sm:$0xff]  ;;  %vm22929_vm8 = vcmp.eq.s32.totalorder %v22928_v11, 1  ;;  %v4205_v11 = vld [vmem:[#allocation2 + $0xd1] sm:$0xff] }
 0x23f   : > { %15062 = vmatprep.mubr.msk.f32.mxu0 %vm584_vm13, %v18528_v9  ;;  %v3825_v9 = vld [vmem:[#allocation2 + $0x118] sm:$0xff] }
 0x241   : > { %5723 = vperm.xlu0 %17199, %v18714_v32   ;;  %5732 = vperm.xlu1 %17200, %v18768_v20   ;;  %v4187_v32 = vld [vmem:[#allocation2 + $0x41] sm:$0xff] }
 0x242   : > { %15063 = vmatmul.mubr.msk.f32.gmra.mrb[18].mxu0 %vm584_vm13, %v18534_v52  ;;  %v3826_v52 = vld [vmem:[#allocation2 + $0x120] sm:$0xff] }
 0x243   : > { %15065 = vmatprep.mubr.msk.f32.mxu0 %vm584_vm13, %v18536_v39  ;;  %v4184_v39 = vld [vmem:[#allocation2 + $0x29] sm:$0xff] }
 0x245   : > { %5729 = vperm.xlu0 %17199, %v18734_v48   ;;  %5738 = vperm.xlu1 %17200, %v18788_v5   ;;  %v22930_v48 = vld [vmem:[#allocation40_spill] sm:$0xff]  ;;  %v4190_v5 = vld [vmem:[#allocation2 + $0x59] sm:$0xff] }
 0x246   : > { %15066 = vmatmul.mubr.msk.f32.gmra.mrb[20].mxu0 %vm584_vm13, %v18542_v19  ;;  %v22925_v19 = vld [vmem:[#allocation37_spill] sm:$0xff]  ;;  %vm22931_vm10 = vcmp.eq.s32.totalorder %v22930_v48, 1  ;;  %v22968_v48 = vld [vmem:[#allocation67_spill] sm:$0xff] }
 0x247   : > { %15068 = vmatprep.mubr.msk.f32.mxu0 %vm584_vm13, %v18544_v26  ;;  %vm22926_vm6 = vcmp.eq.s32.totalorder %v22925_v19, 1  ;;  %v4219_v15 = vsel %vm22931_vm10, %v4187_v32, 0.5  ;;  %vm22953_vm10 = vcmp.eq.s32.totalorder %v22952_v6, 1  ;;  %v4204_v19 = vld [vmem:[#allocation2 + $0xc9] sm:$0xff] }
 0x248   : > { %v4216_v26 = vsel %vm22926_vm6, %v4184_v39, 0.5  ;;  %v4203_v39 = vld [vmem:[#allocation2 + $0xc1] sm:$0xff] }
 0x249   : > { %5735 = vperm.xlu0 %17199, %v18754_v62   ;;  %5744 = vperm.xlu1 %17200, %v18808_v27   ;;  %v22932_v62 = vld [vmem:[#allocation41_spill] sm:$0xff]  ;;  %v22966_v32 = vld [vmem:[#allocation64_spill] sm:$0xff] }
 0x24a   : > { %15069 = vmatmul.mubr.msk.f32.gmra.mrb[22].mxu0 %vm584_vm13, %v3818_v50  ;;  %vm22933_vm9 = vcmp.eq.s32.totalorder %v22932_v62, 1  ;;  %v4200_v50 = vld [vmem:[#allocation2 + $0xa9] sm:$0xff]  ;;  %vm22967_vm4 = vcmp.eq.s32.totalorder %v22966_v32, 1  ;;  %v4207_v62 = vld [vmem:[#allocation2 + $0xe1] sm:$0xff] }
 0x24b   : > { %15071 = vmatprep.mubr.msk.f32.mxu0 %vm584_vm13, %v3819_v60  ;;  %v4220_v20 = vsel %vm22933_vm9, %v4188_v33, 0.5  ;;  %v4237_v33 = vsel %vm22967_vm4, %v4205_v11, 0.5 }
 0x24d   : > { %5741 = vperm.xlu0 %17199, %v18774_v8   ;;  %5750 = vperm.xlu1 %17200, %v18826_v29   ;;  %v4189_v8 = vld [vmem:[#allocation2 + $0x51] sm:$0xff] }
 0x24e   : > { %15072 = vmatmul.mubr.msk.f32.gmra.mrb[24].mxu0 %vm584_vm13, %v3820_v63 }
 0x24f   : > { %15074 = vmatprep.mubr.msk.f32.mxu0 %vm584_vm13, %v3821_v30  ;;  %v4201_v30 = vld [vmem:[#allocation2 + $0xb1] sm:$0xff] }
 0x251   : > { %5747 = vperm.xlu0 %17199, %v18794_v31   ;;  %5756 = vperm.xlu1 %17200, %v18845_v14   ;;  %v22934_v31 = vld [vmem:[#allocation42_spill] sm:$0xff]  ;;  %v4192_v14 = vld [vmem:[#allocation2 + $0x69] sm:$0xff] }
 0x252   : > { %15075 = vmatmul.mubr.msk.f32.gmra.mrb[26].mxu0 %vm584_vm13, %v3822_v37  ;;  %vm22935_vm11 = vcmp.eq.s32.totalorder %v22934_v31, 1  ;;  %v4202_v37 = vld [vmem:[#allocation2 + $0xb9] sm:$0xff] }
 0x253   : > { %15077 = vmatprep.mubr.msk.f32.mxu0 %vm584_vm13, %v18554_v46  ;;  %v4186_v46 = vld [vmem:[#allocation2 + $0x39] sm:$0xff]  ;;  %v4221_v27 = vsel %vm22935_vm11, %v4189_v8, 0.5  ;;  %v22970_v8 = vld [vmem:[#allocation68_spill] sm:$0xff] }
 0x254   : > { %v4218_v51 = vsel %vm22929_vm8, %v4186_v46, 0.5  ;;  %v22964_v46 = vld [vmem:[#allocation63_spill] sm:$0xff] }
 0x255   : > { %5753 = vperm.xlu0 %17199, %v18812_v34   ;;  %5762 = vperm.xlu1 %17200, %v18882_v47   ;;  %v22936_v34 = vld [vmem:[#allocation43_spill] sm:$0xff]  ;;  %v22940_v47 = vld [vmem:[#allocation45_spill] sm:$0xff] }
 0x256   : > { %15078 = vmatmul.mubr.msk.f32.gmra.mrb[28].mxu0 %vm584_vm13, %v18559_v53  ;;  %v22927_v53 = vld [vmem:[#allocation38_spill] sm:$0xff]  ;;  %vm22937_vm12 = vcmp.eq.s32.totalorder %v22936_v34, 1  ;;  %vm22941_vm7 = vcmp.eq.s32.totalorder %v22940_v47, 1  ;;  %v22972_v31 = vld [vmem:[#allocation71_spill] sm:$0xff] }
 0x257   : > { %15080 = vmatprep.mubr.msk.f32.mxu0 %vm584_vm13, %v3825_v9  ;;  %v4222_v29 = vsel %vm22937_vm12, %v4190_v5, 0.5  ;;  %v4209_v34 = vld [vmem:[#allocation2 + $0xf1] sm:$0xff]  ;;  %v4211_v47 = vld [vmem:[#allocation2 + $0x101] sm:$0xff] }
 0x259   : > { %5759 = vperm.xlu0 %17199, %v18830_v35   ;;  %5768 = vperm.xlu1 %17200, %v18899_v43   ;;  %v4191_v35 = vld [vmem:[#allocation2 + $0x61] sm:$0xff]  ;;  %v22942_v43 = vld [vmem:[#allocation46_spill] sm:$0xff] }
 0x25a   : > { %15081 = vmatmul.mubr.msk.f32.gmra.mrb[30].mxu0 %vm584_vm13, %v3826_v52  ;;  %vm22943_vm0 = vcmp.eq.s32.totalorder %v22942_v43, 1 }
 0x25b   : > { %15085 = vmatprep.mubr.msk.f32.mxu0 %vm584_vm13, %v4216_v26 }
 0x25d   : > { %5765 = vperm.xlu0 %17199, %v18851_v0   ;;  %5774 = vperm.xlu1 %17200, %v18919_v58   ;;  %v22938_v0 = vld [vmem:[#allocation44_spill] sm:$0xff] }
 0x25e   : > { %15086 = vmatmul.mubr.msk.f32.vlgmr.msra.gmra.mrb[0].mxu0 %vm584_vm13, %v22927_v53  ;;  %vm22939_vm15 = vcmp.eq.s32.totalorder %v22938_v0, 1  ;;  %v4195_v58 = vld [vmem:[#allocation2 + $0x81] sm:$0xff] }
 0x25f   : > { %15088 = vmatprep.mubr.msk.f32.mxu0 %vm584_vm13, %v4218_v51  ;;  %v4223_v54 = vsel %vm22939_vm15, %v4191_v35, 0.5  ;;  %v4206_v51 = vld [vmem:[#allocation2 + $0xd9] sm:$0xff]  ;;  %v22974_v35 = vld [vmem:[#allocation72_spill] sm:$0xff] }
 0x260   : > { %v22976_v0 = vld [vmem:[#allocation75_spill] sm:$0xff] }
 0x261   : > { %5771 = vperm.xlu0 %17199, %v18885_v56   ;;  %5780 = vperm.xlu1 %17200, %v18937_v2   ;;  %v4224_v56 = vsel %vm22941_vm7, %v4192_v14, 0.5  ;;  %v22948_v2 = vld [vmem:[#allocation49_spill] sm:$0xff] }
 0x262   : > { %15089 = vmatmul.mubr.msk.f32.gmra.mrb[2].mxu0 %vm584_vm13, %v4219_v15  ;;  %vm22949_vm6 = vcmp.eq.s32.totalorder %v22948_v2, 1 }
 0x263   : > { %15091 = vmatprep.mubr.msk.f32.mxu0 %vm584_vm13, %v4220_v20  ;;  %v4228_v40 = vsel %vm22949_vm6, %v4196_v42, 0.5  ;;  %v4208_v20 = vld [vmem:[#allocation2 + $0xe9] sm:$0xff]  ;;  %vm22971_vm6 = vcmp.eq.s32.totalorder %v22970_v8, 1 }
 0x264   : > { %v4239_v5 = vsel %vm22971_vm6, %v4207_v62, 0.5 }
 0x265   : > { %5777 = vperm.xlu0 %17199, %v18906_v16   ;;  %5786 = vperm.xlu1 %17200, %v18955_v25   ;;  %v4225_v16 = vsel %vm22943_vm0, %v4193_v13, 0.5  ;;  %v4198_v25 = vld [vmem:[#allocation2 + $0x99] sm:$0xff]  ;;  %vm22965_vm0 = vcmp.eq.s32.totalorder %v22964_v46, 1  ;;  %v4213_v13 = vld [vmem:[#allocation2 + $0x111] sm:$0xff] }
 0x266   : > { %15092 = vmatmul.mubr.msk.f32.gmra.mrb[4].mxu0 %vm584_vm13, %v4221_v27  ;;  %v4236_v53 = vsel %vm22965_vm0, %v4204_v19, 0.5  ;;  %v4245_v43 = vsel %vm1751_vm1, %v4213_v13, 0.5 }
 0x267   : > { %15094 = vmatprep.mubr.msk.f32.mxu0 %vm584_vm13, %v4222_v29  ;;  %v4210_v29 = vld [vmem:[#allocation2 + $0xf9] sm:$0xff] }
 0x269   : > { %5783 = vperm.xlu0 %17199, %v18924_v61   ;;  %5792 = vperm.xlu1 %17200, %v18973_v10   ;;  %v22946_v61 = vld [vmem:[#allocation48_spill] sm:$0xff]  ;;  %v4230_v10 = vsel %vm22953_vm10, %v4198_v25, 0.5  ;;  %vm22975_vm10 = vcmp.eq.s32.totalorder %v22974_v35, 1 }
 0x26a   : > { %15095 = vmatmul.mubr.msk.f32.gmra.mrb[6].mxu0 %vm584_vm13, %v4223_v54  ;;  %vm22947_vm5 = vcmp.eq.s32.totalorder %v22946_v61, 1  ;;  %v4241_v14 = vsel %vm22975_vm10, %v4209_v34, 0.5 }
 0x26b   : > { %15097 = vmatprep.mubr.msk.f32.mxu0 %vm584_vm13, %v4224_v56  ;;  %v4227_v1 = vsel %vm22947_vm5, %v4195_v58, 0.5  ;;  %vm22969_vm5 = vcmp.eq.s32.totalorder %v22968_v48, 1 }
 0x26c   : > { %v4238_v15 = vsel %vm22969_vm5, %v4206_v51, 0.5 }
 0x26d   : > { %5789 = vperm.xlu0 %17199, %v18942_v49   ;;  %5798 = vperm.xlu1 %17200, %v18988_v28   ;;  %v22950_v49 = vld [vmem:[#allocation50_spill] sm:$0xff]  ;;  %v22956_v28 = vld [vmem:[#allocation55_spill] sm:$0xff] }
 0x26e   : > { %15098 = vmatmul.mubr.msk.f32.gmra.mrb[8].mxu0 %vm584_vm13, %v4225_v16  ;;  %vm22951_vm8 = vcmp.eq.s32.totalorder %v22950_v49, 1  ;;  %vm22957_vm11 = vcmp.eq.s32.totalorder %v22956_v28, 1  ;;  %v4215_v16 = vld [vmem:[#allocation2 + $0x121] sm:$0xff] }
 0x26f   : > { %15100 = vmatprep.mubr.msk.f32.mxu0 %vm584_vm13, %v4226_v21  ;;  %v4229_v12 = vsel %vm22951_vm8, %v4197_v24, 0.5  ;;  %v4232_v63 = vsel %vm22957_vm11, %v4200_v50, 0.5  ;;  %vm22973_vm8 = vcmp.eq.s32.totalorder %v22972_v31, 1  ;;  %vm22978_vm11 = vcmp.eq.s32.totalorder %v18323_v44, 1  ;;  %v19168_v21 = vpop.permute.xlu1 %4844 }
 0x270   : > { %v4240_v27 = vsel %vm22973_vm8, %v4208_v20, 0.5  ;;  %v4243_v56 = vsel %vm22978_vm11, %v4211_v47, 0.5  ;;  %v4247_v44 = vsel %vm1753_vm2, %v4215_v16, 0.5  ;;  %22979 = vst [vmem:[#allocation53_spill] sm:$0xff] %v19168_v21 }
 0x271   : > { %5795 = vperm.xlu0 %17199, %v18960_v7   ;;  %5804 = vperm.xlu1 %17200, %v19000_v41   ;;  %v22954_v7 = vld [vmem:[#allocation52_spill] sm:$0xff]  ;;  %v22960_v41 = vld [vmem:[#allocation59_spill] sm:$0xff] }
 0x272   : > { %15101 = vmatmul.mubr.msk.f32.gmra.mrb[10].mxu0 %vm584_vm13, %v4227_v1  ;;  %vm22955_vm9 = vcmp.eq.s32.totalorder %v22954_v7, 1  ;;  %vm22961_vm15 = vcmp.eq.s32.totalorder %v22960_v41, 1  ;;  %v19176_v1 = vpop.permute.xlu0 %4847 }
 0x273   : > { %15103 = vmatprep.mubr.msk.f32.mxu0 %vm584_vm13, %v4228_v40  ;;  %v4231_v60 = vsel %vm22955_vm9, %v4199_v55, 0.5  ;;  %v4234_v52 = vsel %vm22961_vm15, %v4202_v37, 0.5  ;;  %vm22977_vm9 = vcmp.eq.s32.totalorder %v22976_v0, 1  ;;  %v19171_v42 = vpop.permute.xlu1 %4850  ;;  %22980 = vst [vmem:[#allocation54_spill] sm:$0xff] %v19176_v1  ;;  %v5003_v37 = vld [vmem:[%s22533_s9] sm:$0xff] }
 0x274   : > { %v4242_v54 = vsel %vm22977_vm9, %v4210_v29, 0.5  ;;  %vm22715_vm1 = vcmp.eq.s32.totalorder %v19171_v42, 1 }
 0x275   : > { %5801 = vperm.xlu0 %17199, %v18978_v18   ;;  %17201 = vset.pattern.permute.xlu1 %v22894_v38  ;;  %v22958_v18 = vld [vmem:[#allocation56_spill] sm:$0xff] }
 0x276   : > { %15104 = vmatmul.mubr.msk.f32.gmra.mrb[12].mxu0 %vm584_vm13, %v4229_v12  ;;  %vm22959_vm12 = vcmp.eq.s32.totalorder %v22958_v18, 1  ;;  %v19180_v40 = vpop.permute.xlu0 %4856  ;;  %v5004_v18 = vld [vmem:[%s22533_s9 + $0x8] sm:$0xff] }
 0x277   : > { %15106 = vmatprep.mubr.msk.f32.mxu0 %vm584_vm13, %v4230_v10  ;;  %v4233_v9 = vsel %vm22959_vm12, %v4201_v30, 0.5  ;;  %v19174_v61 = vpop.permute.xlu1 %4853  ;;  %v19216_v41 = vpack.c.bf16 %v5004_v18, %v5003_v37  ;;  %vm22703_vm0 = vcmp.eq.s32.totalorder %v19180_v40, 1 }
 0x278   : > { %vm22704_vm2 = vcmp.eq.s32.totalorder %v19174_v61, 1 }
 0x279   : > { %5807 = vperm.xlu0 %17199, %v18993_v36   ;;  %v22962_v36 = vld [vmem:[#allocation60_spill] sm:$0xff] }
 0x27a   : > { %15107 = vmatmul.mubr.msk.f32.gmra.mrb[14].mxu0 %vm584_vm13, %v4231_v60  ;;  %vm22963_vm7 = vcmp.eq.s32.totalorder %v22962_v36, 1 }
 0x27b   : > { %15109 = vmatprep.mubr.msk.f32.mxu0 %vm584_vm13, %v4232_v63  ;;  %v4235_v26 = vsel %vm22963_vm7, %v4203_v39, 0.5  ;;  %v19178_v2 = vpop.permute.xlu1 %4859 }
 0x27c   : > { %vm22692_vm7 = vcmp.eq.s32.totalorder %v19178_v2, 1 }
 0x27d   : > { %17202 = vset.pattern.permute.xlu0 %v22894_v38 }
 0x27e   : > { %15110 = vmatmul.mubr.msk.f32.gmra.mrb[16].mxu0 %vm584_vm13, %v4233_v9  ;;  %v19184_v25 = vpop.permute.xlu0 %4862 }
 0x27f   : > { %15112 = vmatprep.mubr.msk.f32.mxu0 %vm584_vm13, %v4234_v52  ;;  %v19182_v24 = vpop.permute.xlu1 %4865  ;;  %vm22691_vm8 = vcmp.eq.s32.totalorder %v19184_v25, 1 }
 0x280   : > { %vm22674_vm4 = vcmp.eq.s32.totalorder %v19182_v24, 1 }
 0x282   : > { %15113 = vmatmul.mubr.msk.f32.gmra.mrb[18].mxu0 %vm584_vm13, %v4235_v26 }
 0x283   : > { %15115 = vmatprep.mubr.msk.f32.mxu0 %vm584_vm13, %v4236_v53  ;;  %v19186_v49 = vpop.permute.xlu1 %4871  ;;  %v19188_v12 = vpop.permute.xlu0 %4868 }
 0x284   : > { %22981 = vst [vmem:[#allocation57_spill] sm:$0xff] %v19186_v49  ;;  %vm22682_vm10 = vcmp.eq.s32.totalorder %v19186_v49, 1  ;;  %vm22683_vm9 = vcmp.eq.s32.totalorder %v19188_v12, 1 }
 0x286   : > { %15116 = vmatmul.mubr.msk.f32.gmra.mrb[20].mxu0 %vm584_vm13, %v4237_v33 }
 0x287   : > { %15118 = vmatprep.mubr.msk.f32.mxu0 %vm584_vm13, %v4238_v15  ;;  %v19190_v6 = vpop.permute.xlu1 %4877 }
 0x288   : > { %v19192_v10 = vpop.permute.xlu0 %4874 }
 0x28a   : > { %15119 = vmatmul.mubr.msk.f32.gmra.mrb[22].mxu0 %vm584_vm13, %v4239_v5 }
 0x28b   : > { %15121 = vmatprep.mubr.msk.f32.mxu0 %vm584_vm13, %v4240_v27  ;;  %v19194_v55 = vpop.permute.xlu1 %4883  ;;  %v19258_v27 = vld [vmem:[%s22532_s8] ss:$0 sm:$0xff] }
 0x28c   : > { %v19196_v50 = vpop.permute.xlu0 %4880 }
 0x28e   : > { %15122 = vmatmul.mubr.msk.f32.gmra.mrb[24].mxu0 %vm584_vm13, %v4241_v14 }
 0x28f   : > { %15124 = vmatprep.mubr.msk.f32.mxu0 %vm584_vm13, %v4242_v54  ;;  %v19198_v7 = vpop.permute.xlu1 %4889 }
 0x290   : > { %v19200_v60 = vpop.permute.xlu0 %4886 }
 0x292   : > { %15125 = vmatmul.mubr.msk.f32.gmra.mrb[26].mxu0 %vm584_vm13, %v4243_v56 }
 0x293   : > { %15127 = vmatprep.mubr.msk.f32.mxu0 %vm584_vm13, %v18357_v3  ;;  %v5037_v3 = vld [vmem:[%s22533_s9 + $0x10] sm:$0xff]  ;;  %v19202_v28 = vpop.permute.xlu1 %4895 }
 0x294   : > { %v16151_v58 = vpack.c.bf16 %v5038_v23, %v5037_v3 }
 0x296   : > { %15128 = vmatmul.mubr.msk.f32.gmra.mrb[28].mxu0 %vm584_vm13, %v4245_v43  ;;  %16152 = vmatprep.subr.bf16.mxu0 %v16151_v58 }
 0x297   : > { %15130 = vmatprep.mubr.msk.f32.mxu0 %vm584_vm13, %v4246_v57  ;;  %16523 = vmatprep.subr.bf16.mxu1 %v16151_v58  ;;  %v19206_v30 = vpop.permute.xlu1 %4901 }
 0x298   : > { %16154 = vmatpush3.bf16.msra.mxu0 %v16151_v58  ;;  %16524 = vmatpush3.bf16.msra.mxu1 %v16151_v58 }
 0x299   : > { %16156 = vmatprep.subr.bf16.mxu1 %v19216_v41 }
 0x29a   : > { %15131 = vmatmul.mubr.msk.f32.gmra.mrb[30].mxu0 %vm584_vm13, %v4247_v44 }
 0x29b   : > { %15137 = vmatprep.mubr.msk.f32.mxu0 %vm4676_vm3, %v5005_v17  ;;  %v19204_v63 = vpop.permute.xlu0 %4892  ;;  %v19218_v52 = vpop.permute.xlu1 %4907 }
 0x29e   : > { %15138 = vmatmul.mubr.msk.f32.vlgmr.msra.gmra.mrb[32].mxu0 %vm4676_vm3, %v5006_v22 }
 0x29f   : > { %v19214_v9 = vpop.permute.xlu0 %4898  ;;  %v19223_v19 = vpop.permute.xlu1 %4913 }
 0x2a3   : > { %v19221_v39 = vpop.permute.xlu0 %4904  ;;  %v19227_v26 = vpop.permute.xlu1 %4919 }
 0x2a7   : > { %v19225_v36 = vpop.permute.xlu0 %4910  ;;  %v19231_v53 = vpop.permute.xlu1 %4925 }
 0x2ab   : > { %v19229_v46 = vpop.permute.xlu0 %4916  ;;  %v19235_v51 = vpop.permute.xlu1 %4931 }
 0x2af   : > { %v19233_v11 = vpop.permute.xlu0 %4922  ;;  %v19239_v33 = vpop.permute.xlu1 %4937 }
 0x2b0   : > { %22982 = vst [vmem:[#allocation58_spill] sm:$0xff] %v19239_v33 }
 0x2b3   : > { %v19237_v32 = vpop.permute.xlu0 %4928 }
 0x2b4   : > { %v19243_v15 = vpop.permute.xlu1 %5717 }
 0x2b5   : > { %22984 = vst [vmem:[#allocation62_spill] sm:$0xff] %v19243_v15  ;;  %vm22673_vm13 = vcmp.eq.s32.totalorder %v19243_v15, 1 }
 0x2b7   : > { %v19241_v48 = vpop.permute.xlu0 %4934 }
 0x2b8   : > { %22983 = vst [vmem:[#allocation61_spill] sm:$0xff] %v19241_v48  ;;  %v19247_v20 = vpop.permute.xlu1 %5720 }
 0x2b9   : > { %22986 = vst [vmem:[#allocation66_spill] sm:$0xff] %v19247_v20  ;;  %vm22665_vm14 = vcmp.eq.s32.totalorder %v19247_v20, 1 }
 0x2bc   : > { %v19245_v62 = vpop.permute.xlu0 %5714  ;;  %v19251_v5 = vpop.permute.xlu1 %5726 }
 0x2bd   : > { %22985 = vst [vmem:[#allocation65_spill] sm:$0xff] %v19245_v62  ;;  %22988 = vst [vmem:[#allocation70_spill] sm:$0xff] %v19251_v5  ;;  %vm22659_vm15 = vcmp.eq.s32.totalorder %v19251_v5, 1 }
 0x2c0   : > { %v19249_v8 = vpop.permute.xlu0 %5723  ;;  %v19260_v34 = vpop.permute.xlu1 %5732 }
 0x2c1   : > { %22987 = vst [vmem:[#allocation69_spill] sm:$0xff] %v19249_v8  ;;  %22990 = vst [vmem:[#allocation74_spill] sm:$0xff] %v19260_v34  ;;  %vm22664_vm12 = vcmp.eq.s32.totalorder %v19249_v8, 1  ;;  %vm22661_vm6 = vcmp.eq.s32.totalorder %v19260_v34, 1 }
 0x2c4   : > { %v19253_v31 = vpop.permute.xlu0 %5729  ;;  %v19266_v4 = vpop.permute.xlu1 %5738 }
 0x2c5   : > { %22989 = vst [vmem:[#allocation73_spill] sm:$0xff] %v19253_v31  ;;  %22992 = vst [vmem:[#allocation77_spill] sm:$0xff] %v19266_v4  ;;  %vm22662_vm5 = vcmp.eq.s32.totalorder %v19253_v31, 1 }
 0x2c8   : > { %v19264_v47 = vpop.permute.xlu0 %5735  ;;  %v19278_v18 = vpop.permute.xlu1 %5744 }
 0x2c9   : > { %22991 = vst [vmem:[#allocation76_spill] sm:$0xff] %v19264_v47  ;;  %22994 = vst [vmem:[#allocation10_spill] sm:$0xff] %v19278_v18  ;;  %vm22670_vm11 = vcmp.eq.s32.totalorder %v19264_v47, 1 }
 0x2cc   : > { %v19274_v22 = vpop.permute.xlu0 %5741 }
 0x2cd   : > { %22993 = vst [vmem:[#allocation8_spill] sm:$0xff] %v19274_v22 }
 0x331   : > { %v15087_v29 = vpop.f32.mrb[0].mxu0 }
 0x332   : > { %v4613_v35 = vadd.f32 %v15087_v29, %v19258_v27  ;;  %v4414_v14 = vpop.f32.mrb[1].mxu0 }
 0x333   : > { %v4612_v0 = vadd.f32 %v19258_v27, %v4414_v14 }
 0x334   : > { %v4645_v54 = vmax.f32 %v4613_v35, 0.0 }
 0x335   : > { %v4644_v56 = vmax.f32 %v4612_v0, 0.0  ;;  %v15090_v13 = vpop.f32.mrb[2].mxu0 }
 0x336   : > { %4681 = vst.msk [vmem:[#allocation3 + $0x20] sm:$0xff] %vm4676_vm3, %v4645_v54  ;;  %v4615_v43 = vadd.f32 %v15090_v13, %v19258_v27  ;;  %v4424_v16 = vpop.f32.mrb[3].mxu0 }
 0x337   : > { %4680 = vst.msk [vmem:[#allocation3 + $0x18] sm:$0xff] %vm4676_vm3, %v4644_v56  ;;  %v4614_v57 = vadd.f32 %v19258_v27, %v4424_v16 }
 0x338   : > { %v4647_v44 = vmax.f32 %v4615_v43, 0.0 }
 0x339   : > { %v4646_v3 = vmax.f32 %v4614_v57, 0.0  ;;  %v15093_v23 = vpop.f32.mrb[4].mxu0  ;;  %v19286_v57 = vpop.permute.xlu0 %5747 }
 0x33a   : > { %4683 = vst.msk [vmem:[#allocation3 + $0x30] sm:$0xff] %vm4676_vm3, %v4647_v44  ;;  %v4617_v58 = vadd.f32 %v15093_v23, %v19258_v27  ;;  %v4434_v17 = vpop.f32.mrb[5].mxu0  ;;  %22995 = vst [vmem:[#allocation7_spill] sm:$0xff] %v19286_v57  ;;  %v19288_v23 = vpop.permute.xlu1 %5750 }
 0x33b   : > { %4682 = vst.msk [vmem:[#allocation3 + $0x28] sm:$0xff] %vm4676_vm3, %v4646_v3  ;;  %v4616_v37 = vadd.f32 %v19258_v27, %v4434_v17  ;;  %22996 = vst [vmem:[#allocation9_spill] sm:$0xff] %v19288_v23 }
 0x33c   : > { %v4649_v29 = vmax.f32 %v4617_v58, 0.0 }
 0x33d   : > { %v4648_v35 = vmax.f32 %v4616_v37, 0.0  ;;  %v15096_v14 = vpop.f32.mrb[6].mxu0  ;;  %v5008_v43 = vld [vmem:[#allocation3 + $0x20] sm:$0xff] }
 0x33e   : > { %4685 = vst.msk [vmem:[#allocation3 + $0x40] sm:$0xff] %vm4676_vm3, %v4649_v29  ;;  %v4619_v0 = vadd.f32 %v15096_v14, %v19258_v27  ;;  %v4444_v54 = vpop.f32.mrb[7].mxu0  ;;  %v5007_v56 = vld [vmem:[#allocation3 + $0x18] sm:$0xff] }
 0x33f   : > { %4684 = vst.msk [vmem:[#allocation3 + $0x38] sm:$0xff] %vm4676_vm3, %v4648_v35  ;;  %v4618_v13 = vadd.f32 %v19258_v27, %v4444_v54  ;;  %15140 = vmatprep.mubr.msk.f32.mxu0 %vm4676_vm3, %v5007_v56 }
 0x340   : > { %v4651_v16 = vmax.f32 %v4619_v0, 0.0  ;;  %15141 = vmatmul.mubr.msk.f32.gmra.mrb[34].mxu0 %vm4676_vm3, %v5008_v43 }
 0x341   : > { %v4650_v44 = vmax.f32 %v4618_v13, 0.0  ;;  %v15099_v3 = vpop.f32.mrb[8].mxu0  ;;  %v5010_v54 = vld [vmem:[#allocation3 + $0x30] sm:$0xff] }
 0x342   : > { %v19291_v58 = vld [vmem:[#allocation3 + $0x21] sm:$0xff]  ;;  %v19293_v17 = vld [vmem:[#allocation3 + $0x29] sm:$0xff]  ;;  %4687 = vst.msk [vmem:[#allocation3 + $0x50] sm:$0xff] %vm4676_vm3, %v4651_v16  ;;  %v4621_v37 = vadd.f32 %v15099_v3, %v19258_v27  ;;  %v4454_v29 = vpop.f32.mrb[9].mxu0 }
 0x343   : > { %22997 = vst [vmem:[#allocation12_spill] sm:$0xff] %v19291_v58  ;;  %22998 = vst [vmem:[#allocation11_spill] sm:$0xff] %v19293_v17  ;;  %v5009_v35 = vld [vmem:[#allocation3 + $0x28] sm:$0xff]  ;;  %v19301_v14 = vsel %vm22673_vm13, %v19291_v58, 0.0  ;;  %v19306_v0 = vsel %vm22665_vm14, %v19293_v17, 0.0  ;;  %v4620_v16 = vadd.f32 %v19258_v27, %v4454_v29  ;;  %vm22689_vm13 = vcmp.eq.s32.totalorder %v19286_v57, 1 }
 0x344   : > { %22999 = vst [vmem:[#allocation14_spill] sm:$0xff] %v19301_v14  ;;  %23000 = vst [vmem:[#allocation13_spill] sm:$0xff] %v19306_v0  ;;  %15143 = vmatprep.mubr.msk.f32.mxu0 %vm4676_vm3, %v5009_v35  ;;  %v19310_v56 = vld [vmem:[#allocation3 + $0x27] sm:$0xff]  ;;  %v19312_v13 = vld [vmem:[#allocation3 + $0x2f] sm:$0xff]  ;;  %v4653_v43 = vmax.f32 %v4621_v37, 0.0  ;;  %v19336_v0 = vpop.permute.xlu0 %5753 }
 0x345   : > { %4686 = vst.msk [vmem:[#allocation3 + $0x48] sm:$0xff] %vm4676_vm3, %v4650_v44  ;;  %15144 = vmatmul.mubr.msk.f32.gmra.mrb[36].mxu0 %vm4676_vm3, %v5010_v54  ;;  %v15102_v3 = vpop.f32.mrb[10].mxu0  ;;  %v19322_v44 = vsel %vm22715_vm1, %v19310_v56, 0.0  ;;  %v19327_v35 = vsel %vm22704_vm2, %v19312_v13, 0.0  ;;  %v4652_v29 = vmax.f32 %v4620_v16, 0.0  ;;  %23005 = vst [vmem:[#allocation20_spill] sm:$0xff] %v19336_v0 }
 0x346   : > { %23001 = vst [vmem:[#allocation16_spill] sm:$0xff] %v19322_v44  ;;  %23002 = vst [vmem:[#allocation15_spill] sm:$0xff] %v19327_v35  ;;  %v19329_v59 = vld [vmem:[#allocation3 + $0x39] sm:$0xff]  ;;  %v19331_v37 = vld [vmem:[#allocation3 + $0x31] sm:$0xff]  ;;  %v4623_v54 = vadd.f32 %v15102_v3, %v19258_v27  ;;  %v4464_v45 = vpop.f32.mrb[11].mxu0  ;;  %v19354_v3 = vpop.permute.xlu1 %5756 }
 0x347   : > { %23003 = vst [vmem:[#allocation18_spill] sm:$0xff] %v19329_v59  ;;  %23004 = vst [vmem:[#allocation17_spill] sm:$0xff] %v19331_v37  ;;  %v5011_v38 = vld [vmem:[#allocation3 + $0x38] sm:$0xff]  ;;  %v19341_v14 = vsel %vm22665_vm14, %v19329_v59, 0.0  ;;  %v19346_v35 = vsel %vm22664_vm12, %v19331_v37, 0.0  ;;  %v5012_v16 = vld [vmem:[#allocation3 + $0x40] sm:$0xff] }
 0x348   : > { %4689 = vst.msk [vmem:[#allocation3 + $0x60] sm:$0xff] %vm4676_vm3, %v4653_v43  ;;  %23006 = vst [vmem:[#allocation19_spill] sm:$0xff] %v19341_v14  ;;  %v19351_v43 = vsel %vm22659_vm15, %v19329_v59, 0.0  ;;  %15146 = vmatprep.mubr.msk.f32.mxu0 %vm4676_vm3, %v5011_v38  ;;  %v19356_v44 = vld [vmem:[#allocation3 + $0x37] sm:$0xff]  ;;  %v19358_v17 = vld [vmem:[#allocation3 + $0x3f] sm:$0xff]  ;;  %v4655_v14 = vmax.f32 %v4623_v54, 0.0 }
 0x349   : > { %23007 = vst [vmem:[#allocation22_spill] sm:$0xff] %v19346_v35  ;;  %23008 = vst [vmem:[#allocation21_spill] sm:$0xff] %v19351_v43  ;;  %v4622_v35 = vadd.f32 %v19258_v27, %v4464_v45  ;;  %15147 = vmatmul.mubr.msk.f32.gmra.mrb[38].mxu0 %vm4676_vm3, %v5012_v16  ;;  %v15105_v38 = vpop.f32.mrb[12].mxu0  ;;  %v5014_v43 = vld [vmem:[#allocation3 + $0x50] sm:$0xff]  ;;  %v19370_v59 = vsel %vm22703_vm0, %v19356_v44, 0.0  ;;  %v19435_v5 = vsel %vm22715_vm1, %v19356_v44, 0.0 }
 0x34a   : > { %23009 = vst [vmem:[#allocation24_spill] sm:$0xff] %v19354_v3  ;;  %4688 = vst.msk [vmem:[#allocation3 + $0x58] sm:$0xff] %vm4676_vm3, %v4652_v29  ;;  %v19375_v29 = vsel %vm22692_vm7, %v19358_v17, 0.0  ;;  %v4625_v37 = vadd.f32 %v15105_v38, %v19258_v27  ;;  %v4474_v58 = vpop.f32.mrb[13].mxu0  ;;  %vm22679_vm14 = vcmp.eq.s32.totalorder %v19278_v18, 1 }
 0x34b   : > { %23010 = vst [vmem:[#allocation23_spill] sm:$0xff] %v19370_v59  ;;  %23011 = vst [vmem:[#allocation26_spill] sm:$0xff] %v19375_v29  ;;  %v4654_v16 = vmax.f32 %v4622_v35, 0.0 }
 0x34c   : > { %v19377_v54 = vld [vmem:[#allocation3 + $0x41] sm:$0xff]  ;;  %v19379_v45 = vld [vmem:[#allocation3 + $0x49] sm:$0xff]  ;;  %4691 = vst.msk [vmem:[#allocation3 + $0x70] sm:$0xff] %vm4676_vm3, %v4655_v14  ;;  %23022 = vst [vmem:[#allocation36_spill] sm:$0xff] %v19435_v5 }
 0x34d   : > { %23012 = vst [vmem:[#allocation25_spill] sm:$0xff] %v19377_v54  ;;  %23013 = vst [vmem:[#allocation28_spill] sm:$0xff] %v19379_v45  ;;  %v5013_v20 = vld [vmem:[#allocation3 + $0x48] sm:$0xff]  ;;  %v19387_v59 = vsel %vm22664_vm12, %v19377_v54, 0.0  ;;  %v19392_v29 = vsel %vm22659_vm15, %v19379_v45, 0.0  ;;  %v19397_v15 = vsel %vm22662_vm5, %v19377_v54, 0.0 }
 0x34e   : > { %23014 = vst [vmem:[#allocation27_spill] sm:$0xff] %v19387_v59  ;;  %23015 = vst [vmem:[#allocation30_spill] sm:$0xff] %v19392_v29  ;;  %v19402_v14 = vsel %vm22661_vm6, %v19379_v45, 0.0  ;;  %15149 = vmatprep.mubr.msk.f32.mxu0 %vm4676_vm3, %v5013_v20  ;;  %v19405_v35 = vld [vmem:[#allocation3 + $0x47] sm:$0xff]  ;;  %v19407_v38 = vld [vmem:[#allocation3 + $0x4f] sm:$0xff]  ;;  %v4657_v29 = vmax.f32 %v4625_v37, 0.0  ;;  %v4624_v59 = vadd.f32 %v19258_v27, %v4474_v58 }
 0x34f   : > { %23016 = vst [vmem:[#allocation29_spill] sm:$0xff] %v19397_v15  ;;  %23017 = vst [vmem:[#allocation32_spill] sm:$0xff] %v19402_v14  ;;  %15150 = vmatmul.mubr.msk.f32.gmra.mrb[40].mxu0 %vm4676_vm3, %v5014_v43  ;;  %v19414_v15 = vpop.permute.xlu0 %5759  ;;  %v15108_v20 = vpop.f32.mrb[14].mxu0  ;;  %v19423_v45 = vsel %vm22691_vm8, %v19405_v35, 0.0  ;;  %v19428_v58 = vsel %vm22674_vm4, %v19407_v38, 0.0  ;;  %v5016_v54 = vld [vmem:[#allocation3 + $0x60] sm:$0xff] }
 0x350   : > { %4690 = vst.msk [vmem:[#allocation3 + $0x68] sm:$0xff] %vm4676_vm3, %v4654_v16  ;;  %23018 = vst [vmem:[#allocation31_spill] sm:$0xff] %v19414_v15  ;;  %v19418_v14 = vpop.permute.xlu1 %5762  ;;  %v4656_v37 = vmax.f32 %v4624_v59, 0.0  ;;  %v4627_v43 = vadd.f32 %v15108_v20, %v19258_v27  ;;  %v4484_v16 = vpop.f32.mrb[15].mxu0  ;;  %vm22671_vm15 = vcmp.eq.s32.totalorder %v19266_v4, 1  ;;  %v19451_v20 = vsel %vm22703_vm0, %v19405_v35, 0.0 }
 0x351   : > { %23019 = vst [vmem:[#allocation33_spill] sm:$0xff] %v19418_v14  ;;  %23020 = vst [vmem:[#allocation34_spill] sm:$0xff] %v19423_v45  ;;  %v19440_v45 = vsel %vm22704_vm2, %v19358_v17, 0.0  ;;  %v19442_v8 = vld [vmem:[#allocation3 + $0x51] sm:$0xff]  ;;  %v4626_v59 = vadd.f32 %v19258_v27, %v4484_v16  ;;  %v19456_v5 = vsel %vm22692_vm7, %v19407_v38, 0.0  ;;  %vm22678_vm12 = vcmp.eq.s32.totalorder %v19274_v22, 1 }
 0x352   : > { %23021 = vst [vmem:[#allocation35_spill] sm:$0xff] %v19428_v58  ;;  %4693 = vst.msk [vmem:[#allocation3 + $0x80] sm:$0xff] %vm4676_vm3, %v4657_v29  ;;  %v19444_v58 = vld [vmem:[#allocation3 + $0x59] sm:$0xff]  ;;  %v19471_v33 = vsel %vm22670_vm11, %v19442_v8, 0.0  ;;  %vm22712_vm7 = vcmp.eq.s32.totalorder %v19418_v14, 1 }
 0x353   : > { %23023 = vst [vmem:[#allocation37_spill] sm:$0xff] %v19440_v45  ;;  %23024 = vst [vmem:[#allocation38_spill] sm:$0xff] %v19442_v8  ;;  %v5015_v29 = vld [vmem:[#allocation3 + $0x58] sm:$0xff]  ;;  %v19461_v45 = vsel %vm22662_vm5, %v19442_v8, 0.0  ;;  %v19466_v16 = vsel %vm22661_vm6, %v19444_v58, 0.0  ;;  %vm22742_vm6 = vcmp.eq.s32.totalorder %v19190_v6, 1 }
 0x354   : > { %23025 = vst [vmem:[#allocation39_spill] sm:$0xff] %v19444_v58  ;;  %23026 = vst [vmem:[#allocation40_spill] sm:$0xff] %v19451_v20  ;;  %v19476_v20 = vsel %vm22671_vm15, %v19444_v58, 0.0  ;;  %15152 = vmatprep.mubr.msk.f32.mxu0 %vm4676_vm3, %v5015_v29  ;;  %vm22743_vm5 = vcmp.eq.s32.totalorder %v19192_v10, 1  ;;  %v4658_v8 = vmax.f32 %v4626_v59, 0.0  ;;  %v19490_v58 = vpop.permute.xlu0 %5765  ;;  %v19504_v31 = vpop.permute.xlu1 %5768 }
 0x355   : > { %23027 = vst [vmem:[#allocation41_spill] sm:$0xff] %v19456_v5  ;;  %23028 = vst [vmem:[#allocation42_spill] sm:$0xff] %v19461_v45  ;;  %v19480_v45 = vld [vmem:[#allocation3 + $0x57] sm:$0xff]  ;;  %v19482_v5 = vld [vmem:[#allocation3 + $0x5f] sm:$0xff]  ;;  %15153 = vmatmul.mubr.msk.f32.gmra.mrb[42].mxu0 %vm4676_vm3, %v5016_v54  ;;  %vm22725_vm0 = vcmp.eq.s32.totalorder %v19490_v58, 1  ;;  %vm22724_vm2 = vcmp.eq.s32.totalorder %v19504_v31, 1 }
 0x356   : > { %23029 = vst [vmem:[#allocation43_spill] sm:$0xff] %v19466_v16  ;;  %23030 = vst [vmem:[#allocation44_spill] sm:$0xff] %v19471_v33  ;;  %v4659_v16 = vmax.f32 %v4627_v43, 0.0  ;;  %v15111_v33 = vpop.f32.mrb[16].mxu0  ;;  %v19495_v34 = vsel %vm22683_vm9, %v19480_v45, 0.0  ;;  %v19509_v62 = vsel %vm22682_vm10, %v19482_v5, 0.0 }
 0x357   : > { %23031 = vst [vmem:[#allocation45_spill] sm:$0xff] %v19476_v20  ;;  %4692 = vst.msk [vmem:[#allocation3 + $0x78] sm:$0xff] %vm4676_vm3, %v4656_v37  ;;  %v4629_v37 = vadd.f32 %v15111_v33, %v19258_v27  ;;  %v4494_v29 = vpop.f32.mrb[17].mxu0  ;;  %v5018_v20 = vld [vmem:[#allocation3 + $0x70] sm:$0xff]  ;;  %v19497_v43 = vld [vmem:[#allocation3 + $0x61] sm:$0xff] }
 0x358   : > { %23032 = vst [vmem:[#allocation46_spill] sm:$0xff] %v19480_v45  ;;  %23033 = vst [vmem:[#allocation47_spill] sm:$0xff] %v19482_v5  ;;  %v19499_v59 = vld [vmem:[#allocation3 + $0x69] sm:$0xff]  ;;  %v4628_v54 = vadd.f32 %v19258_v27, %v4494_v29 }
 0x359   : > { %23034 = vst [vmem:[#allocation48_spill] sm:$0xff] %v19490_v58  ;;  %23035 = vst [vmem:[#allocation49_spill] sm:$0xff] %v19495_v34  ;;  %v5017_v33 = vld [vmem:[#allocation3 + $0x68] sm:$0xff]  ;;  %v19514_v34 = vsel %vm22691_vm8, %v19480_v45, 0.0  ;;  %v19529_v29 = vsel %vm22671_vm15, %v19499_v59, 0.0  ;;  %vm22728_vm15 = vcmp.eq.s32.totalorder %v19196_v50, 1 }
 0x35a   : > { %23036 = vst [vmem:[#allocation50_spill] sm:$0xff] %v19497_v43  ;;  %23037 = vst [vmem:[#allocation51_spill] sm:$0xff] %v19499_v59  ;;  %15155 = vmatprep.mubr.msk.f32.mxu0 %vm4676_vm3, %v5017_v33  ;;  %v4660_v4 = vmax.f32 %v4628_v54, 0.0  ;;  %vm22711_vm8 = vcmp.eq.s32.totalorder %v19414_v15, 1 }
 0x35b   : > { %4695 = vst.msk [vmem:[#allocation3 + $0x90] sm:$0xff] %vm4676_vm3, %v4659_v16  ;;  %4694 = vst.msk [vmem:[#allocation3 + $0x88] sm:$0xff] %vm4676_vm3, %v4658_v8  ;;  %v19519_v16 = vsel %vm22674_vm4, %v19482_v5, 0.0  ;;  %v19524_v8 = vsel %vm22670_vm11, %v19497_v43, 0.0  ;;  %vm22727_vm11 = vcmp.eq.s32.totalorder %v19194_v55, 1  ;;  %15156 = vmatmul.mubr.msk.f32.gmra.mrb[44].mxu0 %vm4676_vm3, %v5018_v20  ;;  %vm22688_vm4 = vcmp.eq.s32.totalorder %v19288_v23, 1 }
 0x35c   : > { %23038 = vst [vmem:[#allocation52_spill] sm:$0xff] %v19504_v31  ;;  %23039 = vst [vmem:[#allocation55_spill] sm:$0xff] %v19509_v62  ;;  %v19534_v62 = vsel %vm22678_vm12, %v19497_v43, 0.0 }
 0x35d   : > { %23040 = vst [vmem:[#allocation56_spill] sm:$0xff] %v19514_v34  ;;  %23041 = vst [vmem:[#allocation59_spill] sm:$0xff] %v19519_v16  ;;  %v19539_v34 = vsel %vm22679_vm14, %v19499_v59, 0.0  ;;  %v19542_v16 = vld [vmem:[#allocation3 + $0x67] sm:$0xff] }
 0x35e   : > { %23042 = vst [vmem:[#allocation60_spill] sm:$0xff] %v19524_v8  ;;  %23043 = vst [vmem:[#allocation63_spill] sm:$0xff] %v19529_v29  ;;  %v19544_v8 = vld [vmem:[#allocation3 + $0x6f] sm:$0xff]  ;;  %v4661_v29 = vmax.f32 %v4629_v37, 0.0  ;;  %v19555_v59 = vsel %vm22743_vm5, %v19542_v16, 0.0  ;;  %v19559_v47 = vld [vmem:[#allocation3 + $0x79] sm:$0xff] }
 0x35f   : > { %23044 = vst [vmem:[#allocation64_spill] sm:$0xff] %v19534_v62  ;;  %23045 = vst [vmem:[#allocation67_spill] sm:$0xff] %v19539_v34  ;;  %v15114_v62 = vpop.f32.mrb[18].mxu0  ;;  %v19557_v43 = vld [vmem:[#allocation3 + $0x71] sm:$0xff]  ;;  %v19572_v54 = vsel %vm22683_vm9, %v19542_v16, 0.0  ;;  %vm22700_vm9 = vcmp.eq.s32.totalorder %v19354_v3, 1 }
 0x360   : > { %23046 = vst [vmem:[#allocation68_spill] sm:$0xff] %v19542_v16  ;;  %23047 = vst [vmem:[#allocation71_spill] sm:$0xff] %v19544_v8  ;;  %v4631_v34 = vadd.f32 %v15114_v62, %v19258_v27  ;;  %v4504_v33 = vpop.f32.mrb[19].mxu0  ;;  %v5019_v37 = vld [vmem:[#allocation3 + $0x78] sm:$0xff]  ;;  %v19567_v62 = vsel %vm22742_vm6, %v19544_v8, 0.0 }
 0x361   : > { %23048 = vst [vmem:[#allocation72_spill] sm:$0xff] %v19555_v59  ;;  %23049 = vst [vmem:[#allocation75_spill] sm:$0xff] %v19557_v43  ;;  %v4630_v20 = vadd.f32 %v19258_v27, %v4504_v33  ;;  %v19577_v59 = vsel %vm22682_vm10, %v19544_v8, 0.0  ;;  %v19592_v33 = vsel %vm22689_vm13, %v19557_v43, 0.0  ;;  %15158 = vmatprep.mubr.msk.f32.mxu0 %vm4676_vm3, %v5019_v37  ;;  %vm22701_vm10 = vcmp.eq.s32.totalorder %v19336_v0, 1 }
 0x362   : > { %23050 = vst [vmem:[#allocation78_spill] sm:$0xff] %v19559_v47  ;;  %4697 = vst.msk [vmem:[#allocation3 + $0xa0] sm:$0xff] %vm4676_vm3, %v4661_v29  ;;  %v19587_v29 = vsel %vm22679_vm14, %v19559_v47, 0.0  ;;  %vm22739_vm14 = vcmp.eq.s32.totalorder %v19200_v60, 1  ;;  %v19614_v37 = vld [vmem:[#allocation3 + $0x89] sm:$0xff] }
 0x363   : > { %4696 = vst.msk [vmem:[#allocation3 + $0x98] sm:$0xff] %vm4676_vm3, %v4660_v4  ;;  %23051 = vst [vmem:[#allocation79_spill] sm:$0xff] %v19567_v62  ;;  %v19582_v4 = vsel %vm22678_vm12, %v19557_v43, 0.0  ;;  %vm22738_vm12 = vcmp.eq.s32.totalorder %v19198_v7, 1  ;;  %v4662_v62 = vmax.f32 %v4630_v20, 0.0  ;;  %v19608_v43 = vpop.permute.xlu1 %5774  ;;  %v19619_v20 = vld [vmem:[#allocation3 + $0x88] sm:$0xff] }
 0x364   : > { %23052 = vst [vmem:[#allocation80_spill] sm:$0xff] %v19572_v54  ;;  %23053 = vst [vmem:[#allocation81_spill] sm:$0xff] %v19577_v59  ;;  %v19597_v54 = vsel %vm22688_vm4, %v19559_v47, 0.0  ;;  %v19600_v59 = vld [vmem:[#allocation3 + $0x80] sm:$0xff]  ;;  %v19610_v47 = vld [vmem:[#allocation3 + $0x77] sm:$0xff]  ;;  %v19629_v22 = vsel %vm22688_vm4, %v19614_v37, 0.0 }
 0x365   : > { %23054 = vst [vmem:[#allocation82_spill] sm:$0xff] %v19582_v4  ;;  %23055 = vst [vmem:[#allocation83_spill] sm:$0xff] %v19587_v29  ;;  %v19602_v4 = vpop.permute.xlu0 %5771  ;;  %v4663_v29 = vmax.f32 %v4631_v34, 0.0  ;;  %15159 = vmatmul.mubr.msk.f32.gmra.mrb[46].mxu0 %vm4676_vm3, %v19600_v59  ;;  %vm22753_vm4 = vcmp.eq.s32.totalorder %v19202_v28, 1 }
 0x366   : > { %23056 = vst [vmem:[#allocation84_spill] sm:$0xff] %v19592_v33  ;;  %23057 = vst [vmem:[#allocation85_spill] sm:$0xff] %v19597_v54  ;;  %v15117_v33 = vpop.f32.mrb[20].mxu0  ;;  %v19612_v54 = vld [vmem:[#allocation3 + $0x81] sm:$0xff]  ;;  %15161 = vmatprep.mubr.msk.f32.mxu0 %vm4676_vm3, %v19619_v20  ;;  %vm22736_vm1 = vcmp.eq.s32.totalorder %v19602_v4, 1 }
 0x367   : > { %23058 = vst [vmem:[#allocation86_spill] sm:$0xff] %v19600_v59  ;;  %23059 = vst [vmem:[#allocation87_spill] sm:$0xff] %v19602_v4  ;;  %v4633_v18 = vadd.f32 %v15117_v33, %v19258_v27  ;;  %v4514_v34 = vpop.f32.mrb[21].mxu0  ;;  %v19624_v59 = vsel %vm22689_vm13, %v19612_v54, 0.0  ;;  %v19634_v48 = vsel %vm22701_vm10, %v19612_v54, 0.0  ;;  %v19639_v33 = vsel %vm22700_vm9, %v19614_v37, 0.0 }
 0x368   : > { %23060 = vst [vmem:[#allocation88_spill] sm:$0xff] %v19608_v43  ;;  %23061 = vst [vmem:[#allocation89_spill] sm:$0xff] %v19612_v54  ;;  %vm22716_vm13 = vcmp.eq.s32.totalorder %v19204_v63, 1  ;;  %v19650_v54 = vld [vmem:[#allocation3 + $0x90] sm:$0xff] }
 0x369   : > { %23062 = vst [vmem:[#allocation90_spill] sm:$0xff] %v19614_v37  ;;  %23063 = vst [vmem:[#allocation91_spill] sm:$0xff] %v19619_v20  ;;  %15162 = vmatmul.mubr.msk.f32.gmra.mrb[48].mxu0 %vm4676_vm3, %v19650_v54  ;;  %v19673_v8 = vpop.permute.xlu0 %5777 }
 0x36a   : > { %23064 = vst [vmem:[#allocation92_spill] sm:$0xff] %v19624_v59  ;;  %23065 = vst [vmem:[#allocation93_spill] sm:$0xff] %v19629_v22  ;;  %v19645_v59 = vld [vmem:[#allocation3 + $0x7f] sm:$0xff]  ;;  %v4665_v22 = vmax.f32 %v4633_v18, 0.0  ;;  %v19663_v18 = vsel %vm22728_vm15, %v19610_v47, 0.0 }
 0x36b   : > { %23066 = vst [vmem:[#allocation94_spill] sm:$0xff] %v19634_v48  ;;  %23067 = vst [vmem:[#allocation95_spill] sm:$0xff] %v19639_v33  ;;  %v4632_v48 = vadd.f32 %v19258_v27, %v4514_v34  ;;  %v19658_v33 = vld [vmem:[#allocation3 + $0x8f] sm:$0xff]  ;;  %v19667_v20 = vld [vmem:[#allocation3 + $0x99] sm:$0xff]  ;;  %v19678_v16 = vsel %vm22727_vm11, %v19645_v59, 0.0 }
 0x36c   : > { %4699 = vst.msk [vmem:[#allocation3 + $0xb0] sm:$0xff] %vm4676_vm3, %v4663_v29  ;;  %4698 = vst.msk [vmem:[#allocation3 + $0xa8] sm:$0xff] %vm4676_vm3, %v4662_v62  ;;  %v15120_v62 = vpop.f32.mrb[22].mxu0  ;;  %v19656_v29 = vld [vmem:[#allocation3 + $0x87] sm:$0xff]  ;;  %v19665_v34 = vld [vmem:[#allocation3 + $0x91] sm:$0xff] }
 0x36d   : > { %23068 = vst [vmem:[#allocation96_spill] sm:$0xff] %v19645_v59  ;;  %23069 = vst [vmem:[#allocation97_spill] sm:$0xff] %v19650_v54  ;;  %v4664_v37 = vmax.f32 %v4632_v48, 0.0  ;;  %v4635_v23 = vadd.f32 %v15120_v62, %v19258_v27  ;;  %v4524_v54 = vpop.f32.mrb[23].mxu0  ;;  %v19671_v57 = vld [vmem:[#allocation3 + $0x98] sm:$0xff]  ;;  %v19688_v48 = vsel %vm22700_vm9, %v19667_v20, 0.0 }
 0x36e   : > { %23070 = vst [vmem:[#allocation98_spill] sm:$0xff] %v19658_v33  ;;  %23071 = vst [vmem:[#allocation99_spill] sm:$0xff] %v19663_v18  ;;  %v19683_v18 = vsel %vm22701_vm10, %v19665_v34, 0.0  ;;  %v19698_v62 = vsel %vm22712_vm7, %v19667_v20, 0.0  ;;  %15164 = vmatprep.mubr.msk.f32.mxu0 %vm4676_vm3, %v19671_v57  ;;  %vm4958_vm9 = vcmp.eq.s32.totalorder %v19206_v30, 1  ;;  %vm4957_vm10 = vcmp.eq.s32.totalorder %v19214_v9, 1 }
 0x36f   : > { %23072 = vst [vmem:[#allocation100_spill] sm:$0xff] %v19665_v34  ;;  %23073 = vst [vmem:[#allocation101_spill] sm:$0xff] %v19667_v20  ;;  %v19721_v20 = vsel %vm22739_vm14, %v19656_v29, 0.0 }
 0x370   : > { %4701 = vst.msk [vmem:[#allocation3 + $0xc0] sm:$0xff] %vm4676_vm3, %v4665_v22  ;;  %23074 = vst [vmem:[#allocation102_spill] sm:$0xff] %v19671_v57  ;;  %v19693_v22 = vsel %vm22711_vm8, %v19665_v34, 0.0  ;;  %v19710_v34 = vld [vmem:[#allocation3 + $0xa0] sm:$0xff] }
 0x371   : > { %23075 = vst [vmem:[#allocation103_spill] sm:$0xff] %v19673_v8  ;;  %23076 = vst [vmem:[#allocation104_spill] sm:$0xff] %v19678_v16  ;;  %v19702_v16 = vpop.permute.xlu1 %5780  ;;  %15165 = vmatmul.mubr.msk.f32.gmra.mrb[50].mxu0 %vm4676_vm3, %v19710_v34  ;;  %v19716_v57 = vld [vmem:[#allocation3 + $0x9f] sm:$0xff] }
 0x372   : > { %23077 = vst [vmem:[#allocation105_spill] sm:$0xff] %v19683_v18  ;;  %23078 = vst [vmem:[#allocation106_spill] sm:$0xff] %v19688_v48  ;;  %v19704_v18 = vld [vmem:[#allocation3 + $0x97] sm:$0xff]  ;;  %v4667_v48 = vmax.f32 %v4635_v23, 0.0  ;;  %v19726_v23 = vsel %vm22738_vm12, %v19658_v33, 0.0 }
 0x373   : > { %23079 = vst [vmem:[#allocation107_spill] sm:$0xff] %v19693_v22  ;;  %23080 = vst [vmem:[#allocation108_spill] sm:$0xff] %v19698_v62  ;;  %v4634_v22 = vadd.f32 %v19258_v27, %v4524_v54  ;;  %v15123_v62 = vpop.f32.mrb[24].mxu0  ;;  %v19728_v54 = vld [vmem:[#allocation3 + $0xa1] sm:$0xff] }
 0x374   : > { %23081 = vst [vmem:[#allocation109_spill] sm:$0xff] %v19702_v16  ;;  %23082 = vst [vmem:[#allocation110_spill] sm:$0xff] %v19704_v18  ;;  %v4637_v3 = vadd.f32 %v15123_v62, %v19258_v27  ;;  %v4534_v0 = vpop.f32.mrb[25].mxu0  ;;  %v19734_v5 = vld [vmem:[#allocation3 + $0xa8] sm:$0xff] }
 0x375   : > { %4700 = vst.msk [vmem:[#allocation3 + $0xb8] sm:$0xff] %vm4676_vm3, %v4664_v37  ;;  %23083 = vst [vmem:[#allocation111_spill] sm:$0xff] %v19710_v34  ;;  %v19730_v37 = vld [vmem:[#allocation3 + $0xa9] sm:$0xff]  ;;  %v4666_v34 = vmax.f32 %v4634_v22, 0.0  ;;  %v19754_v22 = vsel %vm22725_vm0, %v19728_v54, 0.0  ;;  %15167 = vmatprep.mubr.msk.f32.mxu0 %vm4676_vm3, %v19734_v5 }
 0x376   : > { %23084 = vst [vmem:[#allocation112_spill] sm:$0xff] %v19716_v57  ;;  %23085 = vst [vmem:[#allocation113_spill] sm:$0xff] %v19721_v20  ;;  %v19739_v20 = vsel %vm22716_vm13, %v19704_v18, 0.0  ;;  %v19759_v62 = vsel %vm22724_vm2, %v19730_v37, 0.0  ;;  %vm22735_vm13 = vcmp.eq.s32.totalorder %v19608_v43, 1 }
 0x377   : > { %23086 = vst [vmem:[#allocation114_spill] sm:$0xff] %v19726_v23  ;;  %23087 = vst [vmem:[#allocation115_spill] sm:$0xff] %v19728_v54  ;;  %v19744_v23 = vsel %vm22711_vm8, %v19728_v54, 0.0  ;;  %vm4960_vm8 = vcmp.eq.s32.totalorder %v19218_v52, 1  ;;  %v19771_v54 = vpop.permute.xlu0 %5783 }
 0x378   : > { %23088 = vst [vmem:[#allocation116_spill] sm:$0xff] %v19730_v37  ;;  %4703 = vst.msk [vmem:[#allocation3 + $0xd0] sm:$0xff] %vm4676_vm3, %v4667_v48  ;;  %v19749_v48 = vsel %vm22712_vm7, %v19730_v37, 0.0  ;;  %vm4959_vm7 = vcmp.eq.s32.totalorder %v19221_v39, 1  ;;  %v19773_v37 = vld [vmem:[#allocation3 + $0xaf] sm:$0xff] }
 0x379   : > { %23089 = vst [vmem:[#allocation117_spill] sm:$0xff] %v19734_v5  ;;  %23090 = vst [vmem:[#allocation118_spill] sm:$0xff] %v19739_v20  ;;  %v19763_v20 = vld [vmem:[#allocation3 + $0xa7] sm:$0xff]  ;;  %v19779_v5 = vpop.permute.xlu1 %5786  ;;  %v19798_v45 = vsel %vm4958_vm9, %v19773_v37, 0.0 }
 0x37a   : > { %23091 = vst [vmem:[#allocation119_spill] sm:$0xff] %v19744_v23  ;;  %23092 = vst [vmem:[#allocation120_spill] sm:$0xff] %v19749_v48  ;;  %v4669_v48 = vmax.f32 %v4637_v3, 0.0  ;;  %v4636_v23 = vadd.f32 %v19258_v27, %v4534_v0  ;;  %v19784_v0 = vsel %vm22753_vm4, %v19716_v57, 0.0  ;;  %v19789_v3 = vsel %vm4957_vm10, %v19763_v20, 0.0 }
 0x37b   : > { %23093 = vst [vmem:[#allocation121_spill] sm:$0xff] %v19754_v22  ;;  %23094 = vst [vmem:[#allocation122_spill] sm:$0xff] %v19759_v62  ;;  %v19769_v22 = vld [vmem:[#allocation3 + $0xb0] sm:$0xff]  ;;  %v15126_v62 = vpop.f32.mrb[26].mxu0 }
 0x37c   : > { %23095 = vst [vmem:[#allocation123_spill] sm:$0xff] %v19763_v20  ;;  %4702 = vst.msk [vmem:[#allocation3 + $0xc8] sm:$0xff] %vm4676_vm3, %v4666_v34  ;;  %15168 = vmatmul.mubr.msk.f32.gmra.mrb[52].mxu0 %vm4676_vm3, %v19769_v22  ;;  %v4668_v34 = vmax.f32 %v4636_v23, 0.0  ;;  %v4639_v14 = vadd.f32 %v15126_v62, %v19258_v27  ;;  %v4544_v15 = vpop.f32.mrb[27].mxu0  ;;  %v19805_v49 = vld [vmem:[#allocation3 + $0xb1] sm:$0xff]  ;;  %v19815_v62 = vsel %vm22742_vm6, %v19645_v59, 0.0 }
 0x37d   : > { %23096 = vst [vmem:[#allocation124_spill] sm:$0xff] %v19769_v22  ;;  %23097 = vst [vmem:[#allocation125_spill] sm:$0xff] %v19771_v54  ;;  %v19793_v22 = vld [vmem:[#allocation3 + $0xc0] sm:$0xff]  ;;  %v4638_v23 = vadd.f32 %v19258_v27, %v4544_v15  ;;  %v19830_v15 = vsel %vm22725_vm0, %v19805_v49, 0.0  ;;  %vm22745_vm0 = vcmp.eq.s32.totalorder %v19225_v36, 1  ;;  %v19879_v58 = vpop.permute.xlu1 %5792  ;;  %vm22778_vm6 = vcmp.eq.s32.totalorder %v19168_v21, 1 }
 0x37e   : > { %23098 = vst [vmem:[#allocation126_spill] sm:$0xff] %v19773_v37  ;;  %23099 = vst [vmem:[#allocation127_spill] sm:$0xff] %v19779_v5 }
 0x37f   : > { %23100 = vst [vmem:[#allocation128_spill] sm:$0xff] %v19784_v0  ;;  %23101 = vst [vmem:[#allocation129_spill] sm:$0xff] %v19789_v3  ;;  %v19803_v0 = vsel %vm22743_vm5, %v19610_v47, 0.0  ;;  %v19807_v3 = vld [vmem:[#allocation3 + $0xb9] sm:$0xff]  ;;  %vm22774_vm5 = vcmp.eq.s32.totalorder %v19176_v1, 1 }
 0x380   : > { %4705 = vst.msk [vmem:[#allocation3 + $0xe0] sm:$0xff] %vm4676_vm3, %v4669_v48  ;;  %23102 = vst [vmem:[#allocation130_spill] sm:$0xff] %v19793_v22  ;;  %v19810_v48 = vld [vmem:[#allocation3 + $0xb8] sm:$0xff]  ;;  %v19835_v59 = vsel %vm22724_vm2, %v19807_v3, 0.0  ;;  %vm4962_vm2 = vcmp.eq.s32.totalorder %v19223_v19, 1 }
 0x381   : > { %23103 = vst [vmem:[#allocation131_spill] sm:$0xff] %v19798_v45  ;;  %23104 = vst [vmem:[#allocation132_spill] sm:$0xff] %v19803_v0  ;;  %v19820_v45 = vsel %vm22728_vm15, %v19656_v29, 0.0  ;;  %v19825_v0 = vsel %vm22727_vm11, %v19658_v33, 0.0  ;;  %15170 = vmatprep.mubr.msk.f32.mxu0 %vm4676_vm3, %v19810_v48  ;;  %vm22752_vm11 = vcmp.eq.s32.totalorder %v19673_v8, 1  ;;  %vm22747_vm15 = vcmp.eq.s32.totalorder %v19702_v16, 1 }
 0x382   : > { %23105 = vst [vmem:[#allocation133_spill] sm:$0xff] %v19805_v49  ;;  %23106 = vst [vmem:[#allocation134_spill] sm:$0xff] %v19807_v3  ;;  %15171 = vmatmul.mubr.msk.f32.gmra.mrb[54].mxu0 %vm4676_vm3, %v19793_v22 }
 0x383   : > { %23107 = vst [vmem:[#allocation135_spill] sm:$0xff] %v19810_v48  ;;  %23108 = vst [vmem:[#allocation136_spill] sm:$0xff] %v19815_v62  ;;  %v19840_v62 = vsel %vm22736_vm1, %v19805_v49, 0.0  ;;  %v19861_v48 = vpop.permute.xlu0 %5789  ;;  %v19863_v49 = vld [vmem:[#allocation3 + $0xd0] sm:$0xff]  ;;  %v19877_v31 = vld [vmem:[#allocation3 + $0xc8] sm:$0xff] }
 0x384   : > { %23109 = vst [vmem:[#allocation137_spill] sm:$0xff] %v19820_v45  ;;  %23110 = vst [vmem:[#allocation138_spill] sm:$0xff] %v19825_v0  ;;  %v19845_v45 = vsel %vm22735_vm13, %v19807_v3, 0.0  ;;  %v19852_v0 = vld [vmem:[#allocation3 + $0xbf] sm:$0xff]  ;;  %v15129_v3 = vpop.f32.mrb[28].mxu0  ;;  %v19872_v22 = vld [vmem:[#allocation3 + $0xc9] sm:$0xff]  ;;  %15173 = vmatprep.mubr.msk.f32.mxu0 %vm4676_vm3, %v19877_v31 }
 0x385   : > { %23111 = vst [vmem:[#allocation139_spill] sm:$0xff] %v19830_v15  ;;  %23112 = vst [vmem:[#allocation140_spill] sm:$0xff] %v19835_v59  ;;  %v19850_v15 = vld [vmem:[#allocation3 + $0xb7] sm:$0xff]  ;;  %v4671_v59 = vmax.f32 %v4639_v14, 0.0  ;;  %v19884_v33 = vsel %vm4960_vm8, %v19852_v0, 0.0  ;;  %v4994_v30 = vsel %vm4962_vm2, %v19852_v0, 0.0 }
 0x386   : > { %23113 = vst [vmem:[#allocation141_spill] sm:$0xff] %v19840_v62  ;;  %23114 = vst [vmem:[#allocation142_spill] sm:$0xff] %v19845_v45  ;;  %v4670_v62 = vmax.f32 %v4638_v23, 0.0  ;;  %v4554_v45 = vpop.f32.mrb[29].mxu0  ;;  %v19868_v14 = vsel %vm4959_vm7, %v19850_v15, 0.0  ;;  %v19870_v23 = vld [vmem:[#allocation3 + $0xc1] sm:$0xff]  ;;  %15174 = vmatmul.mubr.msk.f32.gmra.mrb[56].mxu0 %vm4676_vm3, %v19863_v49 }
 0x387   : > { %4704 = vst.msk [vmem:[#allocation3 + $0xd8] sm:$0xff] %vm4676_vm3, %v4668_v34  ;;  %23115 = vst [vmem:[#allocation143_spill] sm:$0xff] %v19850_v15  ;;  %v4641_v34 = vadd.f32 %v15129_v3, %v19258_v27  ;;  %v4640_v3 = vadd.f32 %v19258_v27, %v4554_v45  ;;  %v19899_v45 = vsel %vm22736_vm1, %v19870_v23, 0.0  ;;  %vm22760_vm1 = vcmp.eq.s32.totalorder %v19229_v46, 1 }
 0x388   : > { %23116 = vst [vmem:[#allocation144_spill] sm:$0xff] %v19863_v49  ;;  %23117 = vst [vmem:[#allocation145_spill] sm:$0xff] %v19868_v14  ;;  %v19889_v14 = vsel %vm22739_vm14, %v19704_v18, 0.0  ;;  %vm22758_vm14 = vcmp.eq.s32.totalorder %v19779_v5, 1 }
 0x389   : > { %23118 = vst [vmem:[#allocation146_spill] sm:$0xff] %v19870_v23  ;;  %23119 = vst [vmem:[#allocation147_spill] sm:$0xff] %v19872_v22  ;;  %v4672_v43 = vmax.f32 %v4640_v3, 0.0 }
 0x38a   : > { %4707 = vst.msk [vmem:[#allocation3 + $0xf0] sm:$0xff] %vm4676_vm3, %v4671_v59  ;;  %4706 = vst.msk [vmem:[#allocation3 + $0xe8] sm:$0xff] %vm4676_vm3, %v4670_v62  ;;  %v19894_v59 = vsel %vm22738_vm12, %v19716_v57, 0.0  ;;  %v19904_v62 = vsel %vm22735_vm13, %v19872_v22, 0.0  ;;  %vm4964_vm13 = vcmp.eq.s32.totalorder %v19227_v26, 1  ;;  %vm22759_vm12 = vcmp.eq.s32.totalorder %v19771_v54, 1 }
 0x38b   : > { %23120 = vst [vmem:[#allocation148_spill] sm:$0xff] %v19877_v31  ;;  %23121 = vst [vmem:[#allocation149_spill] sm:$0xff] %v19884_v33  ;;  %v19909_v33 = vsel %vm22752_vm11, %v19870_v23, 0.0  ;;  %v23207_v26 = vld [vmem:[#allocation61_spill] sm:$0xff] }
 0x38c   : > { %23122 = vst [vmem:[#allocation150_spill] sm:$0xff] %v19889_v14  ;;  %23123 = vst [vmem:[#allocation151_spill] sm:$0xff] %v19894_v59  ;;  %v19914_v14 = vsel %vm22747_vm15, %v19872_v22, 0.0  ;;  %v19918_v59 = vld [vmem:[#allocation3 + $0xc7] sm:$0xff] }
 0x38d   : > { %23124 = vst [vmem:[#allocation152_spill] sm:$0xff] %v19899_v45  ;;  %23125 = vst [vmem:[#allocation153_spill] sm:$0xff] %v19904_v62  ;;  %v19920_v45 = vld [vmem:[#allocation3 + $0xcf] sm:$0xff]  ;;  %v4673_v62 = vmax.f32 %v4641_v34, 0.0  ;;  %v19932_v22 = vsel %vm22745_vm0, %v19918_v59, 0.0  ;;  %vm23133_vm0 = vcmp.eq.s32.totalorder %v19204_v63, 1 }
 0x38e   : > { %23126 = vst [vmem:[#allocation154_spill] sm:$0xff] %v19909_v33  ;;  %23127 = vst [vmem:[#allocation155_spill] sm:$0xff] %v19914_v14  ;;  %v15132_v33 = vpop.f32.mrb[30].mxu0  ;;  %v19936_v34 = vld [vmem:[#allocation3 + $0xd1] sm:$0xff]  ;;  %v19938_v3 = vld [vmem:[#allocation3 + $0xd9] sm:$0xff]  ;;  %v19953_v23 = vsel %vm23133_vm0, %v19763_v20, 0.0 }
 0x38f   : > { %v4643_v14 = vadd.f32 %v15132_v33, %v19258_v27  ;;  %v4564_v31 = vpop.f32.mrb[31].mxu0  ;;  %23128 = vst [vmem:[#allocation156_spill] sm:$0xff] %v19932_v22  ;;  %23129 = vst [vmem:[#allocation157_spill] sm:$0xff] %v19936_v34  ;;  %v19943_v49 = vld [vmem:[#allocation3 + $0xd8] sm:$0xff]  ;;  %v19948_v22 = vsel %vm4962_vm2, %v19920_v45, 0.0  ;;  %vm4966_vm0 = vcmp.eq.s32.totalorder %v19231_v53, 1 }
 0x390   : > { %23130 = vst [vmem:[#allocation158_spill] sm:$0xff] %v19938_v3  ;;  %4709 = vst.msk [vmem:[#allocation3 + $0x100] sm:$0xff] %vm4676_vm3, %v4673_v62  ;;  %v4642_v33 = vadd.f32 %v19258_v27, %v4564_v31  ;;  %v19958_v62 = vsel %vm22753_vm4, %v19773_v37, 0.0  ;;  %v19963_v31 = vsel %vm22752_vm11, %v19936_v34, 0.0  ;;  %v19968_v27 = vsel %vm22747_vm15, %v19938_v3, 0.0  ;;  %15176 = vmatprep.mubr.msk.f32.mxu0 %vm4676_vm3, %v19943_v49  ;;  %v23204_v9 = vld [vmem:[#allocation143_spill] sm:$0xff] }
 0x391   : > { %4708 = vst.msk [vmem:[#allocation3 + $0xf8] sm:$0xff] %vm4676_vm3, %v4672_v43  ;;  %23131 = vst [vmem:[#allocation159_spill] sm:$0xff] %v19943_v49  ;;  %v19973_v43 = vsel %vm22759_vm12, %v19936_v34, 0.0  ;;  %vm4965_vm15 = vcmp.eq.s32.totalorder %v19233_v11, 1  ;;  %v19997_v49 = vld [vmem:[#allocation3 + $0xdf] sm:$0xff]  ;;  %v20001_v16 = vld [vmem:[#allocation3 + $0xe9] sm:$0xff] }
 0x392   : > { %23132 = vst [vmem:[#allocation160_spill] sm:$0xff] %v19948_v22  ;;  %23134 = vst [vmem:[#allocation161_spill] sm:$0xff] %v19953_v23  ;;  %v19978_v23 = vsel %vm22758_vm14, %v19938_v3, 0.0  ;;  %v19986_v22 = vld [vmem:[#allocation3 + $0xd7] sm:$0xff]  ;;  %v19992_v3 = vpop.permute.xlu1 %5798  ;;  %v19999_v34 = vld [vmem:[#allocation3 + $0xe1] sm:$0xff]  ;;  %vm22772_vm11 = vcmp.eq.s32.totalorder %v19861_v48, 1 }
 0x393   : > { %23135 = vst [vmem:[#allocation162_spill] sm:$0xff] %v19958_v62  ;;  %23136 = vst [vmem:[#allocation163_spill] sm:$0xff] %v19963_v31  ;;  %v19982_v62 = vpop.permute.xlu0 %5795  ;;  %v19984_v31 = vld [vmem:[#allocation3 + $0xe0] sm:$0xff]  ;;  %vm22771_vm4 = vcmp.eq.s32.totalorder %v19879_v58, 1  ;;  %v20015_v8 = vsel %vm22759_vm12, %v19999_v34, 0.0  ;;  %v20020_v4 = vsel %vm22758_vm14, %v20001_v16, 0.0 }
 0x394   : > { %23137 = vst [vmem:[#allocation164_spill] sm:$0xff] %v19968_v27  ;;  %23138 = vst [vmem:[#allocation165_spill] sm:$0xff] %v19973_v43  ;;  %v4675_v27 = vmax.f32 %v4643_v14, 0.0  ;;  %v4674_v43 = vmax.f32 %v4642_v33, 0.0  ;;  %15177 = vmatmul.mubr.msk.f32.gmra.mrb[58].mxu0 %vm4676_vm3, %v19984_v31  ;;  %v20005_v14 = vld [vmem:[#allocation3 + $0xe8] sm:$0xff]  ;;  %v20010_v33 = vsel %vm22760_vm1, %v19986_v22, 0.0 }
 0x395   : > { %23139 = vst [vmem:[#allocation166_spill] sm:$0xff] %v19978_v23  ;;  %23140 = vst [vmem:[#allocation167_spill] sm:$0xff] %v19984_v31  ;;  %v5873_v23 = vld [vmem:[%s22533_s9 + $0x20] sm:$0xff]  ;;  %v20025_v37 = vsel %vm22772_vm11, %v19999_v34, 0.0  ;;  %15179 = vmatprep.mubr.msk.f32.mxu0 %vm4676_vm3, %v20005_v14  ;;  %vm4967_vm14 = vcmp.eq.s32.totalorder %v19237_v32, 1  ;;  %vm5836_vm12 = vcmp.eq.s32.totalorder %v19982_v62, 1 }
 0x396   : > { %23141 = vst [vmem:[#allocation168_spill] sm:$0xff] %v19999_v34  ;;  %23142 = vst [vmem:[#allocation169_spill] sm:$0xff] %v20001_v16  ;;  %v4780_v31 = vld [vmem:[#allocation3 + $0xf] sm:$0xff]  ;;  %vm22783_vm1 = vcmp.eq.s32.totalorder %v19992_v3, 1  ;;  %v4996_v52 = vsel %vm4964_vm13, %v19920_v45, 0.0  ;;  %v4998_v19 = vsel %vm4966_vm0, %v19997_v49, 0.0 }
 0x397   : > { %23143 = vst [vmem:[#allocation170_spill] sm:$0xff] %v20005_v14  ;;  %23144 = vst [vmem:[#allocation171_spill] sm:$0xff] %v20010_v33  ;;  %v20030_v33 = vsel %vm22771_vm4, %v20001_v16, 0.0  ;;  %v6292_v14 = vld [vmem:[%s22533_s9 + $0x30] sm:$0xff]  ;;  %v6293_v16 = vld [vmem:[%s22533_s9 + $0x38] sm:$0xff]  ;;  %v20080_v20 = vpop.permute.xlu0 %5801 }
 0x398   : > { %23145 = vst [vmem:[#allocation172_spill] sm:$0xff] %v20015_v8  ;;  %23146 = vst [vmem:[#allocation173_spill] sm:$0xff] %v20020_v4  ;;  %v5874_v4 = vld [vmem:[%s22533_s9 + $0x28] sm:$0xff]  ;;  %v20039_v8 = vld [vmem:[#allocation3 + $0xe7] sm:$0xff]  ;;  %v20165_v1 = vpack.c.bf16 %v6293_v16, %v6292_v14 }
 0x399   : > { %23147 = vst [vmem:[#allocation174_spill] sm:$0xff] %v20025_v37  ;;  %23148 = vst [vmem:[#allocation175_spill] sm:$0xff] %v20030_v33  ;;  %v20044_v33 = vld [vmem:[#allocation3 + $0xf0] sm:$0xff]  ;;  %v4779_v37 = vld [vmem:[#allocation3 + $0x7] sm:$0xff]  ;;  %v20064_v34 = vsel %vm4965_vm15, %v20039_v8, 0.0  ;;  %v16159_v18 = vpack.c.bf16 %v5874_v4, %v5873_v23 }
 0x39a   : > { %4711 = vst.msk [vmem:[#allocation3 + $0x110] sm:$0xff] %vm4676_vm3, %v4675_v27  ;;  %4710 = vst.msk [vmem:[#allocation3 + $0x108] sm:$0xff] %vm4676_vm3, %v4674_v43  ;;  %v20046_v27 = vld [vmem:[#allocation3 + $0xef] sm:$0xff]  ;;  %v20051_v43 = vsel %vm4964_vm13, %v19997_v49, 0.0  ;;  %15180 = vmatmul.mubr.msk.f32.gmra.mrb[60].mxu0 %vm4676_vm3, %v20044_v33  ;;  %v20078_v54 = vld [vmem:[#allocation3 + $0xf9] sm:$0xff] }
 0x39b   : > { %23149 = vst [vmem:[#allocation176_spill] sm:$0xff] %v20044_v33  ;;  %23150 = vst [vmem:[#allocation177_spill] sm:$0xff] %v20051_v43  ;;  %v20069_v43 = vsel %vm4966_vm0, %v20046_v27, 0.0  ;;  %v20074_v33 = vsel %vm4957_vm10, %v19850_v15, 0.0  ;;  %v20076_v5 = vld [vmem:[#allocation3 + $0xf1] sm:$0xff]  ;;  %v20107_v4 = vsel %vm22771_vm4, %v20078_v54, 0.0 }
 0x39c   : > { %23151 = vst [vmem:[#allocation178_spill] sm:$0xff] %v20064_v34  ;;  %23152 = vst [vmem:[#allocation179_spill] sm:$0xff] %v20069_v43  ;;  %v20082_v57 = vld [vmem:[#allocation3 + $0xf8] sm:$0xff]  ;;  %v20087_v34 = vsel %vm4958_vm9, %v19852_v0, 0.0  ;;  %v20092_v43 = vsel %vm4959_vm7, %v19918_v59, 0.0  ;;  %v20102_v15 = vsel %vm22772_vm11, %v20076_v5, 0.0 }
 0x39d   : > { %23153 = vst [vmem:[#allocation180_spill] sm:$0xff] %v20074_v33  ;;  %23154 = vst [vmem:[#allocation181_spill] sm:$0xff] %v20082_v57  ;;  %v20097_v33 = vsel %vm4960_vm8, %v19920_v45, 0.0  ;;  %v20112_v23 = vsel %vm5836_vm12, %v20076_v5, 0.0  ;;  %15182 = vmatprep.mubr.msk.f32.mxu1 %vm4676_vm3, %v20082_v57  ;;  %vm4968_vm4 = vcmp.eq.s32.totalorder %v19235_v51, 1  ;;  %vm22782_vm11 = vcmp.eq.s32.totalorder %v20080_v20, 1 }
 0x39e   : > { %23155 = vst [vmem:[#allocation182_spill] sm:$0xff] %v20087_v34  ;;  %23156 = vst [vmem:[#allocation183_spill] sm:$0xff] %v20092_v43  ;;  %v20117_v43 = vsel %vm22783_vm1, %v20078_v54, 0.0  ;;  %v4971_v34 = vsel %vm22778_vm6, %v4779_v37, 0.0  ;;  %v20157_v57 = vsel %vm4962_vm2, %v19997_v49, 0.0  ;;  %vm23169_vm6 = vcmp.eq.s32.totalorder %v19229_v46, 1 }
 0x39f   : > { %23157 = vst [vmem:[#allocation184_spill] sm:$0xff] %v20097_v33  ;;  %23158 = vst [vmem:[#allocation185_spill] sm:$0xff] %v20102_v15  ;;  %v20121_v33 = vld [vmem:[#allocation3 + $0x100] sm:$0xff]  ;;  %v20123_v15 = vld [vmem:[#allocation3 + $0xf7] sm:$0xff]  ;;  %v5000_v11 = vsel %vm4968_vm4, %v20046_v27, 0.0 }
 0x3a0   : > { %23159 = vst [vmem:[#allocation186_spill] sm:$0xff] %v20107_v4  ;;  %23160 = vst [vmem:[#allocation187_spill] sm:$0xff] %v20112_v23  ;;  %v4972_v4 = vsel %vm22774_vm5, %v4780_v31, 0.0  ;;  %15183 = vmatmul.mubr.msk.f32.vlgmr.msra.gmra.mrb[0].mxu1 %vm4676_vm3, %v20121_v33  ;;  %v20132_v23 = vld [vmem:[#allocation3 + $0xff] sm:$0xff]  ;;  %v20142_v31 = vld [vmem:[#allocation3 + $0x17] sm:$0xff]  ;;  %vm23165_vm5 = vcmp.eq.s32.totalorder %v19225_v36, 1 }
 0x3a1   : > { %23161 = vst [vmem:[#allocation188_spill] sm:$0xff] %v20117_v43  ;;  %23162 = vst [vmem:[#allocation189_spill] sm:$0xff] %v20121_v33  ;;  %v20137_v43 = vsel %vm4967_vm14, %v20123_v15, 0.0  ;;  %16158 = vmatpush3.bf16.msra.mxu1 %v19216_v41  ;;  %15189 = vmatprep.mubr.msk.f32.mxu1 %vm4676_vm3, %v4971_v34  ;;  %v20147_v33 = vsel %vm4968_vm4, %v20132_v23, 0.0  ;;  %v20152_v37 = vsel %vm23165_vm5, %v19986_v22, 0.0  ;;  %v20159_v41 = vld [vmem:[#allocation3 + $0x101] sm:$0xff] }
 0x3a2   : > { %23163 = vst [vmem:[#allocation190_spill] sm:$0xff] %v20137_v43  ;;  %23164 = vst [vmem:[#allocation191_spill] sm:$0xff] %v20147_v33  ;;  %v20161_v34 = vld [vmem:[#allocation3 + $0x109] sm:$0xff]  ;;  %v20163_v43 = vld [vmem:[#allocation3 + $0x111] sm:$0xff]  ;;  %16160 = vmatprep.subr.bf16.mxu1 %v16159_v18  ;;  %v20170_v33 = vsel %vm23169_vm6, %v20039_v8, 0.0  ;;  %v20185_v16 = vsel %vm5836_vm12, %v20159_v41, 0.0 }
 0x3a3   : > { %23166 = vst [vmem:[#allocation192_spill] sm:$0xff] %v20152_v37  ;;  %23167 = vst [vmem:[#allocation193_spill] sm:$0xff] %v20157_v57  ;;  %v20175_v37 = vsel %vm4964_vm13, %v20046_v27, 0.0  ;;  %v20180_v57 = vsel %vm4965_vm15, %v20123_v15, 0.0  ;;  %v20190_v14 = vsel %vm22783_vm1, %v20161_v34, 0.0  ;;  %v20204_v21 = vld [vmem:[#allocation3 + $0x10f] sm:$0xff] }
 0x3a4   : > { %23168 = vst [vmem:[#allocation194_spill] sm:$0xff] %v20163_v43  ;;  %23170 = vst [vmem:[#allocation195_spill] sm:$0xff] %v20170_v33  ;;  %v20195_v33 = vsel %vm22782_vm11, %v20159_v41, 0.0  ;;  %15190 = vmatmul.mubr.msk.f32.vlgmr.msra.gmra.mrb[2].mxu1 %vm4676_vm3, %v4972_v4  ;;  %vm23176_vm5 = vcmp.eq.s32.totalorder %v19171_v42, 1  ;;  %v20226_v42 = vsel %vm4968_vm4, %v20204_v21, 0.0  ;;  %vm23178_vm6 = vcmp.eq.s32.totalorder %v19174_v61, 1 }
 0x3a5   : > { %23171 = vst [vmem:[#allocation196_spill] sm:$0xff] %v20175_v37  ;;  %23172 = vst [vmem:[#allocation197_spill] sm:$0xff] %v20180_v57  ;;  %v20200_v37 = vsel %vm22782_vm11, %v20163_v43, 0.0  ;;  %v20202_v57 = vld [vmem:[#allocation3 + $0x107] sm:$0xff]  ;;  %16162 = vmatpush3.bf16.msra.mxu1 %v16159_v18  ;;  %v20216_v43 = vsel %vm4966_vm0, %v20132_v23, 0.0  ;;  %vm23180_vm11 = vcmp.eq.s32.totalorder %v19178_v2, 1 }
 0x3a6   : > { %23173 = vst [vmem:[#allocation198_spill] sm:$0xff] %v20185_v16  ;;  %23174 = vst [vmem:[#allocation199_spill] sm:$0xff] %v20190_v14  ;;  %v4973_v14 = vsel %vm23176_vm5, %v20142_v31, 0.0  ;;  %v20210_v16 = vld [vmem:[#allocation3 + $0x1f] sm:$0xff]  ;;  %16164 = vmatprep.subr.bf16.mxu1 %v20165_v1  ;;  %vm23179_vm5 = vcmp.eq.s32.totalorder %v19180_v40, 1  ;;  %vm23181_vm1 = vcmp.eq.s32.totalorder %v19184_v25, 1 }
 0x3a7   : > { %23175 = vst [vmem:[#allocation200_spill] sm:$0xff] %v20200_v37  ;;  %15192 = vmatprep.mubr.msk.f32.mxu1 %vm4676_vm3, %v4973_v14  ;;  %v20221_v37 = vsel %vm4967_vm14, %v20202_v57, 0.0  ;;  %23177 = vst [vmem:[#allocation201_spill] sm:$0xff] %v20226_v42  ;;  %v4974_v18 = vsel %vm23178_vm6, %v20210_v16, 0.0  ;;  %v4975_v4 = vsel %vm23179_vm5, %v19310_v56, 0.0  ;;  %v4976_v14 = vsel %vm23180_vm11, %v19312_v13, 0.0 }
 0x3a8   : > { %15193 = vmatmul.mubr.msk.f32.gmra.mrb[4].mxu1 %vm4676_vm3, %v4974_v18  ;;  %v4977_v42 = vsel %vm23181_vm1, %v19356_v44, 0.0  ;;  %vm23182_vm6 = vcmp.eq.s32.totalorder %v19182_v24, 1  ;;  %vm23183_vm5 = vcmp.eq.s32.totalorder %v19188_v12, 1  ;;  %v23184_v2 = vld [vmem:[#allocation57_spill] sm:$0xff]  ;;  %v23186_v25 = vld [vmem:[#allocation46_spill] sm:$0xff]  ;;  %vm23187_vm1 = vcmp.eq.s32.totalorder %v19192_v10, 1 }
 0x3a9   : > { %15195 = vmatprep.mubr.msk.f32.mxu1 %vm4676_vm3, %v4975_v4  ;;  %v4978_v61 = vsel %vm23182_vm6, %v19358_v17, 0.0  ;;  %v4979_v40 = vsel %vm23183_vm5, %v19405_v35, 0.0  ;;  %vm23185_vm11 = vcmp.eq.s32.totalorder %v23184_v2, 1  ;;  %v4981_v13 = vsel %vm23187_vm1, %v23186_v25, 0.0  ;;  %v23188_v24 = vld [vmem:[#allocation47_spill] sm:$0xff]  ;;  %v23190_v12 = vld [vmem:[#allocation68_spill] sm:$0xff] }
 0x3aa   : > { %v4980_v56 = vsel %vm23185_vm11, %v19407_v38, 0.0  ;;  %vm23189_vm6 = vcmp.eq.s32.totalorder %v19190_v6, 1  ;;  %vm23191_vm5 = vcmp.eq.s32.totalorder %v19196_v50, 1  ;;  %v20268_v35 = vpop.f32.mrb[32].mxu0  ;;  %v23192_v10 = vld [vmem:[#allocation71_spill] sm:$0xff]  ;;  %vm23193_vm11 = vcmp.eq.s32.totalorder %v19194_v55, 1 }
 0x3ab   : > { %v4982_v17 = vsel %vm23189_vm6, %v23188_v24, 0.0  ;;  %v4983_v44 = vsel %vm23191_vm5, %v23190_v12, 0.0  ;;  %v20271_v38 = vpop.f32.mrb[33].mxu0  ;;  %vm23194_vm1 = vcmp.eq.s32.totalorder %v19200_v60, 1  ;;  %v23195_v50 = vld [vmem:[#allocation96_spill] sm:$0xff]  ;;  %vm23196_vm6 = vcmp.eq.s32.totalorder %v19198_v7, 1 }
 0x3ac   : > { %15196 = vmatmul.mubr.msk.f32.gmra.mrb[6].mxu1 %vm4676_vm3, %v4976_v14  ;;  %v4985_v6 = vsel %vm23194_vm1, %v19610_v47, 0.0  ;;  %v4986_v18 = vsel %vm23196_vm6, %v23195_v50, 0.0  ;;  %vm23197_vm5 = vcmp.eq.s32.totalorder %v19204_v63, 1  ;;  %v23198_v55 = vld [vmem:[#allocation98_spill] sm:$0xff]  ;;  %v23201_v7 = vld [vmem:[#allocation112_spill] sm:$0xff]  ;;  %v23202_v63 = vld [vmem:[#allocation123_spill] sm:$0xff] }
 0x3ad   : > { %15198 = vmatprep.mubr.msk.f32.mxu1 %vm4676_vm3, %v4977_v42  ;;  %v4984_v42 = vsel %vm23193_vm11, %v23192_v10, 0.0  ;;  %v4987_v4 = vsel %vm23197_vm5, %v19656_v29, 0.0  ;;  %vm23199_vm11 = vcmp.eq.s32.totalorder %v19202_v28, 1  ;;  %v23200_v60 = vld [vmem:[#allocation110_spill] sm:$0xff]  ;;  %v4991_v29 = vsel %vm4959_vm7, %v23202_v63, 0.0  ;;  %v23208_v53 = vld [vmem:[#allocation65_spill] sm:$0xff] }
 0x3ae   : > { %v4988_v14 = vsel %vm23199_vm11, %v23198_v55, 0.0  ;;  %v4989_v47 = vsel %vm4957_vm10, %v23200_v60, 0.0  ;;  %v23203_v28 = vld [vmem:[#allocation126_spill] sm:$0xff]  ;;  %vm23205_vm10 = vcmp.eq.s32.totalorder %v19225_v36, 1  ;;  %vm23206_vm7 = vcmp.eq.s32.totalorder %v19229_v46, 1  ;;  %v20360_v45 = vld [vmem:[#allocation3 + $0x19] sm:$0xff] }
 0x3af   : > { %v4993_v2 = vsel %vm23205_vm10, %v23204_v9, 0.0  ;;  %v4995_v39 = vsel %vm23206_vm7, %v19918_v59, 0.0  ;;  %v4997_v36 = vsel %vm4965_vm15, %v19986_v22, 0.0  ;;  %v4999_v46 = vsel %vm4967_vm14, %v20039_v8, 0.0  ;;  %v5681_v0 = vld [vmem:[#allocation3 + $0x9] sm:$0xff]  ;;  %v5682_v59 = vld [vmem:[#allocation3 + $0x11] sm:$0xff] }
 0x3b0   : > { %15199 = vmatmul.mubr.msk.f32.gmra.mrb[8].mxu1 %vm4676_vm3, %v4978_v61  ;;  %v4990_v61 = vsel %vm4958_vm9, %v23201_v7, 0.0  ;;  %vm4969_vm13 = vcmp.eq.s32.totalorder %v23207_v26, 1  ;;  %vm5809_vm2 = vcmp.eq.s32.totalorder %v23208_v53, 1  ;;  %v23209_v32 = vld [vmem:[#allocation58_spill] sm:$0xff]  ;;  %v6679_v22 = vld [vmem:[%s22533_s9 + $0x40] sm:$0xff]  ;;  %v23214_v24 = vld [vmem:[#allocation12_spill] sm:$0xff] }
 0x3b1   : > { %15201 = vmatprep.mubr.msk.f32.mxu1 %vm4676_vm3, %v4979_v40  ;;  %v4992_v40 = vsel %vm4960_vm8, %v23203_v28, 0.0  ;;  %v5001_v49 = vsel %vm4969_vm13, %v20123_v15, 0.0  ;;  %vm4970_vm14 = vcmp.eq.s32.totalorder %v23209_v32, 1  ;;  %v5841_v8 = vsel %vm5809_vm2, %v5681_v0, 0.0  ;;  %v6680_v15 = vld [vmem:[%s22533_s9 + $0x48] sm:$0xff]  ;;  %v23212_v25 = vld [vmem:[#allocation66_spill] sm:$0xff] }
 0x3b2   : > { %v5002_v51 = vsel %vm4970_vm14, %v20132_v23, 0.0  ;;  %v20363_v27 = vpack.c.bf16 %v6680_v15, %v6679_v22  ;;  %vm23213_vm4 = vcmp.eq.s32.totalorder %v23212_v25, 1  ;;  %v23218_v10 = vld [vmem:[#allocation70_spill] sm:$0xff]  ;;  %v23221_v50 = vld [vmem:[#allocation73_spill] sm:$0xff]  ;;  %v23227_v60 = vld [vmem:[#allocation76_spill] sm:$0xff] }
 0x3b3   : > { %vm23219_vm9 = vcmp.eq.s32.totalorder %v23218_v10, 1  ;;  %vm23222_vm0 = vcmp.eq.s32.totalorder %v23221_v50, 1  ;;  %vm23228_vm6 = vcmp.eq.s32.totalorder %v23227_v60, 1  ;;  %v23229_v7 = vld [vmem:[#allocation28_spill] sm:$0xff]  ;;  %v23235_v9 = vld [vmem:[#allocation39_spill] sm:$0xff]  ;;  %v23399_v53 = vld [vmem:[#allocation42_spill] sm:$0xff] }
 0x3b4   : > { %15202 = vmatmul.mubr.msk.f32.gmra.mrb[10].mxu1 %vm4676_vm3, %v4980_v56  ;;  %v23210_v56 = vld [vmem:[#allocation62_spill] sm:$0xff]  ;;  %v23233_v28 = vld [vmem:[#allocation8_spill] sm:$0xff]  ;;  %v7885_v26 = vld [vmem:[#allocation3 + $0x90] sm:$0xff] }
 0x3b5   : > { %15204 = vmatprep.mubr.msk.f32.mxu1 %vm4676_vm3, %v4981_v13  ;;  %vm23211_vm15 = vcmp.eq.s32.totalorder %v23210_v56, 1  ;;  %v5843_v13 = vsel %vm23213_vm4, %v20360_v45, 0.0  ;;  %vm23234_vm11 = vcmp.eq.s32.totalorder %v23233_v28, 1  ;;  %v23248_v22 = vld [vmem:[#allocation24_spill] sm:$0xff] }
 0x3b6   : > { %v5842_v23 = vsel %vm23211_vm15, %v5682_v59, 0.0  ;;  %v23250_v59 = vld [vmem:[#allocation89_spill] sm:$0xff]  ;;  %v7886_v32 = vld [vmem:[#allocation3 + $0x98] sm:$0xff] }
 0x3b8   : > { %15205 = vmatmul.mubr.msk.f32.gmra.mrb[12].mxu1 %vm4676_vm3, %v4982_v17  ;;  %v23215_v17 = vld [vmem:[#allocation69_spill] sm:$0xff] }
 0x3b9   : > { %15207 = vmatprep.mubr.msk.f32.mxu1 %vm4676_vm3, %v4983_v44  ;;  %vm23216_vm8 = vcmp.eq.s32.totalorder %v23215_v17, 1  ;;  %v23217_v44 = vld [vmem:[#allocation11_spill] sm:$0xff] }
 0x3ba   : > { %v5844_v12 = vsel %vm23216_vm8, %v23214_v24, 0.0  ;;  %vm23249_vm8 = vcmp.eq.s32.totalorder %v23248_v22, 1  ;;  %v23254_v24 = vld [vmem:[#allocation33_spill] sm:$0xff] }
 0x3bc   : > { %15208 = vmatmul.mubr.msk.f32.gmra.mrb[14].mxu1 %vm4676_vm3, %v4984_v42  ;;  %v5845_v42 = vsel %vm23219_vm9, %v23217_v44, 0.0  ;;  %v23257_v44 = vld [vmem:[#allocation48_spill] sm:$0xff] }
 0x3bd   : > { %15210 = vmatprep.mubr.msk.f32.mxu1 %vm4676_vm3, %v4985_v6  ;;  %v23220_v6 = vld [vmem:[#allocation17_spill] sm:$0xff] }
 0x3c0   : > { %15211 = vmatmul.mubr.msk.f32.gmra.mrb[16].mxu1 %vm4676_vm3, %v4986_v18  ;;  %v5846_v18 = vsel %vm23222_vm0, %v23220_v6, 0.0  ;;  %vm23255_vm0 = vcmp.eq.s32.totalorder %v23254_v24, 1  ;;  %v23260_v6 = vld [vmem:[#allocation52_spill] sm:$0xff]  ;;  %v23295_v24 = vld [vmem:[#allocation26_spill] sm:$0xff] }
 0x3c1   : > { %15213 = vmatprep.mubr.msk.f32.mxu1 %vm4676_vm3, %v4987_v4  ;;  %v23223_v4 = vld [vmem:[#allocation18_spill] sm:$0xff] }
 0x3c4   : > { %15214 = vmatmul.mubr.msk.f32.gmra.mrb[18].mxu1 %vm4676_vm3, %v4988_v14  ;;  %v23226_v14 = vld [vmem:[#allocation25_spill] sm:$0xff] }
 0x3c5   : > { %15216 = vmatprep.mubr.msk.f32.mxu1 %vm4676_vm3, %v4989_v47  ;;  %v5848_v47 = vsel %vm23228_vm6, %v23226_v14, 0.0  ;;  %vm23261_vm6 = vcmp.eq.s32.totalorder %v23260_v6, 1  ;;  %v23266_v14 = vld [vmem:[#allocation88_spill] sm:$0xff] }
 0x3c8   : > { %15217 = vmatmul.mubr.msk.f32.gmra.mrb[20].mxu1 %vm4676_vm3, %v4990_v61  ;;  %v23230_v61 = vld [vmem:[#allocation77_spill] sm:$0xff] }
 0x3c9   : > { %15219 = vmatprep.mubr.msk.f32.mxu1 %vm4676_vm3, %v4991_v29  ;;  %vm23231_vm5 = vcmp.eq.s32.totalorder %v23230_v61, 1  ;;  %v23232_v29 = vld [vmem:[#allocation38_spill] sm:$0xff] }
 0x3ca   : > { %v5849_v63 = vsel %vm23231_vm5, %v23229_v7, 0.0  ;;  %v23269_v7 = vld [vmem:[#allocation103_spill] sm:$0xff] }
 0x3cc   : > { %15220 = vmatmul.mubr.msk.f32.gmra.mrb[22].mxu1 %vm4676_vm3, %v4992_v40  ;;  %v5850_v40 = vsel %vm23234_vm11, %v23232_v29, 0.0  ;;  %vm23267_vm11 = vcmp.eq.s32.totalorder %v23266_v14, 1  ;;  %v23272_v29 = vld [vmem:[#allocation109_spill] sm:$0xff]  ;;  %v23305_v14 = vld [vmem:[#allocation114_spill] sm:$0xff] }
 0x3cd   : > { %15222 = vmatprep.mubr.msk.f32.mxu1 %vm4676_vm3, %v4993_v2  ;;  %v23236_v2 = vld [vmem:[#allocation10_spill] sm:$0xff] }
 0x3ce   : > { %vm23237_vm10 = vcmp.eq.s32.totalorder %v23236_v2, 1 }
 0x3d0   : > { %15223 = vmatmul.mubr.msk.f32.gmra.mrb[24].mxu1 %vm4676_vm3, %v4994_v30  ;;  %v5851_v30 = vsel %vm23237_vm10, %v23235_v9, 0.0  ;;  %vm23270_vm10 = vcmp.eq.s32.totalorder %v23269_v7, 1  ;;  %v23275_v9 = vld [vmem:[#allocation125_spill] sm:$0xff] }
 0x3d1   : > { %15225 = vmatprep.mubr.msk.f32.mxu1 %vm4676_vm3, %v4995_v39  ;;  %v23238_v39 = vld [vmem:[#allocation50_spill] sm:$0xff] }
 0x3d4   : > { %15226 = vmatmul.mubr.msk.f32.gmra.mrb[26].mxu1 %vm4676_vm3, %v4996_v52  ;;  %v23239_v52 = vld [vmem:[#allocation7_spill] sm:$0xff] }
 0x3d5   : > { %15228 = vmatprep.mubr.msk.f32.mxu1 %vm4676_vm3, %v4997_v36  ;;  %vm23240_vm7 = vcmp.eq.s32.totalorder %v23239_v52, 1 }
 0x3d6   : > { %v5852_v36 = vsel %vm23240_vm7, %v23238_v39, 0.0  ;;  %vm23273_vm7 = vcmp.eq.s32.totalorder %v23272_v29, 1  ;;  %v23278_v39 = vld [vmem:[#allocation127_spill] sm:$0xff] }
 0x3d8   : > { %15229 = vmatmul.mubr.msk.f32.gmra.mrb[28].mxu1 %vm4676_vm3, %v4998_v19  ;;  %v23241_v19 = vld [vmem:[#allocation51_spill] sm:$0xff] }
 0x3d9   : > { %15231 = vmatprep.mubr.msk.f32.mxu1 %vm4676_vm3, %v4999_v46  ;;  %v23242_v46 = vld [vmem:[#allocation9_spill] sm:$0xff] }
 0x3da   : > { %vm23243_vm15 = vcmp.eq.s32.totalorder %v23242_v46, 1  ;;  %v23282_v46 = vld [vmem:[#allocation158_spill] sm:$0xff] }
 0x3db   : > { %v5853_v0 = vsel %vm23243_vm15, %v23241_v19, 0.0  ;;  %vm23276_vm15 = vcmp.eq.s32.totalorder %v23275_v9, 1  ;;  %v23310_v9 = vld [vmem:[#allocation145_spill] sm:$0xff] }
 0x3dc   : > { %15232 = vmatmul.mubr.msk.f32.gmra.mrb[30].mxu1 %vm4676_vm3, %v5000_v11  ;;  %v23244_v11 = vld [vmem:[#allocation75_spill] sm:$0xff] }
 0x3dd   : > { %15234 = vmatprep.mubr.msk.f32.mxu1 %vm4676_vm3, %v5001_v49  ;;  %v23245_v49 = vld [vmem:[#allocation20_spill] sm:$0xff] }
 0x3de   : > { %vm23246_vm4 = vcmp.eq.s32.totalorder %v23245_v49, 1  ;;  %v23284_v49 = vld [vmem:[#allocation168_spill] sm:$0xff] }
 0x3e0   : > { %15235 = vmatmul.mubr.msk.f32.gmra.mrb[0].mxu1 %vm4676_vm3, %v5002_v51  ;;  %v23247_v51 = vld [vmem:[#allocation78_spill] sm:$0xff] }
 0x3e1   : > { %15241 = vmatprep.mubr.msk.f32.mxu1 %vm4676_vm3, %v5841_v8  ;;  %v5854_v8 = vsel %vm23246_vm4, %v23244_v11, 0.0  ;;  %v5855_v15 = vsel %vm23249_vm8, %v23247_v51, 0.0  ;;  %vm23279_vm4 = vcmp.eq.s32.totalorder %v23278_v39, 1  ;;  %vm23281_vm8 = vcmp.eq.s32.totalorder %v19861_v48, 1  ;;  %v20470_v11 = vpop.permute.xlu1 %5804  ;;  %v23285_v51 = vld [vmem:[#allocation169_spill] sm:$0xff] }
 0x3e4   : > { %15242 = vmatmul.mubr.msk.f32.vlgmr.msra.gmra.mrb[2].mxu1 %vm4676_vm3, %v5842_v23  ;;  %v23251_v23 = vld [vmem:[#allocation31_spill] sm:$0xff] }
 0x3e5   : > { %15244 = vmatprep.mubr.msk.f32.mxu1 %vm4676_vm3, %v5843_v13  ;;  %16166 = vmatpush3.bf16.msra.mxu1 %v20165_v1  ;;  %v23224_v1 = vld [vmem:[#allocation74_spill] sm:$0xff]  ;;  %vm23252_vm9 = vcmp.eq.s32.totalorder %v23251_v23, 1 }
 0x3e6   : > { %16168 = vmatprep.subr.bf16.mxu1 %v20363_v27  ;;  %vm23225_vm1 = vcmp.eq.s32.totalorder %v23224_v1, 1  ;;  %v5856_v25 = vsel %vm23252_vm9, %v23250_v59, 0.0  ;;  %v23253_v13 = vld [vmem:[#allocation90_spill] sm:$0xff]  ;;  %vm23283_vm9 = vcmp.eq.s32.totalorder %v19879_v58, 1  ;;  %v20480_v58 = vpop.permute.xlu0 %5807 }
 0x3e7   : > { %v5847_v55 = vsel %vm23225_vm1, %v23223_v4, 0.0  ;;  %v5857_v17 = vsel %vm23255_vm0, %v23253_v13, 0.0  ;;  %vm23258_vm1 = vcmp.eq.s32.totalorder %v23257_v44, 1  ;;  %v23263_v4 = vld [vmem:[#allocation87_spill] sm:$0xff]  ;;  %vm23286_vm0 = vcmp.eq.s32.totalorder %v19992_v3, 1  ;;  %v23300_v44 = vld [vmem:[#allocation72_spill] sm:$0xff] }
 0x3e8   : > { %15245 = vmatmul.mubr.msk.f32.gmra.mrb[4].mxu1 %vm4676_vm3, %v5844_v12  ;;  %v23256_v12 = vld [vmem:[#allocation100_spill] sm:$0xff]  ;;  %vm23264_vm5 = vcmp.eq.s32.totalorder %v23263_v4, 1  ;;  %v5869_v22 = vsel %vm23286_vm0, %v23285_v51, 0.0  ;;  %v23293_v13 = vld [vmem:[#allocation15_spill] sm:$0xff]  ;;  %v23304_v4 = vld [vmem:[#allocation113_spill] sm:$0xff] }
 0x3e9   : > { %15247 = vmatprep.mubr.msk.f32.mxu1 %vm4676_vm3, %v5845_v42  ;;  %v5858_v10 = vsel %vm23258_vm1, %v23256_v12, 0.0  ;;  %v23259_v42 = vld [vmem:[#allocation101_spill] sm:$0xff]  ;;  %vm5839_vm1 = vcmp.eq.s32.totalorder %v20470_v11, 1  ;;  %v8883_v11 = vld [vmem:[%s22526_s2] sm:$0xff] }
 0x3ea   : > { %v5859_v50 = vsel %vm23261_vm6, %v23259_v42, 0.0  ;;  %vm23287_vm6 = vcmp.eq.s32.totalorder %v20080_v20, 1  ;;  %v5871_v62 = vsel %vm5839_vm1, %v20078_v54, 0.0  ;;  %v23288_v20 = vld [vmem:[#allocation53_spill] sm:$0xff]  ;;  %v23302_v42 = vld [vmem:[#allocation99_spill] sm:$0xff] }
 0x3eb   : > { %v5870_v48 = vsel %vm23287_vm6, %v20076_v5, 0.0  ;;  %v7099_v5 = vld [vmem:[%s22533_s9 + $0x58] sm:$0xff]  ;;  %v23298_v12 = vld [vmem:[#allocation49_spill] sm:$0xff] }
 0x3ec   : > { %15248 = vmatmul.mubr.msk.f32.gmra.mrb[6].mxu1 %vm4676_vm3, %v5846_v18  ;;  %v23262_v18 = vld [vmem:[#allocation115_spill] sm:$0xff] }
 0x3ed   : > { %15250 = vmatprep.mubr.msk.f32.mxu1 %vm4676_vm3, %v5847_v55  ;;  %v5860_v1 = vsel %vm23264_vm5, %v23262_v18, 0.0  ;;  %v23265_v55 = vld [vmem:[#allocation116_spill] sm:$0xff]  ;;  %vm23289_vm5 = vcmp.eq.s32.totalorder %v23288_v20, 1  ;;  %v23372_v20 = vld [vmem:[#allocation41_spill] sm:$0xff] }
 0x3ee   : > { %v5861_v60 = vsel %vm23267_vm11, %v23265_v55, 0.0  ;;  %v6260_v54 = vsel %vm23289_vm5, %v20142_v31, 0.0  ;;  %v23294_v31 = vld [vmem:[#allocation23_spill] sm:$0xff]  ;;  %v23303_v18 = vld [vmem:[#allocation104_spill] sm:$0xff] }
 0x3f0   : > { %15251 = vmatmul.mubr.msk.f32.gmra.mrb[8].mxu1 %vm4676_vm3, %v5848_v47  ;;  %v23268_v47 = vld [vmem:[#allocation133_spill] sm:$0xff] }
 0x3f1   : > { %15253 = vmatprep.mubr.msk.f32.mxu1 %vm4676_vm3, %v5849_v63  ;;  %v5862_v61 = vsel %vm23270_vm10, %v23268_v47, 0.0  ;;  %v23271_v63 = vld [vmem:[#allocation134_spill] sm:$0xff]  ;;  %vm23367_vm10 = vmmov %vm23289_vm5 }
 0x3f2   : > { %v5863_v28 = vsel %vm23273_vm7, %v23271_v63, 0.0  ;;  %v23308_v63 = vld [vmem:[#allocation129_spill] sm:$0xff] }
 0x3f4   : > { %15254 = vmatmul.mubr.msk.f32.gmra.mrb[10].mxu1 %vm4676_vm3, %v5850_v40  ;;  %v23274_v40 = vld [vmem:[#allocation146_spill] sm:$0xff] }
 0x3f5   : > { %15256 = vmatprep.mubr.msk.f32.mxu1 %vm4676_vm3, %v5851_v30  ;;  %v5864_v2 = vsel %vm23276_vm15, %v23274_v40, 0.0  ;;  %v23277_v30 = vld [vmem:[#allocation147_spill] sm:$0xff] }
 0x3f6   : > { %v5865_v52 = vsel %vm23279_vm4, %v23277_v30, 0.0  ;;  %v23309_v40 = vld [vmem:[#allocation131_spill] sm:$0xff]  ;;  %v23311_v30 = vld [vmem:[#allocation149_spill] sm:$0xff] }
 0x3f8   : > { %15257 = vmatmul.mubr.msk.f32.gmra.mrb[12].mxu1 %vm4676_vm3, %v5852_v36  ;;  %v23280_v36 = vld [vmem:[#allocation157_spill] sm:$0xff] }
 0x3f9   : > { %15259 = vmatprep.mubr.msk.f32.mxu1 %vm4676_vm3, %v5853_v0  ;;  %v5866_v19 = vsel %vm23281_vm8, %v23280_v36, 0.0  ;;  %v5867_v0 = vsel %vm23283_vm9, %v23282_v46, 0.0 }
 0x3fc   : > { %15260 = vmatmul.mubr.msk.f32.gmra.mrb[14].mxu1 %vm4676_vm3, %v5854_v8  ;;  %v5868_v8 = vsel %vm5836_vm12, %v23284_v49, 0.0  ;;  %vm5840_vm12 = vcmp.eq.s32.totalorder %v20480_v58, 1  ;;  %v8884_v58 = vld [vmem:[%s22526_s2 + $0x8] sm:$0xff] }
 0x3fd   : > { %15262 = vmatprep.mubr.msk.f32.mxu1 %vm4676_vm3, %v5855_v15  ;;  %v5872_v3 = vsel %vm5840_vm12, %v20159_v41, 0.0  ;;  %v7098_v15 = vld [vmem:[%s22533_s9 + $0x50] sm:$0xff]  ;;  %v23290_v41 = vld [vmem:[#allocation54_spill] sm:$0xff] }
 0x3fe   : > { %v20506_v59 = vpack.c.bf16 %v7099_v5, %v7098_v15  ;;  %vm23291_vm11 = vcmp.eq.s32.totalorder %v23290_v41, 1  ;;  %v23318_v15 = vld [vmem:[#allocation190_spill] sm:$0xff]  ;;  %v23374_v41 = vld [vmem:[#allocation59_spill] sm:$0xff] }
 0x3ff   : > { %v6261_v23 = vsel %vm23291_vm11, %v20210_v16, 0.0  ;;  %v23297_v16 = vld [vmem:[#allocation35_spill] sm:$0xff]  ;;  %vm23368_vm7 = vmmov %vm23291_vm11 }
 0x400   : > { %15263 = vmatmul.mubr.msk.f32.gmra.mrb[16].mxu1 %vm4676_vm3, %v5856_v25  ;;  %v23292_v25 = vld [vmem:[#allocation16_spill] sm:$0xff] }
 0x401   : > { %15265 = vmatprep.mubr.msk.f32.mxu1 %vm4676_vm3, %v5857_v17  ;;  %v23296_v17 = vld [vmem:[#allocation34_spill] sm:$0xff] }
 0x404   : > { %15266 = vmatmul.mubr.msk.f32.gmra.mrb[18].mxu1 %vm4676_vm3, %v5858_v10  ;;  %v23301_v10 = vld [vmem:[#allocation79_spill] sm:$0xff] }
 0x405   : > { %15268 = vmatprep.mubr.msk.f32.mxu1 %vm4676_vm3, %v5859_v50 }
 0x408   : > { %15269 = vmatmul.mubr.msk.f32.gmra.mrb[20].mxu1 %vm4676_vm3, %v5860_v1 }
 0x409   : > { %15271 = vmatprep.mubr.msk.f32.mxu1 %vm4676_vm3, %v5861_v60  ;;  %v23306_v60 = vld [vmem:[#allocation118_spill] sm:$0xff] }
 0x40c   : > { %15272 = vmatmul.mubr.msk.f32.gmra.mrb[22].mxu1 %vm4676_vm3, %v5862_v61  ;;  %v23307_v61 = vld [vmem:[#allocation128_spill] sm:$0xff] }
 0x40d   : > { %15274 = vmatprep.mubr.msk.f32.mxu1 %vm4676_vm3, %v5863_v28 }
 0x410   : > { %15275 = vmatmul.mubr.msk.f32.gmra.mrb[24].mxu1 %vm4676_vm3, %v5864_v2 }
 0x411   : > { %15277 = vmatprep.mubr.msk.f32.mxu1 %vm4676_vm3, %v5865_v52  ;;  %v23312_v52 = vld [vmem:[#allocation156_spill] sm:$0xff] }
 0x413   : > { %v20536_v6 = vpop.f32.mrb[34].mxu0 }
 0x414   : > { %15278 = vmatmul.mubr.msk.f32.gmra.mrb[26].mxu1 %vm4676_vm3, %v5866_v19  ;;  %v20538_v50 = vpop.f32.mrb[35].mxu0  ;;  %v23313_v19 = vld [vmem:[#allocation160_spill] sm:$0xff] }
 0x415   : > { %15280 = vmatprep.mubr.msk.f32.mxu1 %vm4676_vm3, %v5867_v0  ;;  %v23314_v0 = vld [vmem:[#allocation171_spill] sm:$0xff] }
 0x418   : > { %15281 = vmatmul.mubr.msk.f32.gmra.mrb[28].mxu1 %vm4676_vm3, %v5868_v8  ;;  %v20544_v1 = vpop.f32.mrb[36].mxu0  ;;  %v23315_v8 = vld [vmem:[#allocation177_spill] sm:$0xff] }
 0x419   : > { %15283 = vmatprep.mubr.msk.f32.mxu1 %vm4676_vm3, %v5869_v22  ;;  %v20546_v55 = vpop.f32.mrb[37].mxu0  ;;  %v23316_v22 = vld [vmem:[#allocation178_spill] sm:$0xff] }
 0x41c   : > { %15284 = vmatmul.mubr.msk.f32.gmra.mrb[30].mxu1 %vm4676_vm3, %v5870_v48  ;;  %v20552_v47 = vpop.f32.mrb[38].mxu0 }
 0x41d   : > { %15286 = vmatprep.mubr.msk.f32.mxu1 %vm4676_vm3, %v5871_v62  ;;  %v20554_v7 = vpop.f32.mrb[39].mxu0  ;;  %v23317_v62 = vld [vmem:[#allocation179_spill] sm:$0xff] }
 0x420   : > { %15287 = vmatmul.mubr.msk.f32.gmra.mrb[0].mxu1 %vm4676_vm3, %v5872_v3 }
 0x421   : > { %15293 = vmatprep.mubr.msk.f32.mxu1 %vm4676_vm3, %v6260_v54  ;;  %v23319_v54 = vld [vmem:[#allocation191_spill] sm:$0xff] }
 0x422   : > { %v20560_v29 = vpop.f32.mrb[40].mxu0 }
 0x423   : > { %v20562_v28 = vpop.f32.mrb[41].mxu0 }
 0x424   : > { %15294 = vmatmul.mubr.msk.f32.vlgmr.msra.gmra.mrb[2].mxu1 %vm4676_vm3, %v6261_v23  ;;  %v6290_v23 = vsel %vm4969_vm13, %v20202_v57, 0.0  ;;  %v6647_v57 = vld [vmem:[#allocation3 + $0x18] sm:$0xff] }
 0x425   : > { %15296 = vmatprep.mubr.msk.f32.mxu1 %vm4676_vm3, %v23292_v25  ;;  %16170 = vmatpush3.bf16.msra.mxu1 %v20363_v27  ;;  %v23299_v27 = vld [vmem:[#allocation55_spill] sm:$0xff] }
 0x426   : > { %16172 = vmatprep.subr.bf16.mxu1 %v20506_v59 }
 0x428   : > { %15297 = vmatmul.mubr.msk.f32.gmra.mrb[4].mxu1 %vm4676_vm3, %v23293_v13  ;;  %v20568_v2 = vpop.f32.mrb[42].mxu0  ;;  %v6291_v13 = vsel %vm4970_vm14, %v20204_v21, 0.0  ;;  %v6648_v21 = vld [vmem:[#allocation3 + $0x20] sm:$0xff] }
 0x429   : > { %15299 = vmatprep.mubr.msk.f32.mxu1 %vm4676_vm3, %v23294_v31  ;;  %v20572_v39 = vpop.f32.mrb[43].mxu0  ;;  %v7517_v31 = vld [vmem:[%s22533_s9 + $0x60] sm:$0xff] }
 0x42c   : > { %15300 = vmatmul.mubr.msk.f32.gmra.mrb[6].mxu1 %vm4676_vm3, %v23295_v24  ;;  %v7518_v24 = vld [vmem:[%s22533_s9 + $0x68] sm:$0xff] }
 0x42d   : > { %15302 = vmatprep.mubr.msk.f32.mxu1 %vm4676_vm3, %v23296_v17 }
 0x42e   : > { %v20576_v36 = vpop.f32.mrb[44].mxu0 }
 0x42f   : > { %v20580_v46 = vpop.f32.mrb[45].mxu0 }
 0x430   : > { %15303 = vmatmul.mubr.msk.f32.gmra.mrb[8].mxu1 %vm4676_vm3, %v23297_v16 }
 0x431   : > { %15305 = vmatprep.mubr.msk.f32.mxu1 %vm4676_vm3, %v23298_v12  ;;  %v20625_v12 = vpack.c.bf16 %v7518_v24, %v7517_v31  ;;  %v23326_v31 = vld [vmem:[#allocation117_spill] sm:$0xff]  ;;  %v23327_v24 = vld [vmem:[#allocation124_spill] sm:$0xff] }
 0x434   : > { %15306 = vmatmul.mubr.msk.f32.gmra.mrb[10].mxu1 %vm4676_vm3, %v23299_v27 }
 0x435   : > { %15308 = vmatprep.mubr.msk.f32.mxu1 %vm4676_vm3, %v23300_v44  ;;  %v20630_v44 = vld [vmem:[#allocation3 + $0x28] sm:$0xff] }
 0x438   : > { %15309 = vmatmul.mubr.msk.f32.gmra.mrb[12].mxu1 %vm4676_vm3, %v23301_v10  ;;  %v20584_v49 = vpop.f32.mrb[46].mxu0 }
 0x439   : > { %15311 = vmatprep.mubr.msk.f32.mxu1 %vm4676_vm3, %v23302_v42  ;;  %v20588_v51 = vpop.f32.mrb[47].mxu0  ;;  %v20638_v42 = vld [vmem:[#allocation3 + $0x30] sm:$0xff] }
 0x43c   : > { %15312 = vmatmul.mubr.msk.f32.gmra.mrb[14].mxu1 %vm4676_vm3, %v23303_v18  ;;  %v20592_v48 = vpop.f32.mrb[48].mxu0 }
 0x43d   : > { %15314 = vmatprep.mubr.msk.f32.mxu1 %vm4676_vm3, %v23304_v4  ;;  %v20596_v3 = vpop.f32.mrb[49].mxu0  ;;  %v20644_v4 = vld [vmem:[#allocation3 + $0x38] sm:$0xff] }
 0x440   : > { %15315 = vmatmul.mubr.msk.f32.gmra.mrb[16].mxu1 %vm4676_vm3, %v23305_v14 }
 0x441   : > { %15317 = vmatprep.mubr.msk.f32.mxu1 %vm4676_vm3, %v23306_v60  ;;  %v20650_v60 = vld [vmem:[#allocation3 + $0x40] sm:$0xff] }
 0x444   : > { %15318 = vmatmul.mubr.msk.f32.gmra.mrb[18].mxu1 %vm4676_vm3, %v23307_v61  ;;  %v20600_v5 = vpop.f32.mrb[50].mxu0 }
 0x445   : > { %15320 = vmatprep.mubr.msk.f32.mxu1 %vm4676_vm3, %v23308_v63  ;;  %v20607_v25 = vpop.f32.mrb[51].mxu0 }
 0x448   : > { %15321 = vmatmul.mubr.msk.f32.gmra.mrb[20].mxu1 %vm4676_vm3, %v23309_v40  ;;  %v20662_v40 = vld [vmem:[#allocation3 + $0x50] sm:$0xff] }
 0x449   : > { %15323 = vmatprep.mubr.msk.f32.mxu1 %vm4676_vm3, %v23310_v9 }
 0x44c   : > { %15324 = vmatmul.mubr.msk.f32.gmra.mrb[22].mxu1 %vm4676_vm3, %v23311_v30  ;;  %v20668_v30 = vld [vmem:[#allocation3 + $0x58] sm:$0xff] }
 0x44d   : > { %15326 = vmatprep.mubr.msk.f32.mxu1 %vm4676_vm3, %v23312_v52 }
 0x44f   : > { %v20619_v17 = vpop.f32.mrb[52].mxu0 }
 0x450   : > { %15327 = vmatmul.mubr.msk.f32.gmra.mrb[24].mxu1 %vm4676_vm3, %v23313_v19  ;;  %v20622_v16 = vpop.f32.mrb[53].mxu0  ;;  %v20674_v19 = vld [vmem:[#allocation3 + $0x60] sm:$0xff] }
 0x451   : > { %15329 = vmatprep.mubr.msk.f32.mxu1 %vm4676_vm3, %v23314_v0  ;;  %v20678_v0 = vld [vmem:[#allocation3 + $0x68] sm:$0xff] }
 0x454   : > { %15330 = vmatmul.mubr.msk.f32.gmra.mrb[26].mxu1 %vm4676_vm3, %v23315_v8  ;;  %v20682_v8 = vld [vmem:[#allocation3 + $0x70] sm:$0xff] }
 0x455   : > { %15332 = vmatprep.mubr.msk.f32.mxu1 %vm4676_vm3, %v23316_v22  ;;  %v20627_v27 = vpop.f32.mrb[54].mxu0  ;;  %v20686_v22 = vld [vmem:[#allocation3 + $0x78] sm:$0xff] }
 0x456   : > { %v20632_v10 = vpop.f32.mrb[55].mxu0 }
 0x458   : > { %15333 = vmatmul.mubr.msk.f32.gmra.mrb[28].mxu1 %vm4676_vm3, %v23317_v62  ;;  %v23321_v62 = vld [vmem:[#allocation86_spill] sm:$0xff] }
 0x459   : > { %15335 = vmatprep.mubr.msk.f32.mxu1 %vm4676_vm3, %v23318_v15  ;;  %v20640_v18 = vpop.f32.mrb[56].mxu0  ;;  %v23322_v15 = vld [vmem:[#allocation91_spill] sm:$0xff] }
 0x45a   : > { %v20646_v14 = vpop.f32.mrb[57].mxu0 }
 0x45c   : > { %15336 = vmatmul.mubr.msk.f32.gmra.mrb[30].mxu1 %vm4676_vm3, %v23319_v54  ;;  %v23323_v54 = vld [vmem:[#allocation97_spill] sm:$0xff] }
 0x45d   : > { %15338 = vmatprep.mubr.msk.f32.mxu1 %vm4676_vm3, %v6290_v23  ;;  %v23324_v23 = vld [vmem:[#allocation102_spill] sm:$0xff] }
 0x460   : > { %15339 = vmatmul.mubr.msk.f32.gmra.mrb[0].mxu1 %vm4676_vm3, %v6291_v13  ;;  %v23325_v13 = vld [vmem:[#allocation111_spill] sm:$0xff] }
 0x461   : > { %15345 = vmatprep.mubr.msk.f32.mxu1 %vm4676_vm3, %v6647_v57  ;;  %v23328_v57 = vld [vmem:[#allocation135_spill] sm:$0xff] }
 0x464   : > { %15346 = vmatmul.mubr.msk.f32.vlgmr.msra.gmra.mrb[2].mxu1 %vm4676_vm3, %v6648_v21  ;;  %v23329_v21 = vld [vmem:[#allocation130_spill] sm:$0xff] }
 0x465   : > { %15348 = vmatprep.mubr.msk.f32.mxu1 %vm4676_vm3, %v20630_v44  ;;  %16174 = vmatpush3.bf16.msra.mxu1 %v20506_v59  ;;  %v20656_v59 = vld [vmem:[#allocation3 + $0x48] sm:$0xff] }
 0x466   : > { %16176 = vmatprep.subr.bf16.mxu1 %v20625_v12 }
 0x467   : > { %v20652_v61 = vpop.f32.mrb[58].mxu0 }
 0x468   : > { %15349 = vmatmul.mubr.msk.f32.gmra.mrb[4].mxu1 %vm4676_vm3, %v20638_v42  ;;  %v20658_v63 = vpop.f32.mrb[59].mxu0 }
 0x469   : > { %15351 = vmatprep.mubr.msk.f32.mxu1 %vm4676_vm3, %v20644_v4 }
 0x46c   : > { %15352 = vmatmul.mubr.msk.f32.gmra.mrb[6].mxu1 %vm4676_vm3, %v20650_v60 }
 0x46d   : > { %15354 = vmatprep.mubr.msk.f32.mxu1 %vm4676_vm3, %v20656_v59  ;;  %v20664_v9 = vpop.f32.mrb[60].mxu0 }
 0x46e   : > { %v20670_v52 = vpop.f32.mrb[61].mxu0 }
 0x46f   : > { %23320 = vst [vmem:[#allocation57_spill] sm:$0xff] %v20670_v52  ;;  %v23341_v52 = vld [vmem:[#allocation21_spill] sm:$0xff] }
 0x470   : > { %15355 = vmatmul.mubr.msk.f32.gmra.mrb[8].mxu1 %vm4676_vm3, %v20662_v40 }
 0x471   : > { %15357 = vmatprep.mubr.msk.f32.mxu1 %vm4676_vm3, %v20668_v30 }
 0x474   : > { %15358 = vmatmul.mubr.msk.f32.gmra.mrb[10].mxu1 %vm4676_vm3, %v20674_v19 }
 0x475   : > { %15360 = vmatprep.mubr.msk.f32.mxu1 %vm4676_vm3, %v20678_v0 }
 0x478   : > { %15361 = vmatmul.mubr.msk.f32.gmra.mrb[12].mxu1 %vm4676_vm3, %v20682_v8 }
 0x479   : > { %15363 = vmatprep.mubr.msk.f32.mxu1 %vm4676_vm3, %v20686_v22 }
 0x47c   : > { %15364 = vmatmul.mubr.msk.f32.gmra.mrb[14].mxu1 %vm4676_vm3, %v23321_v62  ;;  %v23330_v62 = vld [vmem:[#allocation148_spill] sm:$0xff] }
 0x47d   : > { %15366 = vmatprep.mubr.msk.f32.mxu1 %vm4676_vm3, %v23322_v15  ;;  %v23331_v15 = vld [vmem:[#allocation144_spill] sm:$0xff] }
 0x480   : > { %15367 = vmatmul.mubr.msk.f32.gmra.mrb[16].mxu1 %vm4676_vm3, %v23323_v54  ;;  %v23332_v54 = vld [vmem:[#allocation159_spill] sm:$0xff] }
 0x481   : > { %15369 = vmatprep.mubr.msk.f32.mxu1 %vm4676_vm3, %v23324_v23  ;;  %v23333_v23 = vld [vmem:[#allocation167_spill] sm:$0xff] }
 0x484   : > { %15370 = vmatmul.mubr.msk.f32.gmra.mrb[18].mxu1 %vm4676_vm3, %v23325_v13  ;;  %v23334_v13 = vld [vmem:[#allocation170_spill] sm:$0xff] }
 0x485   : > { %15372 = vmatprep.mubr.msk.f32.mxu1 %vm4676_vm3, %v23326_v31  ;;  %v23335_v31 = vld [vmem:[#allocation176_spill] sm:$0xff] }
 0x488   : > { %15373 = vmatmul.mubr.msk.f32.gmra.mrb[20].mxu1 %vm4676_vm3, %v23327_v24  ;;  %v23336_v24 = vld [vmem:[#allocation181_spill] sm:$0xff] }
 0x489   : > { %15375 = vmatprep.mubr.msk.f32.mxu1 %vm4676_vm3, %v23328_v57  ;;  %v23337_v57 = vld [vmem:[#allocation189_spill] sm:$0xff] }
 0x48c   : > { %15376 = vmatmul.mubr.msk.f32.gmra.mrb[22].mxu1 %vm4676_vm3, %v23329_v21  ;;  %v20724_v21 = vld [vmem:[#allocation3 + $0x108] sm:$0xff] }
 0x48d   : > { %15378 = vmatprep.mubr.msk.f32.mxu1 %vm4676_vm3, %v23330_v62  ;;  %v20728_v62 = vld [vmem:[#allocation3 + $0x110] sm:$0xff] }
 0x490   : > { %15379 = vmatmul.mubr.msk.f32.gmra.mrb[24].mxu1 %vm4676_vm3, %v23331_v15  ;;  %v7904_v15 = vld [vmem:[%s22533_s9 + $0x70] sm:$0xff] }
 0x491   : > { %15381 = vmatprep.mubr.msk.f32.mxu1 %vm4676_vm3, %v23332_v54  ;;  %v7905_v54 = vld [vmem:[%s22533_s9 + $0x78] sm:$0xff] }
 0x494   : > { %15382 = vmatmul.mubr.msk.f32.gmra.mrb[26].mxu1 %vm4676_vm3, %v23333_v23  ;;  %v7066_v23 = vsel %vm5809_vm2, %v20360_v45, 0.0  ;;  %v23342_v45 = vld [vmem:[#allocation29_spill] sm:$0xff] }
 0x495   : > { %15384 = vmatprep.mubr.msk.f32.mxu1 %vm4676_vm3, %v23334_v13  ;;  %v16179_v13 = vpack.c.bf16 %v7905_v54, %v7904_v15  ;;  %v23344_v15 = vld [vmem:[#allocation44_spill] sm:$0xff]  ;;  %v23345_v54 = vld [vmem:[#allocation45_spill] sm:$0xff] }
 0x498   : > { %15385 = vmatmul.mubr.msk.f32.gmra.mrb[28].mxu1 %vm4676_vm3, %v23335_v31  ;;  %v23338_v31 = vld [vmem:[#allocation14_spill] sm:$0xff] }
 0x499   : > { %15387 = vmatprep.mubr.msk.f32.mxu1 %vm4676_vm3, %v23336_v24  ;;  %v23339_v24 = vld [vmem:[#allocation13_spill] sm:$0xff] }
 0x49c   : > { %15388 = vmatmul.mubr.msk.f32.gmra.mrb[30].mxu1 %vm4676_vm3, %v23337_v57  ;;  %v23340_v57 = vld [vmem:[#allocation22_spill] sm:$0xff] }
 0x49d   : > { %15390 = vmatprep.mubr.msk.f32.mxu1 %vm4676_vm3, %v20724_v21 }
 0x4a0   : > { %15391 = vmatmul.mubr.msk.f32.gmra.mrb[0].mxu1 %vm4676_vm3, %v20728_v62 }
 0x4a1   : > { %15397 = vmatprep.mubr.msk.f32.mxu1 %vm4676_vm3, %v7066_v23  ;;  %v23343_v23 = vld [vmem:[#allocation32_spill] sm:$0xff] }
 0x4a4   : > { %15398 = vmatmul.mubr.msk.f32.vlgmr.msra.gmra.mrb[2].mxu1 %vm4676_vm3, %v23338_v31  ;;  %v23347_v31 = vld [vmem:[#allocation67_spill] sm:$0xff] }
 0x4a5   : > { %15400 = vmatprep.mubr.msk.f32.mxu1 %vm4676_vm3, %v23339_v24  ;;  %16178 = vmatpush3.bf16.msra.mxu1 %v20625_v12  ;;  %v23346_v12 = vld [vmem:[#allocation64_spill] sm:$0xff] }
 0x4a6   : > { %16180 = vmatprep.subr.bf16.mxu1 %v16179_v13  ;;  %v23348_v24 = vld [vmem:[#allocation84_spill] sm:$0xff] }
 0x4a8   : > { %15401 = vmatmul.mubr.msk.f32.gmra.mrb[4].mxu1 %vm4676_vm3, %v23340_v57  ;;  %v23350_v57 = vld [vmem:[#allocation94_spill] sm:$0xff] }
 0x4a9   : > { %15403 = vmatprep.mubr.msk.f32.mxu1 %vm4676_vm3, %v23341_v52  ;;  %v23349_v52 = vld [vmem:[#allocation85_spill] sm:$0xff] }
 0x4ac   : > { %15404 = vmatmul.mubr.msk.f32.gmra.mrb[6].mxu1 %vm4676_vm3, %v23342_v45  ;;  %v23351_v45 = vld [vmem:[#allocation95_spill] sm:$0xff] }
 0x4ad   : > { %15406 = vmatprep.mubr.msk.f32.mxu1 %vm4676_vm3, %v23343_v23  ;;  %v23352_v23 = vld [vmem:[#allocation107_spill] sm:$0xff] }
 0x4b0   : > { %15407 = vmatmul.mubr.msk.f32.gmra.mrb[8].mxu1 %vm4676_vm3, %v23344_v15  ;;  %v23353_v15 = vld [vmem:[#allocation108_spill] sm:$0xff] }
 0x4b1   : > { %15409 = vmatprep.mubr.msk.f32.mxu1 %vm4676_vm3, %v23345_v54  ;;  %v23354_v54 = vld [vmem:[#allocation121_spill] sm:$0xff] }
 0x4b4   : > { %15410 = vmatmul.mubr.msk.f32.gmra.mrb[10].mxu1 %vm4676_vm3, %v23346_v12  ;;  %v23355_v12 = vld [vmem:[#allocation122_spill] sm:$0xff] }
 0x4b5   : > { %15412 = vmatprep.mubr.msk.f32.mxu1 %vm4676_vm3, %v23347_v31  ;;  %v23356_v31 = vld [vmem:[#allocation141_spill] sm:$0xff] }
 0x4b8   : > { %15413 = vmatmul.mubr.msk.f32.gmra.mrb[12].mxu1 %vm4676_vm3, %v23348_v24  ;;  %v23357_v24 = vld [vmem:[#allocation142_spill] sm:$0xff] }
 0x4b9   : > { %15415 = vmatprep.mubr.msk.f32.mxu1 %vm4676_vm3, %v23349_v52  ;;  %v23358_v52 = vld [vmem:[#allocation154_spill] sm:$0xff] }
 0x4bc   : > { %15416 = vmatmul.mubr.msk.f32.gmra.mrb[14].mxu1 %vm4676_vm3, %v23350_v57  ;;  %v23359_v57 = vld [vmem:[#allocation155_spill] sm:$0xff] }
 0x4bd   : > { %15418 = vmatprep.mubr.msk.f32.mxu1 %vm4676_vm3, %v23351_v45  ;;  %v23360_v45 = vld [vmem:[#allocation165_spill] sm:$0xff] }
 0x4c0   : > { %15419 = vmatmul.mubr.msk.f32.gmra.mrb[16].mxu1 %vm4676_vm3, %v23352_v23  ;;  %v23361_v23 = vld [vmem:[#allocation166_spill] sm:$0xff] }
 0x4c1   : > { %15421 = vmatprep.mubr.msk.f32.mxu1 %vm4676_vm3, %v23353_v15  ;;  %v23362_v15 = vld [vmem:[#allocation174_spill] sm:$0xff] }
 0x4c4   : > { %15422 = vmatmul.mubr.msk.f32.gmra.mrb[18].mxu1 %vm4676_vm3, %v23354_v54  ;;  %v23363_v54 = vld [vmem:[#allocation175_spill] sm:$0xff] }
 0x4c5   : > { %15424 = vmatprep.mubr.msk.f32.mxu1 %vm4676_vm3, %v23355_v12  ;;  %v23364_v12 = vld [vmem:[#allocation187_spill] sm:$0xff] }
 0x4c8   : > { %15425 = vmatmul.mubr.msk.f32.gmra.mrb[20].mxu1 %vm4676_vm3, %v23356_v31  ;;  %v23365_v31 = vld [vmem:[#allocation188_spill] sm:$0xff] }
 0x4c9   : > { %15427 = vmatprep.mubr.msk.f32.mxu1 %vm4676_vm3, %v23357_v24  ;;  %v7096_v24 = vsel %vm5839_vm1, %v20161_v34, 0.0  ;;  %v17230_v34 = vld [vmem:[#allocation3 + $0x27] sm:$0xff] }
 0x4cc   : > { %15428 = vmatmul.mubr.msk.f32.gmra.mrb[22].mxu1 %vm4676_vm3, %v23358_v52  ;;  %v23366_v52 = vld [vmem:[#allocation194_spill] sm:$0xff] }
 0x4cd   : > { %15430 = vmatprep.mubr.msk.f32.mxu1 %vm4676_vm3, %v23359_v57  ;;  %v7097_v57 = vsel %vm5840_vm12, %v23366_v52, 0.0  ;;  %v23371_v52 = vld [vmem:[#allocation40_spill] sm:$0xff] }
 0x4d0   : > { %15431 = vmatmul.mubr.msk.f32.gmra.mrb[24].mxu1 %vm4676_vm3, %v23360_v45  ;;  %v8323_v45 = vld [vmem:[%s22533_s9 + $0x80] sm:$0xff] }
 0x4d1   : > { %15433 = vmatprep.mubr.msk.f32.mxu1 %vm4676_vm3, %v23361_v23  ;;  %v8324_v23 = vld [vmem:[%s22533_s9 + $0x88] sm:$0xff] }
 0x4d4   : > { %15434 = vmatmul.mubr.msk.f32.gmra.mrb[26].mxu1 %vm4676_vm3, %v23362_v15  ;;  %v16183_v15 = vpack.c.bf16 %v8324_v23, %v8323_v45  ;;  %v23375_v45 = vld [vmem:[#allocation80_spill] sm:$0xff] }
 0x4d5   : > { %15436 = vmatprep.mubr.msk.f32.mxu1 %vm4676_vm3, %v23363_v54  ;;  %v17231_v54 = vld [vmem:[#allocation3 + $0x2f] sm:$0xff]  ;;  %v23377_v23 = vld [vmem:[#allocation132_spill] sm:$0xff] }
 0x4d8   : > { %15437 = vmatmul.mubr.msk.f32.gmra.mrb[28].mxu1 %vm4676_vm3, %v23364_v12  ;;  %v7486_v12 = vsel %vm23368_vm7, %v17231_v54, 0.0  ;;  %v23380_v54 = vld [vmem:[#allocation138_spill] sm:$0xff] }
 0x4d9   : > { %15439 = vmatprep.mubr.msk.f32.mxu1 %vm4676_vm3, %v23365_v31  ;;  %v23369_v31 = vld [vmem:[#allocation36_spill] sm:$0xff] }
 0x4dc   : > { %15440 = vmatmul.mubr.msk.f32.gmra.mrb[30].mxu1 %vm4676_vm3, %v20195_v33  ;;  %v7485_v33 = vsel %vm23367_vm10, %v17230_v34, 0.0  ;;  %v23378_v34 = vld [vmem:[#allocation136_spill] sm:$0xff] }
 0x4dd   : > { %15442 = vmatprep.mubr.msk.f32.mxu1 %vm4676_vm3, %v7096_v24  ;;  %v23370_v24 = vld [vmem:[#allocation37_spill] sm:$0xff] }
 0x4e0   : > { %15443 = vmatmul.mubr.msk.f32.gmra.mrb[0].mxu1 %vm4676_vm3, %v7097_v57  ;;  %v23373_v57 = vld [vmem:[#allocation56_spill] sm:$0xff] }
 0x4e1   : > { %15449 = vmatprep.mubr.msk.f32.mxu1 %vm4676_vm3, %v7485_v33  ;;  %v23379_v33 = vld [vmem:[#allocation137_spill] sm:$0xff] }
 0x4e4   : > { %15450 = vmatmul.mubr.msk.f32.vlgmr.msra.gmra.mrb[2].mxu1 %vm4676_vm3, %v7486_v12  ;;  %v23381_v12 = vld [vmem:[#allocation150_spill] sm:$0xff] }
 0x4e5   : > { %15452 = vmatprep.mubr.msk.f32.mxu1 %vm4676_vm3, %v23369_v31  ;;  %16182 = vmatpush3.bf16.msra.mxu1 %v16179_v13  ;;  %v23376_v13 = vld [vmem:[#allocation81_spill] sm:$0xff]  ;;  %v23382_v31 = vld [vmem:[#allocation151_spill] sm:$0xff] }
 0x4e6   : > { %16184 = vmatprep.subr.bf16.mxu1 %v16183_v15 }
 0x4e8   : > { %15453 = vmatmul.mubr.msk.f32.gmra.mrb[4].mxu1 %vm4676_vm3, %v23370_v24  ;;  %v23383_v24 = vld [vmem:[#allocation161_spill] sm:$0xff] }
 0x4e9   : > { %15455 = vmatprep.mubr.msk.f32.mxu1 %vm4676_vm3, %v23371_v52  ;;  %v23384_v52 = vld [vmem:[#allocation162_spill] sm:$0xff] }
 0x4ec   : > { %15456 = vmatmul.mubr.msk.f32.gmra.mrb[6].mxu1 %vm4676_vm3, %v23372_v20  ;;  %v23385_v20 = vld [vmem:[#allocation180_spill] sm:$0xff] }
 0x4ed   : > { %15458 = vmatprep.mubr.msk.f32.mxu1 %vm4676_vm3, %v23373_v57  ;;  %v23386_v57 = vld [vmem:[#allocation182_spill] sm:$0xff] }
 0x4f0   : > { %15459 = vmatmul.mubr.msk.f32.gmra.mrb[8].mxu1 %vm4676_vm3, %v23374_v41  ;;  %v23387_v41 = vld [vmem:[#allocation183_spill] sm:$0xff] }
 0x4f1   : > { %15461 = vmatprep.mubr.msk.f32.mxu1 %vm4676_vm3, %v23375_v45  ;;  %v23388_v45 = vld [vmem:[#allocation184_spill] sm:$0xff] }
 0x4f4   : > { %15462 = vmatmul.mubr.msk.f32.gmra.mrb[10].mxu1 %vm4676_vm3, %v23376_v13  ;;  %v23389_v13 = vld [vmem:[#allocation192_spill] sm:$0xff] }
 0x4f5   : > { %15464 = vmatprep.mubr.msk.f32.mxu1 %vm4676_vm3, %v23377_v23  ;;  %v23390_v23 = vld [vmem:[#allocation193_spill] sm:$0xff] }
 0x4f8   : > { %15465 = vmatmul.mubr.msk.f32.gmra.mrb[12].mxu1 %vm4676_vm3, %v23378_v34  ;;  %v23391_v34 = vld [vmem:[#allocation195_spill] sm:$0xff] }
 0x4f9   : > { %15467 = vmatprep.mubr.msk.f32.mxu1 %vm4676_vm3, %v23379_v33  ;;  %v23392_v33 = vld [vmem:[#allocation196_spill] sm:$0xff] }
 0x4fc   : > { %15468 = vmatmul.mubr.msk.f32.gmra.mrb[14].mxu1 %vm4676_vm3, %v23380_v54  ;;  %v23393_v54 = vld [vmem:[#allocation197_spill] sm:$0xff] }
 0x4fd   : > { %15470 = vmatprep.mubr.msk.f32.mxu1 %vm4676_vm3, %v23381_v12  ;;  %v7483_v12 = vld [vmem:[#allocation3 + $0x117] sm:$0xff] }
 0x500   : > { %15471 = vmatmul.mubr.msk.f32.gmra.mrb[16].mxu1 %vm4676_vm3, %v23382_v31  ;;  %v7484_v31 = vld [vmem:[#allocation3 + $0x11f] sm:$0xff] }
 0x501   : > { %15473 = vmatprep.mubr.msk.f32.mxu1 %vm4676_vm3, %v23383_v24  ;;  %v23394_v24 = vld [vmem:[#allocation201_spill] sm:$0xff] }
 0x504   : > { %15474 = vmatmul.mubr.msk.f32.gmra.mrb[18].mxu1 %vm4676_vm3, %v23384_v52  ;;  %v7515_v52 = vsel %vm4969_vm13, %v7483_v12, 0.0  ;;  %vm23395_vm13 = vcmp.eq.s32.totalorder %v23210_v56, 1  ;;  %v23400_v12 = vld [vmem:[#allocation43_spill] sm:$0xff] }
 0x505   : > { %15476 = vmatprep.mubr.msk.f32.mxu1 %vm4676_vm3, %v23385_v20  ;;  %v7516_v20 = vsel %vm4970_vm14, %v7484_v31, 0.0  ;;  %v23401_v31 = vld [vmem:[#allocation60_spill] sm:$0xff]  ;;  %v23402_v56 = vld [vmem:[#allocation63_spill] sm:$0xff] }
 0x508   : > { %15477 = vmatmul.mubr.msk.f32.gmra.mrb[20].mxu1 %vm4676_vm3, %v23386_v57  ;;  %v7899_v57 = vld [vmem:[#allocation3 + $0x100] sm:$0xff] }
 0x509   : > { %15479 = vmatprep.mubr.msk.f32.mxu1 %vm4676_vm3, %v23387_v41  ;;  %v7902_v41 = vld [vmem:[#allocation3 + $0x118] sm:$0xff] }
 0x50c   : > { %15480 = vmatmul.mubr.msk.f32.gmra.mrb[22].mxu1 %vm4676_vm3, %v23388_v45  ;;  %v7903_v45 = vld [vmem:[#allocation3 + $0x120] sm:$0xff] }
 0x50d   : > { %15482 = vmatprep.mubr.msk.f32.mxu1 %vm4676_vm3, %v23389_v13  ;;  %v17232_v13 = vld [vmem:[#allocation3 + $0x29] sm:$0xff] }
 0x510   : > { %15483 = vmatmul.mubr.msk.f32.gmra.mrb[24].mxu1 %vm4676_vm3, %v23390_v23  ;;  %v8291_v23 = vsel %vm5809_vm2, %v17232_v13, 0.0  ;;  %v8290_v13 = vld [vmem:[#allocation3 + $0x121] sm:$0xff]  ;;  %vm8891_vm2 = vcmp.gt.f32.partialorder %v8883_v11, 0.5 }
 0x511   : > { %15485 = vmatprep.mubr.msk.f32.mxu1 %vm4676_vm3, %v23391_v34  ;;  %v8260_v34 = vld [vmem:[#allocation3 + $0x31] sm:$0xff] }
 0x514   : > { %15486 = vmatmul.mubr.msk.f32.gmra.mrb[26].mxu1 %vm4676_vm3, %v23392_v33  ;;  %v8292_v33 = vsel %vm23395_vm13, %v8260_v34, 0.0  ;;  %v8322_v34 = vsel %vm5840_vm12, %v8290_v13, 0.0 }
 0x515   : > { %15488 = vmatprep.mubr.msk.f32.mxu1 %vm4676_vm3, %v23393_v54  ;;  %v23398_v54 = vld [vmem:[#allocation30_spill] sm:$0xff] }
 0x518   : > { %15489 = vmatmul.mubr.msk.f32.gmra.mrb[28].mxu1 %vm4676_vm3, %v20216_v43  ;;  %v7883_v43 = vld [vmem:[#allocation3 + $0x80] sm:$0xff] }
 0x519   : > { %15491 = vmatprep.mubr.msk.f32.mxu1 %vm4676_vm3, %v20221_v37  ;;  %v7884_v37 = vld [vmem:[#allocation3 + $0x88] sm:$0xff] }
 0x51c   : > { %15492 = vmatmul.mubr.msk.f32.gmra.mrb[30].mxu1 %vm4676_vm3, %v23394_v24  ;;  %v23403_v24 = vld [vmem:[#allocation82_spill] sm:$0xff] }
 0x51d   : > { %15494 = vmatprep.mubr.msk.f32.mxu1 %vm4676_vm3, %v7515_v52  ;;  %v23404_v52 = vld [vmem:[#allocation83_spill] sm:$0xff] }
 0x520   : > { %15495 = vmatmul.mubr.msk.f32.gmra.mrb[0].mxu1 %vm4676_vm3, %v7516_v20  ;;  %v23405_v20 = vld [vmem:[#allocation92_spill] sm:$0xff] }
 0x521   : > { %15501 = vmatprep.mubr.msk.f32.mxu1 %vm4676_vm3, %v20630_v44  ;;  %v7887_v44 = vld [vmem:[#allocation3 + $0xa0] sm:$0xff] }
 0x524   : > { %15502 = vmatmul.mubr.msk.f32.vlgmr.msra.gmra.mrb[2].mxu1 %vm4676_vm3, %v20638_v42  ;;  %v7888_v42 = vld [vmem:[#allocation3 + $0xa8] sm:$0xff] }
 0x525   : > { %15504 = vmatprep.mubr.msk.f32.mxu1 %vm4676_vm3, %v20644_v4  ;;  %16186 = vmatpush3.bf16.msra.mxu1 %v16183_v15  ;;  %v7889_v4 = vld [vmem:[#allocation3 + $0xb0] sm:$0xff]  ;;  %v7898_v15 = vld [vmem:[#allocation3 + $0xf8] sm:$0xff] }
 0x528   : > { %15505 = vmatmul.mubr.msk.f32.gmra.mrb[4].mxu1 %vm4676_vm3, %v20650_v60  ;;  %v7890_v60 = vld [vmem:[#allocation3 + $0xb8] sm:$0xff] }
 0x529   : > { %15507 = vmatprep.mubr.msk.f32.mxu1 %vm4676_vm3, %v20656_v59  ;;  %v7891_v59 = vld [vmem:[#allocation3 + $0xc0] sm:$0xff] }
 0x52c   : > { %15508 = vmatmul.mubr.msk.f32.gmra.mrb[6].mxu1 %vm4676_vm3, %v20662_v40  ;;  %v7892_v40 = vld [vmem:[#allocation3 + $0xc8] sm:$0xff] }
 0x52d   : > { %15510 = vmatprep.mubr.msk.f32.mxu1 %vm4676_vm3, %v20668_v30  ;;  %v7893_v30 = vld [vmem:[#allocation3 + $0xd0] sm:$0xff] }
 0x530   : > { %15511 = vmatmul.mubr.msk.f32.gmra.mrb[8].mxu1 %vm4676_vm3, %v20674_v19  ;;  %v7894_v19 = vld [vmem:[#allocation3 + $0xd8] sm:$0xff] }
 0x531   : > { %15513 = vmatprep.mubr.msk.f32.mxu1 %vm4676_vm3, %v20678_v0  ;;  %v7895_v0 = vld [vmem:[#allocation3 + $0xe0] sm:$0xff] }
 0x534   : > { %15514 = vmatmul.mubr.msk.f32.gmra.mrb[10].mxu1 %vm4676_vm3, %v20682_v8  ;;  %v7896_v8 = vld [vmem:[#allocation3 + $0xe8] sm:$0xff] }
 0x535   : > { %15516 = vmatprep.mubr.msk.f32.mxu1 %vm4676_vm3, %v20686_v22  ;;  %v7897_v22 = vld [vmem:[#allocation3 + $0xf0] sm:$0xff] }
 0x538   : > { %15517 = vmatmul.mubr.msk.f32.gmra.mrb[12].mxu1 %vm4676_vm3, %v7883_v43  ;;  %v23406_v43 = vld [vmem:[#allocation93_spill] sm:$0xff] }
 0x539   : > { %15519 = vmatprep.mubr.msk.f32.mxu1 %vm4676_vm3, %v7884_v37  ;;  %v23407_v37 = vld [vmem:[#allocation105_spill] sm:$0xff] }
 0x53c   : > { %15520 = vmatmul.mubr.msk.f32.gmra.mrb[14].mxu1 %vm4676_vm3, %v7885_v26  ;;  %v23408_v26 = vld [vmem:[#allocation106_spill] sm:$0xff] }
 0x53d   : > { %15522 = vmatprep.mubr.msk.f32.mxu1 %vm4676_vm3, %v7886_v32  ;;  %v23409_v32 = vld [vmem:[#allocation119_spill] sm:$0xff] }
 0x540   : > { %15523 = vmatmul.mubr.msk.f32.gmra.mrb[16].mxu1 %vm4676_vm3, %v7887_v44  ;;  %v23410_v44 = vld [vmem:[#allocation120_spill] sm:$0xff] }
 0x541   : > { %15525 = vmatprep.mubr.msk.f32.mxu1 %vm4676_vm3, %v7888_v42  ;;  %v23411_v42 = vld [vmem:[#allocation139_spill] sm:$0xff] }
 0x544   : > { %15526 = vmatmul.mubr.msk.f32.gmra.mrb[18].mxu1 %vm4676_vm3, %v7889_v4  ;;  %v23412_v4 = vld [vmem:[#allocation140_spill] sm:$0xff] }
 0x545   : > { %15528 = vmatprep.mubr.msk.f32.mxu1 %vm4676_vm3, %v7890_v60  ;;  %v23413_v60 = vld [vmem:[#allocation152_spill] sm:$0xff] }
 0x548   : > { %15529 = vmatmul.mubr.msk.f32.gmra.mrb[20].mxu1 %vm4676_vm3, %v7891_v59  ;;  %v23414_v59 = vld [vmem:[#allocation153_spill] sm:$0xff] }
 0x549   : > { %15531 = vmatprep.mubr.msk.f32.mxu1 %vm4676_vm3, %v7892_v40  ;;  %v23415_v40 = vld [vmem:[#allocation163_spill] sm:$0xff] }
 0x54c   : > { %15532 = vmatmul.mubr.msk.f32.gmra.mrb[22].mxu1 %vm4676_vm3, %v7893_v30  ;;  %v23416_v30 = vld [vmem:[#allocation164_spill] sm:$0xff] }
 0x54d   : > { %15534 = vmatprep.mubr.msk.f32.mxu1 %vm4676_vm3, %v7894_v19  ;;  %v23417_v19 = vld [vmem:[#allocation172_spill] sm:$0xff] }
 0x550   : > { %15535 = vmatmul.mubr.msk.f32.gmra.mrb[24].mxu1 %vm4676_vm3, %v7895_v0  ;;  %v23418_v0 = vld [vmem:[#allocation173_spill] sm:$0xff] }
 0x551   : > { %15537 = vmatprep.mubr.msk.f32.mxu1 %vm4676_vm3, %v7896_v8  ;;  %v23419_v8 = vld [vmem:[#allocation185_spill] sm:$0xff] }
 0x554   : > { %15538 = vmatmul.mubr.msk.f32.gmra.mrb[26].mxu1 %vm4676_vm3, %v7897_v22  ;;  %v23420_v22 = vld [vmem:[#allocation186_spill] sm:$0xff] }
 0x555   : > { %15540 = vmatprep.mubr.msk.f32.mxu1 %vm4676_vm3, %v7898_v15  ;;  %v23421_v15 = vld [vmem:[#allocation198_spill] sm:$0xff] }
 0x558   : > { %15541 = vmatmul.mubr.msk.f32.gmra.mrb[28].mxu1 %vm4676_vm3, %v7899_v57  ;;  %v8289_v57 = vld [vmem:[#allocation3 + $0x119] sm:$0xff] }
 0x559   : > { %15543 = vmatprep.mubr.msk.f32.mxu1 %vm4676_vm3, %v20724_v21  ;;  %v23396_v21 = vld [vmem:[#allocation19_spill] sm:$0xff] }
 0x55c   : > { %15544 = vmatmul.mubr.msk.f32.gmra.mrb[30].mxu1 %vm4676_vm3, %v20728_v62  ;;  %v23397_v62 = vld [vmem:[#allocation27_spill] sm:$0xff] }
 0x55d   : > { %15546 = vmatprep.mubr.msk.f32.mxu1 %vm4676_vm3, %v7902_v41  ;;  %v23422_v41 = vld [vmem:[#allocation199_spill] sm:$0xff] }
 0x560   : > { %15547 = vmatmul.mubr.msk.f32.gmra.mrb[0].mxu1 %vm4676_vm3, %v7903_v45  ;;  %v8321_v45 = vsel %vm5839_vm1, %v8289_v57, 0.0  ;;  %vm8870_vm1 = vcmask 261120  }
 0x561   : > { %15553 = vmatprep.mubr.msk.f32.mxu1 %vm4676_vm3, %v8291_v23  ;;  %v23423_v23 = vld [vmem:[#allocation200_spill] sm:$0xff] }
 0x564   : > { %15554 = vmatmul.mubr.msk.f32.vlgmr.msra.gmra.mrb[2].mxu1 %vm4676_vm3, %v8292_v33  ;;  %v8750_v33 = vld [vmem:[%s22528_s4 + $0x8] sm:$0xff] }
 0x565   : > { %15556 = vmatprep.mubr.msk.f32.mxu1 %vm4676_vm3, %v23396_v21  ;;  %8829 = vmatprep.mubr.f32.mxu0 %v8750_v33  ;;  %v8885_v21 = vld [vmem:[%s22526_s2 + $0x10] sm:$0xff] }
 0x566   : > { %vm8893_vm14 = vcmp.gt.f32.partialorder %v8885_v21, 0.5 }
 0x568   : > { %15557 = vmatmul.mubr.msk.f32.gmra.mrb[4].mxu1 %vm4676_vm3, %v23397_v62  ;;  %v8887_v62 = vld [vmem:[%s22526_s2 + $0x20] sm:$0xff] }
 0x569   : > { %15559 = vmatprep.mubr.msk.f32.mxu1 %vm4676_vm3, %v23398_v54  ;;  %v23424_v54 = vmov 0   ;;  %vm8895_vm15 = vcmp.gt.f32.partialorder %v8887_v62, 0.5 }
 0x56c   : > { %15560 = vmatmul.mubr.msk.f32.gmra.mrb[6].mxu1 %vm4676_vm3, %v23399_v53  ;;  %v21012_v53 = vsel %vm8891_vm2, 1, %v23424_v54 }
 0x56d   : > { %15562 = vmatprep.mubr.msk.f32.mxu1 %vm4676_vm3, %v23400_v12  ;;  %v8886_v12 = vld [vmem:[%s22526_s2 + $0x18] sm:$0xff]  ;;  %8916 = vperm.xlu1 %17201, %v21012_v53  }
 0x56e   : > { %vm8894_vm4 = vcmp.gt.f32.partialorder %v8886_v12, 0.5 }
 0x570   : > { %15563 = vmatmul.mubr.msk.f32.gmra.mrb[8].mxu1 %vm4676_vm3, %v23401_v31 }
 0x571   : > { %15565 = vmatprep.mubr.msk.f32.mxu1 %vm4676_vm3, %v23402_v56  ;;  %v8889_v56 = vld [vmem:[%s22526_s2 + $0x30] sm:$0xff] }
 0x572   : > { %vm8897_vm8 = vcmp.gt.f32.partialorder %v8889_v56, 0.5 }
 0x574   : > { %15566 = vmatmul.mubr.msk.f32.gmra.mrb[10].mxu1 %vm4676_vm3, %v23403_v24  ;;  %v8967_v24 = vld [vmem:[%s22535_s11 + $0x20] sm:$0xff] }
 0x575   : > { %15568 = vmatprep.mubr.msk.f32.mxu1 %vm4676_vm3, %v23404_v52  ;;  %v8968_v52 = vld [vmem:[%s22535_s11 + $0x28] sm:$0xff] }
 0x578   : > { %15569 = vmatmul.mubr.msk.f32.gmra.mrb[12].mxu1 %vm4676_vm3, %v23405_v20  ;;  %v21031_v20 = vsel %vm8893_vm14, 1, %v23424_v54 }
 0x579   : > { %15571 = vmatprep.mubr.msk.f32.mxu1 %vm4676_vm3, %v23406_v43  ;;  %v21035_v43 = vsel %vm8895_vm15, 1, %v23424_v54  ;;  %8922 = vperm.xlu1 %17201, %v21031_v20  }
 0x57c   : > { %15572 = vmatmul.mubr.msk.f32.gmra.mrb[14].mxu1 %vm4676_vm3, %v23407_v37  ;;  %v16219_v37 = vpack.c.bf16 %v8968_v52, %v8967_v24 }
 0x57d   : > { %15574 = vmatprep.mubr.msk.f32.mxu1 %vm4676_vm3, %v23408_v26  ;;  %v8888_v26 = vld [vmem:[%s22526_s2 + $0x28] sm:$0xff] }
 0x57e   : > { %16220 = vmatprep.subr.bf16.mxu1 %v16219_v37  ;;  %vm8896_vm9 = vcmp.gt.f32.partialorder %v8888_v26, 0.5 }
 0x57f   : > { %16222 = vmatpush3.bf16.msra.mxu1 %v16219_v37 }
 0x580   : > { %15575 = vmatmul.mubr.msk.f32.gmra.mrb[16].mxu1 %vm4676_vm3, %v23409_v32  ;;  %v21042_v32 = vsel %vm8894_vm4, 1, %v23424_v54 }
 0x581   : > { %15577 = vmatprep.mubr.msk.f32.mxu1 %vm4676_vm3, %v23410_v44  ;;  %v21046_v44 = vsel %vm8897_vm8, 1, %v23424_v54  ;;  %8925 = vperm.xlu1 %17201, %v21042_v32  }
 0x584   : > { %15578 = vmatmul.mubr.msk.f32.gmra.mrb[18].mxu1 %vm4676_vm3, %v23411_v42  ;;  %v8890_v42 = vld [vmem:[%s22526_s2 + $0x38] sm:$0xff] }
 0x585   : > { %15580 = vmatprep.mubr.msk.f32.mxu1 %vm4676_vm3, %v23412_v4  ;;  %v21053_v4 = vsel %vm8896_vm9, 1, %v23424_v54  ;;  %vm8898_vm0 = vcmp.gt.f32.partialorder %v8890_v42, 0.5 }
 0x586   : > { %8931 = vperm.xlu1 %17201, %v21053_v4  }
 0x588   : > { %15581 = vmatmul.mubr.msk.f32.gmra.mrb[20].mxu1 %vm4676_vm3, %v23413_v60  ;;  %v21058_v60 = vsel %vm8898_vm0, 1, %v23424_v54 }
 0x589   : > { %15583 = vmatprep.mubr.msk.f32.mxu1 %vm4676_vm3, %v23414_v59  ;;  %v23425_v59 = vmov 1  }
 0x58a   : > { %8937 = vperm.xlu1 %17201, %v21058_v60  }
 0x58c   : > { %15584 = vmatmul.mubr.msk.f32.gmra.mrb[22].mxu1 %vm4676_vm3, %v23415_v40 }
 0x58d   : > { %15586 = vmatprep.mubr.msk.f32.mxu1 %vm4676_vm3, %v23416_v30  ;;  %v21070_v30 = vld [vmem:[%s22534_s10] ss:$0 sm:$0xff] }
 0x58e   : > { %17204 = vset.pattern.permute.xlu1 %v23425_v59 }
 0x590   : > { %15587 = vmatmul.mubr.msk.f32.gmra.mrb[24].mxu1 %vm4676_vm3, %v23417_v19 }
 0x591   : > { %15589 = vmatprep.mubr.msk.f32.mxu1 %vm4676_vm3, %v23418_v0 }
 0x594   : > { %15590 = vmatmul.mubr.msk.f32.gmra.mrb[26].mxu1 %vm4676_vm3, %v23419_v8 }
 0x595   : > { %15592 = vmatprep.mubr.msk.f32.mxu1 %vm4676_vm3, %v23420_v22 }
 0x598   : > { %15593 = vmatmul.mubr.msk.f32.gmra.mrb[28].mxu1 %vm4676_vm3, %v23421_v15 }
 0x599   : > { %15595 = vmatprep.mubr.msk.f32.mxu1 %vm4676_vm3, %v23422_v41 }
 0x59c   : > { %15596 = vmatmul.mubr.msk.f32.gmra.mrb[30].mxu1 %vm4676_vm3, %v23423_v23 }
 0x59d   : > { %15598 = vmatprep.mubr.msk.f32.mxu1 %vm4676_vm3, %v8321_v45 }
 0x5a0   : > { %15599 = vmatmul.mubr.msk.f32.gmra.mrb[0].mxu1 %vm4676_vm3, %v8322_v34  ;;  %vm8892_vm3 = vcmp.gt.f32.partialorder %v8884_v58, 0.5 }
 0x5a1   : > { %v21019_v31 = vsel %vm8892_vm3, 1, %v23424_v54 }
 0x5a2   : > { %8919 = vperm.xlu0 %17202, %v21019_v31   ;;  %9241 = vperm.xlu1 %17204, %v21019_v31  }
 0x5a6   : > { %8928 = vperm.xlu0 %17202, %v21035_v43   ;;  %9244 = vperm.xlu1 %17204, %v21031_v20  }
 0x5aa   : > { %8934 = vperm.xlu0 %17202, %v21046_v44   ;;  %9250 = vperm.xlu1 %17204, %v21035_v43  }
 0x5ae   : > { %17203 = vset.pattern.permute.xlu0 %v23425_v59  ;;  %9256 = vperm.xlu1 %17204, %v21046_v44  }
 0x5af   : > { %9238 = vperm.xlu0 %17203, %v21012_v53  }
 0x5b2   : > { %17205 = vset.pattern.permute.xlu1 %v23424_v54 }
 0x5b3   : > { %9247 = vperm.xlu0 %17203, %v21042_v32   ;;  %10412 = vperm.xlu1 %17205, %v21012_v53  }
 0x5b7   : > { %9253 = vperm.xlu0 %17203, %v21053_v4   ;;  %10418 = vperm.xlu1 %17205, %v21031_v20  }
 0x5bb   : > { %9259 = vperm.xlu0 %17203, %v21058_v60   ;;  %10421 = vperm.xlu1 %17205, %v21042_v32  }
 0x5bf   : > { %17206 = vset.pattern.permute.xlu0 %v23424_v54  ;;  %10427 = vperm.xlu1 %17205, %v21053_v4  }
 0x5c0   : > { %10415 = vperm.xlu0 %17206, %v21019_v31  }
 0x5c3   : > { %10433 = vperm.xlu1 %17205, %v21058_v60  }
 0x5c4   : > { %10424 = vperm.xlu0 %17206, %v21035_v43  }
 0x5c7   : > { %17208 = vset.pattern.permute.xlu1 %v23425_v59 }
 0x5c8   : > { %10430 = vperm.xlu0 %17206, %v21046_v44   ;;  %10737 = vperm.xlu1 %17208, %v21019_v31  }
 0x5cc   : > { %17207 = vset.pattern.permute.xlu0 %v23425_v59  ;;  %10740 = vperm.xlu1 %17208, %v21031_v20  }
 0x5cd   : > { %10734 = vperm.xlu0 %17207, %v21012_v53  }
 0x5d0   : > { %10746 = vperm.xlu1 %17208, %v21035_v43  }
 0x5d1   : > { %10743 = vperm.xlu0 %17207, %v21042_v32  }
 0x5d4   : > { %10752 = vperm.xlu1 %17208, %v21046_v44  }
 0x5d5   : > { %10749 = vperm.xlu0 %17207, %v21053_v4  }
 0x5d8   : > { %17209 = vset.pattern.permute.xlu1 %v23424_v54 }
 0x5d9   : > { %10755 = vperm.xlu0 %17207, %v21058_v60  }
 0x5dd   : > { %17210 = vset.pattern.permute.xlu0 %v23424_v54 }
 0x637   : > { %v15555_v40 = vpop.f32.mrb[2].mxu1 }
 0x638   : > { %v16525_v19 = vadd.f32 %v15555_v40, %v20268_v35  ;;  %v8487_v0 = vpop.f32.mrb[3].mxu1 }
 0x639   : > { %v16526_v8 = vadd.f32 %v8487_v0, %v20271_v38 }
 0x63a   : > { %v8686_v22 = vadd.f32 %v16525_v19, %v21070_v30 }
 0x63b   : > { %v8685_v15 = vadd.f32 %v16526_v8, %v21070_v30  ;;  %v15558_v57 = vpop.f32.mrb[4].mxu1 }
 0x63c   : > { %v8718_v41 = vmax.f32 %v8686_v22, 0.0  ;;  %v16527_v45 = vadd.f32 %v15558_v57, %v20536_v6  ;;  %v8497_v13 = vpop.f32.mrb[5].mxu1 }
 0x63d   : > { %v8717_v23 = vmax.f32 %v8685_v15, 0.0  ;;  %v16528_v34 = vadd.f32 %v8497_v13, %v20538_v50 }
 0x63e   : > { %v8688_v35 = vadd.f32 %v16527_v45, %v21070_v30 }
 0x63f   : > { %v21083_v38 = vpack.c.bf16 %v8718_v41, %v8717_v23  ;;  %v8687_v33 = vadd.f32 %v16528_v34, %v21070_v30  ;;  %v15561_v11 = vpop.f32.mrb[6].mxu1 }
 0x640   : > { %v8720_v21 = vmax.f32 %v8688_v35, 0.0  ;;  %v16529_v6 = vadd.f32 %v15561_v11, %v20544_v1  ;;  %v8507_v58 = vpop.f32.mrb[7].mxu1 }
 0x641   : > { %v8719_v62 = vmax.f32 %v8687_v33, 0.0  ;;  %v16530_v50 = vadd.f32 %v8507_v58, %v20546_v55 }
 0x642   : > { %v8690_v12 = vadd.f32 %v16529_v6, %v21070_v30 }
 0x643   : > { %v21091_v56 = vpack.c.bf16 %v8720_v21, %v8719_v62  ;;  %v8689_v24 = vadd.f32 %v16530_v50, %v21070_v30  ;;  %v15564_v52 = vpop.f32.mrb[8].mxu1 }
 0x644   : > { %v8722_v37 = vmax.f32 %v8690_v12, 0.0  ;;  %v16531_v26 = vadd.f32 %v15564_v52, %v20552_v47  ;;  %v8517_v42 = vpop.f32.mrb[9].mxu1 }
 0x645   : > { %v8721_v1 = vmax.f32 %v8689_v24, 0.0  ;;  %v16532_v40 = vadd.f32 %v8517_v42, %v20554_v7 }
 0x646   : > { %v8692_v55 = vadd.f32 %v16531_v26, %v21070_v30 }
 0x647   : > { %v21100_v19 = vpack.c.bf16 %v8722_v37, %v8721_v1  ;;  %v8691_v0 = vadd.f32 %v16532_v40, %v21070_v30  ;;  %v15567_v8 = vpop.f32.mrb[10].mxu1 }
 0x648   : > { %v8724_v22 = vmax.f32 %v8692_v55, 0.0  ;;  %v16533_v47 = vadd.f32 %v15567_v8, %v20560_v29  ;;  %v8527_v15 = vpop.f32.mrb[11].mxu1 }
 0x649   : > { %v8723_v57 = vmax.f32 %v8691_v0, 0.0  ;;  %v16534_v7 = vadd.f32 %v8527_v15, %v20562_v28 }
 0x64a   : > { %v8694_v41 = vadd.f32 %v16533_v47, %v21070_v30 }
 0x64b   : > { %v21108_v45 = vpack.c.bf16 %v8724_v22, %v8723_v57  ;;  %v8693_v13 = vadd.f32 %v16534_v7, %v21070_v30  ;;  %v15570_v23 = vpop.f32.mrb[12].mxu1 }
 0x64c   : > { %v8726_v34 = vmax.f32 %v8694_v41, 0.0  ;;  %v16535_v35 = vadd.f32 %v15570_v23, %v20568_v2  ;;  %v8537_v33 = vpop.f32.mrb[13].mxu1 }
 0x64d   : > { %v8725_v29 = vmax.f32 %v8693_v13, 0.0  ;;  %v16536_v28 = vadd.f32 %v8537_v33, %v20572_v39 }
 0x64e   : > { %v8696_v11 = vadd.f32 %v16535_v35, %v21070_v30 }
 0x64f   : > { %v21117_v21 = vpack.c.bf16 %v8726_v34, %v8725_v29  ;;  %v8695_v6 = vadd.f32 %v16536_v28, %v21070_v30  ;;  %v15573_v58 = vpop.f32.mrb[14].mxu1 }
 0x650   : > { %v8728_v62 = vmax.f32 %v8696_v11, 0.0  ;;  %v16537_v50 = vadd.f32 %v15573_v58, %v20576_v36  ;;  %v8547_v12 = vpop.f32.mrb[15].mxu1 }
 0x651   : > { %v8727_v2 = vmax.f32 %v8695_v6, 0.0  ;;  %v16538_v53 = vadd.f32 %v8547_v12, %v20580_v46 }
 0x652   : > { %v8698_v39 = vadd.f32 %v16537_v50, %v21070_v30 }
 0x653   : > { %v21125_v24 = vpack.c.bf16 %v8728_v62, %v8727_v2  ;;  %v8697_v52 = vadd.f32 %v16538_v53, %v21070_v30  ;;  %v15576_v37 = vpop.f32.mrb[16].mxu1 }
 0x654   : > { %v8730_v26 = vmax.f32 %v8698_v39, 0.0  ;;  %v16539_v42 = vadd.f32 %v15576_v37, %v20584_v49  ;;  %v8557_v1 = vpop.f32.mrb[17].mxu1 }
 0x655   : > { %v8729_v36 = vmax.f32 %v8697_v52, 0.0  ;;  %v16540_v32 = vadd.f32 %v8557_v1, %v20588_v51 }
 0x656   : > { %v8700_v46 = vadd.f32 %v16539_v42, %v21070_v30 }
 0x657   : > { %v21133_v40 = vpack.c.bf16 %v8730_v26, %v8729_v36  ;;  %v8699_v55 = vadd.f32 %v16540_v32, %v21070_v30  ;;  %v15579_v0 = vpop.f32.mrb[18].mxu1 }
 0x658   : > { %v8732_v8 = vmax.f32 %v8700_v46, 0.0  ;;  %v16541_v22 = vadd.f32 %v15579_v0, %v20592_v48  ;;  %v8567_v47 = vpop.f32.mrb[19].mxu1 }
 0x659   : > { %v8731_v49 = vmax.f32 %v8699_v55, 0.0  ;;  %v16542_v4 = vadd.f32 %v8567_v47, %v20596_v3 }
 0x65a   : > { %v8702_v51 = vadd.f32 %v16541_v22, %v21070_v30 }
 0x65b   : > { %v21141_v15 = vpack.c.bf16 %v8732_v8, %v8731_v49  ;;  %v8701_v57 = vadd.f32 %v16542_v4, %v21070_v30  ;;  %v15582_v7 = vpop.f32.mrb[20].mxu1  ;;  %v23426_v4 = vld [vmem:[#allocation57_spill] sm:$0xff] }
 0x65c   : > { %v8734_v41 = vmax.f32 %v8702_v51, 0.0  ;;  %v16543_v48 = vadd.f32 %v15582_v7, %v20600_v5  ;;  %v8577_v13 = vpop.f32.mrb[21].mxu1 }
 0x65d   : > { %v8733_v60 = vmax.f32 %v8701_v57, 0.0  ;;  %v16544_v3 = vadd.f32 %v8577_v13, %v20607_v25 }
 0x65e   : > { %v8704_v23 = vadd.f32 %v16543_v48, %v21070_v30 }
 0x65f   : > { %v8703_v34 = vadd.f32 %v16544_v3, %v21070_v30  ;;  %v15585_v35 = vpop.f32.mrb[22].mxu1  ;;  %v16187_v33 = vpack.c.bf16 %v8734_v41, %v8733_v60 }
 0x660   : > { %v8736_v29 = vmax.f32 %v8704_v23, 0.0  ;;  %v16545_v31 = vadd.f32 %v15585_v35, %v20619_v17  ;;  %v8587_v28 = vpop.f32.mrb[23].mxu1  ;;  %v8756_v35 = vld [vmem:[%s22528_s4 + $0x38] sm:$0xff] }
 0x661   : > { %v8735_v11 = vmax.f32 %v8703_v34, 0.0  ;;  %v16546_v5 = vadd.f32 %v8587_v28, %v20622_v16  ;;  %16188 = vmatprep.subr.bf16.mxu0 %v16187_v33  ;;  %v8755_v33 = vld [vmem:[%s22528_s4 + $0x30] sm:$0xff]  ;;  %v8760_v28 = vld [vmem:[%s22528_s4 + $0x58] sm:$0xff] }
 0x662   : > { %v8706_v6 = vadd.f32 %v16545_v31, %v21070_v30  ;;  %16190 = vmatpush3.bf16.msra.mxu0 %v21083_v38  ;;  %v8757_v31 = vld [vmem:[%s22528_s4 + $0x40] sm:$0xff] }
 0x663   : > { %v8705_v25 = vadd.f32 %v16546_v5, %v21070_v30  ;;  %v15588_v58 = vpop.f32.mrb[24].mxu1  ;;  %v16191_v62 = vpack.c.bf16 %v8736_v29, %v8735_v11  ;;  %v8758_v29 = vld [vmem:[%s22528_s4 + $0x48] sm:$0xff]  ;;  %v8759_v11 = vld [vmem:[%s22528_s4 + $0x50] sm:$0xff] }
 0x664   : > { %v8738_v50 = vmax.f32 %v8706_v6, 0.0  ;;  %v16547_v20 = vadd.f32 %v15588_v58, %v20627_v27  ;;  %v8597_v12 = vpop.f32.mrb[25].mxu1  ;;  %v8762_v5 = vld [vmem:[%s22528_s4 + $0x68] sm:$0xff]  ;;  %v8761_v6 = vld [vmem:[%s22528_s4 + $0x60] sm:$0xff]  ;;  %v8763_v58 = vld [vmem:[%s22528_s4 + $0x70] sm:$0xff] }
 0x665   : > { %v8737_v17 = vmax.f32 %v8705_v25, 0.0  ;;  %v16548_v2 = vadd.f32 %v8597_v12, %v20632_v10  ;;  %16192 = vmatprep.subr.bf16.mxu0 %v16191_v62  ;;  %v8764_v25 = vld [vmem:[%s22528_s4 + $0x78] sm:$0xff]  ;;  %v23427_v62 = vmov 0.0  }
 0x666   : > { %v8708_v16 = vadd.f32 %v16547_v20, %v21070_v30  ;;  %16194 = vmatpush3.bf16.msra.mxu0 %v21091_v56  ;;  %8871 = vst.msk [vmem:[#allocation4] sm:$0xff] %vm8870_vm1, %v23427_v62  ;;  %8872 = vst.msk [vmem:[#allocation4 + $0x8] sm:$0xff] %vm8870_vm1, %v23427_v62  ;;  %v8970_v20 = vld [vmem:[%s22535_s11 + $0x38] sm:$0xff] }
 0x667   : > { %v8707_v38 = vadd.f32 %v16548_v2, %v21070_v30  ;;  %v15591_v53 = vpop.f32.mrb[26].mxu1  ;;  %v16195_v39 = vpack.c.bf16 %v8738_v50, %v8737_v17  ;;  %8881 = vst.msk [vmem:[#allocation4 + $0x50] sm:$0xff] %vm8870_vm1, %v23427_v62  ;;  %8882 = vst.msk [vmem:[#allocation4 + $0x58] sm:$0xff] %vm8870_vm1, %v23427_v62  ;;  %v8969_v50 = vld [vmem:[%s22535_s11 + $0x30] sm:$0xff]  ;;  %v8955_v2 = vld [vmem:[%s22535_s11] sm:$0xff] }
 0x668   : > { %v8740_v52 = vmax.f32 %v8708_v16, 0.0  ;;  %v16549_v43 = vadd.f32 %v15591_v53, %v20640_v18  ;;  %v8607_v37 = vpop.f32.mrb[27].mxu1  ;;  %10367 = vst.msk [vmem:[#allocation5] sm:$0xff] %vm8870_vm1, %v23427_v62  ;;  %10368 = vst.msk [vmem:[#allocation5 + $0x8] sm:$0xff] %vm8870_vm1, %v23427_v62  ;;  %v16223_v12 = vpack.c.bf16 %v8970_v20, %v8969_v50  ;;  %v8956_v16 = vld [vmem:[%s22535_s11 + $0x8] sm:$0xff]  ;;  %v21258_v53 = vpop.permute.xlu1 %8916 }
 0x669   : > { %v8739_v27 = vmax.f32 %v8707_v38, 0.0  ;;  %v16550_v26 = vadd.f32 %v8607_v37, %v20646_v14  ;;  %16196 = vmatprep.subr.bf16.mxu0 %v16195_v39  ;;  %10377 = vst.msk [vmem:[#allocation5 + $0x50] sm:$0xff] %vm8870_vm1, %v23427_v62  ;;  %10378 = vst.msk [vmem:[#allocation5 + $0x58] sm:$0xff] %vm8870_vm1, %v23427_v62  ;;  %v16227_v38 = vpack.c.bf16 %v8956_v16, %v8955_v2  ;;  %vm8939_vm14 = vcmp.eq.s32.totalorder %v21258_v53, 1 }
 0x66a   : > { %v8710_v10 = vadd.f32 %v16549_v43, %v21070_v30  ;;  %16198 = vmatpush3.bf16.msra.mxu0 %v21100_v19  ;;  %16224 = vmatprep.subr.bf16.mxu1 %v16223_v12 }
 0x66b   : > { %v8709_v56 = vadd.f32 %v16550_v26, %v21070_v30  ;;  %v15594_v42 = vpop.f32.mrb[28].mxu1  ;;  %v16199_v1 = vpack.c.bf16 %v8740_v52, %v8739_v27  ;;  %16226 = vmatpush3.bf16.msra.mxu1 %v16223_v12  ;;  %v21262_v52 = vpop.permute.xlu0 %8919 }
 0x66c   : > { %v8742_v36 = vmax.f32 %v8710_v10, 0.0  ;;  %v16551_v44 = vadd.f32 %v15594_v42, %v20652_v61  ;;  %v8617_v32 = vpop.f32.mrb[29].mxu1  ;;  %16228 = vmatprep.subr.bf16.mxu1 %v16227_v38  ;;  %v21260_v39 = vpop.permute.xlu1 %8922  ;;  %vm8940_vm6 = vcmp.eq.s32.totalorder %v21262_v52, 1 }
 0x66d   : > { %v8741_v18 = vmax.f32 %v8709_v56, 0.0  ;;  %v16552_v46 = vadd.f32 %v8617_v32, %v20658_v63  ;;  %16200 = vmatprep.subr.bf16.mxu0 %v16199_v1  ;;  %v8959_v17 = vld [vmem:[#allocation4 + $0x8] sm:$0xff]  ;;  %v8958_v32 = vld [vmem:[%s22535_s11 + $0x18] sm:$0xff]  ;;  %vm8941_vm5 = vcmp.eq.s32.totalorder %v21260_v39, 1 }
 0x66e   : > { %v8712_v14 = vadd.f32 %v16551_v44, %v21070_v30  ;;  %16202 = vmatpush3.bf16.msra.mxu0 %v21108_v45  ;;  %15609 = vmatprep.mubr.msk.f32.mxu1 %vm8870_vm1, %v8959_v17  ;;  %v8957_v44 = vld [vmem:[%s22535_s11 + $0x10] sm:$0xff] }
 0x66f   : > { %v8711_v19 = vadd.f32 %v16552_v46, %v21070_v30  ;;  %v15597_v55 = vpop.f32.mrb[30].mxu1  ;;  %v16203_v0 = vpack.c.bf16 %v8742_v36, %v8741_v18  ;;  %v21267_v42 = vpop.permute.xlu0 %8928 }
 0x670   : > { %v8744_v8 = vmax.f32 %v8712_v14, 0.0  ;;  %v16553_v22 = vadd.f32 %v15597_v55, %v20664_v9  ;;  %v8627_v47 = vpop.f32.mrb[31].mxu1  ;;  %v21264_v37 = vpop.permute.xlu1 %8925  ;;  %vm8943_vm13 = vcmp.eq.s32.totalorder %v21267_v42, 1 }
 0x671   : > { %v8743_v49 = vmax.f32 %v8711_v19, 0.0  ;;  %v16554_v61 = vadd.f32 %v8627_v47, %v23426_v4  ;;  %16204 = vmatprep.subr.bf16.mxu0 %v16203_v0  ;;  %v16231_v19 = vpack.c.bf16 %v8958_v32, %v8957_v44  ;;  %vm8942_vm10 = vcmp.eq.s32.totalorder %v21264_v37, 1  ;;  %v9280_v44 = vld [vmem:[%s22535_s11 + $0x58] sm:$0xff] }
 0x672   : > { %v8714_v51 = vadd.f32 %v16553_v22, %v21070_v30  ;;  %16206 = vmatpush3.bf16.msra.mxu0 %v21117_v21  ;;  %v8749_v21 = vld [vmem:[%s22528_s4] sm:$0xff]  ;;  %v9278_v22 = vld [vmem:[%s22535_s11 + $0x48] sm:$0xff] }
 0x673   : > { %v8713_v63 = vadd.f32 %v16554_v61, %v21070_v30  ;;  %v15600_v57 = vpop.f32.mrb[0].mxu1  ;;  %v16207_v45 = vpack.c.bf16 %v8744_v8, %v8743_v49  ;;  %v21280_v0 = vpop.permute.xlu0 %8934  ;;  %v9277_v8 = vld [vmem:[%s22535_s11 + $0x40] sm:$0xff] }
 0x674   : > { %v8746_v7 = vmax.f32 %v8714_v51, 0.0  ;;  %v8716_v41 = vadd.f32 %v15600_v57, %v21070_v30  ;;  %v8637_v48 = vpop.f32.mrb[1].mxu1  ;;  %v21269_v36 = vpop.permute.xlu1 %8931  ;;  %v21293_v51 = vpack.c.bf16 %v9278_v22, %v9277_v8  ;;  %vm8945_vm8 = vcmp.eq.s32.totalorder %v21280_v0, 1 }
 0x675   : > { %v8745_v13 = vmax.f32 %v8713_v63, 0.0  ;;  %v8715_v9 = vadd.f32 %v21070_v30, %v8637_v48  ;;  %16208 = vmatprep.subr.bf16.mxu0 %v16207_v45  ;;  %v8752_v30 = vld [vmem:[%s22528_s4 + $0x18] sm:$0xff]  ;;  %vm8944_vm3 = vcmp.eq.s32.totalorder %v21269_v36, 1 }
 0x676   : > { %v8748_v60 = vmax.f32 %v8716_v41, 0.0  ;;  %16210 = vmatpush3.bf16.msra.mxu0 %v21125_v24  ;;  %v8751_v24 = vld [vmem:[%s22528_s4 + $0x10] sm:$0xff]  ;;  %v9743_v36 = vld [vmem:[%s22535_s11 + $0xb8] sm:$0xff] }
 0x677   : > { %v8747_v3 = vmax.f32 %v8715_v9, 0.0  ;;  %v16211_v23 = vpack.c.bf16 %v8746_v7, %v8745_v13  ;;  %v21300_v7 = vpop.permute.xlu0 %9238 }
 0x678   : > { %v21291_v49 = vpop.permute.xlu1 %8937  ;;  %vm9261_vm12 = vcmp.eq.s32.totalorder %v21300_v7, 1 }
 0x679   : > { %v16215_v34 = vpack.c.bf16 %v8748_v60, %v8747_v3  ;;  %16212 = vmatprep.subr.bf16.mxu0 %v16211_v23  ;;  %vm8946_vm9 = vcmp.eq.s32.totalorder %v21291_v49, 1  ;;  %v10045_v49 = vld [vmem:[#allocation4 + $0x50] sm:$0xff] }
 0x67a   : > { %16214 = vmatpush3.bf16.msra.mxu0 %v21133_v40  ;;  %v8754_v40 = vld [vmem:[%s22528_s4 + $0x28] sm:$0xff] }
 0x67b   : > { %16216 = vmatprep.subr.bf16.mxu0 %v16215_v34  ;;  %v21370_v20 = vpop.permute.xlu0 %9247 }
 0x67c   : > { %v21302_v48 = vpop.permute.xlu1 %9241  ;;  %vm9264_vm2 = vcmp.eq.s32.totalorder %v21370_v20, 1 }
 0x67d   : > { %vm9262_vm11 = vcmp.eq.s32.totalorder %v21302_v48, 1 }
 0x67e   : > { %16218 = vmatpush3.bf16.msra.mxu0 %v21141_v15  ;;  %v8753_v15 = vld [vmem:[%s22528_s4 + $0x20] sm:$0xff] }
 0x681   : > { %8830 = vmatmul.mubr.f32.vlgmr.msra.gmra.mrb[62].mxu0 %v8749_v21 }
 0x682   : > { %8834 = vmatprep.mubr.f32.mxu0 %v8752_v30 }
 0x685   : > { %8835 = vmatmul.mubr.f32.gmra.mrb[64].mxu0 %v8751_v24 }
 0x686   : > { %8839 = vmatprep.mubr.f32.mxu0 %v8754_v40 }
 0x689   : > { %8840 = vmatmul.mubr.f32.gmra.mrb[66].mxu0 %v8753_v15 }
 0x68a   : > { %8844 = vmatprep.mubr.f32.mxu0 %v8756_v35 }
 0x68d   : > { %8845 = vmatmul.mubr.f32.gmra.mrb[68].mxu0 %v8755_v33 }
 0x68e   : > { %8849 = vmatprep.mubr.f32.mxu0 %v8758_v29 }
 0x691   : > { %8850 = vmatmul.mubr.f32.gmra.mrb[70].mxu0 %v8757_v31  ;;  %v21347_v31 = vpop.permute.xlu1 %9244 }
 0x692   : > { %8854 = vmatprep.mubr.f32.mxu0 %v8760_v28  ;;  %vm9263_vm7 = vcmp.eq.s32.totalorder %v21347_v31, 1 }
 0x695   : > { %8855 = vmatmul.mubr.f32.gmra.mrb[72].mxu0 %v8759_v11 }
 0x696   : > { %8859 = vmatprep.mubr.f32.mxu0 %v8762_v5 }
 0x699   : > { %8860 = vmatmul.mubr.f32.gmra.mrb[74].mxu0 %v8761_v6 }
 0x69a   : > { %8864 = vmatprep.mubr.f32.mxu0 %v8764_v25 }
 0x69d   : > { %8865 = vmatmul.mubr.f32.gmra.mrb[76].mxu0 %v8763_v58 }
 0x754   : > { %v14343_v43 = vpop.f32.mrb[62].mxu0 }
 0x755   : > { %v14344_v27 = vpop.f32.mrb[63].mxu0 }
 0x756   : > { %v14345_v26 = vadd.f32 %v14344_v27, %v14343_v43 }
 0x758   : > { %8873 = vst.msk [vmem:[#allocation4 + $0x10] sm:$0xff] %vm8870_vm1, %v14345_v26  ;;  %v14346_v10 = vpop.f32.mrb[64].mxu0 }
 0x759   : > { %v14347_v56 = vpop.f32.mrb[65].mxu0 }
 0x75a   : > { %v14348_v1 = vadd.f32 %v14347_v56, %v14346_v10  ;;  %v21392_v10 = vpop.permute.xlu1 %9250  ;;  %v8899_v56 = vld [vmem:[#allocation4 + $0x7] sm:$0xff] }
 0x75b   : > { %vm22784_vm15 = vcmp.eq.s32.totalorder %v21392_v10, 1 }
 0x75c   : > { %8874 = vst.msk [vmem:[#allocation4 + $0x18] sm:$0xff] %vm8870_vm1, %v14348_v1  ;;  %v14349_v18 = vpop.f32.mrb[66].mxu0  ;;  %v9279_v1 = vld [vmem:[%s22535_s11 + $0x50] sm:$0xff] }
 0x75d   : > { %v14350_v46 = vpop.f32.mrb[67].mxu0 }
 0x75e   : > { %v14351_v14 = vadd.f32 %v14350_v46, %v14349_v18 }
 0x75f   : > { %v21278_v55 = vld [vmem:[#allocation4 + $0x10] sm:$0xff] }
 0x760   : > { %8875 = vst.msk [vmem:[#allocation4 + $0x20] sm:$0xff] %vm8870_vm1, %v14351_v14  ;;  %v14352_v47 = vpop.f32.mrb[68].mxu0  ;;  %15610 = vmatmul.mubr.msk.f32.vlgmr.msra.gmra.mrb[32].mxu1 %vm8870_vm1, %v21278_v55  ;;  %v8947_v14 = vsel %vm8939_vm14, %v8899_v56, 0.0  ;;  %v9436_v56 = vld [vmem:[%s22535_s11 + $0x70] sm:$0xff] }
 0x761   : > { %v14353_v4 = vpop.f32.mrb[69].mxu0  ;;  %16230 = vmatpush3.bf16.msra.mxu1 %v16227_v38 }
 0x762   : > { %v14354_v61 = vadd.f32 %v14353_v4, %v14352_v47  ;;  %16232 = vmatprep.subr.bf16.mxu1 %v16231_v19  ;;  %v21426_v47 = vpop.permute.xlu0 %9253 }
 0x763   : > { %v21295_v63 = vld [vmem:[#allocation4 + $0x18] sm:$0xff]  ;;  %vm9266_vm4 = vcmp.eq.s32.totalorder %v21426_v47, 1 }
 0x764   : > { %8876 = vst.msk [vmem:[#allocation4 + $0x28] sm:$0xff] %vm8870_vm1, %v14354_v61  ;;  %v14355_v57 = vpop.f32.mrb[70].mxu0  ;;  %15612 = vmatprep.mubr.msk.f32.mxu1 %vm8870_vm1, %v21295_v63  ;;  %v21428_v4 = vld [vmem:[#allocation4 + $0x17] sm:$0xff]  ;;  %v16239_v61 = vpack.c.bf16 %v9280_v44, %v9279_v1 }
 0x765   : > { %v14356_v45 = vpop.f32.mrb[71].mxu0  ;;  %16234 = vmatpush3.bf16.msra.mxu1 %v16231_v19  ;;  %v21412_v19 = vld [vmem:[#allocation4 + $0xf] sm:$0xff]  ;;  %v9437_v1 = vld [vmem:[%s22535_s11 + $0x78] sm:$0xff] }
 0x766   : > { %v14357_v41 = vadd.f32 %v14356_v45, %v14355_v57  ;;  %16236 = vmatprep.subr.bf16.mxu1 %v21293_v51  ;;  %v8948_v57 = vsel %vm8940_vm6, %v21412_v19, 0.0  ;;  %v21481_v44 = vld [vmem:[#allocation4 + $0x11] sm:$0xff] }
 0x767   : > { %v21305_v13 = vld [vmem:[#allocation4 + $0x1f] sm:$0xff] }
 0x768   : > { %v21308_v9 = vld [vmem:[#allocation4 + $0x20] sm:$0xff]  ;;  %8877 = vst.msk [vmem:[#allocation4 + $0x30] sm:$0xff] %vm8870_vm1, %v14357_v41  ;;  %v14358_v3 = vpop.f32.mrb[72].mxu0  ;;  %v21316_v23 = vsel %vm8940_vm6, %v21305_v13, 0.0 }
 0x769   : > { %v21310_v60 = vld [vmem:[#allocation4 + $0x19] sm:$0xff]  ;;  %15613 = vmatmul.mubr.msk.f32.gmra.mrb[34].mxu1 %vm8870_vm1, %v21308_v9  ;;  %v14359_v34 = vpop.f32.mrb[73].mxu0 }
 0x76a   : > { %v21324_v21 = vsel %vm9261_vm12, %v21310_v60, 0.0  ;;  %v14360_v30 = vadd.f32 %v14359_v34, %v14358_v3  ;;  %v9434_v41 = vld [vmem:[%s22535_s11 + $0x60] sm:$0xff]  ;;  %v9435_v3 = vld [vmem:[%s22535_s11 + $0x68] sm:$0xff]  ;;  %v8949_v34 = vsel %vm8941_vm5, %v21428_v4, 0.0 }
 0x76b   : > { %v21327_v24 = vld [vmem:[#allocation4 + $0x27] sm:$0xff] }
 0x76c   : > { %v21329_v40 = vld [vmem:[#allocation4 + $0x28] sm:$0xff]  ;;  %v21337_v35 = vsel %vm8941_vm5, %v21327_v24, 0.0  ;;  %8878 = vst.msk [vmem:[#allocation4 + $0x38] sm:$0xff] %vm8870_vm1, %v14360_v30  ;;  %v14361_v33 = vpop.f32.mrb[74].mxu0 }
 0x76d   : > { %v21332_v15 = vld [vmem:[#allocation4 + $0x21] sm:$0xff]  ;;  %15615 = vmatprep.mubr.msk.f32.mxu1 %vm8870_vm1, %v21329_v40  ;;  %v14362_v28 = vpop.f32.mrb[75].mxu0 }
 0x76e   : > { %v21345_v29 = vsel %vm9262_vm11, %v21332_v15, 0.0  ;;  %v14363_v11 = vadd.f32 %v14362_v28, %v14361_v33  ;;  %v16243_v33 = vpack.c.bf16 %v9435_v3, %v9434_v41  ;;  %v8950_v28 = vsel %vm8942_vm10, %v21305_v13, 0.0  ;;  %v9583_v41 = vld [vmem:[%s22535_s11 + $0x80] sm:$0xff]  ;;  %v9584_v3 = vld [vmem:[%s22535_s11 + $0x88] sm:$0xff] }
 0x76f   : > { %v21350_v5 = vld [vmem:[#allocation4 + $0x2f] sm:$0xff]  ;;  %v9734_v7 = vsel %vm9263_vm7, %v21332_v15, 0.0 }
 0x770   : > { %v21352_v6 = vld [vmem:[#allocation4 + $0x30] sm:$0xff]  ;;  %v21360_v58 = vsel %vm8942_vm10, %v21350_v5, 0.0  ;;  %8879 = vst.msk [vmem:[#allocation4 + $0x40] sm:$0xff] %vm8870_vm1, %v14363_v11  ;;  %v14364_v12 = vpop.f32.mrb[76].mxu0  ;;  %v8951_v11 = vsel %vm8943_vm13, %v21327_v24, 0.0 }
 0x771   : > { %v21355_v25 = vld [vmem:[#allocation4 + $0x29] sm:$0xff]  ;;  %15616 = vmatmul.mubr.msk.f32.gmra.mrb[36].mxu1 %vm8870_vm1, %v21352_v6  ;;  %v14365_v17 = vpop.f32.mrb[77].mxu0 }
 0x772   : > { %v21368_v50 = vsel %vm9263_vm7, %v21355_v25, 0.0  ;;  %v14366_v2 = vadd.f32 %v14365_v17, %v14364_v12  ;;  %v9229_v17 = vld [vmem:[#allocation4 + $0x9] sm:$0xff] }
 0x773   : > { %v21372_v16 = vld [vmem:[#allocation4 + $0x37] sm:$0xff] }
 0x774   : > { %v21375_v38 = vld [vmem:[#allocation4 + $0x38] sm:$0xff]  ;;  %v21383_v27 = vsel %vm8943_vm13, %v21372_v16, 0.0  ;;  %8880 = vst.msk [vmem:[#allocation4 + $0x48] sm:$0xff] %vm8870_vm1, %v14366_v2  ;;  %v8953_v12 = vsel %vm8945_vm8, %v21372_v16, 0.0  ;;  %v9431_v39 = vsel %vm8944_vm3, %v21372_v16, 0.0  ;;  %v9897_v16 = vld [vmem:[%s22535_s11 + $0xc0] sm:$0xff] }
 0x775   : > { %v21378_v43 = vld [vmem:[#allocation4 + $0x31] sm:$0xff]  ;;  %15618 = vmatprep.mubr.msk.f32.mxu1 %vm8870_vm1, %v21375_v38 }
 0x776   : > { %v21390_v26 = vsel %vm9264_vm2, %v21378_v43, 0.0 }
 0x777   : > { %v21403_v32 = vld [vmem:[#allocation4 + $0x3f] sm:$0xff] }
 0x778   : > { %v21405_v18 = vld [vmem:[#allocation4 + $0x40] sm:$0xff]  ;;  %v21417_v8 = vsel %vm8944_vm3, %v21403_v32, 0.0  ;;  %v8954_v2 = vsel %vm8946_vm9, %v21403_v32, 0.0 }
 0x779   : > { %v21408_v46 = vld [vmem:[#allocation4 + $0x39] sm:$0xff]  ;;  %15619 = vmatmul.mubr.msk.f32.gmra.mrb[38].mxu1 %vm8870_vm1, %v21405_v18 }
 0x77a   : > { %v21424_v22 = vsel %vm22784_vm15, %v21408_v46, 0.0  ;;  %15629 = vmatprep.mubr.msk.f32.mxu1 %vm8870_vm1, %v8947_v14  ;;  %v9269_v14 = vsel %vm9261_vm12, %v9229_v17, 0.0  ;;  %v21511_v17 = vpop.permute.xlu0 %9259 }
 0x77b   : > { %v21435_v45 = vld [vmem:[#allocation4 + $0x41] sm:$0xff]  ;;  %v10193_v20 = vld [vmem:[#allocation4 + $0x49] sm:$0xff] }
 0x77c   : > { %v21450_v30 = vsel %vm9266_vm4, %v21435_v45, 0.0  ;;  %v21566_v37 = vld [vmem:[#allocation4 + $0x47] sm:$0xff] }
 0x77d   : > { %15630 = vmatmul.mubr.msk.f32.vlgmr.msra.gmra.mrb[32].mxu1 %vm8870_vm1, %v8948_v57  ;;  %v9270_v57 = vsel %vm9262_vm11, %v21481_v44, 0.0  ;;  %v9433_v42 = vsel %vm8946_vm9, %v21566_v37, 0.0 }
 0x77e   : > { %15632 = vmatprep.mubr.msk.f32.mxu1 %vm8870_vm1, %v8949_v34  ;;  %16238 = vmatpush3.bf16.msra.mxu1 %v21293_v51  ;;  %v8952_v51 = vsel %vm8944_vm3, %v21350_v5, 0.0  ;;  %v9271_v34 = vsel %vm9263_vm7, %v21310_v60, 0.0 }
 0x77f   : > { %16240 = vmatprep.subr.bf16.mxu1 %v16239_v61 }
 0x781   : > { %15633 = vmatmul.mubr.msk.f32.gmra.mrb[34].mxu1 %vm8870_vm1, %v8950_v28  ;;  %v21501_v28 = vpop.permute.xlu1 %9256 }
 0x782   : > { %15635 = vmatprep.mubr.msk.f32.mxu1 %vm8870_vm1, %v8951_v11  ;;  %16242 = vmatpush3.bf16.msra.mxu1 %v16239_v61  ;;  %v16247_v61 = vpack.c.bf16 %v9437_v1, %v9436_v56  ;;  %v16251_v11 = vpack.c.bf16 %v9584_v3, %v9583_v41  ;;  %vm9267_vm0 = vcmp.eq.s32.totalorder %v21501_v28, 1  ;;  %v9585_v1 = vld [vmem:[%s22535_s11 + $0x90] sm:$0xff]  ;;  %v9427_v41 = vsel %vm8940_vm6, %v21428_v4, 0.0  ;;  %v9740_v3 = vld [vmem:[%s22535_s11 + $0xa0] sm:$0xff] }
 0x783   : > { %16244 = vmatprep.subr.bf16.mxu1 %v16243_v33  ;;  %vm23428_vm6 = vcmp.eq.s32.totalorder %v21392_v10, 1  ;;  %v9738_v31 = vsel %vm9267_vm0, %v21435_v45, 0.0  ;;  %v10049_v10 = vld [vmem:[%s22535_s11 + $0xf8] sm:$0xff] }
 0x785   : > { %15636 = vmatmul.mubr.msk.f32.gmra.mrb[36].mxu1 %vm8870_vm1, %v8952_v51  ;;  %v9272_v51 = vsel %vm9264_vm2, %v21332_v15, 0.0  ;;  %v9737_v15 = vsel %vm9266_vm4, %v21408_v46, 0.0  ;;  %v21737_v28 = vpop.permute.xlu1 %10412 }
 0x786   : > { %15638 = vmatprep.mubr.msk.f32.mxu1 %vm8870_vm1, %v8953_v12  ;;  %v9273_v12 = vsel %vm22784_vm15, %v21355_v25, 0.0  ;;  %vm9268_vm15 = vcmp.eq.s32.totalorder %v21511_v17, 1  ;;  %vm10435_vm3 = vcmp.eq.s32.totalorder %v21737_v28, 1 }
 0x787   : > { %v9276_v56 = vsel %vm9268_vm15, %v21435_v45, 0.0  ;;  %v10203_v45 = vld [vmem:[%s22535_s11 + $0x100] sm:$0xff] }
 0x789   : > { %15639 = vmatmul.mubr.msk.f32.gmra.mrb[38].mxu1 %vm8870_vm1, %v8954_v2  ;;  %v9275_v2 = vsel %vm9267_vm0, %v21408_v46, 0.0  ;;  %v9889_v46 = vsel %vm8939_vm14, %v21428_v4, 0.0  ;;  %v9888_v4 = vld [vmem:[#allocation4 + $0x4f] sm:$0xff]  ;;  %v21739_v17 = vpop.permute.xlu1 %10418 }
 0x78a   : > { %15649 = vmatprep.mubr.msk.f32.mxu1 %vm8870_vm1, %v9269_v14  ;;  %v9586_v14 = vld [vmem:[%s22535_s11 + $0x98] sm:$0xff] }
 0x78d   : > { %15650 = vmatmul.mubr.msk.f32.vlgmr.msra.gmra.mrb[32].mxu1 %vm8870_vm1, %v9270_v57  ;;  %v16255_v57 = vpack.c.bf16 %v9586_v14, %v9585_v1  ;;  %v9733_v14 = vsel %vm9262_vm11, %v21310_v60, 0.0  ;;  %v9735_v60 = vsel %vm9264_vm2, %v21355_v25, 0.0  ;;  %v9739_v25 = vsel %vm9268_vm15, %v10193_v20, 0.0 }
 0x78e   : > { %15652 = vmatprep.mubr.msk.f32.mxu1 %vm8870_vm1, %v9271_v34  ;;  %16246 = vmatpush3.bf16.msra.mxu1 %v16243_v33  ;;  %v9274_v33 = vsel %vm9266_vm4, %v21378_v43, 0.0  ;;  %v9741_v34 = vld [vmem:[%s22535_s11 + $0xa8] sm:$0xff]  ;;  %vm10437_vm11 = vcmp.eq.s32.totalorder %v21739_v17, 1 }
 0x78f   : > { %16248 = vmatprep.subr.bf16.mxu1 %v16247_v61  ;;  %v16259_v52 = vpack.c.bf16 %v9741_v34, %v9740_v3  ;;  %v21741_v3 = vpop.permute.xlu1 %10421  ;;  %v21743_v34 = vpop.permute.xlu0 %10415 }
 0x790   : > { %vm10438_vm2 = vcmp.eq.s32.totalorder %v21741_v3, 1 }
 0x791   : > { %15653 = vmatmul.mubr.msk.f32.gmra.mrb[34].mxu1 %vm8870_vm1, %v9272_v51  ;;  %v9429_v51 = vsel %vm8942_vm10, %v21327_v24, 0.0  ;;  %v9742_v24 = vld [vmem:[%s22535_s11 + $0xb0] sm:$0xff]  ;;  %vm10436_vm10 = vcmp.eq.s32.totalorder %v21743_v34, 1 }
 0x792   : > { %15655 = vmatprep.mubr.msk.f32.mxu1 %vm8870_vm1, %v9273_v12  ;;  %16250 = vmatpush3.bf16.msra.mxu1 %v16247_v61  ;;  %v9426_v61 = vsel %vm8939_vm14, %v21412_v19, 0.0  ;;  %v9428_v19 = vsel %vm8941_vm5, %v21305_v13, 0.0  ;;  %v9430_v12 = vsel %vm8943_vm13, %v21350_v5, 0.0  ;;  %v9432_v13 = vsel %vm8945_vm8, %v21403_v32, 0.0  ;;  %v9898_v32 = vld [vmem:[%s22535_s11 + $0xc8] sm:$0xff] }
 0x793   : > { %16252 = vmatprep.subr.bf16.mxu1 %v16251_v11  ;;  %v16263_v5 = vpack.c.bf16 %v9743_v36, %v9742_v24 }
 0x795   : > { %15656 = vmatmul.mubr.msk.f32.gmra.mrb[36].mxu1 %vm8870_vm1, %v9274_v33  ;;  %v9899_v33 = vld [vmem:[%s22535_s11 + $0xd0] sm:$0xff] }
 0x796   : > { %15658 = vmatprep.mubr.msk.f32.mxu1 %vm8870_vm1, %v9275_v2  ;;  %v9900_v2 = vld [vmem:[%s22535_s11 + $0xd8] sm:$0xff] }
 0x797   : > { %v16271_v1 = vpack.c.bf16 %v9900_v2, %v9899_v33 }
 0x799   : > { %15659 = vmatmul.mubr.msk.f32.gmra.mrb[38].mxu1 %vm8870_vm1, %v9276_v56  ;;  %v9732_v56 = vsel %vm9261_vm12, %v21481_v44, 0.0  ;;  %v9736_v44 = vsel %vm23428_vm6, %v21378_v43, 0.0  ;;  %v10048_v43 = vld [vmem:[%s22535_s11 + $0xf0] sm:$0xff] }
 0x79a   : > { %15669 = vmatprep.mubr.msk.f32.mxu1 %vm8870_vm1, %v9426_v61  ;;  %v10046_v61 = vld [vmem:[%s22535_s11 + $0xe0] sm:$0xff]  ;;  %v16279_v47 = vpack.c.bf16 %v10049_v10, %v10048_v43 }
 0x79d   : > { %15670 = vmatmul.mubr.msk.f32.vlgmr.msra.gmra.mrb[32].mxu1 %vm8870_vm1, %v9427_v41  ;;  %v10204_v41 = vld [vmem:[%s22535_s11 + $0x108] sm:$0xff] }
 0x79e   : > { %15672 = vmatprep.mubr.msk.f32.mxu1 %vm8870_vm1, %v9428_v19  ;;  %16254 = vmatpush3.bf16.msra.mxu1 %v16251_v11  ;;  %v16267_v11 = vpack.c.bf16 %v9898_v32, %v9897_v16  ;;  %v16283_v53 = vpack.c.bf16 %v10204_v41, %v10203_v45  ;;  %v21745_v19 = vpop.permute.xlu1 %10427 }
 0x79f   : > { %16256 = vmatprep.subr.bf16.mxu1 %v16255_v57 }
 0x7a1   : > { %15673 = vmatmul.mubr.msk.f32.gmra.mrb[34].mxu1 %vm8870_vm1, %v9429_v51  ;;  %v21750_v51 = vpop.permute.xlu0 %10424 }
 0x7a2   : > { %15675 = vmatprep.mubr.msk.f32.mxu1 %vm8870_vm1, %v9430_v12  ;;  %16258 = vmatpush3.bf16.msra.mxu1 %v16255_v57  ;;  %v10047_v57 = vld [vmem:[%s22535_s11 + $0xe8] sm:$0xff]  ;;  %v21752_v24 = vpop.permute.xlu1 %10433  ;;  %vm10439_vm14 = vcmp.eq.s32.totalorder %v21750_v51, 1 }
 0x7a3   : > { %16260 = vmatprep.subr.bf16.mxu1 %v16259_v52  ;;  %v16275_v48 = vpack.c.bf16 %v10047_v57, %v10046_v61  ;;  %v10453_v61 = vld [vmem:[%s22537_s13 + $0x10] sm:$0xff]  ;;  %v10454_v57 = vld [vmem:[%s22537_s13 + $0x18] sm:$0xff] }
 0x7a5   : > { %15676 = vmatmul.mubr.msk.f32.gmra.mrb[36].mxu1 %vm8870_vm1, %v9431_v39  ;;  %v21754_v16 = vpop.permute.xlu0 %10430 }
 0x7a6   : > { %15678 = vmatprep.mubr.msk.f32.mxu1 %vm8870_vm1, %v9432_v13 }
 0x7a9   : > { %15679 = vmatmul.mubr.msk.f32.gmra.mrb[38].mxu1 %vm8870_vm1, %v9433_v42 }
 0x7aa   : > { %15689 = vmatprep.mubr.msk.f32.mxu1 %vm8870_vm1, %v21278_v55  ;;  %v21599_v55 = vld [vmem:[#allocation4 + $0x48] sm:$0xff] }
 0x7ad   : > { %15690 = vmatmul.mubr.msk.f32.vlgmr.msra.gmra.mrb[32].mxu1 %vm8870_vm1, %v21295_v63 }
 0x7ae   : > { %15692 = vmatprep.mubr.msk.f32.mxu1 %vm8870_vm1, %v21308_v9  ;;  %16262 = vmatpush3.bf16.msra.mxu1 %v16259_v52  ;;  %v13609_v52 = vld [vmem:[%s22536_s12] ss:$0 sm:$0xff] }
 0x7af   : > { %16264 = vmatprep.subr.bf16.mxu1 %v16263_v5 }
 0x7b1   : > { %15693 = vmatmul.mubr.msk.f32.gmra.mrb[34].mxu1 %vm8870_vm1, %v21329_v40 }
 0x7b2   : > { %15695 = vmatprep.mubr.msk.f32.mxu1 %vm8870_vm1, %v21352_v6  ;;  %16266 = vmatpush3.bf16.msra.mxu1 %v16263_v5 }
 0x7b3   : > { %16268 = vmatprep.subr.bf16.mxu1 %v16267_v11 }
 0x7b5   : > { %15696 = vmatmul.mubr.msk.f32.gmra.mrb[36].mxu1 %vm8870_vm1, %v21375_v38 }
 0x7b6   : > { %15698 = vmatprep.mubr.msk.f32.mxu1 %vm8870_vm1, %v21405_v18 }
 0x7b9   : > { %15699 = vmatmul.mubr.msk.f32.gmra.mrb[38].mxu1 %vm8870_vm1, %v21599_v55 }
 0x7ba   : > { %15709 = vmatprep.mubr.msk.f32.mxu1 %vm8870_vm1, %v9732_v56 }
 0x7bd   : > { %15710 = vmatmul.mubr.msk.f32.vlgmr.msra.gmra.mrb[32].mxu1 %vm8870_vm1, %v9733_v14 }
 0x7be   : > { %15712 = vmatprep.mubr.msk.f32.mxu1 %vm8870_vm1, %v9734_v7  ;;  %16270 = vmatpush3.bf16.msra.mxu1 %v16267_v11 }
 0x7bf   : > { %16272 = vmatprep.subr.bf16.mxu1 %v16271_v1 }
 0x7c1   : > { %15713 = vmatmul.mubr.msk.f32.gmra.mrb[34].mxu1 %vm8870_vm1, %v9735_v60  ;;  %v21768_v60 = vpop.permute.xlu0 %10734 }
 0x7c2   : > { %15715 = vmatprep.mubr.msk.f32.mxu1 %vm8870_vm1, %v9736_v44  ;;  %16274 = vmatpush3.bf16.msra.mxu1 %v16271_v1  ;;  %vm10757_vm5 = vcmp.eq.s32.totalorder %v21768_v60, 1 }
 0x7c3   : > { %16276 = vmatprep.subr.bf16.mxu1 %v16275_v48 }
 0x7c5   : > { %15716 = vmatmul.mubr.msk.f32.gmra.mrb[36].mxu1 %vm8870_vm1, %v9737_v15 }
 0x7c6   : > { %15718 = vmatprep.mubr.msk.f32.mxu1 %vm8870_vm1, %v9738_v31 }
 0x7c9   : > { %15719 = vmatmul.mubr.msk.f32.gmra.mrb[38].mxu1 %vm8870_vm1, %v9739_v25 }
 0x7ca   : > { %15729 = vmatprep.mubr.msk.f32.mxu1 %vm8870_vm1, %v9889_v46  ;;  %v10773_v46 = vld [vmem:[%s22537_s13 + $0x40] sm:$0xff] }
 0x7cd   : > { %15730 = vmatmul.mubr.msk.f32.vlgmr.msra.gmra.mrb[32].mxu1 %vm8870_vm1, %v21316_v23  ;;  %v9895_v23 = vsel %vm8945_vm8, %v21566_v37, 0.0  ;;  %vm10440_vm8 = vcmp.eq.s32.totalorder %v21745_v19, 1  ;;  %v11239_v19 = vld [vmem:[%s22537_s13 + $0xb8] sm:$0xff] }
 0x7ce   : > { %15732 = vmatprep.mubr.msk.f32.mxu1 %vm8870_vm1, %v21337_v35  ;;  %16278 = vmatpush3.bf16.msra.mxu1 %v16275_v48  ;;  %v9896_v35 = vsel %vm8946_vm9, %v9888_v4, 0.0  ;;  %v21766_v48 = vpop.permute.xlu1 %10737  ;;  %vm10441_vm9 = vcmp.eq.s32.totalorder %v21754_v16, 1 }
 0x7cf   : > { %16280 = vmatprep.subr.bf16.mxu1 %v16279_v47  ;;  %vm10758_vm12 = vcmp.eq.s32.totalorder %v21766_v48, 1 }
 0x7d1   : > { %15733 = vmatmul.mubr.msk.f32.gmra.mrb[34].mxu1 %vm8870_vm1, %v21360_v58  ;;  %v10205_v58 = vld [vmem:[%s22535_s11 + $0x110] sm:$0xff] }
 0x7d2   : > { %15735 = vmatprep.mubr.msk.f32.mxu1 %vm8870_vm1, %v21383_v27  ;;  %16282 = vmatpush3.bf16.msra.mxu1 %v16279_v47  ;;  %v10206_v27 = vld [vmem:[%s22535_s11 + $0x118] sm:$0xff]  ;;  %v10774_v47 = vld [vmem:[%s22537_s13 + $0x48] sm:$0xff]  ;;  %v21786_v4 = vpop.permute.xlu1 %10740 }
 0x7d3   : > { %16284 = vmatprep.subr.bf16.mxu1 %v16283_v53  ;;  %v16287_v0 = vpack.c.bf16 %v10206_v27, %v10205_v58  ;;  %v21790_v58 = vpack.c.bf16 %v10774_v47, %v10773_v46  ;;  %vm10759_vm7 = vcmp.eq.s32.totalorder %v21786_v4, 1 }
 0x7d5   : > { %15736 = vmatmul.mubr.msk.f32.gmra.mrb[36].mxu1 %vm8870_vm1, %v21417_v8  ;;  %v10451_v8 = vld [vmem:[%s22537_s13] sm:$0xff] }
 0x7d6   : > { %15738 = vmatprep.mubr.msk.f32.mxu1 %vm8870_vm1, %v9895_v23 }
 0x7d9   : > { %15739 = vmatmul.mubr.msk.f32.gmra.mrb[38].mxu1 %vm8870_vm1, %v9896_v35  ;;  %v21788_v35 = vpop.permute.xlu0 %10743 }
 0x7da   : > { %15749 = vmatprep.mubr.msk.f32.mxu1 %vm8870_vm1, %v21295_v63  ;;  %v10201_v63 = vsel %vm9267_vm0, %v10193_v20, 0.0  ;;  %v16303_v20 = vpack.c.bf16 %v10454_v57, %v10453_v61  ;;  %vm10760_vm13 = vcmp.eq.s32.totalorder %v21788_v35, 1  ;;  %vm10442_vm0 = vcmp.eq.s32.totalorder %v21752_v24, 1  ;;  %v11541_v24 = vld [vmem:[#allocation5 + $0x50] sm:$0xff] }
 0x7dd   : > { %15750 = vmatmul.mubr.msk.f32.vlgmr.msra.gmra.mrb[32].mxu1 %vm8870_vm1, %v21308_v9  ;;  %v10194_v9 = vld [vmem:[#allocation4 + $0x51] sm:$0xff] }
 0x7de   : > { %15752 = vmatprep.mubr.msk.f32.mxu1 %vm8870_vm1, %v21329_v40  ;;  %16286 = vmatpush3.bf16.msra.mxu1 %v16283_v53  ;;  %v10463_v40 = vld [vmem:[%s22537_s13 + $0x20] sm:$0xff] }
 0x7df   : > { %16288 = vmatprep.subr.bf16.mxu1 %v16287_v0 }
 0x7e1   : > { %15753 = vmatmul.mubr.msk.f32.gmra.mrb[34].mxu1 %vm8870_vm1, %v21352_v6 }
 0x7e2   : > { %15755 = vmatprep.mubr.msk.f32.mxu1 %vm8870_vm1, %v21375_v38  ;;  %16290 = vmatpush3.bf16.msra.mxu1 %v16287_v0  ;;  %v10466_v38 = vld [vmem:[%s22537_s13 + $0x38] sm:$0xff] }
 0x7e5   : > { %15756 = vmatmul.mubr.msk.f32.gmra.mrb[36].mxu1 %vm8870_vm1, %v21405_v18  ;;  %v10455_v18 = vld [vmem:[#allocation5 + $0x8] sm:$0xff] }
 0x7e6   : > { %15758 = vmatprep.mubr.msk.f32.mxu1 %vm8870_vm1, %v21599_v55  ;;  %15789 = vmatprep.mubr.msk.f32.mxu0 %vm8870_vm1, %v10455_v18 }
 0x7e9   : > { %15759 = vmatmul.mubr.msk.f32.gmra.mrb[38].mxu1 %vm8870_vm1, %v10045_v49 }
 0x7ea   : > { %15769 = vmatprep.mubr.msk.f32.mxu1 %vm8870_vm1, %v21324_v21  ;;  %v10202_v21 = vsel %vm9268_vm15, %v10194_v9, 0.0 }
 0x7ed   : > { %15770 = vmatmul.mubr.msk.f32.vlgmr.msra.gmra.mrb[32].mxu1 %vm8870_vm1, %v21345_v29  ;;  %v10464_v29 = vld [vmem:[%s22537_s13 + $0x28] sm:$0xff] }
 0x7ee   : > { %15772 = vmatprep.mubr.msk.f32.mxu1 %vm8870_vm1, %v21368_v50  ;;  %v16291_v6 = vpack.c.bf16 %v10464_v29, %v10463_v40  ;;  %v10465_v50 = vld [vmem:[%s22537_s13 + $0x30] sm:$0xff] }
 0x7f0   : > { %16292 = vmatprep.subr.bf16.mxu0 %v16291_v6 }
 0x7f1   : > { %15773 = vmatmul.mubr.msk.f32.gmra.mrb[34].mxu1 %vm8870_vm1, %v21390_v26  ;;  %16294 = vmatpush3.bf16.msra.mxu0 %v16291_v6  ;;  %v16295_v26 = vpack.c.bf16 %v10466_v38, %v10465_v50 }
 0x7f2   : > { %15775 = vmatprep.mubr.msk.f32.mxu1 %vm8870_vm1, %v21424_v22  ;;  %v10452_v22 = vld [vmem:[%s22537_s13 + $0x8] sm:$0xff] }
 0x7f3   : > { %16296 = vmatprep.subr.bf16.mxu0 %v16295_v26 }
 0x7f5   : > { %15776 = vmatmul.mubr.msk.f32.gmra.mrb[36].mxu1 %vm8870_vm1, %v21450_v30  ;;  %16298 = vmatpush3.bf16.msra.mxu0 %v16295_v26  ;;  %v16299_v30 = vpack.c.bf16 %v10452_v22, %v10451_v8 }
 0x7f6   : > { %15778 = vmatprep.mubr.msk.f32.mxu1 %vm8870_vm1, %v10201_v63 }
 0x7f7   : > { %16300 = vmatprep.subr.bf16.mxu0 %v16299_v30 }
 0x7f9   : > { %15779 = vmatmul.mubr.msk.f32.gmra.mrb[38].mxu1 %vm8870_vm1, %v10202_v21 }
 0x8c0   : > { %v15771_v12 = vpop.f32.mrb[32].mxu1 }
 0x8c1   : > { %v10352_v39 = vadd.f32 %v15771_v12, %v13609_v52  ;;  %v10297_v13 = vpop.f32.mrb[33].mxu1 }
 0x8c2   : > { %v10351_v37 = vadd.f32 %v13609_v52, %v10297_v13 }
 0x8c3   : > { %v10360_v42 = vmax.f32 %v10352_v39, 0.0 }
 0x8c4   : > { %v10359_v36 = vmax.f32 %v10351_v37, 0.0  ;;  %v15774_v5 = vpop.f32.mrb[34].mxu1  ;;  %v10395_v37 = vld [vmem:[#allocation5 + $0x7] sm:$0xff] }
 0x8c5   : > { %10370 = vst.msk [vmem:[#allocation5 + $0x18] sm:$0xff] %vm8870_vm1, %v10360_v42  ;;  %v10354_v32 = vadd.f32 %v15774_v5, %v13609_v52  ;;  %v10307_v11 = vpop.f32.mrb[35].mxu1  ;;  %v10775_v42 = vld [vmem:[%s22537_s13 + $0x50] sm:$0xff] }
 0x8c6   : > { %10369 = vst.msk [vmem:[#allocation5 + $0x10] sm:$0xff] %vm8870_vm1, %v10359_v36  ;;  %v10353_v55 = vadd.f32 %v13609_v52, %v10307_v11  ;;  %v10776_v36 = vld [vmem:[%s22537_s13 + $0x58] sm:$0xff] }
 0x8c7   : > { %v10362_v33 = vmax.f32 %v10354_v32, 0.0 }
 0x8c8   : > { %v10361_v2 = vmax.f32 %v10353_v55, 0.0  ;;  %v15777_v56 = vpop.f32.mrb[36].mxu1 }
 0x8c9   : > { %10372 = vst.msk [vmem:[#allocation5 + $0x28] sm:$0xff] %vm8870_vm1, %v10362_v33  ;;  %v10356_v1 = vadd.f32 %v15777_v56, %v13609_v52  ;;  %v10317_v14 = vpop.f32.mrb[37].mxu1 }
 0x8ca   : > { %10371 = vst.msk [vmem:[#allocation5 + $0x20] sm:$0xff] %vm8870_vm1, %v10361_v2  ;;  %v10355_v7 = vadd.f32 %v13609_v52, %v10317_v14  ;;  %v10443_v2 = vsel %vm10435_vm3, %v10395_v37, 0.0  ;;  %v10932_v37 = vld [vmem:[%s22537_s13 + $0x70] sm:$0xff] }
 0x8cb   : > { %v10364_v44 = vmax.f32 %v10356_v1, 0.0 }
 0x8cc   : > { %v10363_v15 = vmax.f32 %v10355_v7, 0.0  ;;  %v15780_v31 = vpop.f32.mrb[38].mxu1  ;;  %v21782_v41 = vld [vmem:[#allocation5 + $0x18] sm:$0xff]  ;;  %v16311_v7 = vpack.c.bf16 %v10776_v36, %v10775_v42 }
 0x8cd   : > { %10374 = vst.msk [vmem:[#allocation5 + $0x38] sm:$0xff] %vm8870_vm1, %v10364_v44  ;;  %v10358_v25 = vadd.f32 %v15780_v31, %v13609_v52  ;;  %v10327_v43 = vpop.f32.mrb[39].mxu1  ;;  %v21771_v10 = vld [vmem:[#allocation5 + $0x10] sm:$0xff]  ;;  %v10930_v31 = vld [vmem:[%s22537_s13 + $0x60] sm:$0xff]  ;;  %v10933_v42 = vld [vmem:[%s22537_s13 + $0x78] sm:$0xff] }
 0x8ce   : > { %10373 = vst.msk [vmem:[#allocation5 + $0x30] sm:$0xff] %vm8870_vm1, %v10363_v15  ;;  %v10357_v45 = vadd.f32 %v13609_v52, %v10327_v43  ;;  %15790 = vmatmul.mubr.msk.f32.vlgmr.msra.gmra.mrb[78].mxu0 %vm8870_vm1, %v21771_v10  ;;  %v21855_v52 = vpop.permute.xlu0 %10749  ;;  %v21908_v14 = vld [vmem:[#allocation5 + $0xf] sm:$0xff]  ;;  %v21914_v57 = vld [vmem:[#allocation5 + $0x17] sm:$0xff] }
 0x8cf   : > { %v10366_v53 = vmax.f32 %v10358_v25, 0.0  ;;  %15792 = vmatprep.mubr.msk.f32.mxu0 %vm8870_vm1, %v21782_v41  ;;  %16302 = vmatpush3.bf16.msra.mxu0 %v16299_v30  ;;  %v21853_v30 = vpop.permute.xlu1 %10746  ;;  %vm10762_vm4 = vcmp.eq.s32.totalorder %v21855_v52, 1  ;;  %v10444_v15 = vsel %vm10436_vm10, %v21908_v14, 0.0  ;;  %v10445_v25 = vsel %vm10437_vm11, %v21914_v57, 0.0  ;;  %v21963_v36 = vld [vmem:[#allocation5 + $0x11] sm:$0xff] }
 0x8d0   : > { %v10365_v23 = vmax.f32 %v10357_v45, 0.0  ;;  %16304 = vmatprep.subr.bf16.mxu0 %v16303_v20  ;;  %v21814_v21 = vld [vmem:[#allocation5 + $0x28] sm:$0xff]  ;;  %vm22785_vm15 = vcmp.eq.s32.totalorder %v21853_v30, 1  ;;  %v11385_v52 = vsel %vm10435_vm3, %v21914_v57, 0.0 }
 0x8d1   : > { %v21793_v27 = vld [vmem:[#allocation5 + $0x19] sm:$0xff]  ;;  %v21795_v0 = vld [vmem:[#allocation5 + $0x21] sm:$0xff]  ;;  %10376 = vst.msk [vmem:[#allocation5 + $0x48] sm:$0xff] %vm8870_vm1, %v10366_v53 }
 0x8d2   : > { %v21799_v49 = vld [vmem:[#allocation5 + $0x20] sm:$0xff]  ;;  %v21804_v63 = vsel %vm10758_vm12, %v21795_v0, 0.0  ;;  %v21809_v9 = vsel %vm10757_vm5, %v21793_v27, 0.0  ;;  %10375 = vst.msk [vmem:[#allocation5 + $0x40] sm:$0xff] %vm8870_vm1, %v10365_v23  ;;  %v10725_v23 = vld [vmem:[#allocation5 + $0x9] sm:$0xff]  ;;  %v11230_v60 = vsel %vm10759_vm7, %v21795_v0, 0.0 }
 0x8d3   : > { %15793 = vmatmul.mubr.msk.f32.gmra.mrb[80].mxu0 %vm8870_vm1, %v21799_v49  ;;  %v21816_v40 = vld [vmem:[#allocation5 + $0x1f] sm:$0xff]  ;;  %v21818_v29 = vld [vmem:[#allocation5 + $0x27] sm:$0xff] }
 0x8d4   : > { %15795 = vmatprep.mubr.msk.f32.mxu0 %vm8870_vm1, %v21814_v21  ;;  %16306 = vmatpush3.bf16.msra.mxu0 %v16303_v20  ;;  %v21828_v6 = vsel %vm10436_vm10, %v21816_v40, 0.0  ;;  %v21833_v50 = vsel %vm10437_vm11, %v21818_v29, 0.0  ;;  %v21859_v12 = vld [vmem:[#allocation5 + $0x38] sm:$0xff]  ;;  %v10931_v20 = vld [vmem:[%s22537_s13 + $0x68] sm:$0xff]  ;;  %v10446_v46 = vsel %vm10438_vm2, %v21816_v40, 0.0  ;;  %v10447_v47 = vsel %vm10439_vm14, %v21818_v29, 0.0 }
 0x8d5   : > { %16308 = vmatprep.subr.bf16.mxu0 %v21790_v58  ;;  %v21836_v38 = vld [vmem:[#allocation5 + $0x29] sm:$0xff]  ;;  %v21839_v26 = vld [vmem:[#allocation5 + $0x31] sm:$0xff]  ;;  %v16315_v43 = vpack.c.bf16 %v10931_v20, %v10930_v31  ;;  %v11079_v31 = vld [vmem:[%s22537_s13 + $0x80] sm:$0xff] }
 0x8d6   : > { %v21841_v18 = vld [vmem:[#allocation5 + $0x30] sm:$0xff]  ;;  %v21846_v8 = vsel %vm10759_vm7, %v21836_v38, 0.0  ;;  %v21851_v22 = vsel %vm10760_vm13, %v21839_v26, 0.0  ;;  %v11080_v20 = vld [vmem:[%s22537_s13 + $0x88] sm:$0xff] }
 0x8d7   : > { %15796 = vmatmul.mubr.msk.f32.gmra.mrb[82].mxu0 %vm8870_vm1, %v21841_v18  ;;  %v21861_v39 = vld [vmem:[#allocation5 + $0x2f] sm:$0xff]  ;;  %v21863_v13 = vld [vmem:[#allocation5 + $0x37] sm:$0xff] }
 0x8d8   : > { %15798 = vmatprep.mubr.msk.f32.mxu0 %vm8870_vm1, %v21859_v12  ;;  %v21878_v5 = vsel %vm10438_vm2, %v21861_v39, 0.0  ;;  %v21883_v32 = vsel %vm10439_vm14, %v21863_v13, 0.0  ;;  %v10448_v45 = vsel %vm10440_vm8, %v21861_v39, 0.0  ;;  %v10449_v53 = vsel %vm10441_vm9, %v21863_v13, 0.0  ;;  %v11689_v35 = vld [vmem:[#allocation5 + $0x49] sm:$0xff] }
 0x8d9   : > { %v21887_v11 = vld [vmem:[#allocation5 + $0x39] sm:$0xff]  ;;  %v21890_v55 = vld [vmem:[#allocation5 + $0x41] sm:$0xff]  ;;  %v10927_v17 = vsel %vm10440_vm8, %v21863_v13, 0.0 }
 0x8da   : > { %v21892_v33 = vld [vmem:[#allocation5 + $0x40] sm:$0xff]  ;;  %v21899_v56 = vsel %vm22785_vm15, %v21887_v11, 0.0  ;;  %v21904_v1 = vsel %vm10762_vm4, %v21890_v55, 0.0  ;;  %v11233_v4 = vsel %vm10762_vm4, %v21887_v11, 0.0 }
 0x8db   : > { %15799 = vmatmul.mubr.msk.f32.gmra.mrb[84].mxu0 %vm8870_vm1, %v21892_v33  ;;  %v21910_v61 = vld [vmem:[#allocation5 + $0x3f] sm:$0xff] }
 0x8dc   : > { %15809 = vmatprep.mubr.msk.f32.mxu0 %vm8870_vm1, %v10443_v2  ;;  %v21919_v44 = vsel %vm10440_vm8, %v21910_v61, 0.0  ;;  %v10765_v2 = vsel %vm10757_vm5, %v10725_v23, 0.0  ;;  %v21993_v23 = vpop.permute.xlu0 %10755  ;;  %v10928_v3 = vsel %vm10441_vm9, %v21910_v61, 0.0  ;;  %v11393_v13 = vld [vmem:[%s22537_s13 + $0xc0] sm:$0xff] }
 0x8df   : > { %15810 = vmatmul.mubr.msk.f32.vlgmr.msra.gmra.mrb[78].mxu0 %vm8870_vm1, %v10444_v15  ;;  %v10766_v15 = vsel %vm10758_vm12, %v21963_v36, 0.0 }
 0x8e0   : > { %15812 = vmatprep.mubr.msk.f32.mxu0 %vm8870_vm1, %v10445_v25  ;;  %16310 = vmatpush3.bf16.msra.mxu0 %v21790_v58  ;;  %v10450_v58 = vsel %vm10442_vm0, %v21910_v61, 0.0  ;;  %v10767_v25 = vsel %vm10759_vm7, %v21793_v27, 0.0  ;;  %v11394_v61 = vld [vmem:[%s22537_s13 + $0xc8] sm:$0xff] }
 0x8e1   : > { %16312 = vmatprep.subr.bf16.mxu0 %v16311_v7 }
 0x8e3   : > { %15813 = vmatmul.mubr.msk.f32.gmra.mrb[80].mxu0 %vm8870_vm1, %v10446_v46  ;;  %v21983_v46 = vpop.permute.xlu1 %10752 }
 0x8e4   : > { %15815 = vmatprep.mubr.msk.f32.mxu0 %vm8870_vm1, %v10447_v47  ;;  %16314 = vmatpush3.bf16.msra.mxu0 %v16311_v7  ;;  %v16319_v7 = vpack.c.bf16 %v10933_v42, %v10932_v37  ;;  %v16323_v47 = vpack.c.bf16 %v11080_v20, %v11079_v31  ;;  %vm10763_vm6 = vcmp.eq.s32.totalorder %v21983_v46, 1  ;;  %v11081_v42 = vld [vmem:[%s22537_s13 + $0x90] sm:$0xff]  ;;  %v10923_v31 = vsel %vm10436_vm10, %v21914_v57, 0.0  ;;  %v11236_v20 = vld [vmem:[%s22537_s13 + $0xa0] sm:$0xff] }
 0x8e5   : > { %16316 = vmatprep.subr.bf16.mxu0 %v16315_v43  ;;  %v11384_v57 = vld [vmem:[#allocation5 + $0x4f] sm:$0xff] }
 0x8e7   : > { %15816 = vmatmul.mubr.msk.f32.gmra.mrb[82].mxu0 %vm8870_vm1, %v10448_v45  ;;  %v10768_v45 = vsel %vm10760_vm13, %v21795_v0, 0.0  ;;  %v11234_v0 = vsel %vm10763_vm6, %v21890_v55, 0.0 }
 0x8e8   : > { %15818 = vmatprep.mubr.msk.f32.mxu0 %vm8870_vm1, %v10449_v53  ;;  %v10769_v53 = vsel %vm22785_vm15, %v21836_v38, 0.0  ;;  %vm10764_vm15 = vcmp.eq.s32.totalorder %v21993_v23, 1 }
 0x8e9   : > { %v10772_v37 = vsel %vm10764_vm15, %v21890_v55, 0.0  ;;  %v11699_v55 = vld [vmem:[%s22537_s13 + $0x100] sm:$0xff] }
 0x8eb   : > { %15819 = vmatmul.mubr.msk.f32.gmra.mrb[84].mxu0 %vm8870_vm1, %v10450_v58  ;;  %v10771_v58 = vsel %vm10763_vm6, %v21887_v11, 0.0 }
 0x8ec   : > { %15829 = vmatprep.mubr.msk.f32.mxu0 %vm8870_vm1, %v10765_v2  ;;  %v11082_v2 = vld [vmem:[%s22537_s13 + $0x98] sm:$0xff] }
 0x8ef   : > { %15830 = vmatmul.mubr.msk.f32.vlgmr.msra.gmra.mrb[78].mxu0 %vm8870_vm1, %v10766_v15  ;;  %v16327_v15 = vpack.c.bf16 %v11082_v2, %v11081_v42  ;;  %v11229_v2 = vsel %vm10758_vm12, %v21793_v27, 0.0  ;;  %v11231_v27 = vsel %vm10760_vm13, %v21836_v38, 0.0  ;;  %vm23429_vm12 = vcmp.eq.s32.totalorder %v21853_v30, 1  ;;  %v11545_v30 = vld [vmem:[%s22537_s13 + $0xf8] sm:$0xff] }
 0x8f0   : > { %15832 = vmatprep.mubr.msk.f32.mxu0 %vm8870_vm1, %v10767_v25  ;;  %16318 = vmatpush3.bf16.msra.mxu0 %v16315_v43  ;;  %v10770_v43 = vsel %vm10762_vm4, %v21839_v26, 0.0  ;;  %v11237_v25 = vld [vmem:[%s22537_s13 + $0xa8] sm:$0xff]  ;;  %v11235_v38 = vsel %vm10764_vm15, %v11689_v35, 0.0 }
 0x8f1   : > { %16320 = vmatprep.subr.bf16.mxu0 %v16319_v7  ;;  %v16331_v34 = vpack.c.bf16 %v11237_v25, %v11236_v20 }
 0x8f3   : > { %15833 = vmatmul.mubr.msk.f32.gmra.mrb[80].mxu0 %vm8870_vm1, %v10768_v45  ;;  %v10925_v45 = vsel %vm10438_vm2, %v21818_v29, 0.0  ;;  %v11238_v29 = vld [vmem:[%s22537_s13 + $0xb0] sm:$0xff] }
 0x8f4   : > { %15835 = vmatprep.mubr.msk.f32.mxu0 %vm8870_vm1, %v10769_v53  ;;  %16322 = vmatpush3.bf16.msra.mxu0 %v16319_v7  ;;  %v10922_v7 = vsel %vm10435_vm3, %v21908_v14, 0.0  ;;  %v10924_v14 = vsel %vm10437_vm11, %v21816_v40, 0.0  ;;  %v10926_v53 = vsel %vm10439_vm14, %v21861_v39, 0.0  ;;  %v22048_v40 = vld [vmem:[#allocation5 + $0x47] sm:$0xff]  ;;  %v16335_v39 = vpack.c.bf16 %v11239_v19, %v11238_v29 }
 0x8f5   : > { %16324 = vmatprep.subr.bf16.mxu0 %v16323_v47  ;;  %v10929_v51 = vsel %vm10442_vm0, %v22048_v40, 0.0 }
 0x8f7   : > { %15836 = vmatmul.mubr.msk.f32.gmra.mrb[82].mxu0 %vm8870_vm1, %v10770_v43  ;;  %v11395_v43 = vld [vmem:[%s22537_s13 + $0xd0] sm:$0xff] }
 0x8f8   : > { %15838 = vmatprep.mubr.msk.f32.mxu0 %vm8870_vm1, %v10771_v58  ;;  %v11396_v58 = vld [vmem:[%s22537_s13 + $0xd8] sm:$0xff] }
 0x8f9   : > { %v16343_v42 = vpack.c.bf16 %v11396_v58, %v11395_v43 }
 0x8fb   : > { %15839 = vmatmul.mubr.msk.f32.gmra.mrb[84].mxu0 %vm8870_vm1, %v10772_v37  ;;  %v11228_v37 = vsel %vm10757_vm5, %v21963_v36, 0.0  ;;  %v11232_v36 = vsel %vm23429_vm12, %v21839_v26, 0.0  ;;  %v11544_v26 = vld [vmem:[%s22537_s13 + $0xf0] sm:$0xff]  ;;  %vm11865_vm5 = vcmask 523264  }
 0x8fc   : > { %15849 = vmatprep.mubr.msk.f32.mxu0 %vm8870_vm1, %v10922_v7  ;;  %v11542_v7 = vld [vmem:[%s22537_s13 + $0xe0] sm:$0xff]  ;;  %v16351_v11 = vpack.c.bf16 %v11545_v30, %v11544_v26  ;;  %11947 = vst.msk [vmem:[#allocation6] sm:$0xff] %vm11865_vm5, %v23427_v62  ;;  %11950 = vst.msk [vmem:[#allocation6 + $0x18] sm:$0xff] %vm11865_vm5, %v23427_v62  ;;  %v11986_v26 = vld [vmem:[%s22539_s15 + $0x78] sm:$0xff] }
 0x8fd   : > { %v12830_v62 = vld [vmem:[%s22530_s6] sm:$0xff] }
 0x8ff   : > { %15850 = vmatmul.mubr.msk.f32.vlgmr.msra.gmra.mrb[78].mxu0 %vm8870_vm1, %v10923_v31  ;;  %v11700_v31 = vld [vmem:[%s22537_s13 + $0x108] sm:$0xff] }
 0x900   : > { %15852 = vmatprep.mubr.msk.f32.mxu0 %vm8870_vm1, %v10924_v14  ;;  %16326 = vmatpush3.bf16.msra.mxu0 %v16323_v47  ;;  %v16339_v47 = vpack.c.bf16 %v11394_v61, %v11393_v13  ;;  %v16355_v28 = vpack.c.bf16 %v11700_v31, %v11699_v55 }
 0x901   : > { %16328 = vmatprep.subr.bf16.mxu0 %v16327_v15 }
 0x903   : > { %15853 = vmatmul.mubr.msk.f32.gmra.mrb[80].mxu0 %vm8870_vm1, %v10925_v45 }
 0x904   : > { %15855 = vmatprep.mubr.msk.f32.mxu0 %vm8870_vm1, %v10926_v53  ;;  %16330 = vmatpush3.bf16.msra.mxu0 %v16327_v15  ;;  %v11543_v15 = vld [vmem:[%s22537_s13 + $0xe8] sm:$0xff] }
 0x905   : > { %16332 = vmatprep.subr.bf16.mxu0 %v16331_v34  ;;  %v16347_v48 = vpack.c.bf16 %v11543_v15, %v11542_v7 }
 0x907   : > { %15856 = vmatmul.mubr.msk.f32.gmra.mrb[82].mxu0 %vm8870_vm1, %v10927_v17 }
 0x908   : > { %15858 = vmatprep.mubr.msk.f32.mxu0 %vm8870_vm1, %v10928_v3 }
 0x90b   : > { %15859 = vmatmul.mubr.msk.f32.gmra.mrb[84].mxu0 %vm8870_vm1, %v10929_v51 }
 0x90c   : > { %15869 = vmatprep.mubr.msk.f32.mxu0 %vm8870_vm1, %v21771_v10  ;;  %v22081_v10 = vld [vmem:[#allocation5 + $0x48] sm:$0xff] }
 0x90f   : > { %15870 = vmatmul.mubr.msk.f32.vlgmr.msra.gmra.mrb[78].mxu0 %vm8870_vm1, %v21782_v41 }
 0x910   : > { %15872 = vmatprep.mubr.msk.f32.mxu0 %vm8870_vm1, %v21799_v49  ;;  %16334 = vmatpush3.bf16.msra.mxu0 %v16331_v34 }
 0x911   : > { %16336 = vmatprep.subr.bf16.mxu0 %v16335_v39 }
 0x913   : > { %15873 = vmatmul.mubr.msk.f32.gmra.mrb[80].mxu0 %vm8870_vm1, %v21814_v21 }
 0x914   : > { %15875 = vmatprep.mubr.msk.f32.mxu0 %vm8870_vm1, %v21841_v18  ;;  %16338 = vmatpush3.bf16.msra.mxu0 %v16335_v39 }
 0x915   : > { %16340 = vmatprep.subr.bf16.mxu0 %v16339_v47 }
 0x917   : > { %15876 = vmatmul.mubr.msk.f32.gmra.mrb[82].mxu0 %vm8870_vm1, %v21859_v12 }
 0x918   : > { %15878 = vmatprep.mubr.msk.f32.mxu0 %vm8870_vm1, %v21892_v33 }
 0x91b   : > { %15879 = vmatmul.mubr.msk.f32.gmra.mrb[84].mxu0 %vm8870_vm1, %v22081_v10 }
 0x91c   : > { %15889 = vmatprep.mubr.msk.f32.mxu0 %vm8870_vm1, %v11228_v37  ;;  %v11979_v37 = vld [vmem:[%s22539_s15 + $0x40] sm:$0xff] }
 0x91f   : > { %15890 = vmatmul.mubr.msk.f32.vlgmr.msra.gmra.mrb[78].mxu0 %vm8870_vm1, %v11229_v2 }
 0x920   : > { %15892 = vmatprep.mubr.msk.f32.mxu0 %vm8870_vm1, %v11230_v60  ;;  %16342 = vmatpush3.bf16.msra.mxu0 %v16339_v47  ;;  %v11981_v60 = vld [vmem:[%s22539_s15 + $0x50] sm:$0xff] }
 0x921   : > { %16344 = vmatprep.subr.bf16.mxu0 %v16343_v42 }
 0x923   : > { %15893 = vmatmul.mubr.msk.f32.gmra.mrb[80].mxu0 %vm8870_vm1, %v11231_v27  ;;  %v11864_v27 = vld [vmem:[%s22529_s5 + $0x8] sm:$0xff] }
 0x924   : > { %15895 = vmatprep.mubr.msk.f32.mxu0 %vm8870_vm1, %v11232_v36  ;;  %16346 = vmatpush3.bf16.msra.mxu0 %v16343_v42  ;;  %v11980_v42 = vld [vmem:[%s22539_s15 + $0x48] sm:$0xff] }
 0x925   : > { %16348 = vmatprep.subr.bf16.mxu0 %v16347_v48  ;;  %v16379_v15 = vpack.c.bf16 %v11980_v42, %v11979_v37  ;;  %v12260_v37 = vld [vmem:[%s22539_s15 + $0xe0] sm:$0xff]  ;;  %v12261_v42 = vld [vmem:[%s22539_s15 + $0xe8] sm:$0xff] }
 0x927   : > { %15896 = vmatmul.mubr.msk.f32.gmra.mrb[82].mxu0 %vm8870_vm1, %v11233_v4  ;;  %v11983_v4 = vld [vmem:[%s22539_s15 + $0x60] sm:$0xff] }
 0x928   : > { %15898 = vmatprep.mubr.msk.f32.mxu0 %vm8870_vm1, %v11234_v0  ;;  %v11984_v0 = vld [vmem:[%s22539_s15 + $0x68] sm:$0xff] }
 0x92b   : > { %15899 = vmatmul.mubr.msk.f32.gmra.mrb[84].mxu0 %vm8870_vm1, %v11235_v38  ;;  %v16387_v38 = vpack.c.bf16 %v11984_v0, %v11983_v4  ;;  %v12351_v0 = vld [vmem:[%s22539_s15 + $0x110] sm:$0xff] }
 0x92c   : > { %15909 = vmatprep.mubr.msk.f32.mxu0 %vm8870_vm1, %v11385_v52  ;;  %v11969_v52 = vld [vmem:[%s22539_s15] sm:$0xff] }
 0x92f   : > { %15910 = vmatmul.mubr.msk.f32.vlgmr.msra.gmra.mrb[78].mxu0 %vm8870_vm1, %v21828_v6  ;;  %v11391_v6 = vsel %vm10441_vm9, %v22048_v40, 0.0 }
 0x930   : > { %15912 = vmatprep.mubr.msk.f32.mxu0 %vm8870_vm1, %v21833_v50  ;;  %16350 = vmatpush3.bf16.msra.mxu0 %v16347_v48  ;;  %v11392_v50 = vsel %vm10442_vm0, %v11384_v57, 0.0  ;;  %v11982_v48 = vld [vmem:[%s22539_s15 + $0x58] sm:$0xff]  ;;  %v11971_v57 = vld [vmem:[%s22539_s15 + $0x10] sm:$0xff] }
 0x931   : > { %16352 = vmatprep.subr.bf16.mxu0 %v16351_v11  ;;  %v16383_v36 = vpack.c.bf16 %v11982_v48, %v11981_v60  ;;  %v12263_v60 = vld [vmem:[%s22539_s15 + $0xf8] sm:$0xff] }
 0x933   : > { %15913 = vmatmul.mubr.msk.f32.gmra.mrb[80].mxu0 %vm8870_vm1, %v21878_v5  ;;  %v11701_v5 = vld [vmem:[%s22537_s13 + $0x110] sm:$0xff] }
 0x934   : > { %15915 = vmatprep.mubr.msk.f32.mxu0 %vm8870_vm1, %v21883_v32  ;;  %16354 = vmatpush3.bf16.msra.mxu0 %v16351_v11  ;;  %v11702_v32 = vld [vmem:[%s22537_s13 + $0x118] sm:$0xff]  ;;  %v11970_v11 = vld [vmem:[%s22539_s15 + $0x8] sm:$0xff] }
 0x935   : > { %16356 = vmatprep.subr.bf16.mxu0 %v16355_v28  ;;  %v16359_v16 = vpack.c.bf16 %v11702_v32, %v11701_v5  ;;  %v16395_v55 = vpack.c.bf16 %v11970_v11, %v11969_v52  ;;  %v12353_v52 = vld [vmem:[%s22539_s15 + $0x120] sm:$0xff]  ;;  %v12354_v11 = vld [vmem:[%s22539_s15 + $0x128] sm:$0xff] }
 0x937   : > { %15916 = vmatmul.mubr.msk.f32.gmra.mrb[82].mxu0 %vm8870_vm1, %v21919_v44 }
 0x938   : > { %15918 = vmatprep.mubr.msk.f32.mxu0 %vm8870_vm1, %v11391_v6 }
 0x93b   : > { %15919 = vmatmul.mubr.msk.f32.gmra.mrb[84].mxu0 %vm8870_vm1, %v11392_v50  ;;  %v11972_v50 = vld [vmem:[%s22539_s15 + $0x18] sm:$0xff] }
 0x93c   : > { %15929 = vmatprep.mubr.msk.f32.mxu0 %vm8870_vm1, %v21782_v41  ;;  %v11697_v41 = vsel %vm10763_vm6, %v11689_v35, 0.0  ;;  %v11985_v35 = vld [vmem:[%s22539_s15 + $0x70] sm:$0xff] }
 0x93d   : > { %v16391_v30 = vpack.c.bf16 %v11986_v26, %v11985_v35  ;;  %v12352_v35 = vld [vmem:[%s22539_s15 + $0x118] sm:$0xff] }
 0x93e   : > { %v16447_v26 = vpack.c.bf16 %v12352_v35, %v12351_v0  ;;  %v12731_v0 = vld [vmem:[%s22539_s15 + $0x220] sm:$0xff]  ;;  %v12732_v35 = vld [vmem:[%s22539_s15 + $0x228] sm:$0xff] }
 0x93f   : > { %15930 = vmatmul.mubr.msk.f32.vlgmr.msra.gmra.mrb[78].mxu0 %vm8870_vm1, %v21799_v49  ;;  %v11690_v49 = vld [vmem:[#allocation5 + $0x51] sm:$0xff] }
 0x940   : > { %15932 = vmatprep.mubr.msk.f32.mxu0 %vm8870_vm1, %v21814_v21  ;;  %16358 = vmatpush3.bf16.msra.mxu0 %v16355_v28  ;;  %v11951_v21 = vld [vmem:[%s22527_s3] sm:$0xff] }
 0x941   : > { %16360 = vmatprep.subr.bf16.mxu0 %v16359_v16 }
 0x943   : > { %15933 = vmatmul.mubr.msk.f32.gmra.mrb[80].mxu0 %vm8870_vm1, %v21841_v18  ;;  %v11952_v18 = vld [vmem:[%s22527_s3 + $0x8] sm:$0xff] }
 0x944   : > { %15935 = vmatprep.mubr.msk.f32.mxu0 %vm8870_vm1, %v21859_v12  ;;  %16362 = vmatpush3.bf16.msra.mxu0 %v16359_v16  ;;  %vm11954_vm11 = vcmp.gt.f32.partialorder %v11952_v18, 0.5  ;;  %v12831_v12 = vld [vmem:[%s22530_s6 + $0x8] sm:$0xff]  ;;  %v16399_v16 = vpack.c.bf16 %v11972_v50, %v11971_v57  ;;  %v12444_v50 = vld [vmem:[%s22539_s15 + $0x140] sm:$0xff] }
 0x947   : > { %15936 = vmatmul.mubr.msk.f32.gmra.mrb[82].mxu0 %vm8870_vm1, %v21892_v33 }
 0x948   : > { %15938 = vmatprep.mubr.msk.f32.mxu0 %vm8870_vm1, %v22081_v10 }
 0x94b   : > { %15939 = vmatmul.mubr.msk.f32.gmra.mrb[84].mxu0 %vm8870_vm1, %v11541_v24 }
 0x94c   : > { %15949 = vmatprep.mubr.msk.f32.mxu0 %vm8870_vm1, %v21809_v9  ;;  %v11863_v9 = vld [vmem:[%s22529_s5] sm:$0xff] }
 0x94d   : > { %15977 = vmatprep.mubr.msk.f32.mxu1 %vm11865_vm5, %v11863_v9 }
 0x94f   : > { %15950 = vmatmul.mubr.msk.f32.vlgmr.msra.gmra.mrb[78].mxu0 %vm8870_vm1, %v21804_v63  ;;  %v11698_v63 = vsel %vm10764_vm15, %v11690_v49, 0.0  ;;  %v11973_v49 = vld [vmem:[%s22539_s15 + $0x20] sm:$0xff] }
 0x950   : > { %15952 = vmatprep.mubr.msk.f32.mxu0 %vm8870_vm1, %v21846_v8 }
 0x953   : > { %15953 = vmatmul.mubr.msk.f32.gmra.mrb[80].mxu0 %vm8870_vm1, %v21851_v22  ;;  %v11958_v22 = vsel %vm11954_vm11, 1, %v23424_v54 }
 0x954   : > { %15955 = vmatprep.mubr.msk.f32.mxu0 %vm8870_vm1, %v21899_v56  ;;  %11963 = vperm.xlu0 %17210, %v11958_v22  }
 0x957   : > { %15956 = vmatmul.mubr.msk.f32.gmra.mrb[82].mxu0 %vm8870_vm1, %v21904_v1 }
 0x958   : > { %15958 = vmatprep.mubr.msk.f32.mxu0 %vm8870_vm1, %v11697_v41  ;;  %12834 = vperm.xlu0 %17210, %v12830_v62  }
 0x95b   : > { %15959 = vmatmul.mubr.msk.f32.gmra.mrb[84].mxu0 %vm8870_vm1, %v11698_v63  ;;  %vm11953_vm1 = vcmp.gt.f32.partialorder %v11951_v21, 0.5  ;;  %v11974_v63 = vld [vmem:[%s22539_s15 + $0x28] sm:$0xff] }
 0x95c   : > { %v11957_v8 = vsel %vm11953_vm1, 1, %v23424_v54  ;;  %12839 = vperm.xlu0 %17210, %v12831_v12   ;;  %v13682_v54 = vld [vmem:[%s22538_s14] ss:$0 sm:$0xff] }
 0x95d   : > { %11960 = vperm.xlu1 %17209, %v11957_v8  }
 0x960   : > { %17212 = vset.pattern.permute.xlu0 %v23425_v59 }
 0x961   : > { %17211 = vset.pattern.permute.xlu1 %v23425_v59 }
 0x962   : > { %12152 = vperm.xlu1 %17211, %v11957_v8  }
 0x966   : > { %12155 = vperm.xlu1 %17211, %v11958_v22   ;;  %v16403_v22 = vpack.c.bf16 %v11974_v63, %v11973_v49  ;;  %v12447_v49 = vld [vmem:[%s22539_s15 + $0x158] sm:$0xff] }
 0x96a   : > { %12843 = vperm.xlu1 %17211, %v12830_v62  }
 0x96e   : > { %12847 = vperm.xlu1 %17211, %v12831_v12   ;;  %v11975_v12 = vld [vmem:[%s22539_s15 + $0x30] sm:$0xff] }
 0x9dc   : > { %v22263_v6 = vpop.permute.xlu1 %11960 }
 0x9dd   : > { %vm11965_vm10 = vcmp.eq.s32.totalorder %v22263_v6, 1  ;;  %v12356_v6 = vld [vmem:[%s22539_s15 + $0x138] sm:$0xff] }
 0x9e1   : > { %v22274_v41 = vpop.permute.xlu1 %12152 }
 0x9e2   : > { %vm12157_vm7 = vcmp.eq.s32.totalorder %v22274_v41, 1  ;;  %v12539_v41 = vld [vmem:[%s22539_s15 + $0x180] sm:$0xff] }
 0xa22   : > { %v15951_v33 = vpop.f32.mrb[78].mxu0 }
 0xa23   : > { %v11848_v56 = vadd.f32 %v15951_v33, %v13682_v54  ;;  %v11793_v1 = vpop.f32.mrb[79].mxu0 }
 0xa24   : > { %v11847_v44 = vadd.f32 %v13682_v54, %v11793_v1  ;;  %v12162_v1 = vld [vmem:[%s22539_s15 + $0x88] sm:$0xff] }
 0xa25   : > { %v11856_v46 = vmax.f32 %v11848_v56, 0.0  ;;  %v12161_v56 = vld [vmem:[%s22539_s15 + $0x80] sm:$0xff] }
 0xa26   : > { %v11855_v23 = vmax.f32 %v11847_v44, 0.0  ;;  %v15954_v20 = vpop.f32.mrb[80].mxu0  ;;  %v22309_v44 = vpop.permute.xlu0 %11963 }
 0xa27   : > { %v11850_v25 = vadd.f32 %v15954_v20, %v13682_v54  ;;  %v11803_v14 = vpop.f32.mrb[81].mxu0  ;;  %v12164_v20 = vld [vmem:[%s22539_s15 + $0x98] sm:$0xff]  ;;  %vm11966_vm13 = vcmp.eq.s32.totalorder %v22309_v44, 1  ;;  %v12638_v44 = vld [vmem:[%s22539_s15 + $0x1f0] sm:$0xff] }
 0xa28   : > { %v16363_v34 = vpack.c.bf16 %v11856_v46, %v11855_v23  ;;  %v11849_v45 = vadd.f32 %v13682_v54, %v11803_v14  ;;  %v16411_v46 = vpack.c.bf16 %v12162_v1, %v12161_v56  ;;  %v12163_v23 = vld [vmem:[%s22539_s15 + $0x90] sm:$0xff]  ;;  %v12451_v56 = vld [vmem:[%s22539_s15 + $0x178] sm:$0xff] }
 0xa29   : > { %v11858_v53 = vmax.f32 %v11850_v25, 0.0  ;;  %v16415_v14 = vpack.c.bf16 %v12164_v20, %v12163_v23  ;;  %v12541_v20 = vld [vmem:[%s22539_s15 + $0x190] sm:$0xff] }
 0xa2a   : > { %v11857_v17 = vmax.f32 %v11849_v45, 0.0  ;;  %v15957_v59 = vpop.f32.mrb[82].mxu0  ;;  %16364 = vmatprep.subr.bf16.mxu1 %v16363_v34  ;;  %v12165_v45 = vld [vmem:[%s22539_s15 + $0xa0] sm:$0xff] }
 0xa2b   : > { %v11852_v3 = vadd.f32 %v15957_v59, %v13682_v54  ;;  %v11813_v40 = vpop.f32.mrb[83].mxu0  ;;  %16366 = vmatpush3.bf16.msra.mxu1 %v16363_v34 }
 0xa2c   : > { %v16367_v51 = vpack.c.bf16 %v11858_v53, %v11857_v17  ;;  %v11851_v29 = vadd.f32 %v13682_v54, %v11813_v40  ;;  %v12166_v53 = vld [vmem:[%s22539_s15 + $0xa8] sm:$0xff]  ;;  %v12168_v40 = vld [vmem:[%s22539_s15 + $0xb8] sm:$0xff] }
 0xa2d   : > { %v11860_v19 = vmax.f32 %v11852_v3, 0.0  ;;  %v16419_v59 = vpack.c.bf16 %v12166_v53, %v12165_v45  ;;  %v12167_v3 = vld [vmem:[%s22539_s15 + $0xb0] sm:$0xff]  ;;  %v12543_v53 = vld [vmem:[%s22539_s15 + $0x1a0] sm:$0xff] }
 0xa2e   : > { %v11859_v39 = vmax.f32 %v11851_v29, 0.0  ;;  %v15960_v13 = vpop.f32.mrb[84].mxu0  ;;  %16368 = vmatprep.subr.bf16.mxu1 %v16367_v51  ;;  %v12256_v29 = vld [vmem:[%s22539_s15 + $0xc0] sm:$0xff] }
 0xa2f   : > { %v11854_v61 = vadd.f32 %v15960_v13, %v13682_v54  ;;  %v11823_v47 = vpop.f32.mrb[85].mxu0  ;;  %16370 = vmatpush3.bf16.msra.mxu1 %v16367_v51  ;;  %v16423_v51 = vpack.c.bf16 %v12168_v40, %v12167_v3  ;;  %v12545_v3 = vld [vmem:[%s22539_s15 + $0x1b0] sm:$0xff]  ;;  %v12546_v40 = vld [vmem:[%s22539_s15 + $0x1b8] sm:$0xff] }
 0xa30   : > { %v16371_v10 = vpack.c.bf16 %v11860_v19, %v11859_v39  ;;  %v11853_v43 = vadd.f32 %v13682_v54, %v11823_v47  ;;  %v11976_v54 = vld [vmem:[%s22539_s15 + $0x38] sm:$0xff]  ;;  %v12257_v19 = vld [vmem:[%s22539_s15 + $0xc8] sm:$0xff]  ;;  %v22342_v39 = vpop.permute.xlu1 %12155 }
 0xa31   : > { %v11862_v58 = vmax.f32 %v11854_v61, 0.0  ;;  %v16407_v33 = vpack.c.bf16 %v11976_v54, %v11975_v12  ;;  %v16427_v13 = vpack.c.bf16 %v12257_v19, %v12256_v29  ;;  %v12258_v61 = vld [vmem:[%s22539_s15 + $0xd0] sm:$0xff]  ;;  %v12259_v47 = vld [vmem:[%s22539_s15 + $0xd8] sm:$0xff]  ;;  %vm12158_vm2 = vcmp.eq.s32.totalorder %v22342_v39, 1  ;;  %v12632_v29 = vld [vmem:[%s22539_s15 + $0x1c0] sm:$0xff]  ;;  %v12835_v39 = vpop.permute.xlu0 %12834 }
 0xa32   : > { %v11861_v2 = vmax.f32 %v11853_v43, 0.0  ;;  %16372 = vmatprep.subr.bf16.mxu1 %v16371_v10  ;;  %v16431_v43 = vpack.c.bf16 %v12259_v47, %v12258_v61  ;;  %v12635_v61 = vld [vmem:[%s22539_s15 + $0x1d8] sm:$0xff] }
 0xa33   : > { %16374 = vmatpush3.bf16.msra.mxu1 %v16371_v10 }
 0xa34   : > { %v16375_v7 = vpack.c.bf16 %v11862_v58, %v11861_v2 }
 0xa36   : > { %16376 = vmatprep.subr.bf16.mxu1 %v16375_v7 }
 0xa37   : > { %16378 = vmatpush3.bf16.msra.mxu1 %v16375_v7  ;;  %v16435_v7 = vpack.c.bf16 %v12261_v42, %v12260_v37  ;;  %v12637_v37 = vld [vmem:[%s22539_s15 + $0x1e8] sm:$0xff] }
 0xa38   : > { %16380 = vmatprep.subr.bf16.mxu1 %v16379_v15 }
 0xa3a   : > { %15978 = vmatmul.mubr.msk.f32.vlgmr.msra.gmra.mrb[40].mxu1 %vm11865_vm5, %v11864_v27  ;;  %v12349_v27 = vld [vmem:[%s22539_s15 + $0x100] sm:$0xff] }
 0xa3b   : > { %16382 = vmatpush3.bf16.msra.mxu1 %v16379_v15  ;;  %v12262_v15 = vld [vmem:[%s22539_s15 + $0xf0] sm:$0xff] }
 0xa3c   : > { %16384 = vmatprep.subr.bf16.mxu1 %v16383_v36  ;;  %v16439_v48 = vpack.c.bf16 %v12263_v60, %v12262_v15  ;;  %v12727_v15 = vld [vmem:[%s22539_s15 + $0x200] sm:$0xff] }
 0xa3f   : > { %16386 = vmatpush3.bf16.msra.mxu1 %v16383_v36  ;;  %v12350_v36 = vld [vmem:[%s22539_s15 + $0x108] sm:$0xff] }
 0xa40   : > { %16388 = vmatprep.subr.bf16.mxu1 %v16387_v38  ;;  %v16443_v4 = vpack.c.bf16 %v12350_v36, %v12349_v27  ;;  %v12730_v27 = vld [vmem:[%s22539_s15 + $0x218] sm:$0xff] }
 0xa43   : > { %16390 = vmatpush3.bf16.msra.mxu1 %v16387_v38 }
 0xa44   : > { %16392 = vmatprep.subr.bf16.mxu1 %v16391_v30 }
 0xa47   : > { %16394 = vmatpush3.bf16.msra.mxu1 %v16391_v30 }
 0xa48   : > { %16396 = vmatprep.subr.bf16.mxu1 %v16395_v55 }
 0xb0d   : > { %v15979_v31 = vpop.f32.mrb[40].mxu1 }
 0xb0e   : > { %11949 = vst.msk [vmem:[#allocation6 + $0x10] sm:$0xff] %vm11865_vm5, %v15979_v31  ;;  %v11938_v28 = vpop.f32.mrb[41].mxu1  ;;  %v16451_v31 = vpack.c.bf16 %v12354_v11, %v12353_v52 }
 0xb0f   : > { %11948 = vst.msk [vmem:[#allocation6 + $0x8] sm:$0xff] %vm11865_vm5, %v11938_v28  ;;  %v12355_v28 = vld [vmem:[%s22539_s15 + $0x130] sm:$0xff] }
 0xb10   : > { %v16455_v57 = vpack.c.bf16 %v12356_v6, %v12355_v28 }
 0xb15   : > { %v12536_v47 = vld [vmem:[#allocation6 + $0x13] sm:$0xff] }
 0xb16   : > { %v11977_v5 = vld [vmem:[#allocation6 + $0x4] sm:$0xff]  ;;  %v22272_v32 = vld [vmem:[#allocation6 + $0xc] sm:$0xff]  ;;  %v12724_v11 = vld [vmem:[#allocation6 + $0x15] sm:$0xff] }
 0xb17   : > { %v11955_v24 = vld [vmem:[#allocation6 + $0x3] sm:$0xff]  ;;  %15996 = vmatprep.mubr.msk.f32.mxu1 %vm11865_vm5, %v11977_v5  ;;  %v12535_v21 = vld [vmem:[#allocation6 + $0xb] sm:$0xff] }
 0xb18   : > { %v11967_v9 = vsel %vm11965_vm10, %v11955_v24, 0.0  ;;  %15997 = vmatmul.mubr.msk.f32.vlgmr.msra.gmra.mrb[42].mxu1 %vm11865_vm5, %v22272_v32  ;;  %v22290_v18 = vsel %vm11965_vm10, %v12535_v21, 0.0  ;;  %v12723_v8 = vld [vmem:[#allocation6 + $0xd] sm:$0xff]  ;;  %v12149_v25 = vld [vmem:[#allocation6 + $0x5] sm:$0xff]  ;;  %v11968_v34 = vsel %vm11966_vm13, %v12535_v21, 0.0 }
 0xb19   : > { %16398 = vmatpush3.bf16.msra.mxu1 %v16395_v55  ;;  %16015 = vmatprep.mubr.msk.f32.mxu1 %vm11865_vm5, %v11967_v9  ;;  %v22295_v62 = vsel %vm12157_vm7, %v12723_v8, 0.0  ;;  %v12159_v17 = vsel %vm12157_vm7, %v12149_v25, 0.0  ;;  %v12252_v10 = vld [vmem:[#allocation6 + $0x7] sm:$0xff]  ;;  %v12160_v58 = vsel %vm12158_vm2, %v12723_v8, 0.0  ;;  %v12253_v38 = vld [vmem:[#allocation6 + $0xf] sm:$0xff]  ;;  %v12542_v25 = vld [vmem:[%s22539_s15 + $0x198] sm:$0xff] }
 0xb1a   : > { %16400 = vmatprep.subr.bf16.mxu1 %v16399_v16  ;;  %v12254_v2 = vsel %vm11965_vm10, %v12252_v10, 0.0  ;;  %v12255_v30 = vsel %vm11966_vm13, %v12253_v38, 0.0  ;;  %v12347_v55 = vld [vmem:[#allocation6 + $0x8] sm:$0xff]  ;;  %v12446_v24 = vld [vmem:[%s22539_s15 + $0x150] sm:$0xff]  ;;  %v12448_v8 = vld [vmem:[%s22539_s15 + $0x160] sm:$0xff]  ;;  %v16515_v38 = vpack.c.bf16 %v12732_v35, %v12731_v0 }
 0xb1b   : > { %v12445_v5 = vld [vmem:[%s22539_s15 + $0x148] sm:$0xff]  ;;  %v16463_v9 = vpack.c.bf16 %v12447_v49, %v12446_v24  ;;  %v12348_v21 = vld [vmem:[#allocation6 + $0x10] sm:$0xff]  ;;  %v12844_v24 = vpop.permute.xlu1 %12843 }
 0xb1c   : > { %v12440_v63 = vld [vmem:[#allocation6 + $0x9] sm:$0xff] }
 0xb1d   : > { %16402 = vmatpush3.bf16.msra.mxu1 %v16399_v16  ;;  %v16459_v16 = vpack.c.bf16 %v12445_v5, %v12444_v50  ;;  %v12442_v12 = vsel %vm12157_vm7, %v12440_v63, 0.0  ;;  %v12827_v5 = vlaneseq }
 0xb1e   : > { %16404 = vmatprep.subr.bf16.mxu1 %v16403_v22 }
 0xb1f   : > { %v12828_v49 = vand.u32 127, %v12827_v5  ;;  %v12848_v63 = vpop.permute.xlu1 %12847 }
 0xb21   : > { %16406 = vmatpush3.bf16.msra.mxu1 %v16403_v22  ;;  %v12449_v22 = vld [vmem:[%s22539_s15 + $0x168] sm:$0xff]  ;;  %vm12829_vm14 = vcmp.eq.s32.totalorder %v12828_v49, 1  ;;  %vm12875_vm3 = vcmp.le.s32.totalorder %v12828_v49, 2  ;;  %vm12874_vm15 = vcmp.eq.s32.totalorder %v12828_v49, 0  ;;  %vm12880_vm4 = vcmp.lt.s32.totalorder %v12828_v49, 67 }
 0xb22   : > { %16408 = vmatprep.subr.bf16.mxu1 %v16407_v33  ;;  %v16467_v54 = vpack.c.bf16 %v12449_v22, %v12448_v8 }
 0xb25   : > { %16410 = vmatpush3.bf16.msra.mxu1 %v16407_v33  ;;  %v12450_v33 = vld [vmem:[%s22539_s15 + $0x170] sm:$0xff] }
 0xb26   : > { %16412 = vmatprep.subr.bf16.mxu1 %v16411_v46  ;;  %v16471_v1 = vpack.c.bf16 %v12451_v56, %v12450_v33 }
 0xb28   : > { %16016 = vmatmul.mubr.msk.f32.vlgmr.msra.gmra.mrb[42].mxu1 %vm11865_vm5, %v11968_v34  ;;  %v16479_v34 = vpack.c.bf16 %v12542_v25, %v12541_v20 }
 0xb29   : > { %16414 = vmatpush3.bf16.msra.mxu1 %v16411_v46  ;;  %16034 = vmatprep.mubr.msk.f32.mxu1 %vm11865_vm5, %v12159_v17  ;;  %v12540_v46 = vld [vmem:[%s22539_s15 + $0x188] sm:$0xff] }
 0xb2a   : > { %16416 = vmatprep.subr.bf16.mxu1 %v16415_v14  ;;  %v16475_v23 = vpack.c.bf16 %v12540_v46, %v12539_v41  ;;  %v12544_v17 = vld [vmem:[%s22539_s15 + $0x1a8] sm:$0xff] }
 0xb2d   : > { %16418 = vmatpush3.bf16.msra.mxu1 %v16415_v14  ;;  %v12441_v14 = vld [vmem:[#allocation6 + $0x11] sm:$0xff] }
 0xb2e   : > { %16420 = vmatprep.subr.bf16.mxu1 %v16419_v59  ;;  %v12443_v45 = vsel %vm12158_vm2, %v12441_v14, 0.0 }
 0xb31   : > { %16422 = vmatpush3.bf16.msra.mxu1 %v16419_v59  ;;  %v16483_v59 = vpack.c.bf16 %v12544_v17, %v12543_v53 }
 0xb32   : > { %16424 = vmatprep.subr.bf16.mxu1 %v16423_v51 }
 0xb35   : > { %16426 = vmatpush3.bf16.msra.mxu1 %v16423_v51  ;;  %v16487_v51 = vpack.c.bf16 %v12546_v40, %v12545_v3 }
 0xb36   : > { %16428 = vmatprep.subr.bf16.mxu1 %v16427_v13 }
 0xb38   : > { %16035 = vmatmul.mubr.msk.f32.vlgmr.msra.gmra.mrb[42].mxu1 %vm11865_vm5, %v12160_v58  ;;  %v12636_v58 = vld [vmem:[%s22539_s15 + $0x1e0] sm:$0xff] }
 0xb39   : > { %16430 = vmatpush3.bf16.msra.mxu1 %v16427_v13  ;;  %16053 = vmatprep.mubr.msk.f32.mxu1 %vm11865_vm5, %v12254_v2  ;;  %v12634_v13 = vld [vmem:[%s22539_s15 + $0x1d0] sm:$0xff]  ;;  %v16499_v42 = vpack.c.bf16 %v12637_v37, %v12636_v58  ;;  %v12639_v2 = vld [vmem:[%s22539_s15 + $0x1f8] sm:$0xff] }
 0xb3a   : > { %16432 = vmatprep.subr.bf16.mxu1 %v16431_v43  ;;  %v16495_v10 = vpack.c.bf16 %v12635_v61, %v12634_v13 }
 0xb3d   : > { %16434 = vmatpush3.bf16.msra.mxu1 %v16431_v43  ;;  %v12538_v43 = vsel %vm11966_vm13, %v12536_v47, 0.0 }
 0xb3e   : > { %16436 = vmatprep.subr.bf16.mxu1 %v16435_v7 }
 0xb41   : > { %16438 = vmatpush3.bf16.msra.mxu1 %v16435_v7  ;;  %v16503_v7 = vpack.c.bf16 %v12639_v2, %v12638_v44 }
 0xb42   : > { %16440 = vmatprep.subr.bf16.mxu1 %v16439_v48 }
 0xb45   : > { %16442 = vmatpush3.bf16.msra.mxu1 %v16439_v48  ;;  %v12729_v48 = vld [vmem:[%s22539_s15 + $0x210] sm:$0xff] }
 0xb46   : > { %16444 = vmatprep.subr.bf16.mxu1 %v16443_v4  ;;  %v16511_v36 = vpack.c.bf16 %v12730_v27, %v12729_v48 }
 0xb48   : > { %16054 = vmatmul.mubr.msk.f32.vlgmr.msra.gmra.mrb[42].mxu1 %vm11865_vm5, %v12255_v30  ;;  %v12734_v30 = vld [vmem:[%s22539_s15 + $0x238] sm:$0xff] }
 0xb49   : > { %16446 = vmatpush3.bf16.msra.mxu1 %v16443_v4  ;;  %16072 = vmatprep.mubr.msk.f32.mxu1 %vm11865_vm5, %v12347_v55  ;;  %v12631_v4 = vld [vmem:[#allocation6 + $0x14] sm:$0xff]  ;;  %v13703_v55 = vld [vmem:[%s22540_s16] ss:$0 sm:$0xff] }
 0xb4a   : > { %16448 = vmatprep.subr.bf16.mxu1 %v16447_v26 }
 0xb4d   : > { %16450 = vmatpush3.bf16.msra.mxu1 %v16447_v26  ;;  %v12733_v26 = vld [vmem:[%s22539_s15 + $0x230] sm:$0xff] }
 0xb4e   : > { %16452 = vmatprep.subr.bf16.mxu1 %v16451_v31  ;;  %v16519_v52 = vpack.c.bf16 %v12734_v30, %v12733_v26 }
 0xb51   : > { %16454 = vmatpush3.bf16.msra.mxu1 %v16451_v31 }
 0xb52   : > { %16456 = vmatprep.subr.bf16.mxu1 %v16455_v57 }
 0xb55   : > { %16458 = vmatpush3.bf16.msra.mxu1 %v16455_v57 }
 0xb56   : > { %16460 = vmatprep.subr.bf16.mxu1 %v16459_v16 }
 0xb58   : > { %16073 = vmatmul.mubr.msk.f32.vlgmr.msra.gmra.mrb[42].mxu1 %vm11865_vm5, %v12348_v21 }
 0xb59   : > { %16462 = vmatpush3.bf16.msra.mxu1 %v16459_v16  ;;  %16091 = vmatprep.mubr.msk.f32.mxu1 %vm11865_vm5, %v12442_v12 }
 0xb5a   : > { %16464 = vmatprep.subr.bf16.mxu1 %v16463_v9 }
 0xb5d   : > { %16466 = vmatpush3.bf16.msra.mxu1 %v16463_v9  ;;  %v12840_v9 = vpop.permute.xlu0 %12839 }
 0xb5e   : > { %16468 = vmatprep.subr.bf16.mxu1 %v16467_v54 }
 0xb61   : > { %16470 = vmatpush3.bf16.msra.mxu1 %v16467_v54  ;;  %v12851_v54 = vsel %vm12829_vm14, %v12840_v9, %v12848_v63 }
 0xb62   : > { %16472 = vmatprep.subr.bf16.mxu1 %v16471_v1 }
 0xb65   : > { %16474 = vmatpush3.bf16.msra.mxu1 %v16471_v1  ;;  %v12850_v1 = vsel %vm12829_vm14, %v12835_v39, %v12844_v24 }
 0xb66   : > { %16476 = vmatprep.subr.bf16.mxu1 %v16475_v23 }
 0xb68   : > { %16092 = vmatmul.mubr.msk.f32.vlgmr.msra.gmra.mrb[42].mxu1 %vm11865_vm5, %v12443_v45 }
 0xb69   : > { %16478 = vmatpush3.bf16.msra.mxu1 %v16475_v23  ;;  %16110 = vmatprep.mubr.msk.f32.mxu1 %vm11865_vm5, %v22290_v18  ;;  %v12633_v18 = vld [vmem:[%s22539_s15 + $0x1c8] sm:$0xff] }
 0xb6a   : > { %16480 = vmatprep.subr.bf16.mxu1 %v16479_v34  ;;  %v16491_v19 = vpack.c.bf16 %v12633_v18, %v12632_v29 }
 0xb6d   : > { %16482 = vmatpush3.bf16.msra.mxu1 %v16479_v34 }
 0xb6e   : > { %16484 = vmatprep.subr.bf16.mxu1 %v16483_v59 }
 0xb71   : > { %16486 = vmatpush3.bf16.msra.mxu1 %v16483_v59 }
 0xb72   : > { %16488 = vmatprep.subr.bf16.mxu1 %v16487_v51 }
 0xb75   : > { %16490 = vmatpush3.bf16.msra.mxu1 %v16487_v51 }
 0xb76   : > { %16492 = vmatprep.subr.bf16.mxu1 %v16491_v19 }
 0xb78   : > { %16111 = vmatmul.mubr.msk.f32.vlgmr.msra.gmra.mrb[42].mxu1 %vm11865_vm5, %v12538_v43 }
 0xb79   : > { %16494 = vmatpush3.bf16.msra.mxu1 %v16491_v19  ;;  %16129 = vmatprep.mubr.msk.f32.mxu1 %vm11865_vm5, %v22272_v32  ;;  %v12728_v32 = vld [vmem:[%s22539_s15 + $0x208] sm:$0xff] }
 0xb7a   : > { %16496 = vmatprep.subr.bf16.mxu1 %v16495_v10  ;;  %v16507_v60 = vpack.c.bf16 %v12728_v32, %v12727_v15 }
 0xb7d   : > { %16498 = vmatpush3.bf16.msra.mxu1 %v16495_v10 }
 0xb7e   : > { %16500 = vmatprep.subr.bf16.mxu1 %v16499_v42 }
 0xb81   : > { %16502 = vmatpush3.bf16.msra.mxu1 %v16499_v42 }
 0xb82   : > { %16504 = vmatprep.subr.bf16.mxu1 %v16503_v7 }
 0xb85   : > { %16506 = vmatpush3.bf16.msra.mxu1 %v16503_v7 }
 0xb86   : > { %16508 = vmatprep.subr.bf16.mxu1 %v16507_v60 }
 0xb88   : > { %16130 = vmatmul.mubr.msk.f32.vlgmr.msra.gmra.mrb[42].mxu1 %vm11865_vm5, %v12631_v4 }
 0xb89   : > { %16510 = vmatpush3.bf16.msra.mxu1 %v16507_v60  ;;  %16148 = vmatprep.mubr.msk.f32.mxu1 %vm11865_vm5, %v22295_v62  ;;  %v12726_v62 = vsel %vm12158_vm2, %v12724_v11, 0.0 }
 0xb8a   : > { %16512 = vmatprep.subr.bf16.mxu1 %v16511_v36 }
 0xb8d   : > { %16514 = vmatpush3.bf16.msra.mxu1 %v16511_v36 }
 0xb8e   : > { %16516 = vmatprep.subr.bf16.mxu1 %v16515_v38 }
 0xb91   : > { %16518 = vmatpush3.bf16.msra.mxu1 %v16515_v38 }
 0xb92   : > { %16520 = vmatprep.subr.bf16.mxu1 %v16519_v52 }
 0xb95   : > { %16522 = vmatpush3.bf16.msra.mxu1 %v16519_v52 }
 0xb98   : > { %16149 = vmatmul.mubr.msk.f32.vlgmr.msra.gmra.mrb[42].mxu1 %vm11865_vm5, %v12726_v62 }
 0xc6b   : > { %v16150_v31 = vpop.f32.mrb[42].mxu1 }
 0xc6c   : > { %v12826_v28 = vadd.f32 %v16150_v31, %v13703_v55  ;;  %v12807_v6 = vpop.f32.mrb[43].mxu1 }
 0xc6d   : > { %v12825_v57 = vadd.f32 %v13703_v55, %v12807_v6 }
 0xc6e   : > { %17213 = vtanh.f32 %v12826_v28  ;;  %v13705_v50 = vmul.f32 -1.442695, %v12826_v28 }
 0xc6f   : > { %17215 = vtanh.f32 %v12825_v57  ;;  %v13704_v16 = vmul.f32 -1.442695, %v12825_v57 }
 0xc70   : > { %17217 = vpow2.f32 %v13705_v50 }
 0xc71   : > { %17219 = vpow2.f32 %v13704_v16 }
 0xc78   : > { %v17214_v21 = vpop.eup %17213 }
 0xc79   : > { %v17216_v8 = vpop.eup %17215  ;;  %v12855_v22 = vmul.f32 1.5, %v17214_v21 }
 0xc7a   : > { %v17218_v12 = vpop.eup %17217  ;;  %v12854_v33 = vmul.f32 1.5, %v17216_v8 }
 0xc7b   : > { %v17220_v56 = vpop.eup %17219  ;;  %v12857_v41 = vadd.f32 %v12855_v22, %v12851_v54  ;;  %v12869_v46 = vadd.f32 1.0, %v17218_v12 }
 0xc7c   : > { %v12856_v23 = vadd.f32 %v12854_v33, %v12850_v1  ;;  %v12868_v20 = vadd.f32 1.0, %v17220_v56 }
 0xc7d   : > { %17221 = vrcp.f32 %v12869_v46  ;;  %v12859_v25 = vmax.f32 %v12857_v41, 0.0 }
 0xc7e   : > { %17223 = vrcp.f32 %v12868_v20  ;;  %v12858_v14 = vmax.f32 %v12856_v23, 0.0 }
 0xc7f   : > { %v12861_v34 = vmin.f32 %v12859_v25, 15.0 }
 0xc80   : > { %v12860_v45 = vmin.f32 %v12858_v14, 15.0 }
 0xc81   : > { %v12877_v17 = vsel %vm12875_vm3, %v12861_v34, %v12826_v28 }
 0xc82   : > { %v12876_v40 = vsel %vm12875_vm3, %v12860_v45, %v12825_v57 }
 0xc87   : > { %v17222_v53 = vpop.eup %17221 }
 0xc88   : > { %v17224_v59 = vpop.eup %17223  ;;  %v12879_v3 = vsel %vm12874_vm15, %v17222_v53, %v12877_v17 }
 0xc89   : > { %v12878_v51 = vsel %vm12874_vm15, %v17224_v59, %v12876_v40  ;;  %v12882_v18 = vsel %vm12880_vm4, %v12879_v3, 0.0 }
 0xc8a   : > { %v12881_v29 = vsel %vm12880_vm4, %v12878_v51, 0.0  ;;  %12884 = vst [vmem:[%s550_s23 + $0x8] sm:$0xff] %v12882_v18 }
 0xc8b   : > { %12883 = vst [vmem:[%s550_s23] sm:$0xff] %v12881_v29 }
 0xc8c PF: > { %s27_s24 = sadd.s32 1, %s17239_s24  }
 0xc8d   : > { %p24_p5 = scmp.ge.s32.totalorder %s27_s24, 4  }
 0xc8f   :  { %26 = sbr.rel (!%p24_p5) target bundleno = 3 (0x3), region = 118 }

</bundles_post_ra>
